<compile_context>
chip_gen: v7x
topology: tpu7x:2x2x1
jax: 0.10.0
libtpu: 0.0.40
codegen_flags: <defaults>
</compile_context>

<pallas_src>
import jax
import jax.numpy as jnp
import numpy as np
from jax import lax
from jax.experimental import pallas as pl
from jax.experimental.pallas import tpu as pltpu

INPUT_SIZE = 73
HIDDEN_SIZE = 146
OUTPUT_SIZE = 1

# Lane-aligned padded sizes (zero padding is exact: padded lanes of h and c stay
# identically zero through the LSTM math because padded weight/bias columns are 0).
IP = 128            # input features padded to one lane tile
HP = 256            # hidden padded to 2 lane tiles -> lane-aligned gate slices
GP = 4 * HP         # fused gate width = 1024 = 8 x 128

# Kernel gate layout (i, f, o, g): the three sigmoid gates are one contiguous slice,
# tanh is the last slice. PyTorch per-gate order is (i, f, g, o).
_GATE_PERM = (0, 1, 3, 2)   # kernel column-block -> PyTorch gate index


def _lstm_score_kernel(x_ref, wih_ref, b_ref, whh_hbm, wlin_hbm, blin_ref,
                       out_ref, xg_sc, hseq_sc, whh_sc, wlin_sc, dma_sems):
    # x_ref:    (T, IP)   VMEM  zero-padded seasons
    # wih_ref:  (IP, GP)  VMEM  fused input->gate weights (i,f,o,g)
    # b_ref:    (1, GP)   VMEM  fused gate bias (b_ih + b_hh folded)
    # whh_hbm:  (HP, GP)  ANY   fused hidden->gate weights (manual DMA)
    # wlin_hbm: (HP, 1)   ANY   output Linear weight (manual DMA)
    # blin_ref: (1, 1)    VMEM  output Linear bias
    # out_ref:  (T, 1)    VMEM  relu(linear(h_t)) per step
    # xg_sc:    (T, GP)   VMEM scratch  precomputed input projection (+bias)
    # hseq_sc:  (T, HP)   VMEM scratch  per-step hidden states
    # whh_sc:   (HP, GP)  VMEM scratch  W_hh landing buffer
    # wlin_sc:  (HP, 1)   VMEM scratch  W_lin landing buffer
    # dma_sems: (2,)      DMA semaphores
    T = x_ref.shape[0]

    # Kick off the large weight fetches; overlap them with the input projection
    # (with grid=() there is no auto-pipelining to hide them otherwise).
    whh_cp = pltpu.make_async_copy(whh_hbm, whh_sc, dma_sems.at[0])
    wlin_cp = pltpu.make_async_copy(wlin_hbm, wlin_sc, dma_sems.at[1])
    whh_cp.start()
    wlin_cp.start()

    # Hoisted input projection for ALL timesteps: one M=T matmul + fused bias,
    # instead of per-step matmuls inside the serial recurrence.
    xg_sc[...] = (jnp.dot(x_ref[...], wih_ref[...],
                          preferred_element_type=jnp.float32)
                  + b_ref[...])

    whh_cp.wait()   # W_hh needed from here on

    # TODO(synk): on v5e/v6e, stage W_hh in the MXU once via pltpu.matmul_push_rhs
    # and drive each step with matmul_acc_lhs/matmul_pop instead of 8 jnp.dot's.
    def step(t, carry):
        h_prev, c_prev = carry                              # (1, HP) each
        gates = (xg_sc[pl.ds(t, 1), :]
                 + jnp.dot(h_prev, whh_sc[...],
                           preferred_element_type=jnp.float32))   # (1, GP)

        sig = jax.nn.sigmoid(gates[:, :3 * HP])             # i, f, o in one pass
        i_g = sig[:, 0 * HP:1 * HP]
        f_g = sig[:, 1 * HP:2 * HP]
        o_g = sig[:, 2 * HP:3 * HP]
        g_g = jnp.tanh(gates[:, 3 * HP:])

        c_new = f_g * c_prev + i_g * g_g
        h_new = o_g * jnp.tanh(c_new)
        hseq_sc[pl.ds(t, 1), :] = h_new                     # stash for hoisted Linear
        return (h_new, c_new)

    h0 = jnp.zeros((1, HP), jnp.float32)
    c0 = jnp.zeros((1, HP), jnp.float32)
    lax.fori_loop(0, T, step, (h0, c0), unroll=True)        # T=8 fixed -> unroll

    wlin_cp.wait()
    # Hoisted output Linear + ReLU for all timesteps at once.
    pred = (jnp.dot(hseq_sc[...], wlin_sc[...],
                    preferred_element_type=jnp.float32)
            + blin_ref[...])                                # (T, 1)
    out_ref[...] = jnp.maximum(pred, 0.0)


def fuse_and_pad_params(w_ih, w_hh, b, w_lin, b_lin, weights_dtype=jnp.float32):
    """One-time init: per-gate params -> fused, lane-padded matrices.

    Call this ONCE at model setup (not per forward call) and keep the results.
    weights_dtype=jnp.bfloat16 halves the weight DMA (gate math stays f32 via
    preferred_element_type), at a small accuracy cost.
    """
    def pad_last(m, width):
        return jnp.pad(m, [(0, 0)] * (m.ndim - 1) + [(0, width - m.shape[-1])])

    # (4, I, H) -> (I, GP) -> (IP, GP), gate blocks in (i, f, o, g) order.
    wih_f = jnp.concatenate([pad_last(w_ih[g], HP) for g in _GATE_PERM], axis=1)
    wih_f = jnp.pad(wih_f, ((0, IP - INPUT_SIZE), (0, 0))).astype(weights_dtype)
    # (4, H, H) -> (H, GP) -> (HP, GP)
    whh_f = jnp.concatenate([pad_last(w_hh[g], HP) for g in _GATE_PERM], axis=1)
    whh_f = jnp.pad(whh_f, ((0, HP - HIDDEN_SIZE), (0, 0))).astype(weights_dtype)
    # (4, 1, H) -> (1, GP); keep bias in f32 (added post-dot).
    b_f = jnp.concatenate([pad_last(b[g], HP) for g in _GATE_PERM],
                          axis=1).astype(jnp.float32)
    # (H, 1) -> (HP, 1)
    wlin_p = jnp.pad(w_lin, ((0, HP - HIDDEN_SIZE), (0, 0))).astype(weights_dtype)
    blin_p = b_lin.astype(jnp.float32)
    return tuple(jax.device_put(a) for a in (wih_f, whh_f, b_f, wlin_p, blin_p))


@jax.jit
def lstm_score_pallas(seasons, wih_f, whh_f, b_f, wlin_p, blin_p):
    """Per-step relu(linear(h_t)) for the whole sequence, shape (T, 1)."""
    T = seasons.shape[0]
    x_p = jnp.pad(seasons.astype(jnp.float32), ((0, 0), (0, IP - INPUT_SIZE)))

    vmem = pl.BlockSpec(memory_space=pltpu.MemorySpace.VMEM)
    anyspace = pl.BlockSpec(memory_space=pl.ANY)
    return pl.pallas_call(
        _lstm_score_kernel,
        out_shape=jax.ShapeDtypeStruct((T, OUTPUT_SIZE), jnp.float32),
        in_specs=[vmem, vmem, vmem, anyspace, anyspace, vmem],
        out_specs=vmem,
        scratch_shapes=[
            pltpu.VMEM((T, GP), jnp.float32),          # xg_sc
            pltpu.VMEM((T, HP), jnp.float32),          # hseq_sc
            pltpu.VMEM((HP, GP), whh_f.dtype),         # whh landing buffer
            pltpu.VMEM((HP, OUTPUT_SIZE), wlin_p.dtype),  # wlin landing buffer
            pltpu.SemaphoreType.DMA((2,)),
        ],
    )(x_p, wih_f, b_f, whh_f, wlin_p, blin_p)


@jax.jit
def model_forward_dense(seasons, targets, fused_params):
    """Fixed-shape, sync-free forward: (preds (T,), mask (T,), targets (T,))."""
    preds = lstm_score_pallas(seasons, *fused_params)[:, 0]   # (T,)
    mask = jnp.all(seasons > -1, axis=1)                      # (T,) bool
    return preds, mask, jnp.asarray(targets, jnp.float32)


def model_forward(seasons, targets, fused_params):
    """Mirrors Model.forward: (predictions[mask].squeeze(1), targets[mask]).

    The data-dependent boolean gather is the one unavoidable dynamic-shape /
    device-sync point; it runs once here, outside the jitted pipeline. Prefer
    model_forward_dense + jnp.where in downstream losses to avoid it entirely.
    """
    preds, mask, tgt = model_forward_dense(seasons, targets, fused_params)
    return preds[mask], tgt[mask]        # (M,), (M,)


def _reference(seasons, w_ih, w_hh, b, w_lin, b_lin):
    """Pure-JAX reference of the per-step LSTM + Linear + ReLU (no masking)."""
    h = jnp.zeros((1, HIDDEN_SIZE), jnp.float32)
    c = jnp.zeros((1, HIDDEN_SIZE), jnp.float32)
    outs = []
    for t in range(seasons.shape[0]):
        x = seasons[t:t + 1]
        gates = [x @ w_ih[g] + h @ w_hh[g] + b[g] for g in range(4)]  # i,f,g,o
        i = jax.nn.sigmoid(gates[0])
        f = jax.nn.sigmoid(gates[1])
        g_ = jnp.tanh(gates[2])
        o = jax.nn.sigmoid(gates[3])
        c = f * c + i * g_
        h = o * jnp.tanh(c)
        outs.append(jnp.maximum(h @ w_lin + b_lin, 0.0))
    return jnp.concatenate(outs, axis=0)              # (T, 1)


if __name__ == "__main__":
    T = 8  # number of seasons (sequence length of the recurrent loop)

    key = jax.random.PRNGKey(0)
    ks = jax.random.split(key, 8)
    kscale = 1.0 / np.sqrt(HIDDEN_SIZE)

    # Deterministic synthetic parameters (PyTorch-style uniform(-1/sqrt(H), 1/sqrt(H))).
    w_ih = jax.random.uniform(ks[0], (4, INPUT_SIZE, HIDDEN_SIZE), jnp.float32, -kscale, kscale)
    w_hh = jax.random.uniform(ks[1], (4, HIDDEN_SIZE, HIDDEN_SIZE), jnp.float32, -kscale, kscale)
    bias = jax.random.uniform(ks[2], (4, 1, HIDDEN_SIZE), jnp.float32, -kscale, kscale)
    w_lin = jax.random.uniform(ks[3], (HIDDEN_SIZE, OUTPUT_SIZE), jnp.float32, -kscale, kscale)
    b_lin = jax.random.uniform(ks[4], (1, OUTPUT_SIZE), jnp.float32, -kscale, kscale)
    per_gate_params = (w_ih, w_hh, bias, w_lin, b_lin)

    # One-time weight fusion/padding at "init" (NOT in the per-call path).
    fused_params = fuse_and_pad_params(*per_gate_params)   # f32: exact vs reference
    jax.block_until_ready(fused_params)

    # Inputs: T seasons of 73 features; make one season invalid (values <= -1)
    # so the mask path is exercised.
    seasons = jax.random.uniform(ks[5], (T, INPUT_SIZE), jnp.float32, 0.0, 1.0)
    seasons = seasons.at[3, :].set(-2.0)
    targets = jax.random.uniform(ks[6], (T,), jnp.float32, 0.0, 10.0)

    preds, tgt = model_forward(seasons, targets, fused_params)
    jax.block_until_ready(preds)
    jax.block_until_ready(tgt)

    # Correctness check against pure-JAX reference.
    ref_all = _reference(seasons, *per_gate_params)        # (T, 1)
    mask = np.asarray(jnp.all(seasons > -1, axis=1))
    ref_masked = np.asarray(ref_all)[mask][:, 0]           # (M,)
    np.testing.assert_allclose(np.asarray(preds), ref_masked, rtol=1e-5, atol=1e-5)
    assert preds.shape == (int(mask.sum()),)
    assert tgt.shape == (int(mask.sum()),)

    print("KERNEL_OK")
</pallas_src>

<mosaic_0001>
module attributes {stable_mosaic.version = 11 : i64} {
  func.func @_lstm_score_kernel(%arg0: memref<8x128xf32, #tpu.memory_space<vmem>>, %arg1: memref<128x1024xf32, #tpu.memory_space<vmem>>, %arg2: memref<1x1024xf32, #tpu.memory_space<vmem>>, %arg3: memref<256x1024xf32, #tpu.memory_space<any>>, %arg4: memref<256x1xf32, #tpu.memory_space<any>>, %arg5: memref<1x1xf32, #tpu.memory_space<vmem>>, %arg6: memref<8x1xf32, #tpu.memory_space<vmem>>, %arg7: memref<8x1024xf32, #tpu.memory_space<vmem>>, %arg8: memref<8x256xf32, #tpu.memory_space<vmem>>, %arg9: memref<256x1024xf32, #tpu.memory_space<vmem>>, %arg10: memref<256x1xf32, #tpu.memory_space<vmem>>, %arg11: memref<2x!tpu.dma_semaphore, #tpu.memory_space<semaphore_mem>>) attributes {dimension_semantics = [], scalar_prefetch = 0 : i64, scratch_operands = 5 : i64, tpu.core_type = #tpu.core_type<tc>} {
    %c0_i32 = arith.constant 0 : i32
    %0 = tpu.memref_slice %arg11[%c0_i32] : memref<2x!tpu.dma_semaphore, #tpu.memory_space<semaphore_mem>> -> memref<1x!tpu.dma_semaphore, #tpu.memory_space<semaphore_mem>>
    %1 = tpu.memref_squeeze %0 : memref<1x!tpu.dma_semaphore, #tpu.memory_space<semaphore_mem>> -> memref<!tpu.dma_semaphore, #tpu.memory_space<semaphore_mem>>
    tpu.enqueue_dma source(%arg3 : memref<256x1024xf32, #tpu.memory_space<any>>) target(%arg9 : memref<256x1024xf32, #tpu.memory_space<vmem>>) target_semaphore(%1 : memref<!tpu.dma_semaphore, #tpu.memory_space<semaphore_mem>>)
    %c1_i32 = arith.constant 1 : i32
    %2 = tpu.memref_slice %arg11[%c1_i32] : memref<2x!tpu.dma_semaphore, #tpu.memory_space<semaphore_mem>> -> memref<1x!tpu.dma_semaphore, #tpu.memory_space<semaphore_mem>>
    %3 = tpu.memref_squeeze %2 : memref<1x!tpu.dma_semaphore, #tpu.memory_space<semaphore_mem>> -> memref<!tpu.dma_semaphore, #tpu.memory_space<semaphore_mem>>
    tpu.enqueue_dma source(%arg4 : memref<256x1xf32, #tpu.memory_space<any>>) target(%arg10 : memref<256x1xf32, #tpu.memory_space<vmem>>) target_semaphore(%3 : memref<!tpu.dma_semaphore, #tpu.memory_space<semaphore_mem>>)
    %c0 = arith.constant 0 : index
    %c0_0 = arith.constant 0 : index
    %4 = vector.load %arg0[%c0, %c0_0] : memref<8x128xf32, #tpu.memory_space<vmem>>, vector<8x128xf32>
    %c0_1 = arith.constant 0 : index
    %c0_2 = arith.constant 0 : index
    %5 = vector.load %arg1[%c0_1, %c0_2] : memref<128x1024xf32, #tpu.memory_space<vmem>>, vector<128x1024xf32>
    %cst = arith.constant dense<0.000000e+00> : vector<8x1024xf32>
    %6 = tpu.matmul %4, %5, %cst {dimension_numbers = #tpu.dot_dimension_numbers<[1], [0], [0], [1], [0, 0, 1, 1], [], []>} : vector<8x128xf32>, vector<128x1024xf32>, vector<8x1024xf32> -> vector<8x1024xf32>
    %c0_3 = arith.constant 0 : index
    %c0_4 = arith.constant 0 : index
    %7 = vector.load %arg2[%c0_3, %c0_4] : memref<1x1024xf32, #tpu.memory_space<vmem>>, vector<1x1024xf32>
    %8 = vector.broadcast %7 : vector<1x1024xf32> to vector<8x1024xf32>
    %9 = arith.addf %6, %8 : vector<8x1024xf32>
    %c0_5 = arith.constant 0 : index
    %c0_6 = arith.constant 0 : index
    %10 = vector.load %arg7[%c0_5, %c0_6] : memref<8x1024xf32, #tpu.memory_space<vmem>>, vector<8x1024xf32>
    tpu.vector_store %arg7[%c0_5, %c0_6], %9 {strides = array<i32>} : memref<8x1024xf32, #tpu.memory_space<vmem>>, vector<8x1024xf32>,
    %c0_i32_7 = arith.constant 0 : i32
    %11 = tpu.memref_slice %arg11[%c0_i32_7] : memref<2x!tpu.dma_semaphore, #tpu.memory_space<semaphore_mem>> -> memref<1x!tpu.dma_semaphore, #tpu.memory_space<semaphore_mem>>
    %12 = tpu.memref_squeeze %11 : memref<1x!tpu.dma_semaphore, #tpu.memory_space<semaphore_mem>> -> memref<!tpu.dma_semaphore, #tpu.memory_space<semaphore_mem>>
    tpu.wait_dma2 semaphore(%12 : memref<!tpu.dma_semaphore, #tpu.memory_space<semaphore_mem>>) src(%arg3 : memref<256x1024xf32, #tpu.memory_space<any>>) dst(%arg9 : memref<256x1024xf32, #tpu.memory_space<vmem>>)
    %cst_8 = arith.constant 0.000000e+00 : f32
    %13 = vector.broadcast %cst_8 : f32 to vector<1x256xf32>
    %cst_9 = arith.constant 0.000000e+00 : f32
    %14 = vector.broadcast %cst_9 : f32 to vector<1x256xf32>
    %c0_i32_10 = arith.constant 0 : i32
    %15 = arith.index_cast %c0_i32_10 : i32 to index
    %c0_11 = arith.constant 0 : index
    %16 = vector.load %arg7[%15, %c0_11] : memref<8x1024xf32, #tpu.memory_space<vmem>>, vector<1x1024xf32>
    %c0_12 = arith.constant 0 : index
    %c0_13 = arith.constant 0 : index
    %17 = vector.load %arg9[%c0_12, %c0_13] : memref<256x1024xf32, #tpu.memory_space<vmem>>, vector<256x1024xf32>
    %cst_14 = arith.constant dense<0.000000e+00> : vector<1x1024xf32>
    %18 = tpu.matmul %13, %17, %cst_14 {dimension_numbers = #tpu.dot_dimension_numbers<[1], [0], [0], [1], [0, 0, 1, 1], [], []>} : vector<1x256xf32>, vector<256x1024xf32>, vector<1x1024xf32> -> vector<1x1024xf32>
    %19 = arith.addf %16, %18 : vector<1x1024xf32>
    %20 = vector.extract_strided_slice %19 {offsets = [0, 0], sizes = [1, 768], strides = [1, 1]} : vector<1x1024xf32> to vector<1x768xf32>
    %21 = arith.negf %20 : vector<1x768xf32>
    %22 = math.exp %21 : vector<1x768xf32>
    %cst_15 = arith.constant 1.000000e+00 : f32
    %23 = vector.broadcast %cst_15 : f32 to vector<1x768xf32>
    %24 = arith.addf %23, %22 : vector<1x768xf32>
    %25 = arith.divf %23, %24 : vector<1x768xf32>
    %26 = vector.extract_strided_slice %25 {offsets = [0, 0], sizes = [1, 256], strides = [1, 1]} : vector<1x768xf32> to vector<1x256xf32>
    %27 = vector.extract_strided_slice %25 {offsets = [0, 256], sizes = [1, 256], strides = [1, 1]} : vector<1x768xf32> to vector<1x256xf32>
    %28 = vector.extract_strided_slice %25 {offsets = [0, 512], sizes = [1, 256], strides = [1, 1]} : vector<1x768xf32> to vector<1x256xf32>
    %29 = vector.extract_strided_slice %19 {offsets = [0, 768], sizes = [1, 256], strides = [1, 1]} : vector<1x1024xf32> to vector<1x256xf32>
    %30 = math.tanh %29 : vector<1x256xf32>
    %31 = arith.mulf %27, %14 : vector<1x256xf32>
    %32 = arith.mulf %26, %30 : vector<1x256xf32>
    %33 = arith.addf %31, %32 : vector<1x256xf32>
    %34 = math.tanh %33 : vector<1x256xf32>
    %35 = arith.mulf %28, %34 : vector<1x256xf32>
    %36 = arith.index_cast %c0_i32_10 : i32 to index
    %c0_16 = arith.constant 0 : index
    %37 = vector.load %arg8[%36, %c0_16] : memref<8x256xf32, #tpu.memory_space<vmem>>, vector<1x256xf32>
    tpu.vector_store %arg8[%36, %c0_16], %35 {strides = array<i32>} : memref<8x256xf32, #tpu.memory_space<vmem>>, vector<1x256xf32>,
    %c1_i32_17 = arith.constant 1 : i32
    %38 = arith.index_cast %c1_i32_17 : i32 to index
    %c0_18 = arith.constant 0 : index
    %39 = vector.load %arg7[%38, %c0_18] : memref<8x1024xf32, #tpu.memory_space<vmem>>, vector<1x1024xf32>
    %c0_19 = arith.constant 0 : index
    %c0_20 = arith.constant 0 : index
    %40 = vector.load %arg9[%c0_19, %c0_20] : memref<256x1024xf32, #tpu.memory_space<vmem>>, vector<256x1024xf32>
    %cst_21 = arith.constant dense<0.000000e+00> : vector<1x1024xf32>
    %41 = tpu.matmul %35, %40, %cst_21 {dimension_numbers = #tpu.dot_dimension_numbers<[1], [0], [0], [1], [0, 0, 1, 1], [], []>} : vector<1x256xf32>, vector<256x1024xf32>, vector<1x1024xf32> -> vector<1x1024xf32>
    %42 = arith.addf %39, %41 : vector<1x1024xf32>
    %43 = vector.extract_strided_slice %42 {offsets = [0, 0], sizes = [1, 768], strides = [1, 1]} : vector<1x1024xf32> to vector<1x768xf32>
    %44 = arith.negf %43 : vector<1x768xf32>
    %45 = math.exp %44 : vector<1x768xf32>
    %cst_22 = arith.constant 1.000000e+00 : f32
    %46 = vector.broadcast %cst_22 : f32 to vector<1x768xf32>
    %47 = arith.addf %46, %45 : vector<1x768xf32>
    %48 = arith.divf %46, %47 : vector<1x768xf32>
    %49 = vector.extract_strided_slice %48 {offsets = [0, 0], sizes = [1, 256], strides = [1, 1]} : vector<1x768xf32> to vector<1x256xf32>
    %50 = vector.extract_strided_slice %48 {offsets = [0, 256], sizes = [1, 256], strides = [1, 1]} : vector<1x768xf32> to vector<1x256xf32>
    %51 = vector.extract_strided_slice %48 {offsets = [0, 512], sizes = [1, 256], strides = [1, 1]} : vector<1x768xf32> to vector<1x256xf32>
    %52 = vector.extract_strided_slice %42 {offsets = [0, 768], sizes = [1, 256], strides = [1, 1]} : vector<1x1024xf32> to vector<1x256xf32>
    %53 = math.tanh %52 : vector<1x256xf32>
    %54 = arith.mulf %50, %33 : vector<1x256xf32>
    %55 = arith.mulf %49, %53 : vector<1x256xf32>
    %56 = arith.addf %54, %55 : vector<1x256xf32>
    %57 = math.tanh %56 : vector<1x256xf32>
    %58 = arith.mulf %51, %57 : vector<1x256xf32>
    %59 = arith.index_cast %c1_i32_17 : i32 to index
    %c0_23 = arith.constant 0 : index
    %60 = vector.load %arg8[%59, %c0_23] : memref<8x256xf32, #tpu.memory_space<vmem>>, vector<1x256xf32>
    tpu.vector_store %arg8[%59, %c0_23], %58 {strides = array<i32>} : memref<8x256xf32, #tpu.memory_space<vmem>>, vector<1x256xf32>,
    %c2_i32 = arith.constant 2 : i32
    %61 = arith.index_cast %c2_i32 : i32 to index
    %c0_24 = arith.constant 0 : index
    %62 = vector.load %arg7[%61, %c0_24] : memref<8x1024xf32, #tpu.memory_space<vmem>>, vector<1x1024xf32>
    %c0_25 = arith.constant 0 : index
    %c0_26 = arith.constant 0 : index
    %63 = vector.load %arg9[%c0_25, %c0_26] : memref<256x1024xf32, #tpu.memory_space<vmem>>, vector<256x1024xf32>
    %cst_27 = arith.constant dense<0.000000e+00> : vector<1x1024xf32>
    %64 = tpu.matmul %58, %63, %cst_27 {dimension_numbers = #tpu.dot_dimension_numbers<[1], [0], [0], [1], [0, 0, 1, 1], [], []>} : vector<1x256xf32>, vector<256x1024xf32>, vector<1x1024xf32> -> vector<1x1024xf32>
    %65 = arith.addf %62, %64 : vector<1x1024xf32>
    %66 = vector.extract_strided_slice %65 {offsets = [0, 0], sizes = [1, 768], strides = [1, 1]} : vector<1x1024xf32> to vector<1x768xf32>
    %67 = arith.negf %66 : vector<1x768xf32>
    %68 = math.exp %67 : vector<1x768xf32>
    %cst_28 = arith.constant 1.000000e+00 : f32
    %69 = vector.broadcast %cst_28 : f32 to vector<1x768xf32>
    %70 = arith.addf %69, %68 : vector<1x768xf32>
    %71 = arith.divf %69, %70 : vector<1x768xf32>
    %72 = vector.extract_strided_slice %71 {offsets = [0, 0], sizes = [1, 256], strides = [1, 1]} : vector<1x768xf32> to vector<1x256xf32>
    %73 = vector.extract_strided_slice %71 {offsets = [0, 256], sizes = [1, 256], strides = [1, 1]} : vector<1x768xf32> to vector<1x256xf32>
    %74 = vector.extract_strided_slice %71 {offsets = [0, 512], sizes = [1, 256], strides = [1, 1]} : vector<1x768xf32> to vector<1x256xf32>
    %75 = vector.extract_strided_slice %65 {offsets = [0, 768], sizes = [1, 256], strides = [1, 1]} : vector<1x1024xf32> to vector<1x256xf32>
    %76 = math.tanh %75 : vector<1x256xf32>
    %77 = arith.mulf %73, %56 : vector<1x256xf32>
    %78 = arith.mulf %72, %76 : vector<1x256xf32>
    %79 = arith.addf %77, %78 : vector<1x256xf32>
    %80 = math.tanh %79 : vector<1x256xf32>
    %81 = arith.mulf %74, %80 : vector<1x256xf32>
    %82 = arith.index_cast %c2_i32 : i32 to index
    %c0_29 = arith.constant 0 : index
    %83 = vector.load %arg8[%82, %c0_29] : memref<8x256xf32, #tpu.memory_space<vmem>>, vector<1x256xf32>
    tpu.vector_store %arg8[%82, %c0_29], %81 {strides = array<i32>} : memref<8x256xf32, #tpu.memory_space<vmem>>, vector<1x256xf32>,
    %c3_i32 = arith.constant 3 : i32
    %84 = arith.index_cast %c3_i32 : i32 to index
    %c0_30 = arith.constant 0 : index
    %85 = vector.load %arg7[%84, %c0_30] : memref<8x1024xf32, #tpu.memory_space<vmem>>, vector<1x1024xf32>
    %c0_31 = arith.constant 0 : index
    %c0_32 = arith.constant 0 : index
    %86 = vector.load %arg9[%c0_31, %c0_32] : memref<256x1024xf32, #tpu.memory_space<vmem>>, vector<256x1024xf32>
    %cst_33 = arith.constant dense<0.000000e+00> : vector<1x1024xf32>
    %87 = tpu.matmul %81, %86, %cst_33 {dimension_numbers = #tpu.dot_dimension_numbers<[1], [0], [0], [1], [0, 0, 1, 1], [], []>} : vector<1x256xf32>, vector<256x1024xf32>, vector<1x1024xf32> -> vector<1x1024xf32>
    %88 = arith.addf %85, %87 : vector<1x1024xf32>
    %89 = vector.extract_strided_slice %88 {offsets = [0, 0], sizes = [1, 768], strides = [1, 1]} : vector<1x1024xf32> to vector<1x768xf32>
    %90 = arith.negf %89 : vector<1x768xf32>
    %91 = math.exp %90 : vector<1x768xf32>
    %cst_34 = arith.constant 1.000000e+00 : f32
    %92 = vector.broadcast %cst_34 : f32 to vector<1x768xf32>
    %93 = arith.addf %92, %91 : vector<1x768xf32>
    %94 = arith.divf %92, %93 : vector<1x768xf32>
    %95 = vector.extract_strided_slice %94 {offsets = [0, 0], sizes = [1, 256], strides = [1, 1]} : vector<1x768xf32> to vector<1x256xf32>
    %96 = vector.extract_strided_slice %94 {offsets = [0, 256], sizes = [1, 256], strides = [1, 1]} : vector<1x768xf32> to vector<1x256xf32>
    %97 = vector.extract_strided_slice %94 {offsets = [0, 512], sizes = [1, 256], strides = [1, 1]} : vector<1x768xf32> to vector<1x256xf32>
    %98 = vector.extract_strided_slice %88 {offsets = [0, 768], sizes = [1, 256], strides = [1, 1]} : vector<1x1024xf32> to vector<1x256xf32>
    %99 = math.tanh %98 : vector<1x256xf32>
    %100 = arith.mulf %96, %79 : vector<1x256xf32>
    %101 = arith.mulf %95, %99 : vector<1x256xf32>
    %102 = arith.addf %100, %101 : vector<1x256xf32>
    %103 = math.tanh %102 : vector<1x256xf32>
    %104 = arith.mulf %97, %103 : vector<1x256xf32>
    %105 = arith.index_cast %c3_i32 : i32 to index
    %c0_35 = arith.constant 0 : index
    %106 = vector.load %arg8[%105, %c0_35] : memref<8x256xf32, #tpu.memory_space<vmem>>, vector<1x256xf32>
    tpu.vector_store %arg8[%105, %c0_35], %104 {strides = array<i32>} : memref<8x256xf32, #tpu.memory_space<vmem>>, vector<1x256xf32>,
    %c4_i32 = arith.constant 4 : i32
    %107 = arith.index_cast %c4_i32 : i32 to index
    %c0_36 = arith.constant 0 : index
    %108 = vector.load %arg7[%107, %c0_36] : memref<8x1024xf32, #tpu.memory_space<vmem>>, vector<1x1024xf32>
    %c0_37 = arith.constant 0 : index
    %c0_38 = arith.constant 0 : index
    %109 = vector.load %arg9[%c0_37, %c0_38] : memref<256x1024xf32, #tpu.memory_space<vmem>>, vector<256x1024xf32>
    %cst_39 = arith.constant dense<0.000000e+00> : vector<1x1024xf32>
    %110 = tpu.matmul %104, %109, %cst_39 {dimension_numbers = #tpu.dot_dimension_numbers<[1], [0], [0], [1], [0, 0, 1, 1], [], []>} : vector<1x256xf32>, vector<256x1024xf32>, vector<1x1024xf32> -> vector<1x1024xf32>
    %111 = arith.addf %108, %110 : vector<1x1024xf32>
    %112 = vector.extract_strided_slice %111 {offsets = [0, 0], sizes = [1, 768], strides = [1, 1]} : vector<1x1024xf32> to vector<1x768xf32>
    %113 = arith.negf %112 : vector<1x768xf32>
    %114 = math.exp %113 : vector<1x768xf32>
    %cst_40 = arith.constant 1.000000e+00 : f32
    %115 = vector.broadcast %cst_40 : f32 to vector<1x768xf32>
    %116 = arith.addf %115, %114 : vector<1x768xf32>
    %117 = arith.divf %115, %116 : vector<1x768xf32>
    %118 = vector.extract_strided_slice %117 {offsets = [0, 0], sizes = [1, 256], strides = [1, 1]} : vector<1x768xf32> to vector<1x256xf32>
    %119 = vector.extract_strided_slice %117 {offsets = [0, 256], sizes = [1, 256], strides = [1, 1]} : vector<1x768xf32> to vector<1x256xf32>
    %120 = vector.extract_strided_slice %117 {offsets = [0, 512], sizes = [1, 256], strides = [1, 1]} : vector<1x768xf32> to vector<1x256xf32>
    %121 = vector.extract_strided_slice %111 {offsets = [0, 768], sizes = [1, 256], strides = [1, 1]} : vector<1x1024xf32> to vector<1x256xf32>
    %122 = math.tanh %121 : vector<1x256xf32>
    %123 = arith.mulf %119, %102 : vector<1x256xf32>
    %124 = arith.mulf %118, %122 : vector<1x256xf32>
    %125 = arith.addf %123, %124 : vector<1x256xf32>
    %126 = math.tanh %125 : vector<1x256xf32>
    %127 = arith.mulf %120, %126 : vector<1x256xf32>
    %128 = arith.index_cast %c4_i32 : i32 to index
    %c0_41 = arith.constant 0 : index
    %129 = vector.load %arg8[%128, %c0_41] : memref<8x256xf32, #tpu.memory_space<vmem>>, vector<1x256xf32>
    tpu.vector_store %arg8[%128, %c0_41], %127 {strides = array<i32>} : memref<8x256xf32, #tpu.memory_space<vmem>>, vector<1x256xf32>,
    %c5_i32 = arith.constant 5 : i32
    %130 = arith.index_cast %c5_i32 : i32 to index
    %c0_42 = arith.constant 0 : index
    %131 = vector.load %arg7[%130, %c0_42] : memref<8x1024xf32, #tpu.memory_space<vmem>>, vector<1x1024xf32>
    %c0_43 = arith.constant 0 : index
    %c0_44 = arith.constant 0 : index
    %132 = vector.load %arg9[%c0_43, %c0_44] : memref<256x1024xf32, #tpu.memory_space<vmem>>, vector<256x1024xf32>
    %cst_45 = arith.constant dense<0.000000e+00> : vector<1x1024xf32>
    %133 = tpu.matmul %127, %132, %cst_45 {dimension_numbers = #tpu.dot_dimension_numbers<[1], [0], [0], [1], [0, 0, 1, 1], [], []>} : vector<1x256xf32>, vector<256x1024xf32>, vector<1x1024xf32> -> vector<1x1024xf32>
    %134 = arith.addf %131, %133 : vector<1x1024xf32>
    %135 = vector.extract_strided_slice %134 {offsets = [0, 0], sizes = [1, 768], strides = [1, 1]} : vector<1x1024xf32> to vector<1x768xf32>
    %136 = arith.negf %135 : vector<1x768xf32>
    %137 = math.exp %136 : vector<1x768xf32>
    %cst_46 = arith.constant 1.000000e+00 : f32
    %138 = vector.broadcast %cst_46 : f32 to vector<1x768xf32>
    %139 = arith.addf %138, %137 : vector<1x768xf32>
    %140 = arith.divf %138, %139 : vector<1x768xf32>
    %141 = vector.extract_strided_slice %140 {offsets = [0, 0], sizes = [1, 256], strides = [1, 1]} : vector<1x768xf32> to vector<1x256xf32>
    %142 = vector.extract_strided_slice %140 {offsets = [0, 256], sizes = [1, 256], strides = [1, 1]} : vector<1x768xf32> to vector<1x256xf32>
    %143 = vector.extract_strided_slice %140 {offsets = [0, 512], sizes = [1, 256], strides = [1, 1]} : vector<1x768xf32> to vector<1x256xf32>
    %144 = vector.extract_strided_slice %134 {offsets = [0, 768], sizes = [1, 256], strides = [1, 1]} : vector<1x1024xf32> to vector<1x256xf32>
    %145 = math.tanh %144 : vector<1x256xf32>
    %146 = arith.mulf %142, %125 : vector<1x256xf32>
    %147 = arith.mulf %141, %145 : vector<1x256xf32>
    %148 = arith.addf %146, %147 : vector<1x256xf32>
    %149 = math.tanh %148 : vector<1x256xf32>
    %150 = arith.mulf %143, %149 : vector<1x256xf32>
    %151 = arith.index_cast %c5_i32 : i32 to index
    %c0_47 = arith.constant 0 : index
    %152 = vector.load %arg8[%151, %c0_47] : memref<8x256xf32, #tpu.memory_space<vmem>>, vector<1x256xf32>
    tpu.vector_store %arg8[%151, %c0_47], %150 {strides = array<i32>} : memref<8x256xf32, #tpu.memory_space<vmem>>, vector<1x256xf32>,
    %c6_i32 = arith.constant 6 : i32
    %153 = arith.index_cast %c6_i32 : i32 to index
    %c0_48 = arith.constant 0 : index
    %154 = vector.load %arg7[%153, %c0_48] : memref<8x1024xf32, #tpu.memory_space<vmem>>, vector<1x1024xf32>
    %c0_49 = arith.constant 0 : index
    %c0_50 = arith.constant 0 : index
    %155 = vector.load %arg9[%c0_49, %c0_50] : memref<256x1024xf32, #tpu.memory_space<vmem>>, vector<256x1024xf32>
    %cst_51 = arith.constant dense<0.000000e+00> : vector<1x1024xf32>
    %156 = tpu.matmul %150, %155, %cst_51 {dimension_numbers = #tpu.dot_dimension_numbers<[1], [0], [0], [1], [0, 0, 1, 1], [], []>} : vector<1x256xf32>, vector<256x1024xf32>, vector<1x1024xf32> -> vector<1x1024xf32>
    %157 = arith.addf %154, %156 : vector<1x1024xf32>
    %158 = vector.extract_strided_slice %157 {offsets = [0, 0], sizes = [1, 768], strides = [1, 1]} : vector<1x1024xf32> to vector<1x768xf32>
    %159 = arith.negf %158 : vector<1x768xf32>
    %160 = math.exp %159 : vector<1x768xf32>
    %cst_52 = arith.constant 1.000000e+00 : f32
    %161 = vector.broadcast %cst_52 : f32 to vector<1x768xf32>
    %162 = arith.addf %161, %160 : vector<1x768xf32>
    %163 = arith.divf %161, %162 : vector<1x768xf32>
    %164 = vector.extract_strided_slice %163 {offsets = [0, 0], sizes = [1, 256], strides = [1, 1]} : vector<1x768xf32> to vector<1x256xf32>
    %165 = vector.extract_strided_slice %163 {offsets = [0, 256], sizes = [1, 256], strides = [1, 1]} : vector<1x768xf32> to vector<1x256xf32>
    %166 = vector.extract_strided_slice %163 {offsets = [0, 512], sizes = [1, 256], strides = [1, 1]} : vector<1x768xf32> to vector<1x256xf32>
    %167 = vector.extract_strided_slice %157 {offsets = [0, 768], sizes = [1, 256], strides = [1, 1]} : vector<1x1024xf32> to vector<1x256xf32>
    %168 = math.tanh %167 : vector<1x256xf32>
    %169 = arith.mulf %165, %148 : vector<1x256xf32>
    %170 = arith.mulf %164, %168 : vector<1x256xf32>
    %171 = arith.addf %169, %170 : vector<1x256xf32>
    %172 = math.tanh %171 : vector<1x256xf32>
    %173 = arith.mulf %166, %172 : vector<1x256xf32>
    %174 = arith.index_cast %c6_i32 : i32 to index
    %c0_53 = arith.constant 0 : index
    %175 = vector.load %arg8[%174, %c0_53] : memref<8x256xf32, #tpu.memory_space<vmem>>, vector<1x256xf32>
    tpu.vector_store %arg8[%174, %c0_53], %173 {strides = array<i32>} : memref<8x256xf32, #tpu.memory_space<vmem>>, vector<1x256xf32>,
    %c7_i32 = arith.constant 7 : i32
    %176 = arith.index_cast %c7_i32 : i32 to index
    %c0_54 = arith.constant 0 : index
    %177 = vector.load %arg7[%176, %c0_54] : memref<8x1024xf32, #tpu.memory_space<vmem>>, vector<1x1024xf32>
    %c0_55 = arith.constant 0 : index
    %c0_56 = arith.constant 0 : index
    %178 = vector.load %arg9[%c0_55, %c0_56] : memref<256x1024xf32, #tpu.memory_space<vmem>>, vector<256x1024xf32>
    %cst_57 = arith.constant dense<0.000000e+00> : vector<1x1024xf32>
    %179 = tpu.matmul %173, %178, %cst_57 {dimension_numbers = #tpu.dot_dimension_numbers<[1], [0], [0], [1], [0, 0, 1, 1], [], []>} : vector<1x256xf32>, vector<256x1024xf32>, vector<1x1024xf32> -> vector<1x1024xf32>
    %180 = arith.addf %177, %179 : vector<1x1024xf32>
    %181 = vector.extract_strided_slice %180 {offsets = [0, 0], sizes = [1, 768], strides = [1, 1]} : vector<1x1024xf32> to vector<1x768xf32>
    %182 = arith.negf %181 : vector<1x768xf32>
    %183 = math.exp %182 : vector<1x768xf32>
    %cst_58 = arith.constant 1.000000e+00 : f32
    %184 = vector.broadcast %cst_58 : f32 to vector<1x768xf32>
    %185 = arith.addf %184, %183 : vector<1x768xf32>
    %186 = arith.divf %184, %185 : vector<1x768xf32>
    %187 = vector.extract_strided_slice %186 {offsets = [0, 0], sizes = [1, 256], strides = [1, 1]} : vector<1x768xf32> to vector<1x256xf32>
    %188 = vector.extract_strided_slice %186 {offsets = [0, 256], sizes = [1, 256], strides = [1, 1]} : vector<1x768xf32> to vector<1x256xf32>
    %189 = vector.extract_strided_slice %186 {offsets = [0, 512], sizes = [1, 256], strides = [1, 1]} : vector<1x768xf32> to vector<1x256xf32>
    %190 = vector.extract_strided_slice %180 {offsets = [0, 768], sizes = [1, 256], strides = [1, 1]} : vector<1x1024xf32> to vector<1x256xf32>
    %191 = math.tanh %190 : vector<1x256xf32>
    %192 = arith.mulf %188, %171 : vector<1x256xf32>
    %193 = arith.mulf %187, %191 : vector<1x256xf32>
    %194 = arith.addf %192, %193 : vector<1x256xf32>
    %195 = math.tanh %194 : vector<1x256xf32>
    %196 = arith.mulf %189, %195 : vector<1x256xf32>
    %197 = arith.index_cast %c7_i32 : i32 to index
    %c0_59 = arith.constant 0 : index
    %198 = vector.load %arg8[%197, %c0_59] : memref<8x256xf32, #tpu.memory_space<vmem>>, vector<1x256xf32>
    tpu.vector_store %arg8[%197, %c0_59], %196 {strides = array<i32>} : memref<8x256xf32, #tpu.memory_space<vmem>>, vector<1x256xf32>,
    %c8_i32 = arith.constant 8 : i32
    %c1_i32_60 = arith.constant 1 : i32
    %199 = tpu.memref_slice %arg11[%c1_i32_60] : memref<2x!tpu.dma_semaphore, #tpu.memory_space<semaphore_mem>> -> memref<1x!tpu.dma_semaphore, #tpu.memory_space<semaphore_mem>>
    %200 = tpu.memref_squeeze %199 : memref<1x!tpu.dma_semaphore, #tpu.memory_space<semaphore_mem>> -> memref<!tpu.dma_semaphore, #tpu.memory_space<semaphore_mem>>
    tpu.wait_dma2 semaphore(%200 : memref<!tpu.dma_semaphore, #tpu.memory_space<semaphore_mem>>) src(%arg4 : memref<256x1xf32, #tpu.memory_space<any>>) dst(%arg10 : memref<256x1xf32, #tpu.memory_space<vmem>>)
    %c0_61 = arith.constant 0 : index
    %c0_62 = arith.constant 0 : index
    %201 = vector.load %arg8[%c0_61, %c0_62] : memref<8x256xf32, #tpu.memory_space<vmem>>, vector<8x256xf32>
    %c0_63 = arith.constant 0 : index
    %c0_64 = arith.constant 0 : index
    %202 = vector.load %arg10[%c0_63, %c0_64] : memref<256x1xf32, #tpu.memory_space<vmem>>, vector<256x1xf32>
    %cst_65 = arith.constant dense<0.000000e+00> : vector<8x1xf32>
    %203 = tpu.matmul %201, %202, %cst_65 {dimension_numbers = #tpu.dot_dimension_numbers<[1], [0], [0], [1], [0, 0, 1, 1], [], []>} : vector<8x256xf32>, vector<256x1xf32>, vector<8x1xf32> -> vector<8x1xf32>
    %c0_66 = arith.constant 0 : index
    %c0_67 = arith.constant 0 : index
    %204 = vector.load %arg5[%c0_66, %c0_67] : memref<1x1xf32, #tpu.memory_space<vmem>>, vector<1x1xf32>
    %205 = vector.broadcast %204 : vector<1x1xf32> to vector<8x1xf32>
    %206 = arith.addf %203, %205 : vector<8x1xf32>
    %cst_68 = arith.constant 0.000000e+00 : f32
    %207 = vector.broadcast %cst_68 : f32 to vector<8x1xf32>
    %208 = arith.maximumf %206, %207 : vector<8x1xf32>
    %c0_69 = arith.constant 0 : index
    %c0_70 = arith.constant 0 : index
    %209 = vector.load %arg6[%c0_69, %c0_70] : memref<8x1xf32, #tpu.memory_space<vmem>>, vector<8x1xf32>
    tpu.vector_store %arg6[%c0_69, %c0_70], %208 {strides = array<i32>} : memref<8x1xf32, #tpu.memory_space<vmem>>, vector<8x1xf32>,
    return
  }
}

</mosaic_0001>

<bundles_post_ra>
// kernel: lstm_score_pallas.1
= control target key start
LH: loop header
LB: loop body
LE: loop exit
PB: predicated region body
PF: predicated region fallthrough
CT: control target
= control target key end

     0   :  { %s8682_s0 = inlined_call_operand.vmem [shape: f32[8,128], index: 0, kind: input, shape index: {}]   ;;  %s8683_s1 = inlined_call_operand.hbm [shape: f32[128,1024], index: 1, kind: input, shape index: {}]   ;;  %s8684_s2 = inlined_call_operand.vmem [shape: f32[1,1024], index: 2, kind: input, shape index: {}]   ;;  %s8685_s3 = inlined_call_operand.hbm [shape: f32[256,1024], index: 3, kind: input, shape index: {}]   ;;  %s8686_s4 = inlined_call_operand.vmem [shape: f32[256,1], index: 4, kind: input, shape index: {}]   ;;  %s8687_s5 = inlined_call_operand.<no memory space> [shape: f32[1,1], index: 5, kind: input, shape index: {}]   ;;  %s8688_s6 = inlined_call_operand.vmem [shape: f32[8,1], index: 6, kind: output, shape index: {}]  }
   0x1   :  { %v11_v0 = vstv %s8687_s5 }
   0x2   :  { %12 = vst [vmem:[#allocation7] sm:$0x1] %v11_v0 }
   0x3   :  { %13 = vsyncpa [#allocation9], 0  ;;  %s8222_s23 = smov [#allocation8]   ;;  %s8172_s27 = scalar_lea.hbm %s8683_s1, 16384 }
   0x4   :  { %s21_s24 = sshll.u32 %s8222_s23, 4  ;;  %p8173_p0 = scmp.ne.s32.totalorder %s8683_s1, %s8172_s27  ;;  %s22_s24 = int_to_ptr.vmem [resolvable:$true] %s21_s24 }
   0x5   :  { %p8176_p1 = scmp.lt.u32.totalorder %s8172_s27, %s8683_s1 }
   0x7   :  { %p8178_p2 = pnand %p8176_p1, %p8173_p0 }
   0x9   :  { %8181 = shalt.err (!%p8178_p2)
}
   0xa   :  { %s8182_s5 = scalar_lea.vmem %s22_s24, 16384  ;;  %p8187_p4 = scmp.lt.s32.totalorder %s22_s24, %s22_s24 }
   0xb   :  { %p8183_p3 = scmp.ne.s32.totalorder %s22_s24, %s8182_s5  ;;  %p8188_p5 = scmp.lt.s32.totalorder %s8182_s5, %s8182_s5 }
   0xd   :  { %p8189_p6 = por %p8188_p5, %p8187_p4 }
   0xf   :  { %p8190_p7 = pnand %p8189_p6, %p8183_p3 }
  0x11   :  { %8193 = shalt.err (!%p8190_p7)
}
  0x12   :  { %s8223_s8 = smov 1024   ;;  %s8224_s9 = smov 64  }
  0x13   :  { %27 = dma.hbm_to_vmem [thread:$0]  %s8683_s1, 16384, %s22_s24, [#allocation9], %s8223_s8, %s8223_s8, %s8224_s9  }
  0x14   :  { %8216 = dma.done.wait [#allocation9], 16384  }
  0x15   :  { %8217 = vsyncadd [#allocation9], 4294950912  ;;  %s8225_s12 = smov [#allocation4]   ;;  %s8194_s16 = scalar_lea.hbm %s8685_s3, 32768 }
  0x16   :  { %s42_s13 = sshll.u32 %s8225_s12, 4  ;;  %p8195_p8 = scmp.ne.s32.totalorder %s8685_s3, %s8194_s16  ;;  %s43_s13 = int_to_ptr.vmem [resolvable:$true] %s42_s13 }
  0x17   :  { %p8198_p9 = scmp.lt.u32.totalorder %s8194_s16, %s8685_s3 }
  0x19   :  { %p8200_p10 = pnand %p8198_p9, %p8195_p8 }
  0x1b   :  { %8203 = shalt.err (!%p8200_p10)  }
  0x1c   :  { %s8204_s1 = scalar_lea.vmem %s43_s13, 32768  ;;  %p8209_p12 = scmp.lt.s32.totalorder %s43_s13, %s43_s13 }
  0x1d   :  { %p8205_p11 = scmp.ne.s32.totalorder %s43_s13, %s8204_s1  ;;  %p8210_p13 = scmp.lt.s32.totalorder %s8204_s1, %s8204_s1 }
  0x1f   :  { %p8211_p0 = por %p8210_p13, %p8209_p12 }
  0x21   :  { %p8212_p1 = pnand %p8211_p0, %p8205_p11 }
  0x23   :  { %8215 = shalt.err (!%p8212_p1)  }
  0x24   :  { %45 = dma.hbm_to_vmem [thread:$0]  %s8685_s3, 32768, %s43_s13, [#allocation6]  ;;  %v8293_v1 = vld [vmem:[%s8686_s4] sm:$0xff]  ;;  %v8298_v2 = vld [vmem:[%s8686_s4 + $0x8] sm:$0xff]  ;;  %v8303_v3 = vld [vmem:[%s8686_s4 + $0x10] sm:$0xff] }
  0x25   :  { %v8308_v4 = vld [vmem:[%s8686_s4 + $0x18] sm:$0xff]  ;;  %v8313_v5 = vld [vmem:[%s8686_s4 + $0x20] sm:$0xff]  ;;  %v8318_v6 = vld [vmem:[%s8686_s4 + $0x28] sm:$0xff] }
  0x26   :  { %v8323_v7 = vld [vmem:[%s8686_s4 + $0x30] sm:$0xff]  ;;  %v8328_v8 = vld [vmem:[%s8686_s4 + $0x38] sm:$0xff]  ;;  %v8333_v9 = vld [vmem:[%s8686_s4 + $0x40] sm:$0xff] }
  0x27   :  { %v8338_v10 = vld [vmem:[%s8686_s4 + $0x48] sm:$0xff]  ;;  %v8343_v11 = vld [vmem:[%s8686_s4 + $0x50] sm:$0xff]  ;;  %v8348_v12 = vld [vmem:[%s8686_s4 + $0x58] sm:$0xff] }
  0x28   :  { %v8353_v13 = vld [vmem:[%s8686_s4 + $0x60] sm:$0xff]  ;;  %v8358_v14 = vld [vmem:[%s8686_s4 + $0x68] sm:$0xff]  ;;  %v8363_v15 = vld [vmem:[%s8686_s4 + $0x70] sm:$0xff] }
  0x29   :  { %v8368_v16 = vld [vmem:[%s8686_s4 + $0x78] sm:$0xff]  ;;  %v8373_v17 = vld [vmem:[%s8686_s4 + $0x80] sm:$0xff]  ;;  %v8378_v18 = vld [vmem:[%s8686_s4 + $0x88] sm:$0xff] }
  0x2a   :  { %v8383_v19 = vld [vmem:[%s8686_s4 + $0x90] sm:$0xff]  ;;  %v8388_v20 = vld [vmem:[%s8686_s4 + $0x98] sm:$0xff]  ;;  %v8393_v21 = vld [vmem:[%s8686_s4 + $0xa0] sm:$0xff] }
  0x2b   :  { %v8398_v22 = vld [vmem:[%s8686_s4 + $0xa8] sm:$0xff]  ;;  %v8403_v23 = vld [vmem:[%s8686_s4 + $0xb0] sm:$0xff]  ;;  %v8408_v24 = vld [vmem:[%s8686_s4 + $0xb8] sm:$0xff] }
  0x2c   :  { %v8413_v25 = vld [vmem:[%s8686_s4 + $0xc0] sm:$0xff]  ;;  %v8418_v26 = vld [vmem:[%s8686_s4 + $0xc8] sm:$0xff]  ;;  %v8423_v27 = vld [vmem:[%s8686_s4 + $0xd0] sm:$0xff] }
  0x2d   :  { %v8428_v28 = vld [vmem:[%s8686_s4 + $0xd8] sm:$0xff]  ;;  %v8433_v29 = vld [vmem:[%s8686_s4 + $0xe0] sm:$0xff]  ;;  %v8438_v30 = vld [vmem:[%s8686_s4 + $0xe8] sm:$0xff] }
  0x2e   :  { %v8443_v31 = vld [vmem:[%s8686_s4 + $0xf0] sm:$0xff]  ;;  %v8448_v32 = vld [vmem:[%s8686_s4 + $0xf8] sm:$0xff] }
  0x2f   :  { %150 = vsyncadd [#allocation6 + $0x1], 4096  ;;  %v153_v33 = vld [vmem:[#allocation8 + $0x8] sm:$0xff]  ;;  %v155_v36 = vld [vmem:[#allocation8 + $0x18] sm:$0xff]  ;;  %v8226_v39 = vmov 0.0  }
  0x30   :  { %v161_v34 = vld [vmem:[#allocation8 + $0x48] sm:$0xff]  ;;  %v163_v37 = vld [vmem:[#allocation8 + $0x58] sm:$0xff]  ;;  %v152_v38 = vld [vmem:[#allocation8] sm:$0xff]  ;;  %386 = vmatprep.mubr.f32.mxu0 %v8226_v39  ;;  %457 = vmatprep.mubr.f32.mxu1 %v8226_v39 }
  0x31   :  { %v5894_v35 = vpack.c.bf16 %v161_v34, %v153_v33  ;;  %v5926_v40 = vpack.c.bf16 %v163_v37, %v155_v36  ;;  %v160_v41 = vld [vmem:[#allocation8 + $0x40] sm:$0xff]  ;;  %v154_v42 = vld [vmem:[#allocation8 + $0x10] sm:$0xff]  ;;  %v169_v46 = vld [vmem:[#allocation8 + $0x88] sm:$0xff] }
  0x32   :  { %v162_v43 = vld [vmem:[#allocation8 + $0x50] sm:$0xff]  ;;  %v5896_v44 = vpack.c.bf16 %v160_v41, %v152_v38  ;;  %v177_v47 = vld [vmem:[#allocation8 + $0xc8] sm:$0xff]  ;;  %v171_v48 = vld [vmem:[#allocation8 + $0x98] sm:$0xff] }
  0x33   :  { %5895 = vmatprep.subr.bf16.mxu0 %v5894_v35  ;;  %v5928_v45 = vpack.c.bf16 %v162_v43, %v154_v42  ;;  %5927 = vmatprep.subr.bf16.mxu1 %v5926_v40  ;;  %v5898_v49 = vpack.c.bf16 %v177_v47, %v169_v46  ;;  %v179_v50 = vld [vmem:[#allocation8 + $0xd8] sm:$0xff]  ;;  %v168_v51 = vld [vmem:[#allocation8 + $0x80] sm:$0xff]  ;;  %v170_v55 = vld [vmem:[#allocation8 + $0x90] sm:$0xff] }
  0x34   :  { %v176_v52 = vld [vmem:[#allocation8 + $0xc0] sm:$0xff]  ;;  %5897 = vmatpush1.bf16.msra.mxu0 %v5896_v44  ;;  %v5930_v53 = vpack.c.bf16 %v179_v50, %v171_v48  ;;  %v178_v56 = vld [vmem:[#allocation8 + $0xd0] sm:$0xff]  ;;  %v185_v57 = vld [vmem:[#allocation8 + $0x108] sm:$0xff] }
  0x35   :  { %5929 = vmatpush1.bf16.msra.mxu1 %v5928_v45  ;;  %v5900_v54 = vpack.c.bf16 %v176_v52, %v168_v51  ;;  %5899 = vmatprep.subr.bf16.mxu0 %v5898_v49  ;;  %v5932_v58 = vpack.c.bf16 %v178_v56, %v170_v55  ;;  %v193_v59 = vld [vmem:[#allocation8 + $0x148] sm:$0xff]  ;;  %v187_v60 = vld [vmem:[#allocation8 + $0x118] sm:$0xff]  ;;  %v184_v0 = vld [vmem:[#allocation8 + $0x100] sm:$0xff] }
  0x36   :  { %v195_v61 = vld [vmem:[#allocation8 + $0x158] sm:$0xff]  ;;  %5931 = vmatprep.subr.bf16.mxu1 %v5930_v53  ;;  %v5902_v62 = vpack.c.bf16 %v193_v59, %v185_v57  ;;  %v192_v33 = vld [vmem:[#allocation8 + $0x140] sm:$0xff]  ;;  %v186_v34 = vld [vmem:[#allocation8 + $0x110] sm:$0xff] }
  0x37   :  { %v5934_v63 = vpack.c.bf16 %v195_v61, %v187_v60  ;;  %v194_v35 = vld [vmem:[#allocation8 + $0x150] sm:$0xff]  ;;  %v201_v36 = vld [vmem:[#allocation8 + $0x188] sm:$0xff]  ;;  %v5904_v38 = vpack.c.bf16 %v192_v33, %v184_v0  ;;  %v203_v41 = vld [vmem:[#allocation8 + $0x198] sm:$0xff] }
  0x38   :  { %v209_v37 = vld [vmem:[#allocation8 + $0x1c8] sm:$0xff]  ;;  %5901 = vmatpush1.bf16.msra.mxu0 %v5900_v54  ;;  %v5936_v40 = vpack.c.bf16 %v194_v35, %v186_v34  ;;  %v211_v42 = vld [vmem:[#allocation8 + $0x1d8] sm:$0xff]  ;;  %v200_v43 = vld [vmem:[#allocation8 + $0x180] sm:$0xff] }
  0x39   :  { %5933 = vmatpush1.bf16.msra.mxu1 %v5932_v58  ;;  %5903 = vmatprep.subr.bf16.mxu0 %v5902_v62  ;;  %v5906_v44 = vpack.c.bf16 %v209_v37, %v201_v36  ;;  %v5938_v45 = vpack.c.bf16 %v211_v42, %v203_v41  ;;  %v208_v46 = vld [vmem:[#allocation8 + $0x1c0] sm:$0xff]  ;;  %v202_v47 = vld [vmem:[#allocation8 + $0x190] sm:$0xff]  ;;  %v217_v49 = vld [vmem:[#allocation8 + $0x208] sm:$0xff] }
  0x3a   :  { %5935 = vmatprep.subr.bf16.mxu1 %v5934_v63  ;;  %v210_v48 = vld [vmem:[#allocation8 + $0x1d0] sm:$0xff]  ;;  %v225_v50 = vld [vmem:[#allocation8 + $0x248] sm:$0xff]  ;;  %v219_v51 = vld [vmem:[#allocation8 + $0x218] sm:$0xff]  ;;  %v5908_v53 = vpack.c.bf16 %v208_v46, %v200_v43 }
  0x3b   :  { %v227_v52 = vld [vmem:[#allocation8 + $0x258] sm:$0xff]  ;;  %v5940_v54 = vpack.c.bf16 %v210_v48, %v202_v47  ;;  %v216_v55 = vld [vmem:[#allocation8 + $0x200] sm:$0xff]  ;;  %v5910_v57 = vpack.c.bf16 %v225_v50, %v217_v49  ;;  %v218_v59 = vld [vmem:[#allocation8 + $0x210] sm:$0xff] }
  0x3c   :  { %5905 = vmatpush1.bf16.msra.mxu0 %v5904_v38  ;;  %v224_v56 = vld [vmem:[#allocation8 + $0x240] sm:$0xff]  ;;  %v5942_v58 = vpack.c.bf16 %v227_v52, %v219_v51  ;;  %v226_v60 = vld [vmem:[#allocation8 + $0x250] sm:$0xff]  ;;  %v233_v61 = vld [vmem:[#allocation8 + $0x288] sm:$0xff] }
  0x3d   :  { %5937 = vmatpush1.bf16.msra.mxu1 %v5936_v40  ;;  %5907 = vmatprep.subr.bf16.mxu0 %v5906_v44  ;;  %v241_v62 = vld [vmem:[#allocation8 + $0x2c8] sm:$0xff]  ;;  %v235_v63 = vld [vmem:[#allocation8 + $0x298] sm:$0xff]  ;;  %v5912_v33 = vpack.c.bf16 %v224_v56, %v216_v55  ;;  %v5944_v34 = vpack.c.bf16 %v226_v60, %v218_v59  ;;  %v232_v35 = vld [vmem:[#allocation8 + $0x280] sm:$0xff] }
  0x3e   :  { %5939 = vmatprep.subr.bf16.mxu1 %v5938_v45  ;;  %v243_v0 = vld [vmem:[#allocation8 + $0x2d8] sm:$0xff]  ;;  %v240_v36 = vld [vmem:[#allocation8 + $0x2c0] sm:$0xff]  ;;  %v5914_v37 = vpack.c.bf16 %v241_v62, %v233_v61  ;;  %v234_v40 = vld [vmem:[#allocation8 + $0x290] sm:$0xff] }
  0x3f   :  { %v5946_v38 = vpack.c.bf16 %v243_v0, %v235_v63  ;;  %v242_v41 = vld [vmem:[#allocation8 + $0x2d0] sm:$0xff]  ;;  %v249_v42 = vld [vmem:[#allocation8 + $0x308] sm:$0xff]  ;;  %v251_v44 = vld [vmem:[#allocation8 + $0x318] sm:$0xff]  ;;  %v5916_v46 = vpack.c.bf16 %v240_v36, %v232_v35 }
  0x40   :  { %5909 = vmatpush1.bf16.msra.mxu0 %v5908_v53  ;;  %v257_v43 = vld [vmem:[#allocation8 + $0x348] sm:$0xff]  ;;  %v259_v45 = vld [vmem:[#allocation8 + $0x358] sm:$0xff]  ;;  %v5948_v47 = vpack.c.bf16 %v242_v41, %v234_v40  ;;  %v248_v48 = vld [vmem:[#allocation8 + $0x300] sm:$0xff] }
  0x41   :  { %5941 = vmatpush1.bf16.msra.mxu1 %v5940_v54  ;;  %5911 = vmatprep.subr.bf16.mxu0 %v5910_v57  ;;  %v256_v49 = vld [vmem:[#allocation8 + $0x340] sm:$0xff]  ;;  %v5918_v50 = vpack.c.bf16 %v257_v43, %v249_v42  ;;  %v5950_v51 = vpack.c.bf16 %v259_v45, %v251_v44  ;;  %v250_v52 = vld [vmem:[#allocation8 + $0x310] sm:$0xff]  ;;  %v265_v54 = vld [vmem:[#allocation8 + $0x388] sm:$0xff] }
  0x42   :  { %5943 = vmatprep.subr.bf16.mxu1 %v5942_v58  ;;  %v258_v53 = vld [vmem:[#allocation8 + $0x350] sm:$0xff]  ;;  %v273_v55 = vld [vmem:[#allocation8 + $0x3c8] sm:$0xff]  ;;  %v267_v56 = vld [vmem:[#allocation8 + $0x398] sm:$0xff]  ;;  %v5920_v58 = vpack.c.bf16 %v256_v49, %v248_v48 }
  0x43   :  { %v275_v57 = vld [vmem:[#allocation8 + $0x3d8] sm:$0xff]  ;;  %v5952_v59 = vpack.c.bf16 %v258_v53, %v250_v52  ;;  %v264_v60 = vld [vmem:[#allocation8 + $0x380] sm:$0xff]  ;;  %v5922_v62 = vpack.c.bf16 %v273_v55, %v265_v54  ;;  %v266_v0 = vld [vmem:[#allocation8 + $0x390] sm:$0xff] }
  0x44   :  { %5913 = vmatpush1.bf16.msra.mxu0 %v5912_v33  ;;  %v272_v61 = vld [vmem:[#allocation8 + $0x3c0] sm:$0xff]  ;;  %v5954_v63 = vpack.c.bf16 %v275_v57, %v267_v56  ;;  %v274_v33 = vld [vmem:[#allocation8 + $0x3d0] sm:$0xff]  ;;  %v165_v35 = vld [vmem:[#allocation8 + $0x68] sm:$0xff] }
  0x45   :  { %5945 = vmatpush1.bf16.msra.mxu1 %v5944_v34  ;;  %5915 = vmatprep.subr.bf16.mxu0 %v5914_v37  ;;  %v157_v34 = vld [vmem:[#allocation8 + $0x28] sm:$0xff]  ;;  %v159_v36 = vld [vmem:[#allocation8 + $0x38] sm:$0xff]  ;;  %v5956_v40 = vpack.c.bf16 %v274_v33, %v266_v0  ;;  %v156_v41 = vld [vmem:[#allocation8 + $0x20] sm:$0xff] }
  0x46   :  { %5947 = vmatprep.subr.bf16.mxu1 %v5946_v38  ;;  %v167_v37 = vld [vmem:[#allocation8 + $0x78] sm:$0xff]  ;;  %v5924_v38 = vpack.c.bf16 %v272_v61, %v264_v60  ;;  %v164_v42 = vld [vmem:[#allocation8 + $0x60] sm:$0xff]  ;;  %v5958_v43 = vpack.c.bf16 %v165_v35, %v157_v34  ;;  %v158_v45 = vld [vmem:[#allocation8 + $0x30] sm:$0xff] }
  0x47   :  { %v5990_v44 = vpack.c.bf16 %v167_v37, %v159_v36  ;;  %v181_v48 = vld [vmem:[#allocation8 + $0xe8] sm:$0xff]  ;;  %v175_v49 = vld [vmem:[#allocation8 + $0xb8] sm:$0xff]  ;;  %v5960_v52 = vpack.c.bf16 %v164_v42, %v156_v41  ;;  %v172_v54 = vld [vmem:[#allocation8 + $0xa0] sm:$0xff] }
  0x48   :  { %5917 = vmatpush1.bf16.msra.mxu0 %v5916_v46  ;;  %v166_v46 = vld [vmem:[#allocation8 + $0x70] sm:$0xff]  ;;  %v180_v55 = vld [vmem:[#allocation8 + $0xe0] sm:$0xff]  ;;  %v189_v60 = vld [vmem:[#allocation8 + $0x128] sm:$0xff] }
  0x49   :  { %5949 = vmatpush1.bf16.msra.mxu1 %v5948_v47  ;;  %5919 = vmatprep.subr.bf16.mxu0 %v5918_v50  ;;  %v173_v47 = vld [vmem:[#allocation8 + $0xa8] sm:$0xff]  ;;  %v183_v50 = vld [vmem:[#allocation8 + $0xf8] sm:$0xff]  ;;  %v5992_v53 = vpack.c.bf16 %v166_v46, %v158_v45  ;;  %v5964_v0 = vpack.c.bf16 %v180_v55, %v172_v54  ;;  %v188_v34 = vld [vmem:[#allocation8 + $0x120] sm:$0xff] }
  0x4a   :  { %5951 = vmatprep.subr.bf16.mxu1 %v5950_v51  ;;  %v8455_v51 = vld [vmem:[%s8682_s0] sm:$0xff]  ;;  %v5962_v56 = vpack.c.bf16 %v181_v48, %v173_v47  ;;  %v5994_v57 = vpack.c.bf16 %v183_v50, %v175_v49  ;;  %v196_v35 = vld [vmem:[#allocation8 + $0x160] sm:$0xff] }
  0x4b   :  { %v197_v61 = vld [vmem:[#allocation8 + $0x168] sm:$0xff]  ;;  %v5968_v45 = vpack.c.bf16 %v196_v35, %v188_v34  ;;  %v204_v47 = vld [vmem:[#allocation8 + $0x1a0] sm:$0xff] }
  0x4c   :  { %5921 = vmatpush1.bf16.msra.mxu0 %v5920_v58  ;;  %v174_v58 = vld [vmem:[#allocation8 + $0xb0] sm:$0xff]  ;;  %v5966_v36 = vpack.c.bf16 %v197_v61, %v189_v60  ;;  %v205_v41 = vld [vmem:[#allocation8 + $0x1a8] sm:$0xff]  ;;  %v212_v48 = vld [vmem:[#allocation8 + $0x1e0] sm:$0xff] }
  0x4d   :  { %5953 = vmatpush1.bf16.msra.mxu1 %v5952_v59  ;;  %5923 = vmatprep.subr.bf16.mxu0 %v5922_v62  ;;  %v182_v59 = vld [vmem:[#allocation8 + $0xf0] sm:$0xff]  ;;  %v191_v62 = vld [vmem:[#allocation8 + $0x138] sm:$0xff]  ;;  %v213_v42 = vld [vmem:[#allocation8 + $0x1e8] sm:$0xff] }
  0x4e   :  { %5955 = vmatprep.subr.bf16.mxu1 %v5954_v63  ;;  %v199_v63 = vld [vmem:[#allocation8 + $0x178] sm:$0xff]  ;;  %v5996_v33 = vpack.c.bf16 %v182_v59, %v174_v58  ;;  %v5970_v49 = vpack.c.bf16 %v213_v42, %v205_v41  ;;  %v221_v54 = vld [vmem:[#allocation8 + $0x228] sm:$0xff]  ;;  %v5972_v58 = vpack.c.bf16 %v212_v48, %v204_v47  ;;  %v220_v60 = vld [vmem:[#allocation8 + $0x220] sm:$0xff] }
  0x4f   :  { %v5998_v37 = vpack.c.bf16 %v199_v63, %v191_v62  ;;  %v229_v55 = vld [vmem:[#allocation8 + $0x268] sm:$0xff]  ;;  %v228_v61 = vld [vmem:[#allocation8 + $0x260] sm:$0xff] }
  0x50   :  { %5925 = vmatpush1.bf16.msra.mxu0 %v5924_v38  ;;  %v190_v38 = vld [vmem:[#allocation8 + $0x130] sm:$0xff]  ;;  %v5974_v62 = vpack.c.bf16 %v229_v55, %v221_v54  ;;  %v237_v34 = vld [vmem:[#allocation8 + $0x2a8] sm:$0xff]  ;;  %v236_v41 = vld [vmem:[#allocation8 + $0x2a0] sm:$0xff] }
  0x51   :  { %5957 = vmatpush1.bf16.msra.mxu1 %v5956_v40  ;;  %5959 = vmatprep.subr.bf16.mxu0 %v5958_v43  ;;  %v198_v40 = vld [vmem:[#allocation8 + $0x170] sm:$0xff]  ;;  %v207_v43 = vld [vmem:[#allocation8 + $0x1b8] sm:$0xff]  ;;  %v245_v35 = vld [vmem:[#allocation8 + $0x2e8] sm:$0xff] }
  0x52   :  { %5991 = vmatprep.subr.bf16.mxu1 %v5990_v44  ;;  %v215_v44 = vld [vmem:[#allocation8 + $0x1f8] sm:$0xff]  ;;  %v6000_v46 = vpack.c.bf16 %v198_v40, %v190_v38  ;;  %v5976_v38 = vpack.c.bf16 %v228_v61, %v220_v60  ;;  %v244_v42 = vld [vmem:[#allocation8 + $0x2e0] sm:$0xff]  ;;  %v253_v47 = vld [vmem:[#allocation8 + $0x328] sm:$0xff] }
  0x53   :  { %387 = vmatmul.mubr.f32.vlgmr.msra.gmra.mrb[0].mxu0 %v8455_v51  ;;  %v6002_v50 = vpack.c.bf16 %v215_v44, %v207_v43  ;;  %v5978_v43 = vpack.c.bf16 %v245_v35, %v237_v34  ;;  %v261_v48 = vld [vmem:[#allocation8 + $0x368] sm:$0xff]  ;;  %v252_v54 = vld [vmem:[#allocation8 + $0x320] sm:$0xff] }
  0x54   :  { %458 = vmatmul.mubr.f32.vlgmr.msra.gmra.mrb[0].mxu1 %v8455_v51  ;;  %5961 = vmatpush1.bf16.msra.mxu0 %v5960_v52  ;;  %v206_v52 = vld [vmem:[#allocation8 + $0x1b0] sm:$0xff]  ;;  %v260_v55 = vld [vmem:[#allocation8 + $0x360] sm:$0xff]  ;;  %v269_v60 = vld [vmem:[#allocation8 + $0x3a8] sm:$0xff] }
  0x55   :  { %5993 = vmatpush1.bf16.msra.mxu1 %v5992_v53  ;;  %5963 = vmatprep.subr.bf16.mxu0 %v5962_v56  ;;  %v214_v53 = vld [vmem:[#allocation8 + $0x1f0] sm:$0xff]  ;;  %v223_v56 = vld [vmem:[#allocation8 + $0x238] sm:$0xff]  ;;  %v277_v61 = vld [vmem:[#allocation8 + $0x3e8] sm:$0xff] }
  0x56   :  { %5995 = vmatprep.subr.bf16.mxu1 %v5994_v57  ;;  %528 = vmatprep.mubr.f32.mxu0 %v8226_v39  ;;  %v231_v57 = vld [vmem:[#allocation8 + $0x278] sm:$0xff]  ;;  %v6004_v59 = vpack.c.bf16 %v214_v53, %v206_v52  ;;  %v5980_v52 = vpack.c.bf16 %v244_v42, %v236_v41  ;;  %v268_v34 = vld [vmem:[#allocation8 + $0x3a0] sm:$0xff]  ;;  %v5986_v35 = vpack.c.bf16 %v277_v61, %v269_v60 }
  0x57   :  { %599 = vmatprep.mubr.f32.mxu1 %v8226_v39  ;;  %v6006_v63 = vpack.c.bf16 %v231_v57, %v223_v56  ;;  %v5982_v56 = vpack.c.bf16 %v261_v48, %v253_v47  ;;  %v280_v47 = vld [vmem:[%s8684_s2] sm:$0xff] }
  0x58   :  { %5965 = vmatpush1.bf16.msra.mxu0 %v5964_v0  ;;  %v222_v0 = vld [vmem:[#allocation8 + $0x230] sm:$0xff] }
  0x59   :  { %5997 = vmatpush1.bf16.msra.mxu1 %v5996_v33  ;;  %5967 = vmatprep.subr.bf16.mxu0 %v5966_v36  ;;  %v230_v33 = vld [vmem:[#allocation8 + $0x270] sm:$0xff]  ;;  %v239_v36 = vld [vmem:[#allocation8 + $0x2b8] sm:$0xff] }
  0x5a   :  { %5999 = vmatprep.subr.bf16.mxu1 %v5998_v37  ;;  %v247_v37 = vld [vmem:[#allocation8 + $0x2f8] sm:$0xff]  ;;  %v6008_v40 = vpack.c.bf16 %v230_v33, %v222_v0  ;;  %v5984_v0 = vpack.c.bf16 %v260_v55, %v252_v54 }
  0x5b   :  { %v6010_v44 = vpack.c.bf16 %v247_v37, %v239_v36  ;;  %v276_v37 = vld [vmem:[#allocation8 + $0x3e0] sm:$0xff] }
  0x5c   :  { %5969 = vmatpush1.bf16.msra.mxu0 %v5968_v45  ;;  %v238_v45 = vld [vmem:[#allocation8 + $0x2b0] sm:$0xff]  ;;  %v5988_v41 = vpack.c.bf16 %v276_v37, %v268_v34 }
  0x5d   :  { %6001 = vmatpush1.bf16.msra.mxu1 %v6000_v46  ;;  %5971 = vmatprep.subr.bf16.mxu0 %v5970_v49  ;;  %v246_v46 = vld [vmem:[#allocation8 + $0x2f0] sm:$0xff]  ;;  %v255_v49 = vld [vmem:[#allocation8 + $0x338] sm:$0xff] }
  0x5e   :  { %6003 = vmatprep.subr.bf16.mxu1 %v6002_v50  ;;  %v263_v50 = vld [vmem:[#allocation8 + $0x378] sm:$0xff]  ;;  %v6012_v53 = vpack.c.bf16 %v246_v46, %v238_v45 }
  0x5f   :  { %v6014_v57 = vpack.c.bf16 %v263_v50, %v255_v49 }
  0x60   :  { %5973 = vmatpush1.bf16.msra.mxu0 %v5972_v58  ;;  %v254_v58 = vld [vmem:[#allocation8 + $0x330] sm:$0xff] }
  0x61   :  { %6005 = vmatpush1.bf16.msra.mxu1 %v6004_v59  ;;  %5975 = vmatprep.subr.bf16.mxu0 %v5974_v62  ;;  %v262_v59 = vld [vmem:[#allocation8 + $0x370] sm:$0xff]  ;;  %v271_v62 = vld [vmem:[#allocation8 + $0x3b8] sm:$0xff] }
  0x62   :  { %6007 = vmatprep.subr.bf16.mxu1 %v6006_v63  ;;  %v279_v63 = vld [vmem:[#allocation8 + $0x3f8] sm:$0xff]  ;;  %v6016_v33 = vpack.c.bf16 %v262_v59, %v254_v58 }
  0x63   :  { %v6018_v36 = vpack.c.bf16 %v279_v63, %v271_v62 }
  0x64   :  { %5977 = vmatpush1.bf16.msra.mxu0 %v5976_v38  ;;  %v270_v38 = vld [vmem:[#allocation8 + $0x3b0] sm:$0xff] }
  0x65   :  { %6009 = vmatpush1.bf16.msra.mxu1 %v6008_v40  ;;  %5979 = vmatprep.subr.bf16.mxu0 %v5978_v43  ;;  %v278_v40 = vld [vmem:[#allocation8 + $0x3f0] sm:$0xff]  ;;  %v282_v43 = vlaneseq }
  0x66   :  { %6011 = vmatprep.subr.bf16.mxu1 %v6010_v44  ;;  %v6020_v42 = vpack.c.bf16 %v278_v40, %v270_v38 }
  0x67   :  { %v8464_v44 = vshrl.u32 %v282_v43, 7 }
  0x68   :  { %5981 = vmatpush1.bf16.msra.mxu0 %v5980_v52 }
  0x69   :  { %6013 = vmatpush1.bf16.msra.mxu1 %v6012_v53  ;;  %5983 = vmatprep.subr.bf16.mxu0 %v5982_v56  ;;  %v8467_v45 = vsub.s32 0, %v8464_v44  ;;  %v292_v46 = vsub.s32 2, %v8464_v44  ;;  %v8474_v48 = vsub.s32 1, %v8464_v44  ;;  %v296_v49 = vsub.s32 3, %v8464_v44 }
  0x6a   :  { %6015 = vmatprep.subr.bf16.mxu1 %v6014_v57  ;;  %v300_v62 = vsub.s32 4, %v8464_v44  ;;  %v308_v63 = vsub.s32 6, %v8464_v44 }
  0x6b   :  { %v293_v50 = vrot.slane %v280_v47, %v292_v46  ;;  %v289_v52 = vrot.slane %v280_v47, %v8474_v48  ;;  %v297_v53 = vrot.slane %v280_v47, %v296_v49 }
  0x6c   :  { %5985 = vmatpush1.bf16.msra.mxu0 %v5984_v0  ;;  %v304_v0 = vsub.s32 5, %v8464_v44  ;;  %v301_v34 = vrot.slane %v280_v47, %v300_v62 }
  0x6d   :  { %6017 = vmatpush1.bf16.msra.mxu1 %v6016_v33  ;;  %5987 = vmatprep.subr.bf16.mxu0 %v5986_v35  ;;  %v312_v33 = vsub.s32 7, %v8464_v44  ;;  %v309_v35 = vrot.slane %v280_v47, %v308_v63 }
  0x6e   :  { %6019 = vmatprep.subr.bf16.mxu1 %v6018_v36  ;;  %v305_v36 = vrot.slane %v280_v47, %v304_v0 }
  0x6f   :  { %v313_v37 = vrot.slane %v280_v47, %v312_v33 }
  0x70   :  { %5989 = vmatpush1.bf16.msra.mxu0 %v5988_v41 }
  0x71   :  { %6021 = vmatpush1.bf16.msra.mxu1 %v6020_v42 }
  0x73   :  { %529 = vmatmul.mubr.f32.vlgmr.msra.gmra.mrb[2].mxu0 %v8455_v51 }
  0x74   :  { %600 = vmatmul.mubr.f32.vlgmr.msra.gmra.mrb[2].mxu1 %v8455_v51  ;;  %v285_v51 = vrot.slane %v280_v47, %v8467_v45 }
 0x126   :  { %v388_v54 = vpop.f32.mrb[0].mxu0 }
 0x127   :  { %v459_v55 = vpop.f32.mrb[0].mxu1  ;;  %v389_v56 = vadd.f32 %v388_v54, %v285_v51  ;;  %v390_v58 = vpop.f32.mrb[1].mxu0 }
 0x128   :  { %v460_v57 = vadd.f32 %v459_v55, %v293_v50  ;;  %v461_v59 = vpop.f32.mrb[1].mxu1  ;;  %v391_v60 = vadd.f32 %v390_v58, %v289_v52 }
 0x129   :  { %v462_v61 = vadd.f32 %v461_v59, %v297_v53  ;;  %606 = vst [vmem:[#allocation2] sm:$0xff] %v389_v56 }
 0x12a   :  { %608 = vst [vmem:[#allocation2 + $0x10] sm:$0xff] %v460_v57  ;;  %607 = vst [vmem:[#allocation2 + $0x8] sm:$0xff] %v391_v60 }
 0x12b   :  { %609 = vst [vmem:[#allocation2 + $0x18] sm:$0xff] %v462_v61 }
 0x146   :  { %v530_v38 = vpop.f32.mrb[2].mxu0 }
 0x147   :  { %v601_v40 = vpop.f32.mrb[2].mxu1  ;;  %v531_v41 = vadd.f32 %v530_v38, %v301_v34  ;;  %v532_v46 = vpop.f32.mrb[3].mxu0 }
 0x148   :  { %v602_v42 = vadd.f32 %v601_v40, %v309_v35  ;;  %v603_v49 = vpop.f32.mrb[3].mxu1  ;;  %v533_v51 = vadd.f32 %v532_v46, %v305_v36 }
 0x149   :  { %v604_v50 = vadd.f32 %v603_v49, %v313_v37  ;;  %610 = vst [vmem:[#allocation2 + $0x20] sm:$0xff] %v531_v41 }
 0x14a   :  { %612 = vst [vmem:[#allocation2 + $0x30] sm:$0xff] %v602_v42  ;;  %611 = vst [vmem:[#allocation2 + $0x28] sm:$0xff] %v533_v51 }
 0x14b   :  { %613 = vst [vmem:[#allocation2 + $0x38] sm:$0xff] %v604_v50 }
 0x14c   :  { %8218 = dma.done.wait [#allocation6], 32768 }
 0x14d   :  { %8219 = vsyncadd [#allocation6], 4294934528  ;;  %941 = vmatprep.mubr.f32.mxu0 %v8226_v39  ;;  %1012 = vmatprep.mubr.f32.mxu1 %v8226_v39  ;;  %v622_v52 = vld [vmem:[#allocation4 + $0x8] sm:$0xff]  ;;  %v624_v53 = vld [vmem:[#allocation4 + $0x18] sm:$0xff]  ;;  %vm8504_vm0 = vcmp.lt.s32.totalorder %v282_v43, 256 }
 0x14e   :  { %v630_v47 = vld [vmem:[#allocation4 + $0x48] sm:$0xff]  ;;  %v632_v55 = vld [vmem:[#allocation4 + $0x58] sm:$0xff]  ;;  %v621_v56 = vld [vmem:[#allocation4] sm:$0xff] }
 0x14f   :  { %v6022_v54 = vpack.c.bf16 %v630_v47, %v622_v52  ;;  %v629_v57 = vld [vmem:[#allocation4 + $0x40] sm:$0xff]  ;;  %v6086_v58 = vpack.c.bf16 %v632_v55, %v624_v53  ;;  %v623_v60 = vld [vmem:[#allocation4 + $0x10] sm:$0xff]  ;;  %v638_v62 = vld [vmem:[#allocation4 + $0x88] sm:$0xff] }
 0x150   :  { %v6024_v59 = vpack.c.bf16 %v629_v57, %v621_v56  ;;  %v631_v61 = vld [vmem:[#allocation4 + $0x50] sm:$0xff]  ;;  %v646_v0 = vld [vmem:[#allocation4 + $0xc8] sm:$0xff]  ;;  %v640_v33 = vld [vmem:[#allocation4 + $0x98] sm:$0xff] }
 0x151   :  { %6023 = vmatprep.subr.bf16.mxu0 %v6022_v54  ;;  %v6088_v63 = vpack.c.bf16 %v631_v61, %v623_v60  ;;  %v648_v34 = vld [vmem:[#allocation4 + $0xd8] sm:$0xff]  ;;  %6087 = vmatprep.subr.bf16.mxu1 %v6086_v58  ;;  %v6026_v35 = vpack.c.bf16 %v646_v0, %v638_v62  ;;  %v637_v37 = vld [vmem:[#allocation4 + $0x80] sm:$0xff]  ;;  %v639_v40 = vld [vmem:[#allocation4 + $0x90] sm:$0xff] }
 0x152   :  { %6025 = vmatpush1.bf16.msra.mxu0 %v6024_v59  ;;  %v6090_v36 = vpack.c.bf16 %v648_v34, %v640_v33  ;;  %v645_v38 = vld [vmem:[#allocation4 + $0xc0] sm:$0xff]  ;;  %v647_v42 = vld [vmem:[#allocation4 + $0xd0] sm:$0xff]  ;;  %v654_v46 = vld [vmem:[#allocation4 + $0x108] sm:$0xff] }
 0x153   :  { %6089 = vmatpush1.bf16.msra.mxu1 %v6088_v63  ;;  %v6028_v41 = vpack.c.bf16 %v645_v38, %v637_v37  ;;  %v662_v49 = vld [vmem:[#allocation4 + $0x148] sm:$0xff]  ;;  %6027 = vmatprep.subr.bf16.mxu0 %v6026_v35  ;;  %v6092_v51 = vpack.c.bf16 %v647_v42, %v639_v40  ;;  %v656_v52 = vld [vmem:[#allocation4 + $0x118] sm:$0xff]  ;;  %v653_v53 = vld [vmem:[#allocation4 + $0x100] sm:$0xff] }
 0x154   :  { %6091 = vmatprep.subr.bf16.mxu1 %v6090_v36  ;;  %v6030_v50 = vpack.c.bf16 %v662_v49, %v654_v46  ;;  %v664_v47 = vld [vmem:[#allocation4 + $0x158] sm:$0xff]  ;;  %v661_v55 = vld [vmem:[#allocation4 + $0x140] sm:$0xff]  ;;  %v655_v56 = vld [vmem:[#allocation4 + $0x110] sm:$0xff] }
 0x155   :  { %v6094_v54 = vpack.c.bf16 %v664_v47, %v656_v52  ;;  %v663_v57 = vld [vmem:[#allocation4 + $0x150] sm:$0xff]  ;;  %v6032_v58 = vpack.c.bf16 %v661_v55, %v653_v53  ;;  %v670_v59 = vld [vmem:[#allocation4 + $0x188] sm:$0xff]  ;;  %v672_v61 = vld [vmem:[#allocation4 + $0x198] sm:$0xff] }
 0x156   :  { %6029 = vmatpush1.bf16.msra.mxu0 %v6028_v41  ;;  %v678_v60 = vld [vmem:[#allocation4 + $0x1c8] sm:$0xff]  ;;  %v6096_v62 = vpack.c.bf16 %v663_v57, %v655_v56  ;;  %v680_v0 = vld [vmem:[#allocation4 + $0x1d8] sm:$0xff]  ;;  %v669_v33 = vld [vmem:[#allocation4 + $0x180] sm:$0xff] }
 0x157   :  { %6093 = vmatpush1.bf16.msra.mxu1 %v6092_v51  ;;  %6031 = vmatprep.subr.bf16.mxu0 %v6030_v50  ;;  %v6034_v63 = vpack.c.bf16 %v678_v60, %v670_v59  ;;  %v677_v34 = vld [vmem:[#allocation4 + $0x1c0] sm:$0xff]  ;;  %v6098_v35 = vpack.c.bf16 %v680_v0, %v672_v61  ;;  %v671_v36 = vld [vmem:[#allocation4 + $0x190] sm:$0xff]  ;;  %v686_v38 = vld [vmem:[#allocation4 + $0x208] sm:$0xff] }
 0x158   :  { %6095 = vmatprep.subr.bf16.mxu1 %v6094_v54  ;;  %v679_v37 = vld [vmem:[#allocation4 + $0x1d0] sm:$0xff]  ;;  %v694_v40 = vld [vmem:[#allocation4 + $0x248] sm:$0xff]  ;;  %v688_v42 = vld [vmem:[#allocation4 + $0x218] sm:$0xff]  ;;  %v6036_v41 = vpack.c.bf16 %v677_v34, %v669_v33 }
 0x159   :  { %v696_v46 = vld [vmem:[#allocation4 + $0x258] sm:$0xff]  ;;  %v6100_v49 = vpack.c.bf16 %v679_v37, %v671_v36  ;;  %v6038_v51 = vpack.c.bf16 %v694_v40, %v686_v38  ;;  %v685_v50 = vld [vmem:[#allocation4 + $0x200] sm:$0xff]  ;;  %v687_v47 = vld [vmem:[#allocation4 + $0x210] sm:$0xff] }
 0x15a   :  { %6033 = vmatpush1.bf16.msra.mxu0 %v6032_v58  ;;  %v693_v52 = vld [vmem:[#allocation4 + $0x240] sm:$0xff]  ;;  %v6102_v53 = vpack.c.bf16 %v696_v46, %v688_v42  ;;  %v695_v55 = vld [vmem:[#allocation4 + $0x250] sm:$0xff]  ;;  %v702_v54 = vld [vmem:[#allocation4 + $0x288] sm:$0xff] }
 0x15b   :  { %6097 = vmatpush1.bf16.msra.mxu1 %v6096_v62  ;;  %6035 = vmatprep.subr.bf16.mxu0 %v6034_v63  ;;  %v710_v56 = vld [vmem:[#allocation4 + $0x2c8] sm:$0xff]  ;;  %v704_v57 = vld [vmem:[#allocation4 + $0x298] sm:$0xff]  ;;  %v6040_v60 = vpack.c.bf16 %v693_v52, %v685_v50  ;;  %v6104_v58 = vpack.c.bf16 %v695_v55, %v687_v47  ;;  %v701_v62 = vld [vmem:[#allocation4 + $0x280] sm:$0xff] }
 0x15c   :  { %6099 = vmatprep.subr.bf16.mxu1 %v6098_v35  ;;  %v712_v59 = vld [vmem:[#allocation4 + $0x2d8] sm:$0xff]  ;;  %v6042_v61 = vpack.c.bf16 %v710_v56, %v702_v54  ;;  %v709_v63 = vld [vmem:[#allocation4 + $0x2c0] sm:$0xff]  ;;  %v703_v0 = vld [vmem:[#allocation4 + $0x290] sm:$0xff] }
 0x15d   :  { %v6106_v33 = vpack.c.bf16 %v712_v59, %v704_v57  ;;  %v711_v34 = vld [vmem:[#allocation4 + $0x2d0] sm:$0xff]  ;;  %v718_v36 = vld [vmem:[#allocation4 + $0x308] sm:$0xff]  ;;  %v720_v37 = vld [vmem:[#allocation4 + $0x318] sm:$0xff]  ;;  %v6044_v40 = vpack.c.bf16 %v709_v63, %v701_v62 }
 0x15e   :  { %6037 = vmatpush1.bf16.msra.mxu0 %v6036_v41  ;;  %v726_v35 = vld [vmem:[#allocation4 + $0x348] sm:$0xff]  ;;  %v728_v38 = vld [vmem:[#allocation4 + $0x358] sm:$0xff]  ;;  %v6108_v42 = vpack.c.bf16 %v711_v34, %v703_v0  ;;  %v717_v41 = vld [vmem:[#allocation4 + $0x300] sm:$0xff] }
 0x15f   :  { %6101 = vmatpush1.bf16.msra.mxu1 %v6100_v49  ;;  %6039 = vmatprep.subr.bf16.mxu0 %v6038_v51  ;;  %v6046_v46 = vpack.c.bf16 %v726_v35, %v718_v36  ;;  %v725_v49 = vld [vmem:[#allocation4 + $0x340] sm:$0xff]  ;;  %v719_v51 = vld [vmem:[#allocation4 + $0x310] sm:$0xff]  ;;  %v6110_v50 = vpack.c.bf16 %v728_v38, %v720_v37  ;;  %v734_v47 = vld [vmem:[#allocation4 + $0x388] sm:$0xff] }
 0x160   :  { %6103 = vmatprep.subr.bf16.mxu1 %v6102_v53  ;;  %v727_v52 = vld [vmem:[#allocation4 + $0x350] sm:$0xff]  ;;  %v742_v53 = vld [vmem:[#allocation4 + $0x3c8] sm:$0xff]  ;;  %v736_v55 = vld [vmem:[#allocation4 + $0x398] sm:$0xff]  ;;  %v6048_v56 = vpack.c.bf16 %v725_v49, %v717_v41 }
 0x161   :  { %v744_v54 = vld [vmem:[#allocation4 + $0x3d8] sm:$0xff]  ;;  %v6112_v57 = vpack.c.bf16 %v727_v52, %v719_v51  ;;  %v6050_v59 = vpack.c.bf16 %v742_v53, %v734_v47  ;;  %v743_v63 = vld [vmem:[#allocation4 + $0x3d0] sm:$0xff]  ;;  %v750_v0 = vld [vmem:[#allocation4 + $0x408] sm:$0xff] }
 0x162   :  { %6041 = vmatpush1.bf16.msra.mxu0 %v6040_v60  ;;  %v733_v60 = vld [vmem:[#allocation4 + $0x380] sm:$0xff]  ;;  %v6114_v62 = vpack.c.bf16 %v744_v54, %v736_v55  ;;  %v752_v34 = vld [vmem:[#allocation4 + $0x418] sm:$0xff]  ;;  %v759_v49 = vld [vmem:[#allocation4 + $0x450] sm:$0xff] }
 0x163   :  { %6105 = vmatpush1.bf16.msra.mxu1 %v6104_v58  ;;  %6043 = vmatprep.subr.bf16.mxu0 %v6042_v61  ;;  %v741_v58 = vld [vmem:[#allocation4 + $0x3c0] sm:$0xff]  ;;  %v735_v61 = vld [vmem:[#allocation4 + $0x390] sm:$0xff]  ;;  %v760_v36 = vld [vmem:[#allocation4 + $0x458] sm:$0xff] }
 0x164   :  { %6107 = vmatprep.subr.bf16.mxu1 %v6106_v33  ;;  %v758_v33 = vld [vmem:[#allocation4 + $0x448] sm:$0xff]  ;;  %v6052_v35 = vpack.c.bf16 %v741_v58, %v733_v60  ;;  %v6116_v37 = vpack.c.bf16 %v743_v63, %v735_v61  ;;  %v6118_v41 = vpack.c.bf16 %v760_v36, %v752_v34  ;;  %v768_v52 = vld [vmem:[#allocation4 + $0x498] sm:$0xff]  ;;  %v775_v58 = vld [vmem:[#allocation4 + $0x4d0] sm:$0xff] }
 0x165   :  { %v6054_v38 = vpack.c.bf16 %v758_v33, %v750_v0  ;;  %v766_v51 = vld [vmem:[#allocation4 + $0x488] sm:$0xff]  ;;  %v776_v47 = vld [vmem:[#allocation4 + $0x4d8] sm:$0xff] }
 0x166   :  { %6045 = vmatpush1.bf16.msra.mxu0 %v6044_v40  ;;  %v749_v40 = vld [vmem:[#allocation4 + $0x400] sm:$0xff]  ;;  %v6122_v60 = vpack.c.bf16 %v776_v47, %v768_v52  ;;  %v782_v61 = vld [vmem:[#allocation4 + $0x508] sm:$0xff]  ;;  %v784_v63 = vld [vmem:[#allocation4 + $0x518] sm:$0xff] }
 0x167   :  { %6109 = vmatpush1.bf16.msra.mxu1 %v6108_v42  ;;  %6047 = vmatprep.subr.bf16.mxu0 %v6046_v46  ;;  %v757_v42 = vld [vmem:[#allocation4 + $0x440] sm:$0xff]  ;;  %v751_v46 = vld [vmem:[#allocation4 + $0x410] sm:$0xff]  ;;  %v792_v0 = vld [vmem:[#allocation4 + $0x558] sm:$0xff] }
 0x168   :  { %6111 = vmatprep.subr.bf16.mxu1 %v6110_v50  ;;  %v774_v50 = vld [vmem:[#allocation4 + $0x4c8] sm:$0xff]  ;;  %v6056_v53 = vpack.c.bf16 %v757_v42, %v749_v40  ;;  %v6120_v55 = vpack.c.bf16 %v759_v49, %v751_v46  ;;  %v6126_v40 = vpack.c.bf16 %v792_v0, %v784_v63  ;;  %v791_v42 = vld [vmem:[#allocation4 + $0x550] sm:$0xff]  ;;  %v800_v49 = vld [vmem:[#allocation4 + $0x598] sm:$0xff] }
 0x169   :  { %v6058_v54 = vpack.c.bf16 %v774_v50, %v766_v51  ;;  %v798_v46 = vld [vmem:[#allocation4 + $0x588] sm:$0xff]  ;;  %v808_v51 = vld [vmem:[#allocation4 + $0x5d8] sm:$0xff] }
 0x16a   :  { %6049 = vmatpush1.bf16.msra.mxu0 %v6048_v56  ;;  %v765_v56 = vld [vmem:[#allocation4 + $0x480] sm:$0xff] }
 0x16b   :  { %6113 = vmatpush1.bf16.msra.mxu1 %v6112_v57  ;;  %6051 = vmatprep.subr.bf16.mxu0 %v6050_v59  ;;  %v773_v57 = vld [vmem:[#allocation4 + $0x4c0] sm:$0xff]  ;;  %v767_v59 = vld [vmem:[#allocation4 + $0x490] sm:$0xff] }
 0x16c   :  { %6115 = vmatprep.subr.bf16.mxu1 %v6114_v62  ;;  %v790_v62 = vld [vmem:[#allocation4 + $0x548] sm:$0xff]  ;;  %v6060_v33 = vpack.c.bf16 %v773_v57, %v765_v56  ;;  %v6124_v34 = vpack.c.bf16 %v775_v58, %v767_v59  ;;  %v6130_v56 = vpack.c.bf16 %v808_v51, %v800_v49  ;;  %v807_v57 = vld [vmem:[#allocation4 + $0x5d0] sm:$0xff]  ;;  %v816_v58 = vld [vmem:[#allocation4 + $0x618] sm:$0xff] }
 0x16d   :  { %v6062_v36 = vpack.c.bf16 %v790_v62, %v782_v61  ;;  %v814_v59 = vld [vmem:[#allocation4 + $0x608] sm:$0xff]  ;;  %v824_v61 = vld [vmem:[#allocation4 + $0x658] sm:$0xff] }
 0x16e   :  { %6053 = vmatpush1.bf16.msra.mxu0 %v6052_v35  ;;  %v781_v35 = vld [vmem:[#allocation4 + $0x500] sm:$0xff] }
 0x16f   :  { %6117 = vmatpush1.bf16.msra.mxu1 %v6116_v37  ;;  %6055 = vmatprep.subr.bf16.mxu0 %v6054_v38  ;;  %v789_v37 = vld [vmem:[#allocation4 + $0x540] sm:$0xff]  ;;  %v783_v38 = vld [vmem:[#allocation4 + $0x510] sm:$0xff] }
 0x170   :  { %6119 = vmatprep.subr.bf16.mxu1 %v6118_v41  ;;  %v806_v41 = vld [vmem:[#allocation4 + $0x5c8] sm:$0xff]  ;;  %v6064_v50 = vpack.c.bf16 %v789_v37, %v781_v35  ;;  %v6128_v52 = vpack.c.bf16 %v791_v42, %v783_v38  ;;  %v6134_v35 = vpack.c.bf16 %v824_v61, %v816_v58  ;;  %v823_v37 = vld [vmem:[#allocation4 + $0x650] sm:$0xff]  ;;  %v832_v42 = vld [vmem:[#allocation4 + $0x698] sm:$0xff] }
 0x171   :  { %v6066_v47 = vpack.c.bf16 %v806_v41, %v798_v46  ;;  %v830_v38 = vld [vmem:[#allocation4 + $0x688] sm:$0xff]  ;;  %v840_v46 = vld [vmem:[#allocation4 + $0x6d8] sm:$0xff] }
 0x172   :  { %6057 = vmatpush1.bf16.msra.mxu0 %v6056_v53  ;;  %v797_v53 = vld [vmem:[#allocation4 + $0x580] sm:$0xff] }
 0x173   :  { %6121 = vmatpush1.bf16.msra.mxu1 %v6120_v55  ;;  %6059 = vmatprep.subr.bf16.mxu0 %v6058_v54  ;;  %v805_v55 = vld [vmem:[#allocation4 + $0x5c0] sm:$0xff]  ;;  %v799_v54 = vld [vmem:[#allocation4 + $0x590] sm:$0xff] }
 0x174   :  { %6123 = vmatprep.subr.bf16.mxu1 %v6122_v60  ;;  %v822_v60 = vld [vmem:[#allocation4 + $0x648] sm:$0xff]  ;;  %v6068_v62 = vpack.c.bf16 %v805_v55, %v797_v53  ;;  %v6132_v63 = vpack.c.bf16 %v807_v57, %v799_v54  ;;  %v6138_v53 = vpack.c.bf16 %v840_v46, %v832_v42  ;;  %v839_v55 = vld [vmem:[#allocation4 + $0x6d0] sm:$0xff]  ;;  %v848_v57 = vld [vmem:[#allocation4 + $0x718] sm:$0xff] }
 0x175   :  { %v6070_v0 = vpack.c.bf16 %v822_v60, %v814_v59  ;;  %v846_v54 = vld [vmem:[#allocation4 + $0x708] sm:$0xff]  ;;  %v856_v59 = vld [vmem:[#allocation4 + $0x758] sm:$0xff] }
 0x176   :  { %6061 = vmatpush1.bf16.msra.mxu0 %v6060_v33  ;;  %v813_v33 = vld [vmem:[#allocation4 + $0x600] sm:$0xff] }
 0x177   :  { %6125 = vmatpush1.bf16.msra.mxu1 %v6124_v34  ;;  %6063 = vmatprep.subr.bf16.mxu0 %v6062_v36  ;;  %v821_v34 = vld [vmem:[#allocation4 + $0x640] sm:$0xff]  ;;  %v815_v36 = vld [vmem:[#allocation4 + $0x610] sm:$0xff] }
 0x178   :  { %6127 = vmatprep.subr.bf16.mxu1 %v6126_v40  ;;  %v838_v40 = vld [vmem:[#allocation4 + $0x6c8] sm:$0xff]  ;;  %v6072_v41 = vpack.c.bf16 %v821_v34, %v813_v33  ;;  %v6136_v49 = vpack.c.bf16 %v823_v37, %v815_v36  ;;  %v6142_v33 = vpack.c.bf16 %v856_v59, %v848_v57  ;;  %v855_v34 = vld [vmem:[#allocation4 + $0x750] sm:$0xff]  ;;  %v864_v37 = vld [vmem:[#allocation4 + $0x798] sm:$0xff] }
 0x179   :  { %v6074_v51 = vpack.c.bf16 %v838_v40, %v830_v38  ;;  %v862_v36 = vld [vmem:[#allocation4 + $0x788] sm:$0xff]  ;;  %v872_v38 = vld [vmem:[#allocation4 + $0x7d8] sm:$0xff] }
 0x17a   :  { %6065 = vmatpush1.bf16.msra.mxu0 %v6064_v50  ;;  %v829_v50 = vld [vmem:[#allocation4 + $0x680] sm:$0xff] }
 0x17b   :  { %6129 = vmatpush1.bf16.msra.mxu1 %v6128_v52  ;;  %6067 = vmatprep.subr.bf16.mxu0 %v6066_v47  ;;  %v837_v52 = vld [vmem:[#allocation4 + $0x6c0] sm:$0xff]  ;;  %v831_v47 = vld [vmem:[#allocation4 + $0x690] sm:$0xff] }
 0x17c   :  { %6131 = vmatprep.subr.bf16.mxu1 %v6130_v56  ;;  %v854_v56 = vld [vmem:[#allocation4 + $0x748] sm:$0xff]  ;;  %v6076_v60 = vpack.c.bf16 %v837_v52, %v829_v50  ;;  %v6140_v58 = vpack.c.bf16 %v839_v55, %v831_v47  ;;  %v6146_v50 = vpack.c.bf16 %v872_v38, %v864_v37  ;;  %v871_v52 = vld [vmem:[#allocation4 + $0x7d0] sm:$0xff]  ;;  %v628_v55 = vld [vmem:[#allocation4 + $0x38] sm:$0xff] }
 0x17d   :  { %v6078_v61 = vpack.c.bf16 %v854_v56, %v846_v54  ;;  %v626_v47 = vld [vmem:[#allocation4 + $0x28] sm:$0xff]  ;;  %v636_v54 = vld [vmem:[#allocation4 + $0x78] sm:$0xff] }
 0x17e   :  { %6069 = vmatpush1.bf16.msra.mxu0 %v6068_v62  ;;  %v845_v62 = vld [vmem:[#allocation4 + $0x700] sm:$0xff] }
 0x17f   :  { %6133 = vmatpush1.bf16.msra.mxu1 %v6132_v63  ;;  %6071 = vmatprep.subr.bf16.mxu0 %v6070_v0  ;;  %v853_v63 = vld [vmem:[#allocation4 + $0x740] sm:$0xff]  ;;  %v847_v0 = vld [vmem:[#allocation4 + $0x710] sm:$0xff] }
 0x180   :  { %6135 = vmatprep.subr.bf16.mxu1 %v6134_v35  ;;  %v870_v35 = vld [vmem:[#allocation4 + $0x7c8] sm:$0xff]  ;;  %v6080_v40 = vpack.c.bf16 %v853_v63, %v845_v62  ;;  %v6144_v42 = vpack.c.bf16 %v855_v34, %v847_v0  ;;  %v6214_v62 = vpack.c.bf16 %v636_v54, %v628_v55  ;;  %v635_v63 = vld [vmem:[#allocation4 + $0x70] sm:$0xff]  ;;  %v644_v34 = vld [vmem:[#allocation4 + $0xb8] sm:$0xff] }
 0x181   :  { %v6082_v46 = vpack.c.bf16 %v870_v35, %v862_v36  ;;  %v642_v0 = vld [vmem:[#allocation4 + $0xa8] sm:$0xff]  ;;  %v652_v36 = vld [vmem:[#allocation4 + $0xf8] sm:$0xff] }
 0x182   :  { %6073 = vmatpush1.bf16.msra.mxu0 %v6072_v41  ;;  %v861_v41 = vld [vmem:[#allocation4 + $0x780] sm:$0xff] }
 0x183   :  { %6137 = vmatpush1.bf16.msra.mxu1 %v6136_v49  ;;  %6075 = vmatprep.subr.bf16.mxu0 %v6074_v51  ;;  %v869_v49 = vld [vmem:[#allocation4 + $0x7c0] sm:$0xff]  ;;  %v863_v51 = vld [vmem:[#allocation4 + $0x790] sm:$0xff] }
 0x184   :  { %6139 = vmatprep.subr.bf16.mxu1 %v6138_v53  ;;  %v634_v53 = vld [vmem:[#allocation4 + $0x68] sm:$0xff]  ;;  %v6084_v56 = vpack.c.bf16 %v869_v49, %v861_v41  ;;  %v6148_v57 = vpack.c.bf16 %v871_v52, %v863_v51  ;;  %v6218_v41 = vpack.c.bf16 %v652_v36, %v644_v34  ;;  %v651_v49 = vld [vmem:[#allocation4 + $0xf0] sm:$0xff]  ;;  %v660_v52 = vld [vmem:[#allocation4 + $0x138] sm:$0xff] }
 0x185   :  { %v6150_v59 = vpack.c.bf16 %v634_v53, %v626_v47  ;;  %v658_v51 = vld [vmem:[#allocation4 + $0x128] sm:$0xff]  ;;  %v668_v47 = vld [vmem:[#allocation4 + $0x178] sm:$0xff] }
 0x186   :  { %6077 = vmatpush1.bf16.msra.mxu0 %v6076_v60  ;;  %v625_v60 = vld [vmem:[#allocation4 + $0x20] sm:$0xff] }
 0x187   :  { %6141 = vmatpush1.bf16.msra.mxu1 %v6140_v58  ;;  %6079 = vmatprep.subr.bf16.mxu0 %v6078_v61  ;;  %v633_v58 = vld [vmem:[#allocation4 + $0x60] sm:$0xff]  ;;  %v627_v61 = vld [vmem:[#allocation4 + $0x30] sm:$0xff] }
 0x188   :  { %6143 = vmatprep.subr.bf16.mxu1 %v6142_v33  ;;  %v650_v33 = vld [vmem:[#allocation4 + $0xe8] sm:$0xff]  ;;  %v6152_v35 = vpack.c.bf16 %v633_v58, %v625_v60  ;;  %v6216_v37 = vpack.c.bf16 %v635_v63, %v627_v61  ;;  %v6222_v60 = vpack.c.bf16 %v668_v47, %v660_v52  ;;  %v667_v58 = vld [vmem:[#allocation4 + $0x170] sm:$0xff]  ;;  %v676_v63 = vld [vmem:[#allocation4 + $0x1b8] sm:$0xff] }
 0x189   :  { %v6154_v38 = vpack.c.bf16 %v650_v33, %v642_v0  ;;  %v674_v61 = vld [vmem:[#allocation4 + $0x1a8] sm:$0xff]  ;;  %v684_v0 = vld [vmem:[#allocation4 + $0x1f8] sm:$0xff] }
 0x18a   :  { %6081 = vmatpush1.bf16.msra.mxu0 %v6080_v40  ;;  %v641_v40 = vld [vmem:[#allocation4 + $0xa0] sm:$0xff] }
 0x18b   :  { %6145 = vmatpush1.bf16.msra.mxu1 %v6144_v42  ;;  %6083 = vmatprep.subr.bf16.mxu0 %v6082_v46  ;;  %v649_v42 = vld [vmem:[#allocation4 + $0xe0] sm:$0xff]  ;;  %v643_v46 = vld [vmem:[#allocation4 + $0xb0] sm:$0xff] }
 0x18c   :  { %6147 = vmatprep.subr.bf16.mxu1 %v6146_v50  ;;  %v666_v50 = vld [vmem:[#allocation4 + $0x168] sm:$0xff]  ;;  %v6156_v53 = vpack.c.bf16 %v649_v42, %v641_v40  ;;  %v6220_v55 = vpack.c.bf16 %v651_v49, %v643_v46  ;;  %v6226_v40 = vpack.c.bf16 %v684_v0, %v676_v63  ;;  %v683_v42 = vld [vmem:[#allocation4 + $0x1f0] sm:$0xff]  ;;  %v692_v49 = vld [vmem:[#allocation4 + $0x238] sm:$0xff] }
 0x18d   :  { %v6158_v54 = vpack.c.bf16 %v666_v50, %v658_v51  ;;  %v690_v46 = vld [vmem:[#allocation4 + $0x228] sm:$0xff]  ;;  %v700_v51 = vld [vmem:[#allocation4 + $0x278] sm:$0xff] }
 0x18e   :  { %6085 = vmatpush1.bf16.msra.mxu0 %v6084_v56  ;;  %v657_v56 = vld [vmem:[#allocation4 + $0x120] sm:$0xff] }
 0x18f   :  { %6149 = vmatpush1.bf16.msra.mxu1 %v6148_v57  ;;  %6151 = vmatprep.subr.bf16.mxu0 %v6150_v59  ;;  %v665_v57 = vld [vmem:[#allocation4 + $0x160] sm:$0xff]  ;;  %v659_v59 = vld [vmem:[#allocation4 + $0x130] sm:$0xff] }
 0x190   :  { %6215 = vmatprep.subr.bf16.mxu1 %v6214_v62  ;;  %v682_v62 = vld [vmem:[#allocation4 + $0x1e8] sm:$0xff]  ;;  %v6160_v33 = vpack.c.bf16 %v665_v57, %v657_v56  ;;  %v6224_v34 = vpack.c.bf16 %v667_v58, %v659_v59  ;;  %v6230_v56 = vpack.c.bf16 %v700_v51, %v692_v49  ;;  %v699_v57 = vld [vmem:[#allocation4 + $0x270] sm:$0xff]  ;;  %v708_v58 = vld [vmem:[#allocation4 + $0x2b8] sm:$0xff] }
 0x191   :  { %942 = vmatmul.mubr.f32.vlgmr.msra.gmra.mrb[4].mxu0 %v8226_v39  ;;  %v6162_v36 = vpack.c.bf16 %v682_v62, %v674_v61  ;;  %v706_v59 = vld [vmem:[#allocation4 + $0x2a8] sm:$0xff]  ;;  %v716_v61 = vld [vmem:[#allocation4 + $0x2f8] sm:$0xff] }
 0x192   :  { %1013 = vmatmul.mubr.f32.vlgmr.msra.gmra.mrb[4].mxu1 %v8226_v39  ;;  %6153 = vmatpush1.bf16.msra.mxu0 %v6152_v35  ;;  %v673_v35 = vld [vmem:[#allocation4 + $0x1a0] sm:$0xff] }
 0x193   :  { %6217 = vmatpush1.bf16.msra.mxu1 %v6216_v37  ;;  %6155 = vmatprep.subr.bf16.mxu0 %v6154_v38  ;;  %v681_v37 = vld [vmem:[#allocation4 + $0x1e0] sm:$0xff]  ;;  %v675_v38 = vld [vmem:[#allocation4 + $0x1b0] sm:$0xff] }
 0x194   :  { %6219 = vmatprep.subr.bf16.mxu1 %v6218_v41  ;;  %1083 = vmatprep.mubr.f32.mxu0 %v8226_v39  ;;  %v698_v41 = vld [vmem:[#allocation4 + $0x268] sm:$0xff]  ;;  %v6164_v50 = vpack.c.bf16 %v681_v37, %v673_v35  ;;  %v6228_v52 = vpack.c.bf16 %v683_v42, %v675_v38  ;;  %v6234_v35 = vpack.c.bf16 %v716_v61, %v708_v58  ;;  %v715_v37 = vld [vmem:[#allocation4 + $0x2f0] sm:$0xff]  ;;  %v724_v42 = vld [vmem:[#allocation4 + $0x338] sm:$0xff] }
 0x195   :  { %1154 = vmatprep.mubr.f32.mxu1 %v8226_v39  ;;  %v6166_v47 = vpack.c.bf16 %v698_v41, %v690_v46  ;;  %v722_v38 = vld [vmem:[#allocation4 + $0x328] sm:$0xff]  ;;  %v732_v46 = vld [vmem:[#allocation4 + $0x378] sm:$0xff] }
 0x196   :  { %6157 = vmatpush1.bf16.msra.mxu0 %v6156_v53  ;;  %v689_v53 = vld [vmem:[#allocation4 + $0x220] sm:$0xff] }
 0x197   :  { %6221 = vmatpush1.bf16.msra.mxu1 %v6220_v55  ;;  %6159 = vmatprep.subr.bf16.mxu0 %v6158_v54  ;;  %v697_v55 = vld [vmem:[#allocation4 + $0x260] sm:$0xff]  ;;  %v691_v54 = vld [vmem:[#allocation4 + $0x230] sm:$0xff] }
 0x198   :  { %6223 = vmatprep.subr.bf16.mxu1 %v6222_v60  ;;  %v714_v60 = vld [vmem:[#allocation4 + $0x2e8] sm:$0xff]  ;;  %v6168_v62 = vpack.c.bf16 %v697_v55, %v689_v53  ;;  %v6232_v63 = vpack.c.bf16 %v699_v57, %v691_v54  ;;  %v6238_v53 = vpack.c.bf16 %v732_v46, %v724_v42  ;;  %v731_v55 = vld [vmem:[#allocation4 + $0x370] sm:$0xff]  ;;  %v740_v57 = vld [vmem:[#allocation4 + $0x3b8] sm:$0xff] }
 0x199   :  { %v6170_v0 = vpack.c.bf16 %v714_v60, %v706_v59  ;;  %v738_v54 = vld [vmem:[#allocation4 + $0x3a8] sm:$0xff]  ;;  %v748_v59 = vld [vmem:[#allocation4 + $0x3f8] sm:$0xff] }
 0x19a   :  { %6161 = vmatpush1.bf16.msra.mxu0 %v6160_v33  ;;  %v705_v33 = vld [vmem:[#allocation4 + $0x2a0] sm:$0xff] }
 0x19b   :  { %6225 = vmatpush1.bf16.msra.mxu1 %v6224_v34  ;;  %6163 = vmatprep.subr.bf16.mxu0 %v6162_v36  ;;  %v713_v34 = vld [vmem:[#allocation4 + $0x2e0] sm:$0xff]  ;;  %v707_v36 = vld [vmem:[#allocation4 + $0x2b0] sm:$0xff] }
 0x19c   :  { %6227 = vmatprep.subr.bf16.mxu1 %v6226_v40  ;;  %v730_v40 = vld [vmem:[#allocation4 + $0x368] sm:$0xff]  ;;  %v6172_v41 = vpack.c.bf16 %v713_v34, %v705_v33  ;;  %v6236_v49 = vpack.c.bf16 %v715_v37, %v707_v36  ;;  %v6242_v33 = vpack.c.bf16 %v748_v59, %v740_v57  ;;  %v747_v34 = vld [vmem:[#allocation4 + $0x3f0] sm:$0xff]  ;;  %v756_v37 = vld [vmem:[#allocation4 + $0x438] sm:$0xff] }
 0x19d   :  { %v6174_v51 = vpack.c.bf16 %v730_v40, %v722_v38  ;;  %v754_v36 = vld [vmem:[#allocation4 + $0x428] sm:$0xff]  ;;  %v764_v38 = vld [vmem:[#allocation4 + $0x478] sm:$0xff] }
 0x19e   :  { %6165 = vmatpush1.bf16.msra.mxu0 %v6164_v50  ;;  %v721_v50 = vld [vmem:[#allocation4 + $0x320] sm:$0xff] }
 0x19f   :  { %6229 = vmatpush1.bf16.msra.mxu1 %v6228_v52  ;;  %6167 = vmatprep.subr.bf16.mxu0 %v6166_v47  ;;  %v729_v52 = vld [vmem:[#allocation4 + $0x360] sm:$0xff]  ;;  %v723_v47 = vld [vmem:[#allocation4 + $0x330] sm:$0xff] }
 0x1a0   :  { %6231 = vmatprep.subr.bf16.mxu1 %v6230_v56  ;;  %v746_v56 = vld [vmem:[#allocation4 + $0x3e8] sm:$0xff]  ;;  %v6176_v60 = vpack.c.bf16 %v729_v52, %v721_v50  ;;  %v6240_v58 = vpack.c.bf16 %v731_v55, %v723_v47  ;;  %v6246_v50 = vpack.c.bf16 %v764_v38, %v756_v37  ;;  %v763_v52 = vld [vmem:[#allocation4 + $0x470] sm:$0xff]  ;;  %v772_v55 = vld [vmem:[#allocation4 + $0x4b8] sm:$0xff] }
 0x1a1   :  { %v6178_v61 = vpack.c.bf16 %v746_v56, %v738_v54  ;;  %v770_v47 = vld [vmem:[#allocation4 + $0x4a8] sm:$0xff]  ;;  %v780_v54 = vld [vmem:[#allocation4 + $0x4f8] sm:$0xff] }
 0x1a2   :  { %6169 = vmatpush1.bf16.msra.mxu0 %v6168_v62  ;;  %v737_v62 = vld [vmem:[#allocation4 + $0x3a0] sm:$0xff] }
 0x1a3   :  { %6233 = vmatpush1.bf16.msra.mxu1 %v6232_v63  ;;  %6171 = vmatprep.subr.bf16.mxu0 %v6170_v0  ;;  %v745_v63 = vld [vmem:[#allocation4 + $0x3e0] sm:$0xff]  ;;  %v739_v0 = vld [vmem:[#allocation4 + $0x3b0] sm:$0xff] }
 0x1a4   :  { %6235 = vmatprep.subr.bf16.mxu1 %v6234_v35  ;;  %v762_v35 = vld [vmem:[#allocation4 + $0x468] sm:$0xff]  ;;  %v6180_v40 = vpack.c.bf16 %v745_v63, %v737_v62  ;;  %v6244_v42 = vpack.c.bf16 %v747_v34, %v739_v0  ;;  %v6250_v62 = vpack.c.bf16 %v780_v54, %v772_v55  ;;  %v779_v63 = vld [vmem:[#allocation4 + $0x4f0] sm:$0xff]  ;;  %v788_v34 = vld [vmem:[#allocation4 + $0x538] sm:$0xff] }
 0x1a5   :  { %v6182_v46 = vpack.c.bf16 %v762_v35, %v754_v36  ;;  %v786_v0 = vld [vmem:[#allocation4 + $0x528] sm:$0xff]  ;;  %v796_v36 = vld [vmem:[#allocation4 + $0x578] sm:$0xff] }
 0x1a6   :  { %6173 = vmatpush1.bf16.msra.mxu0 %v6172_v41  ;;  %v753_v41 = vld [vmem:[#allocation4 + $0x420] sm:$0xff] }
 0x1a7   :  { %6237 = vmatpush1.bf16.msra.mxu1 %v6236_v49  ;;  %6175 = vmatprep.subr.bf16.mxu0 %v6174_v51  ;;  %v761_v49 = vld [vmem:[#allocation4 + $0x460] sm:$0xff]  ;;  %v755_v51 = vld [vmem:[#allocation4 + $0x430] sm:$0xff] }
 0x1a8   :  { %6239 = vmatprep.subr.bf16.mxu1 %v6238_v53  ;;  %v778_v53 = vld [vmem:[#allocation4 + $0x4e8] sm:$0xff]  ;;  %v6184_v56 = vpack.c.bf16 %v761_v49, %v753_v41  ;;  %v6248_v57 = vpack.c.bf16 %v763_v52, %v755_v51  ;;  %v6254_v41 = vpack.c.bf16 %v796_v36, %v788_v34  ;;  %v795_v49 = vld [vmem:[#allocation4 + $0x570] sm:$0xff]  ;;  %v804_v52 = vld [vmem:[#allocation4 + $0x5b8] sm:$0xff] }
 0x1a9   :  { %v6186_v59 = vpack.c.bf16 %v778_v53, %v770_v47  ;;  %v802_v51 = vld [vmem:[#allocation4 + $0x5a8] sm:$0xff]  ;;  %v812_v47 = vld [vmem:[#allocation4 + $0x5f8] sm:$0xff] }
 0x1aa   :  { %6177 = vmatpush1.bf16.msra.mxu0 %v6176_v60  ;;  %v769_v60 = vld [vmem:[#allocation4 + $0x4a0] sm:$0xff] }
 0x1ab   :  { %6241 = vmatpush1.bf16.msra.mxu1 %v6240_v58  ;;  %6179 = vmatprep.subr.bf16.mxu0 %v6178_v61  ;;  %v777_v58 = vld [vmem:[#allocation4 + $0x4e0] sm:$0xff]  ;;  %v771_v61 = vld [vmem:[#allocation4 + $0x4b0] sm:$0xff] }
 0x1ac   :  { %6243 = vmatprep.subr.bf16.mxu1 %v6242_v33  ;;  %v794_v33 = vld [vmem:[#allocation4 + $0x568] sm:$0xff]  ;;  %v6188_v35 = vpack.c.bf16 %v777_v58, %v769_v60  ;;  %v6252_v37 = vpack.c.bf16 %v779_v63, %v771_v61  ;;  %v6258_v60 = vpack.c.bf16 %v812_v47, %v804_v52  ;;  %v811_v58 = vld [vmem:[#allocation4 + $0x5f0] sm:$0xff]  ;;  %v820_v63 = vld [vmem:[#allocation4 + $0x638] sm:$0xff] }
 0x1ad   :  { %v6190_v38 = vpack.c.bf16 %v794_v33, %v786_v0  ;;  %v818_v61 = vld [vmem:[#allocation4 + $0x628] sm:$0xff]  ;;  %v828_v0 = vld [vmem:[#allocation4 + $0x678] sm:$0xff] }
 0x1ae   :  { %6181 = vmatpush1.bf16.msra.mxu0 %v6180_v40  ;;  %v785_v40 = vld [vmem:[#allocation4 + $0x520] sm:$0xff] }
 0x1af   :  { %6245 = vmatpush1.bf16.msra.mxu1 %v6244_v42  ;;  %6183 = vmatprep.subr.bf16.mxu0 %v6182_v46  ;;  %v793_v42 = vld [vmem:[#allocation4 + $0x560] sm:$0xff]  ;;  %v787_v46 = vld [vmem:[#allocation4 + $0x530] sm:$0xff] }
 0x1b0   :  { %6247 = vmatprep.subr.bf16.mxu1 %v6246_v50  ;;  %v810_v50 = vld [vmem:[#allocation4 + $0x5e8] sm:$0xff]  ;;  %v6192_v53 = vpack.c.bf16 %v793_v42, %v785_v40  ;;  %v6256_v55 = vpack.c.bf16 %v795_v49, %v787_v46  ;;  %v6262_v40 = vpack.c.bf16 %v828_v0, %v820_v63  ;;  %v827_v42 = vld [vmem:[#allocation4 + $0x670] sm:$0xff]  ;;  %v836_v49 = vld [vmem:[#allocation4 + $0x6b8] sm:$0xff] }
 0x1b1   :  { %v6194_v54 = vpack.c.bf16 %v810_v50, %v802_v51  ;;  %v834_v46 = vld [vmem:[#allocation4 + $0x6a8] sm:$0xff]  ;;  %v844_v51 = vld [vmem:[#allocation4 + $0x6f8] sm:$0xff] }
 0x1b2   :  { %6185 = vmatpush1.bf16.msra.mxu0 %v6184_v56  ;;  %v801_v56 = vld [vmem:[#allocation4 + $0x5a0] sm:$0xff] }
 0x1b3   :  { %6249 = vmatpush1.bf16.msra.mxu1 %v6248_v57  ;;  %6187 = vmatprep.subr.bf16.mxu0 %v6186_v59  ;;  %v809_v57 = vld [vmem:[#allocation4 + $0x5e0] sm:$0xff]  ;;  %v803_v59 = vld [vmem:[#allocation4 + $0x5b0] sm:$0xff] }
 0x1b4   :  { %6251 = vmatprep.subr.bf16.mxu1 %v6250_v62  ;;  %v826_v62 = vld [vmem:[#allocation4 + $0x668] sm:$0xff]  ;;  %v6196_v33 = vpack.c.bf16 %v809_v57, %v801_v56  ;;  %v6260_v34 = vpack.c.bf16 %v811_v58, %v803_v59  ;;  %v6266_v56 = vpack.c.bf16 %v844_v51, %v836_v49  ;;  %v843_v57 = vld [vmem:[#allocation4 + $0x6f0] sm:$0xff]  ;;  %v852_v58 = vld [vmem:[#allocation4 + $0x738] sm:$0xff] }
 0x1b5   :  { %v6198_v36 = vpack.c.bf16 %v826_v62, %v818_v61  ;;  %v850_v59 = vld [vmem:[#allocation4 + $0x728] sm:$0xff]  ;;  %v860_v61 = vld [vmem:[#allocation4 + $0x778] sm:$0xff] }
 0x1b6   :  { %6189 = vmatpush1.bf16.msra.mxu0 %v6188_v35  ;;  %v817_v35 = vld [vmem:[#allocation4 + $0x620] sm:$0xff] }
 0x1b7   :  { %6253 = vmatpush1.bf16.msra.mxu1 %v6252_v37  ;;  %6191 = vmatprep.subr.bf16.mxu0 %v6190_v38  ;;  %v825_v37 = vld [vmem:[#allocation4 + $0x660] sm:$0xff]  ;;  %v819_v38 = vld [vmem:[#allocation4 + $0x630] sm:$0xff] }
 0x1b8   :  { %6255 = vmatprep.subr.bf16.mxu1 %v6254_v41  ;;  %v842_v41 = vld [vmem:[#allocation4 + $0x6e8] sm:$0xff]  ;;  %v6200_v50 = vpack.c.bf16 %v825_v37, %v817_v35  ;;  %v6264_v52 = vpack.c.bf16 %v827_v42, %v819_v38  ;;  %v6270_v35 = vpack.c.bf16 %v860_v61, %v852_v58  ;;  %v859_v37 = vld [vmem:[#allocation4 + $0x770] sm:$0xff]  ;;  %v868_v42 = vld [vmem:[#allocation4 + $0x7b8] sm:$0xff] }
 0x1b9   :  { %v6202_v47 = vpack.c.bf16 %v842_v41, %v834_v46  ;;  %v866_v38 = vld [vmem:[#allocation4 + $0x7a8] sm:$0xff]  ;;  %v876_v46 = vld [vmem:[#allocation4 + $0x7f8] sm:$0xff] }
 0x1ba   :  { %6193 = vmatpush1.bf16.msra.mxu0 %v6192_v53  ;;  %v833_v53 = vld [vmem:[#allocation4 + $0x6a0] sm:$0xff]  ;;  %v1261_v61 = vld [vmem:[#allocation4 + $0x58] sm:$0xff] }
 0x1bb   :  { %6257 = vmatpush1.bf16.msra.mxu1 %v6256_v55  ;;  %6195 = vmatprep.subr.bf16.mxu0 %v6194_v54  ;;  %v841_v55 = vld [vmem:[#allocation4 + $0x6e0] sm:$0xff]  ;;  %v835_v54 = vld [vmem:[#allocation4 + $0x6b0] sm:$0xff] }
 0x1bc   :  { %6259 = vmatprep.subr.bf16.mxu1 %v6258_v60  ;;  %v858_v60 = vld [vmem:[#allocation4 + $0x768] sm:$0xff]  ;;  %v6204_v62 = vpack.c.bf16 %v841_v55, %v833_v53  ;;  %v6268_v63 = vpack.c.bf16 %v843_v57, %v835_v54  ;;  %v867_v53 = vld [vmem:[#allocation4 + $0x7b0] sm:$0xff] }
 0x1bd   :  { %v6206_v0 = vpack.c.bf16 %v858_v60, %v850_v59  ;;  %v875_v55 = vld [vmem:[#allocation4 + $0x7f0] sm:$0xff]  ;;  %v1251_v57 = vld [vmem:[#allocation4 + $0x8] sm:$0xff]  ;;  %v1253_v60 = vld [vmem:[#allocation4 + $0x18] sm:$0xff] }
 0x1be   :  { %6197 = vmatpush1.bf16.msra.mxu0 %v6196_v33  ;;  %v849_v33 = vld [vmem:[#allocation4 + $0x720] sm:$0xff]  ;;  %v1259_v59 = vld [vmem:[#allocation4 + $0x48] sm:$0xff] }
 0x1bf   :  { %6261 = vmatpush1.bf16.msra.mxu1 %v6260_v34  ;;  %6199 = vmatprep.subr.bf16.mxu0 %v6198_v36  ;;  %v857_v34 = vld [vmem:[#allocation4 + $0x760] sm:$0xff]  ;;  %v851_v36 = vld [vmem:[#allocation4 + $0x730] sm:$0xff]  ;;  %v6278_v58 = vpack.c.bf16 %v1259_v59, %v1251_v57  ;;  %v1293_v57 = vld [vmem:[#allocation4 + $0x158] sm:$0xff] }
 0x1c0   :  { %6263 = vmatprep.subr.bf16.mxu1 %v6262_v40  ;;  %v874_v40 = vld [vmem:[#allocation4 + $0x7e8] sm:$0xff]  ;;  %v6208_v41 = vpack.c.bf16 %v857_v34, %v849_v33  ;;  %v6272_v49 = vpack.c.bf16 %v859_v37, %v851_v36  ;;  %v1252_v34 = vld [vmem:[#allocation4 + $0x10] sm:$0xff]  ;;  %v1282_v59 = vld [vmem:[#allocation4 + $0x100] sm:$0xff] }
 0x1c1   :  { %v6210_v51 = vpack.c.bf16 %v874_v40, %v866_v38  ;;  %v1260_v36 = vld [vmem:[#allocation4 + $0x50] sm:$0xff]  ;;  %v1267_v37 = vld [vmem:[#allocation4 + $0x88] sm:$0xff]  ;;  %v1269_v40 = vld [vmem:[#allocation4 + $0x98] sm:$0xff] }
 0x1c2   :  { %6201 = vmatpush1.bf16.msra.mxu0 %v6200_v50  ;;  %v865_v50 = vld [vmem:[#allocation4 + $0x7a0] sm:$0xff]  ;;  %v1275_v38 = vld [vmem:[#allocation4 + $0xc8] sm:$0xff] }
 0x1c3   :  { %6265 = vmatpush1.bf16.msra.mxu1 %v6264_v52  ;;  %6203 = vmatprep.subr.bf16.mxu0 %v6202_v47  ;;  %v873_v52 = vld [vmem:[#allocation4 + $0x7e0] sm:$0xff]  ;;  %v6274_v47 = vpack.c.bf16 %v876_v46, %v868_v42  ;;  %v1277_v42 = vld [vmem:[#allocation4 + $0xd8] sm:$0xff] }
 0x1c4   :  { %6267 = vmatprep.subr.bf16.mxu1 %v6266_v56  ;;  %v6212_v54 = vpack.c.bf16 %v873_v52, %v865_v50  ;;  %v6276_v56 = vpack.c.bf16 %v875_v55, %v867_v53  ;;  %v1266_v46 = vld [vmem:[#allocation4 + $0x80] sm:$0xff]  ;;  %v1268_v50 = vld [vmem:[#allocation4 + $0x90] sm:$0xff]  ;;  %v1283_v53 = vld [vmem:[#allocation4 + $0x108] sm:$0xff] }
 0x1c5   :  { %v1276_v52 = vld [vmem:[#allocation4 + $0xd0] sm:$0xff]  ;;  %v1291_v55 = vld [vmem:[#allocation4 + $0x148] sm:$0xff] }
 0x1c6   :  { %6205 = vmatpush1.bf16.msra.mxu0 %v6204_v62  ;;  %v1250_v62 = vld [vmem:[#allocation4] sm:$0xff] }
 0x1c7   :  { %6269 = vmatpush1.bf16.msra.mxu1 %v6268_v63  ;;  %6207 = vmatprep.subr.bf16.mxu0 %v6206_v0  ;;  %v1258_v63 = vld [vmem:[#allocation4 + $0x40] sm:$0xff]  ;;  %v6342_v0 = vpack.c.bf16 %v1261_v61, %v1253_v60 }
 0x1c8   :  { %6271 = vmatprep.subr.bf16.mxu1 %v6270_v35  ;;  %v6280_v33 = vpack.c.bf16 %v1258_v63, %v1250_v62  ;;  %v6344_v35 = vpack.c.bf16 %v1260_v36, %v1252_v34  ;;  %v1290_v60 = vld [vmem:[#allocation4 + $0x140] sm:$0xff]  ;;  %v1284_v62 = vld [vmem:[#allocation4 + $0x110] sm:$0xff]  ;;  %v1307_v34 = vld [vmem:[#allocation4 + $0x1c8] sm:$0xff] }
 0x1c9   :  { %v6288_v61 = vpack.c.bf16 %v1290_v60, %v1282_v59  ;;  %v1292_v63 = vld [vmem:[#allocation4 + $0x150] sm:$0xff]  ;;  %v1301_v36 = vld [vmem:[#allocation4 + $0x198] sm:$0xff] }
 0x1ca   :  { %6209 = vmatpush1.bf16.msra.mxu0 %v6208_v41  ;;  %v1274_v41 = vld [vmem:[#allocation4 + $0xc0] sm:$0xff]  ;;  %v1316_v59 = vld [vmem:[#allocation4 + $0x210] sm:$0xff] }
 0x1cb   :  { %6273 = vmatpush1.bf16.msra.mxu1 %v6272_v49  ;;  %6211 = vmatprep.subr.bf16.mxu0 %v6210_v51  ;;  %v6346_v49 = vpack.c.bf16 %v1277_v42, %v1269_v40  ;;  %v6284_v51 = vpack.c.bf16 %v1274_v41, %v1266_v46  ;;  %v1306_v40 = vld [vmem:[#allocation4 + $0x1c0] sm:$0xff]  ;;  %v1300_v46 = vld [vmem:[#allocation4 + $0x190] sm:$0xff] }
 0x1cc   :  { %6275 = vmatprep.subr.bf16.mxu1 %v6274_v47  ;;  %v6348_v47 = vpack.c.bf16 %v1276_v52, %v1268_v50  ;;  %v1308_v41 = vld [vmem:[#allocation4 + $0x1d0] sm:$0xff]  ;;  %v1323_v50 = vld [vmem:[#allocation4 + $0x248] sm:$0xff]  ;;  %v1317_v52 = vld [vmem:[#allocation4 + $0x218] sm:$0xff] }
 0x1cd   :  { %v1324_v60 = vld [vmem:[#allocation4 + $0x250] sm:$0xff] }
 0x1ce   :  { %6213 = vmatpush1.bf16.msra.mxu0 %v6212_v54  ;;  %v1285_v54 = vld [vmem:[#allocation4 + $0x118] sm:$0xff] }
 0x1cf   :  { %6277 = vmatpush1.bf16.msra.mxu1 %v6276_v56  ;;  %6279 = vmatprep.subr.bf16.mxu0 %v6278_v58  ;;  %v6286_v56 = vpack.c.bf16 %v1291_v55, %v1283_v53  ;;  %v6350_v58 = vpack.c.bf16 %v1293_v57, %v1285_v54  ;;  %v1325_v53 = vld [vmem:[#allocation4 + $0x258] sm:$0xff]  ;;  %v1314_v55 = vld [vmem:[#allocation4 + $0x200] sm:$0xff] }
 0x1d0   :  { %6343 = vmatprep.subr.bf16.mxu1 %v6342_v0  ;;  %v6352_v0 = vpack.c.bf16 %v1292_v63, %v1284_v62  ;;  %v1322_v54 = vld [vmem:[#allocation4 + $0x240] sm:$0xff]  ;;  %v1339_v62 = vld [vmem:[#allocation4 + $0x2c8] sm:$0xff]  ;;  %v1333_v63 = vld [vmem:[#allocation4 + $0x298] sm:$0xff] }
 0x1d1   :  { %1084 = vmatmul.mubr.f32.vlgmr.msra.gmra.mrb[6].mxu0 %v8226_v39  ;;  %v6296_v57 = vpack.c.bf16 %v1322_v54, %v1314_v55  ;;  %v1348_v55 = vld [vmem:[#allocation4 + $0x310] sm:$0xff] }
 0x1d2   :  { %1155 = vmatmul.mubr.f32.vlgmr.msra.gmra.mrb[6].mxu1 %v8226_v39  ;;  %6281 = vmatpush1.bf16.msra.mxu0 %v6280_v33  ;;  %v6282_v39 = vpack.c.bf16 %v1275_v38, %v1267_v37  ;;  %v1299_v33 = vld [vmem:[#allocation4 + $0x188] sm:$0xff]  ;;  %v1309_v37 = vld [vmem:[#allocation4 + $0x1d8] sm:$0xff]  ;;  %v1298_v38 = vld [vmem:[#allocation4 + $0x180] sm:$0xff] }
 0x1d3   :  { %6345 = vmatpush1.bf16.msra.mxu1 %v6344_v35  ;;  %v6290_v35 = vpack.c.bf16 %v1307_v34, %v1299_v33  ;;  %v6292_v42 = vpack.c.bf16 %v1306_v40, %v1298_v38  ;;  %v1341_v33 = vld [vmem:[#allocation4 + $0x2d8] sm:$0xff]  ;;  %v1330_v34 = vld [vmem:[#allocation4 + $0x280] sm:$0xff]  ;;  %v1332_v38 = vld [vmem:[#allocation4 + $0x290] sm:$0xff] }
 0x1d4   :  { %6283 = vmatprep.subr.bf16.mxu0 %v6282_v39  ;;  %6347 = vmatprep.subr.bf16.mxu1 %v6346_v49  ;;  %v6354_v39 = vpack.c.bf16 %v1309_v37, %v1301_v36  ;;  %v6356_v49 = vpack.c.bf16 %v1308_v41, %v1300_v46  ;;  %v1338_v36 = vld [vmem:[#allocation4 + $0x2c0] sm:$0xff]  ;;  %v1340_v40 = vld [vmem:[#allocation4 + $0x2d0] sm:$0xff]  ;;  %v1355_v46 = vld [vmem:[#allocation4 + $0x348] sm:$0xff] }
 0x1d5   :  { %v6300_v37 = vpack.c.bf16 %v1338_v36, %v1330_v34  ;;  %v1349_v41 = vld [vmem:[#allocation4 + $0x318] sm:$0xff]  ;;  %v1356_v54 = vld [vmem:[#allocation4 + $0x350] sm:$0xff] }
 0x1d6   :  { %6285 = vmatpush1.bf16.msra.mxu0 %v6284_v51  ;;  %v1315_v51 = vld [vmem:[#allocation4 + $0x208] sm:$0xff]  ;;  %v1364_v34 = vld [vmem:[#allocation4 + $0x390] sm:$0xff] }
 0x1d7   :  { %6349 = vmatpush1.bf16.msra.mxu1 %v6348_v47  ;;  %6287 = vmatprep.subr.bf16.mxu0 %v6286_v56  ;;  %v6294_v47 = vpack.c.bf16 %v1323_v50, %v1315_v51  ;;  %v6358_v56 = vpack.c.bf16 %v1325_v53, %v1317_v52  ;;  %v1357_v51 = vld [vmem:[#allocation4 + $0x358] sm:$0xff]  ;;  %v1346_v50 = vld [vmem:[#allocation4 + $0x300] sm:$0xff]  ;;  %v1372_v36 = vld [vmem:[#allocation4 + $0x3d0] sm:$0xff] }
 0x1d8   :  { %6351 = vmatprep.subr.bf16.mxu1 %v6350_v58  ;;  %v6360_v58 = vpack.c.bf16 %v1324_v60, %v1316_v59  ;;  %v1354_v52 = vld [vmem:[#allocation4 + $0x340] sm:$0xff]  ;;  %v1371_v59 = vld [vmem:[#allocation4 + $0x3c8] sm:$0xff]  ;;  %v1365_v60 = vld [vmem:[#allocation4 + $0x398] sm:$0xff] }
 0x1d9   :  { %v6304_v53 = vpack.c.bf16 %v1354_v52, %v1346_v50  ;;  %v1380_v50 = vld [vmem:[#allocation4 + $0x410] sm:$0xff] }
 0x1da   :  { %6289 = vmatpush1.bf16.msra.mxu0 %v6288_v61  ;;  %v1331_v61 = vld [vmem:[#allocation4 + $0x288] sm:$0xff]  ;;  %v1388_v52 = vld [vmem:[#allocation4 + $0x450] sm:$0xff] }
 0x1db   :  { %6353 = vmatpush1.bf16.msra.mxu1 %v6352_v0  ;;  %6291 = vmatprep.subr.bf16.mxu0 %v6290_v35  ;;  %v6298_v0 = vpack.c.bf16 %v1339_v62, %v1331_v61  ;;  %v6362_v35 = vpack.c.bf16 %v1341_v33, %v1333_v63  ;;  %v1373_v61 = vld [vmem:[#allocation4 + $0x3d8] sm:$0xff]  ;;  %v1362_v62 = vld [vmem:[#allocation4 + $0x380] sm:$0xff] }
 0x1dc   :  { %6355 = vmatprep.subr.bf16.mxu1 %v6354_v39  ;;  %v6364_v39 = vpack.c.bf16 %v1340_v40, %v1332_v38  ;;  %v1370_v63 = vld [vmem:[#allocation4 + $0x3c0] sm:$0xff]  ;;  %v1387_v38 = vld [vmem:[#allocation4 + $0x448] sm:$0xff]  ;;  %v1381_v40 = vld [vmem:[#allocation4 + $0x418] sm:$0xff] }
 0x1dd   :  { %v6308_v33 = vpack.c.bf16 %v1370_v63, %v1362_v62  ;;  %v1396_v62 = vld [vmem:[#allocation4 + $0x490] sm:$0xff] }
 0x1de   :  { %6293 = vmatpush1.bf16.msra.mxu0 %v6292_v42  ;;  %v1347_v42 = vld [vmem:[#allocation4 + $0x308] sm:$0xff]  ;;  %v1404_v63 = vld [vmem:[#allocation4 + $0x4d0] sm:$0xff] }
 0x1df   :  { %6357 = vmatpush1.bf16.msra.mxu1 %v6356_v49  ;;  %6295 = vmatprep.subr.bf16.mxu0 %v6294_v47  ;;  %v6302_v49 = vpack.c.bf16 %v1355_v46, %v1347_v42  ;;  %v6366_v47 = vpack.c.bf16 %v1357_v51, %v1349_v41  ;;  %v1389_v42 = vld [vmem:[#allocation4 + $0x458] sm:$0xff]  ;;  %v1378_v46 = vld [vmem:[#allocation4 + $0x400] sm:$0xff] }
 0x1e0   :  { %6359 = vmatprep.subr.bf16.mxu1 %v6358_v56  ;;  %v6368_v56 = vpack.c.bf16 %v1356_v54, %v1348_v55  ;;  %v1386_v41 = vld [vmem:[#allocation4 + $0x440] sm:$0xff]  ;;  %v1403_v55 = vld [vmem:[#allocation4 + $0x4c8] sm:$0xff]  ;;  %v1397_v54 = vld [vmem:[#allocation4 + $0x498] sm:$0xff] }
 0x1e1   :  { %v6312_v51 = vpack.c.bf16 %v1386_v41, %v1378_v46  ;;  %v1412_v46 = vld [vmem:[#allocation4 + $0x510] sm:$0xff] }
 0x1e2   :  { %6297 = vmatpush1.bf16.msra.mxu0 %v6296_v57  ;;  %v1363_v57 = vld [vmem:[#allocation4 + $0x388] sm:$0xff]  ;;  %v1420_v41 = vld [vmem:[#allocation4 + $0x550] sm:$0xff] }
 0x1e3   :  { %6361 = vmatpush1.bf16.msra.mxu1 %v6360_v58  ;;  %6299 = vmatprep.subr.bf16.mxu0 %v6298_v0  ;;  %v6306_v58 = vpack.c.bf16 %v1371_v59, %v1363_v57  ;;  %v6370_v0 = vpack.c.bf16 %v1373_v61, %v1365_v60  ;;  %v1405_v57 = vld [vmem:[#allocation4 + $0x4d8] sm:$0xff]  ;;  %v1394_v59 = vld [vmem:[#allocation4 + $0x480] sm:$0xff] }
 0x1e4   :  { %6363 = vmatprep.subr.bf16.mxu1 %v6362_v35  ;;  %v6372_v35 = vpack.c.bf16 %v1372_v36, %v1364_v34  ;;  %v1402_v60 = vld [vmem:[#allocation4 + $0x4c0] sm:$0xff]  ;;  %v1419_v34 = vld [vmem:[#allocation4 + $0x548] sm:$0xff]  ;;  %v1413_v36 = vld [vmem:[#allocation4 + $0x518] sm:$0xff] }
 0x1e5   :  { %v6316_v61 = vpack.c.bf16 %v1402_v60, %v1394_v59  ;;  %v1428_v59 = vld [vmem:[#allocation4 + $0x590] sm:$0xff] }
 0x1e6   :  { %6301 = vmatpush1.bf16.msra.mxu0 %v6300_v37  ;;  %v1379_v37 = vld [vmem:[#allocation4 + $0x408] sm:$0xff]  ;;  %v1436_v60 = vld [vmem:[#allocation4 + $0x5d0] sm:$0xff] }
 0x1e7   :  { %6365 = vmatpush1.bf16.msra.mxu1 %v6364_v39  ;;  %6303 = vmatprep.subr.bf16.mxu0 %v6302_v49  ;;  %v6310_v39 = vpack.c.bf16 %v1387_v38, %v1379_v37  ;;  %v6374_v49 = vpack.c.bf16 %v1389_v42, %v1381_v40  ;;  %v1421_v37 = vld [vmem:[#allocation4 + $0x558] sm:$0xff]  ;;  %v1410_v38 = vld [vmem:[#allocation4 + $0x500] sm:$0xff] }
 0x1e8   :  { %6367 = vmatprep.subr.bf16.mxu1 %v6366_v47  ;;  %v6376_v47 = vpack.c.bf16 %v1388_v52, %v1380_v50  ;;  %v1418_v40 = vld [vmem:[#allocation4 + $0x540] sm:$0xff]  ;;  %v1435_v50 = vld [vmem:[#allocation4 + $0x5c8] sm:$0xff]  ;;  %v1429_v52 = vld [vmem:[#allocation4 + $0x598] sm:$0xff] }
 0x1e9   :  { %v6320_v42 = vpack.c.bf16 %v1418_v40, %v1410_v38  ;;  %v1452_v40 = vld [vmem:[#allocation4 + $0x650] sm:$0xff] }
 0x1ea   :  { %6305 = vmatpush1.bf16.msra.mxu0 %v6304_v53  ;;  %v1395_v53 = vld [vmem:[#allocation4 + $0x488] sm:$0xff] }
 0x1eb   :  { %6369 = vmatpush1.bf16.msra.mxu1 %v6368_v56  ;;  %6307 = vmatprep.subr.bf16.mxu0 %v6306_v58  ;;  %v6314_v56 = vpack.c.bf16 %v1403_v55, %v1395_v53  ;;  %v6378_v58 = vpack.c.bf16 %v1405_v57, %v1397_v54  ;;  %v1437_v53 = vld [vmem:[#allocation4 + $0x5d8] sm:$0xff]  ;;  %v1426_v55 = vld [vmem:[#allocation4 + $0x580] sm:$0xff] }
 0x1ec   :  { %6371 = vmatprep.subr.bf16.mxu1 %v6370_v0  ;;  %v6380_v0 = vpack.c.bf16 %v1404_v63, %v1396_v62  ;;  %v1434_v54 = vld [vmem:[#allocation4 + $0x5c0] sm:$0xff]  ;;  %v1451_v62 = vld [vmem:[#allocation4 + $0x648] sm:$0xff]  ;;  %v1445_v63 = vld [vmem:[#allocation4 + $0x618] sm:$0xff] }
 0x1ed   :  { %v6324_v57 = vpack.c.bf16 %v1434_v54, %v1426_v55  ;;  %v1468_v55 = vld [vmem:[#allocation4 + $0x6d0] sm:$0xff]  ;;  %v1475_v54 = vld [vmem:[#allocation4 + $0x708] sm:$0xff] }
 0x1ee   :  { %6309 = vmatpush1.bf16.msra.mxu0 %v6308_v33  ;;  %v1411_v33 = vld [vmem:[#allocation4 + $0x508] sm:$0xff] }
 0x1ef   :  { %6373 = vmatpush1.bf16.msra.mxu1 %v6372_v35  ;;  %6311 = vmatprep.subr.bf16.mxu0 %v6310_v39  ;;  %v6318_v35 = vpack.c.bf16 %v1419_v34, %v1411_v33  ;;  %v6382_v39 = vpack.c.bf16 %v1421_v37, %v1413_v36  ;;  %v1442_v36 = vld [vmem:[#allocation4 + $0x600] sm:$0xff]  ;;  %v1444_v37 = vld [vmem:[#allocation4 + $0x610] sm:$0xff] }
 0x1f0   :  { %6375 = vmatprep.subr.bf16.mxu1 %v6374_v49  ;;  %v6384_v49 = vpack.c.bf16 %v1420_v41, %v1412_v46  ;;  %v6392_v46 = vpack.c.bf16 %v1452_v40, %v1444_v37  ;;  %v1493_v37 = vld [vmem:[#allocation4 + $0x798] sm:$0xff] }
 0x1f1   :  { %v1501_v40 = vld [vmem:[#allocation4 + $0x7d8] sm:$0xff] }
 0x1f2   :  { %6313 = vmatpush1.bf16.msra.mxu0 %v6312_v51  ;;  %v1427_v51 = vld [vmem:[#allocation4 + $0x588] sm:$0xff] }
 0x1f3   :  { %6377 = vmatpush1.bf16.msra.mxu1 %v6376_v47  ;;  %6315 = vmatprep.subr.bf16.mxu0 %v6314_v56  ;;  %v6322_v47 = vpack.c.bf16 %v1435_v50, %v1427_v51  ;;  %v6386_v56 = vpack.c.bf16 %v1437_v53, %v1429_v52  ;;  %v1469_v51 = vld [vmem:[#allocation4 + $0x6d8] sm:$0xff]  ;;  %v1458_v50 = vld [vmem:[#allocation4 + $0x680] sm:$0xff]  ;;  %v1460_v53 = vld [vmem:[#allocation4 + $0x690] sm:$0xff] }
 0x1f4   :  { %6379 = vmatprep.subr.bf16.mxu1 %v6378_v58  ;;  %v1443_v58 = vld [vmem:[#allocation4 + $0x608] sm:$0xff] }
 0x1f5   :  { %v6326_v33 = vpack.c.bf16 %v1451_v62, %v1443_v58  ;;  %v6396_v58 = vpack.c.bf16 %v1468_v55, %v1460_v53  ;;  %v1474_v62 = vld [vmem:[#allocation4 + $0x700] sm:$0xff] }
 0x1f6   :  { %6317 = vmatpush1.bf16.msra.mxu0 %v6316_v61  ;;  %v6388_v61 = vpack.c.bf16 %v1436_v60, %v1428_v59  ;;  %v1477_v59 = vld [vmem:[#allocation4 + $0x718] sm:$0xff] }
 0x1f7   :  { %6381 = vmatpush1.bf16.msra.mxu1 %v6380_v0  ;;  %6319 = vmatprep.subr.bf16.mxu0 %v6318_v35  ;;  %v1453_v0 = vld [vmem:[#allocation4 + $0x658] sm:$0xff]  ;;  %v1450_v35 = vld [vmem:[#allocation4 + $0x640] sm:$0xff] }
 0x1f8   :  { %6383 = vmatprep.subr.bf16.mxu1 %v6382_v39  ;;  %v6390_v34 = vpack.c.bf16 %v1453_v0, %v1445_v63  ;;  %v6328_v38 = vpack.c.bf16 %v1450_v35, %v1442_v36  ;;  %v1459_v39 = vld [vmem:[#allocation4 + $0x688] sm:$0xff]  ;;  %v1485_v60 = vld [vmem:[#allocation4 + $0x758] sm:$0xff]  ;;  %v1482_v63 = vld [vmem:[#allocation4 + $0x740] sm:$0xff] }
 0x1f9   :  { %v1476_v0 = vld [vmem:[#allocation4 + $0x710] sm:$0xff]  ;;  %v1491_v36 = vld [vmem:[#allocation4 + $0x788] sm:$0xff] }
 0x1fa   :  { %6321 = vmatpush1.bf16.msra.mxu0 %v6320_v42  ;;  %v1467_v42 = vld [vmem:[#allocation4 + $0x6c8] sm:$0xff] }
 0x1fb   :  { %6385 = vmatpush1.bf16.msra.mxu1 %v6384_v49  ;;  %6323 = vmatprep.subr.bf16.mxu0 %v6322_v47  ;;  %v6330_v41 = vpack.c.bf16 %v1467_v42, %v1459_v39  ;;  %v1461_v49 = vld [vmem:[#allocation4 + $0x698] sm:$0xff]  ;;  %v1466_v47 = vld [vmem:[#allocation4 + $0x6c0] sm:$0xff]  ;;  %v1499_v35 = vld [vmem:[#allocation4 + $0x7c8] sm:$0xff]  ;;  %v6336_v39 = vpack.c.bf16 %v1482_v63, %v1474_v62 }
 0x1fc   :  { %6387 = vmatprep.subr.bf16.mxu1 %v6386_v56  ;;  %v6394_v52 = vpack.c.bf16 %v1469_v51, %v1461_v49  ;;  %v1483_v56 = vld [vmem:[#allocation4 + $0x748] sm:$0xff]  ;;  %v6338_v42 = vpack.c.bf16 %v1499_v35, %v1491_v36  ;;  %v6402_v49 = vpack.c.bf16 %v1501_v40, %v1493_v37  ;;  %v1492_v51 = vld [vmem:[#allocation4 + $0x790] sm:$0xff] }
 0x1fe   :  { %6325 = vmatpush1.bf16.msra.mxu0 %v6324_v57  ;;  %v6332_v57 = vpack.c.bf16 %v1466_v47, %v1458_v50  ;;  %v1500_v50 = vld [vmem:[#allocation4 + $0x7d0] sm:$0xff]  ;;  %v8227_v47 = vmov 1966171168  }
 0x1ff   :  { %6389 = vmatpush1.bf16.msra.mxu1 %v6388_v61  ;;  %6327 = vmatprep.subr.bf16.mxu0 %v6326_v33  ;;  %v6334_v61 = vpack.c.bf16 %v1483_v56, %v1475_v54  ;;  %v6398_v33 = vpack.c.bf16 %v1485_v60, %v1477_v59  ;;  %v6404_v55 = vpack.c.bf16 %v1500_v50, %v1492_v51  ;;  %v1255_v56 = vld [vmem:[#allocation4 + $0x28] sm:$0xff] }
 0x200   :  { %6391 = vmatprep.subr.bf16.mxu1 %v6390_v34  ;;  %v1484_v34 = vld [vmem:[#allocation4 + $0x750] sm:$0xff]  ;;  %v1263_v59 = vld [vmem:[#allocation4 + $0x68] sm:$0xff] }
 0x201   :  { %v6406_v60 = vpack.c.bf16 %v1263_v59, %v1255_v56 }
 0x202   :  { %6329 = vmatpush1.bf16.msra.mxu0 %v6328_v38  ;;  %v6400_v38 = vpack.c.bf16 %v1484_v34, %v1476_v0 }
 0x203   :  { %6393 = vmatpush1.bf16.msra.mxu1 %v6392_v46  ;;  %6331 = vmatprep.subr.bf16.mxu0 %v6330_v41  ;;  %v1490_v46 = vld [vmem:[#allocation4 + $0x780] sm:$0xff] }
 0x204   :  { %6395 = vmatprep.subr.bf16.mxu1 %v6394_v52  ;;  %v1498_v41 = vld [vmem:[#allocation4 + $0x7c0] sm:$0xff]  ;;  %v1174_v52 = vunpack.c.l.s4 %v8227_v47 }
 0x205   :  { %v6340_v53 = vpack.c.bf16 %v1498_v41, %v1490_v46  ;;  %v618_v47 = vld [vmem:[#allocation2] ss:$8 sm:$0xf] }
 0x206   :  { %6333 = vmatpush1.bf16.msra.mxu0 %v6332_v57  ;;  %v1175_v54 = vunpack.c.0.s8 %v1174_v52  ;;  %v1257_v57 = vld [vmem:[#allocation4 + $0x38] sm:$0xff] }
 0x207   :  { %6397 = vmatpush1.bf16.msra.mxu1 %v6396_v58  ;;  %6335 = vmatprep.subr.bf16.mxu0 %v6334_v61  ;;  %v1265_v58 = vld [vmem:[#allocation4 + $0x78] sm:$0xff] }
 0x208   :  { %6399 = vmatprep.subr.bf16.mxu1 %v6398_v33  ;;  %v6470_v61 = vpack.c.bf16 %v1265_v58, %v1257_v57  ;;  %v8492_v63 = vsub.s32 %v1175_v54, %v8464_v44  ;;  %v619_v52 = vld [vmem:[#allocation2] ss:$8 sm:$0xf0] }
 0x209   :  { %v620_v54 = vor.u32 %v619_v52, %v618_v47  ;;  %v1273_v47 = vld [vmem:[#allocation4 + $0xb8] sm:$0xff] }
 0x20a   :  { %6337 = vmatpush1.bf16.msra.mxu0 %v6336_v39  ;;  %v1281_v52 = vld [vmem:[#allocation4 + $0xf8] sm:$0xff] }
 0x20b   :  { %6401 = vmatpush1.bf16.msra.mxu1 %v6400_v38  ;;  %6339 = vmatprep.subr.bf16.mxu0 %v6338_v42 }
 0x20c   :  { %6403 = vmatprep.subr.bf16.mxu1 %v6402_v49 }
 0x20e   :  { %6341 = vmatpush1.bf16.msra.mxu0 %v6340_v53 }
 0x20f   :  { %6405 = vmatpush1.bf16.msra.mxu1 %v6404_v55  ;;  %6407 = vmatprep.subr.bf16.mxu0 %v6406_v60 }
 0x210   :  { %6471 = vmatprep.subr.bf16.mxu1 %v6470_v61 }
 0x264   :  { %v943_v62 = vpop.f32.mrb[4].mxu0 }
 0x265   :  { %v1014_v0 = vpop.f32.mrb[4].mxu1  ;;  %v945_v33 = vpop.f32.mrb[5].mxu0 }
 0x266   :  { %v1169_v34 = vcombine.low %v943_v62, %v945_v33  ;;  %v1016_v36 = vpop.f32.mrb[5].mxu1 }
 0x267   :  { %v1170_v35 = vcombine.low %v1014_v0, %v1016_v36 }
 0x268   :  { %v1179_v37 = vrot.slane %v1169_v34, %v8492_v63 }
 0x269   :  { %v1186_v40 = vrot.slane %v1170_v35, %v8492_v63 }
 0x26b   :  { %v1201_v39 = vcombine.low %v1179_v37, %v1186_v40 }
 0x26d   :  { %v1209_v55 = vrot.slane %v1201_v39, %v8492_v63  ;;  %v1254_v39 = vld [vmem:[#allocation4 + $0x20] sm:$0xff] }
 0x2a4   :  { %v1085_v38 = vpop.f32.mrb[6].mxu0 }
 0x2a5   :  { %v1156_v42 = vpop.f32.mrb[6].mxu1  ;;  %v1087_v46 = vpop.f32.mrb[7].mxu0 }
 0x2a6   :  { %v1171_v41 = vcombine.low %v1085_v38, %v1087_v46  ;;  %v1158_v49 = vpop.f32.mrb[7].mxu1  ;;  %v1262_v46 = vld [vmem:[#allocation4 + $0x60] sm:$0xff] }
 0x2a7   :  { %v1172_v51 = vcombine.low %v1156_v42, %v1158_v49  ;;  %v1264_v49 = vld [vmem:[#allocation4 + $0x70] sm:$0xff]  ;;  %v6408_v43 = vpack.c.bf16 %v1262_v46, %v1254_v39  ;;  %v1294_v39 = vld [vmem:[#allocation4 + $0x160] sm:$0xff] }
 0x2a8   :  { %v1193_v44 = vrot.slane %v1171_v41, %v8492_v63  ;;  %v1256_v41 = vld [vmem:[#allocation4 + $0x30] sm:$0xff] }
 0x2a9   :  { %v1200_v50 = vrot.slane %v1172_v51, %v8492_v63 }
 0x2ab   :  { %v1202_v53 = vcombine.low %v1193_v44, %v1200_v50  ;;  %v1271_v44 = vld [vmem:[#allocation4 + $0xa8] sm:$0xff] }
 0x2ac   :  { %v1279_v50 = vld [vmem:[#allocation4 + $0xe8] sm:$0xff] }
 0x2ad   :  { %v1216_v56 = vrot.slane %v1202_v53, %v8492_v63 }
 0x2af   :  { %v1217_v59 = vcombine.low %v1209_v55, %v1216_v56  ;;  %v1270_v56 = vld [vmem:[#allocation4 + $0xa0] sm:$0xff] }
 0x2b1   :  { %v1219_v57 = vadd.f32 %v1217_v59, %v620_v54  ;;  %v6472_v54 = vpack.c.bf16 %v1264_v49, %v1256_v41  ;;  %v1278_v59 = vld [vmem:[#allocation4 + $0xe0] sm:$0xff]  ;;  %v1288_v41 = vld [vmem:[#allocation4 + $0x130] sm:$0xff] }
 0x2b2   :  { %v1296_v49 = vld [vmem:[#allocation4 + $0x170] sm:$0xff] }
 0x2b3   :  { %v5848_v60 = vmul.f32 -1.442695, %v1219_v57  ;;  %v1227_v62 = vrot.slane %v1219_v57, 6  ;;  %v1272_v57 = vld [vmem:[#allocation4 + $0xb0] sm:$0xff] }
 0x2b5   :  { %8108 = vpow2.f32 %v5848_v60  ;;  %v1280_v60 = vld [vmem:[#allocation4 + $0xf0] sm:$0xff] }
 0x2bf   :  { %v8109_v58 = vpop.eup %8108 }
 0x2c0   :  { %v1223_v61 = vadd.f32 1.0, %v8109_v58  ;;  %v1287_v58 = vld [vmem:[#allocation4 + $0x128] sm:$0xff] }
 0x2c2   :  { %8110 = vrcp.f32 %v1223_v61  ;;  %v6410_v61 = vpack.c.bf16 %v1279_v50, %v1271_v44  ;;  %v1311_v44 = vld [vmem:[#allocation4 + $0x1e8] sm:$0xff]  ;;  %v1305_v50 = vld [vmem:[#allocation4 + $0x1b8] sm:$0xff] }
 0x2c3   :  { %8112 = vtanh.f32 %v1227_v62  ;;  %v6474_v62 = vpack.c.bf16 %v1281_v52, %v1273_v47  ;;  %v1313_v47 = vld [vmem:[#allocation4 + $0x1f8] sm:$0xff] }
 0x2cc   :  { %v8111_v0 = vpop.eup %8110 }
 0x2cd   :  { %v1231_v33 = vrot.slane %v8111_v0, 2  ;;  %v8113_v34 = vpop.eup %8112  ;;  %v1237_v40 = vrot.slane %v8111_v0, 4 }
 0x2ce   :  { %v1234_v36 = vmul.f32 %v8113_v34, %v8111_v0  ;;  %v1295_v0 = vld [vmem:[#allocation4 + $0x168] sm:$0xff]  ;;  %v1297_v34 = vld [vmem:[#allocation4 + $0x178] sm:$0xff] }
 0x2cf   :  { %v1233_v35 = vmul.f32 0.0, %v1231_v33  ;;  %v1289_v33 = vld [vmem:[#allocation4 + $0x138] sm:$0xff] }
 0x2d0   :  { %v6478_v46 = vpack.c.bf16 %v1297_v34, %v1289_v33  ;;  %v1321_v33 = vld [vmem:[#allocation4 + $0x238] sm:$0xff] }
 0x2d1   :  { %v8500_v37 = vadd.f32 %v1234_v36, %v1233_v35  ;;  %v6412_v36 = vpack.c.bf16 %v1278_v59, %v1270_v56  ;;  %v6476_v35 = vpack.c.bf16 %v1280_v60, %v1272_v57  ;;  %v1310_v56 = vld [vmem:[#allocation4 + $0x1e0] sm:$0xff]  ;;  %v1304_v57 = vld [vmem:[#allocation4 + $0x1b0] sm:$0xff] }
 0x2d2   :  { %v1312_v60 = vld [vmem:[#allocation4 + $0x1f0] sm:$0xff] }
 0x2d3   :  { %8114 = vtanh.f32 %v8500_v37  ;;  %v6484_v34 = vpack.c.bf16 %v1312_v60, %v1304_v57  ;;  %v1351_v57 = vld [vmem:[#allocation4 + $0x328] sm:$0xff] }
 0x2d4   :  { %v1359_v60 = vld [vmem:[#allocation4 + $0x368] sm:$0xff] }
 0x2dd   :  { %v8115_v38 = vpop.eup %8114 }
 0x2de   :  { %v1239_v51 = vmul.f32 %v8115_v38, %v1237_v40  ;;  %v1286_v40 = vld [vmem:[#allocation4 + $0x120] sm:$0xff]  ;;  %v6414_v38 = vpack.c.bf16 %v1295_v0, %v1287_v58  ;;  %v1319_v58 = vld [vmem:[#allocation4 + $0x228] sm:$0xff] }
 0x2df   :  { %v6416_v52 = vpack.c.bf16 %v1294_v39, %v1286_v40  ;;  %v1327_v0 = vld [vmem:[#allocation4 + $0x268] sm:$0xff] }
 0x2e0   :  { %1244 = vst.msk [vmem:[#allocation3] ss:$8 sm:$0x3] %vm8504_vm0, %v1239_v51  ;;  %v1514_v53 = vrot.slane %v1239_v51, %v8474_v48  ;;  %v8512_v55 = vrot.slane %v1239_v51, %v8467_v45  ;;  %v1303_v51 = vld [vmem:[#allocation4 + $0x1a8] sm:$0xff]  ;;  %v6422_v40 = vpack.c.bf16 %v1327_v0, %v1319_v58  ;;  %v1353_v58 = vld [vmem:[#allocation4 + $0x338] sm:$0xff] }
 0x2e1   :  { %v6418_v59 = vpack.c.bf16 %v1311_v44, %v1303_v51  ;;  %v1337_v51 = vld [vmem:[#allocation4 + $0x2b8] sm:$0xff] }
 0x2e2   :  { %1581 = vmatprep.mubr.f32.mxu0 %v1514_v53  ;;  %1652 = vmatprep.mubr.f32.mxu1 %v1514_v53  ;;  %v1345_v44 = vld [vmem:[#allocation4 + $0x2f8] sm:$0xff] }
 0x2e3   :  { %1582 = vmatmul.mubr.f32.vlgmr.msra.gmra.mrb[8].mxu0 %v8512_v55  ;;  %1653 = vmatmul.mubr.f32.vlgmr.msra.gmra.mrb[8].mxu1 %v8512_v55  ;;  %v1361_v0 = vld [vmem:[#allocation4 + $0x378] sm:$0xff] }
 0x2e4   :  { %6409 = vmatpush1.bf16.msra.mxu0 %v6408_v43  ;;  %6473 = vmatpush1.bf16.msra.mxu1 %v6472_v54  ;;  %v6480_v43 = vpack.c.bf16 %v1296_v49, %v1288_v41  ;;  %v1302_v54 = vld [vmem:[#allocation4 + $0x1a0] sm:$0xff]  ;;  %v1335_v41 = vld [vmem:[#allocation4 + $0x2a8] sm:$0xff] }
 0x2e5   :  { %1723 = vmatprep.mubr.f32.mxu0 %v1514_v53  ;;  %1794 = vmatprep.mubr.f32.mxu1 %v1514_v53  ;;  %v6482_v53 = vpack.c.bf16 %v1313_v47, %v1305_v50  ;;  %v1343_v49 = vld [vmem:[#allocation4 + $0x2e8] sm:$0xff] }
 0x2e6   :  { %6411 = vmatprep.subr.bf16.mxu0 %v6410_v61  ;;  %6475 = vmatprep.subr.bf16.mxu1 %v6474_v62  ;;  %v1329_v61 = vld [vmem:[#allocation4 + $0x278] sm:$0xff]  ;;  %v6420_v62 = vpack.c.bf16 %v1310_v56, %v1302_v54  ;;  %v6426_v54 = vpack.c.bf16 %v1343_v49, %v1335_v41  ;;  %v6490_v56 = vpack.c.bf16 %v1345_v44, %v1337_v51 }
 0x2e7   :  { %v6486_v39 = vpack.c.bf16 %v1329_v61, %v1321_v33  ;;  %v1369_v41 = vld [vmem:[#allocation4 + $0x3b8] sm:$0xff] }
 0x2e8   :  { %6413 = vmatpush1.bf16.msra.mxu0 %v6412_v36  ;;  %6477 = vmatpush1.bf16.msra.mxu1 %v6476_v35  ;;  %v1318_v36 = vld [vmem:[#allocation4 + $0x220] sm:$0xff]  ;;  %v1377_v49 = vld [vmem:[#allocation4 + $0x3f8] sm:$0xff] }
 0x2e9   :  { %6415 = vmatprep.subr.bf16.mxu0 %v6414_v38  ;;  %6479 = vmatprep.subr.bf16.mxu1 %v6478_v46  ;;  %v1326_v35 = vld [vmem:[#allocation4 + $0x260] sm:$0xff]  ;;  %v1320_v38 = vld [vmem:[#allocation4 + $0x230] sm:$0xff] }
 0x2ea   :  { %v1328_v46 = vld [vmem:[#allocation4 + $0x270] sm:$0xff]  ;;  %v6424_v50 = vpack.c.bf16 %v1326_v35, %v1318_v36  ;;  %v6430_v36 = vpack.c.bf16 %v1359_v60, %v1351_v57  ;;  %v6494_v35 = vpack.c.bf16 %v1361_v0, %v1353_v58  ;;  %v1385_v57 = vld [vmem:[#allocation4 + $0x438] sm:$0xff] }
 0x2eb   :  { %v6488_v47 = vpack.c.bf16 %v1328_v46, %v1320_v38  ;;  %v1367_v38 = vld [vmem:[#allocation4 + $0x3a8] sm:$0xff]  ;;  %v1393_v60 = vld [vmem:[#allocation4 + $0x478] sm:$0xff] }
 0x2ec   :  { %6417 = vmatpush1.bf16.msra.mxu0 %v6416_v52  ;;  %6481 = vmatpush1.bf16.msra.mxu1 %v6480_v43  ;;  %v1334_v52 = vld [vmem:[#allocation4 + $0x2a0] sm:$0xff]  ;;  %v1375_v46 = vld [vmem:[#allocation4 + $0x3e8] sm:$0xff] }
 0x2ed   :  { %6419 = vmatprep.subr.bf16.mxu0 %v6418_v59  ;;  %6483 = vmatprep.subr.bf16.mxu1 %v6482_v53  ;;  %v1342_v43 = vld [vmem:[#allocation4 + $0x2e0] sm:$0xff]  ;;  %v1336_v59 = vld [vmem:[#allocation4 + $0x2b0] sm:$0xff] }
 0x2ee   :  { %v1344_v53 = vld [vmem:[#allocation4 + $0x2f0] sm:$0xff]  ;;  %v6428_v33 = vpack.c.bf16 %v1342_v43, %v1334_v52  ;;  %v6434_v52 = vpack.c.bf16 %v1375_v46, %v1367_v38  ;;  %v6498_v43 = vpack.c.bf16 %v1377_v49, %v1369_v41  ;;  %v1401_v38 = vld [vmem:[#allocation4 + $0x4b8] sm:$0xff] }
 0x2ef   :  { %v6492_v61 = vpack.c.bf16 %v1344_v53, %v1336_v59  ;;  %v1383_v59 = vld [vmem:[#allocation4 + $0x428] sm:$0xff]  ;;  %v1409_v46 = vld [vmem:[#allocation4 + $0x4f8] sm:$0xff] }
 0x2f0   :  { %6421 = vmatpush1.bf16.msra.mxu0 %v6420_v62  ;;  %6485 = vmatpush1.bf16.msra.mxu1 %v6484_v34  ;;  %v1350_v62 = vld [vmem:[#allocation4 + $0x320] sm:$0xff]  ;;  %v1391_v53 = vld [vmem:[#allocation4 + $0x468] sm:$0xff] }
 0x2f1   :  { %6423 = vmatprep.subr.bf16.mxu0 %v6422_v40  ;;  %6487 = vmatprep.subr.bf16.mxu1 %v6486_v39  ;;  %v1358_v34 = vld [vmem:[#allocation4 + $0x360] sm:$0xff]  ;;  %v1352_v40 = vld [vmem:[#allocation4 + $0x330] sm:$0xff] }
 0x2f2   :  { %v1360_v39 = vld [vmem:[#allocation4 + $0x370] sm:$0xff]  ;;  %v6432_v51 = vpack.c.bf16 %v1358_v34, %v1350_v62  ;;  %v6438_v62 = vpack.c.bf16 %v1391_v53, %v1383_v59  ;;  %v6502_v34 = vpack.c.bf16 %v1393_v60, %v1385_v57  ;;  %v1417_v59 = vld [vmem:[#allocation4 + $0x538] sm:$0xff] }
 0x2f3   :  { %v6496_v44 = vpack.c.bf16 %v1360_v39, %v1352_v40  ;;  %v1399_v40 = vld [vmem:[#allocation4 + $0x4a8] sm:$0xff]  ;;  %v1425_v53 = vld [vmem:[#allocation4 + $0x578] sm:$0xff] }
 0x2f4   :  { %6425 = vmatpush1.bf16.msra.mxu0 %v6424_v50  ;;  %6489 = vmatpush1.bf16.msra.mxu1 %v6488_v47  ;;  %v1366_v50 = vld [vmem:[#allocation4 + $0x3a0] sm:$0xff]  ;;  %v1407_v39 = vld [vmem:[#allocation4 + $0x4e8] sm:$0xff] }
 0x2f5   :  { %6427 = vmatprep.subr.bf16.mxu0 %v6426_v54  ;;  %6491 = vmatprep.subr.bf16.mxu1 %v6490_v56  ;;  %v1374_v47 = vld [vmem:[#allocation4 + $0x3e0] sm:$0xff]  ;;  %v1368_v54 = vld [vmem:[#allocation4 + $0x3b0] sm:$0xff] }
 0x2f6   :  { %v1376_v56 = vld [vmem:[#allocation4 + $0x3f0] sm:$0xff]  ;;  %v6436_v58 = vpack.c.bf16 %v1374_v47, %v1366_v50  ;;  %v6442_v50 = vpack.c.bf16 %v1407_v39, %v1399_v40  ;;  %v6506_v47 = vpack.c.bf16 %v1409_v46, %v1401_v38  ;;  %v1433_v40 = vld [vmem:[#allocation4 + $0x5b8] sm:$0xff] }
 0x2f7   :  { %v6500_v0 = vpack.c.bf16 %v1376_v56, %v1368_v54  ;;  %v1415_v54 = vld [vmem:[#allocation4 + $0x528] sm:$0xff]  ;;  %v1441_v39 = vld [vmem:[#allocation4 + $0x5f8] sm:$0xff] }
 0x2f8   :  { %6429 = vmatpush1.bf16.msra.mxu0 %v6428_v33  ;;  %6493 = vmatpush1.bf16.msra.mxu1 %v6492_v61  ;;  %v1382_v33 = vld [vmem:[#allocation4 + $0x420] sm:$0xff]  ;;  %v1423_v56 = vld [vmem:[#allocation4 + $0x568] sm:$0xff] }
 0x2f9   :  { %6431 = vmatprep.subr.bf16.mxu0 %v6430_v36  ;;  %6495 = vmatprep.subr.bf16.mxu1 %v6494_v35  ;;  %v1390_v61 = vld [vmem:[#allocation4 + $0x460] sm:$0xff]  ;;  %v1384_v36 = vld [vmem:[#allocation4 + $0x430] sm:$0xff] }
 0x2fa   :  { %v1392_v35 = vld [vmem:[#allocation4 + $0x470] sm:$0xff]  ;;  %v6440_v41 = vpack.c.bf16 %v1390_v61, %v1382_v33  ;;  %v6446_v33 = vpack.c.bf16 %v1423_v56, %v1415_v54  ;;  %v6510_v61 = vpack.c.bf16 %v1425_v53, %v1417_v59  ;;  %v1449_v54 = vld [vmem:[#allocation4 + $0x638] sm:$0xff] }
 0x2fb   :  { %v6504_v49 = vpack.c.bf16 %v1392_v35, %v1384_v36  ;;  %v1431_v36 = vld [vmem:[#allocation4 + $0x5a8] sm:$0xff]  ;;  %v1457_v56 = vld [vmem:[#allocation4 + $0x678] sm:$0xff] }
 0x2fc   :  { %6433 = vmatpush1.bf16.msra.mxu0 %v6432_v51  ;;  %6497 = vmatpush1.bf16.msra.mxu1 %v6496_v44  ;;  %v1398_v51 = vld [vmem:[#allocation4 + $0x4a0] sm:$0xff]  ;;  %v1439_v35 = vld [vmem:[#allocation4 + $0x5e8] sm:$0xff] }
 0x2fd   :  { %6435 = vmatprep.subr.bf16.mxu0 %v6434_v52  ;;  %6499 = vmatprep.subr.bf16.mxu1 %v6498_v43  ;;  %v1406_v44 = vld [vmem:[#allocation4 + $0x4e0] sm:$0xff]  ;;  %v1400_v52 = vld [vmem:[#allocation4 + $0x4b0] sm:$0xff] }
 0x2fe   :  { %v1408_v43 = vld [vmem:[#allocation4 + $0x4f0] sm:$0xff]  ;;  %v6444_v57 = vpack.c.bf16 %v1406_v44, %v1398_v51  ;;  %v6450_v51 = vpack.c.bf16 %v1439_v35, %v1431_v36  ;;  %v6514_v44 = vpack.c.bf16 %v1441_v39, %v1433_v40  ;;  %v1465_v36 = vld [vmem:[#allocation4 + $0x6b8] sm:$0xff] }
 0x2ff   :  { %v6508_v60 = vpack.c.bf16 %v1408_v43, %v1400_v52  ;;  %v1447_v52 = vld [vmem:[#allocation4 + $0x628] sm:$0xff]  ;;  %v1473_v35 = vld [vmem:[#allocation4 + $0x6f8] sm:$0xff] }
 0x300   :  { %6437 = vmatpush1.bf16.msra.mxu0 %v6436_v58  ;;  %6501 = vmatpush1.bf16.msra.mxu1 %v6500_v0  ;;  %v1414_v58 = vld [vmem:[#allocation4 + $0x520] sm:$0xff]  ;;  %v1455_v43 = vld [vmem:[#allocation4 + $0x668] sm:$0xff] }
 0x301   :  { %6439 = vmatprep.subr.bf16.mxu0 %v6438_v62  ;;  %6503 = vmatprep.subr.bf16.mxu1 %v6502_v34  ;;  %v1422_v0 = vld [vmem:[#allocation4 + $0x560] sm:$0xff]  ;;  %v1416_v62 = vld [vmem:[#allocation4 + $0x530] sm:$0xff] }
 0x302   :  { %v1424_v34 = vld [vmem:[#allocation4 + $0x570] sm:$0xff]  ;;  %v6448_v38 = vpack.c.bf16 %v1422_v0, %v1414_v58  ;;  %v6454_v58 = vpack.c.bf16 %v1455_v43, %v1447_v52  ;;  %v6518_v0 = vpack.c.bf16 %v1457_v56, %v1449_v54  ;;  %v1481_v52 = vld [vmem:[#allocation4 + $0x738] sm:$0xff] }
 0x303   :  { %v6512_v46 = vpack.c.bf16 %v1424_v34, %v1416_v62  ;;  %v1463_v62 = vld [vmem:[#allocation4 + $0x6a8] sm:$0xff]  ;;  %v1489_v43 = vld [vmem:[#allocation4 + $0x778] sm:$0xff] }
 0x304   :  { %6441 = vmatpush1.bf16.msra.mxu0 %v6440_v41  ;;  %6505 = vmatpush1.bf16.msra.mxu1 %v6504_v49  ;;  %v1430_v41 = vld [vmem:[#allocation4 + $0x5a0] sm:$0xff]  ;;  %v1471_v34 = vld [vmem:[#allocation4 + $0x6e8] sm:$0xff] }
 0x305   :  { %6443 = vmatprep.subr.bf16.mxu0 %v6442_v50  ;;  %6507 = vmatprep.subr.bf16.mxu1 %v6506_v47  ;;  %v1438_v49 = vld [vmem:[#allocation4 + $0x5e0] sm:$0xff]  ;;  %v1432_v50 = vld [vmem:[#allocation4 + $0x5b0] sm:$0xff] }
 0x306   :  { %v1440_v47 = vld [vmem:[#allocation4 + $0x5f0] sm:$0xff]  ;;  %v6452_v59 = vpack.c.bf16 %v1438_v49, %v1430_v41  ;;  %v6458_v41 = vpack.c.bf16 %v1471_v34, %v1463_v62  ;;  %v6522_v49 = vpack.c.bf16 %v1473_v35, %v1465_v36  ;;  %v1497_v62 = vld [vmem:[#allocation4 + $0x7b8] sm:$0xff] }
 0x307   :  { %v6516_v53 = vpack.c.bf16 %v1440_v47, %v1432_v50  ;;  %v1479_v50 = vld [vmem:[#allocation4 + $0x728] sm:$0xff]  ;;  %v1505_v34 = vld [vmem:[#allocation4 + $0x7f8] sm:$0xff] }
 0x308   :  { %6445 = vmatpush1.bf16.msra.mxu0 %v6444_v57  ;;  %6509 = vmatpush1.bf16.msra.mxu1 %v6508_v60  ;;  %v1446_v57 = vld [vmem:[#allocation4 + $0x620] sm:$0xff]  ;;  %v1487_v47 = vld [vmem:[#allocation4 + $0x768] sm:$0xff] }
 0x309   :  { %6447 = vmatprep.subr.bf16.mxu0 %v6446_v33  ;;  %6511 = vmatprep.subr.bf16.mxu1 %v6510_v61  ;;  %v1454_v60 = vld [vmem:[#allocation4 + $0x660] sm:$0xff]  ;;  %v1448_v33 = vld [vmem:[#allocation4 + $0x630] sm:$0xff] }
 0x30a   :  { %v1456_v61 = vld [vmem:[#allocation4 + $0x670] sm:$0xff]  ;;  %v6456_v40 = vpack.c.bf16 %v1454_v60, %v1446_v57  ;;  %v6462_v57 = vpack.c.bf16 %v1487_v47, %v1479_v50  ;;  %v6526_v60 = vpack.c.bf16 %v1489_v43, %v1481_v52  ;;  %v1888_v50 = vld [vmem:[#allocation4 + $0x8] sm:$0xff]  ;;  %v1890_v52 = vld [vmem:[#allocation4 + $0x18] sm:$0xff] }
 0x30b   :  { %v6520_v39 = vpack.c.bf16 %v1456_v61, %v1448_v33  ;;  %v1495_v33 = vld [vmem:[#allocation4 + $0x7a8] sm:$0xff] }
 0x30c   :  { %6449 = vmatpush1.bf16.msra.mxu0 %v6448_v38  ;;  %6513 = vmatpush1.bf16.msra.mxu1 %v6512_v46  ;;  %v1462_v38 = vld [vmem:[#allocation4 + $0x6a0] sm:$0xff]  ;;  %v1503_v61 = vld [vmem:[#allocation4 + $0x7e8] sm:$0xff] }
 0x30d   :  { %6451 = vmatprep.subr.bf16.mxu0 %v6450_v51  ;;  %6515 = vmatprep.subr.bf16.mxu1 %v6514_v44  ;;  %v1470_v46 = vld [vmem:[#allocation4 + $0x6e0] sm:$0xff]  ;;  %v1464_v51 = vld [vmem:[#allocation4 + $0x6b0] sm:$0xff]  ;;  %v1896_v47 = vld [vmem:[#allocation4 + $0x48] sm:$0xff] }
 0x30e   :  { %v1472_v44 = vld [vmem:[#allocation4 + $0x6f0] sm:$0xff]  ;;  %v6460_v54 = vpack.c.bf16 %v1470_v46, %v1462_v38  ;;  %v6530_v38 = vpack.c.bf16 %v1505_v34, %v1497_v62  ;;  %v1502_v46 = vld [vmem:[#allocation4 + $0x7e0] sm:$0xff]  ;;  %v6534_v43 = vpack.c.bf16 %v1896_v47, %v1888_v50  ;;  %v1906_v62 = vld [vmem:[#allocation4 + $0x98] sm:$0xff] }
 0x30f   :  { %v6524_v56 = vpack.c.bf16 %v1472_v44, %v1464_v51  ;;  %v1914_v34 = vld [vmem:[#allocation4 + $0xd8] sm:$0xff] }
 0x310   :  { %6453 = vmatpush1.bf16.msra.mxu0 %v6452_v59  ;;  %6517 = vmatpush1.bf16.msra.mxu1 %v6516_v53  ;;  %v1478_v59 = vld [vmem:[#allocation4 + $0x720] sm:$0xff]  ;;  %v1930_v47 = vld [vmem:[#allocation4 + $0x158] sm:$0xff] }
 0x311   :  { %6455 = vmatprep.subr.bf16.mxu0 %v6454_v58  ;;  %6519 = vmatprep.subr.bf16.mxu1 %v6518_v0  ;;  %v1486_v53 = vld [vmem:[#allocation4 + $0x760] sm:$0xff]  ;;  %v1480_v58 = vld [vmem:[#allocation4 + $0x730] sm:$0xff] }
 0x312   :  { %v1488_v0 = vld [vmem:[#allocation4 + $0x770] sm:$0xff]  ;;  %v6464_v36 = vpack.c.bf16 %v1486_v53, %v1478_v59  ;;  %v1895_v59 = vld [vmem:[#allocation4 + $0x40] sm:$0xff] }
 0x313   :  { %v6528_v35 = vpack.c.bf16 %v1488_v0, %v1480_v58  ;;  %v1897_v58 = vld [vmem:[#allocation4 + $0x50] sm:$0xff] }
 0x314   :  { %6457 = vmatpush1.bf16.msra.mxu0 %v6456_v40  ;;  %6521 = vmatpush1.bf16.msra.mxu1 %v6520_v39  ;;  %v1494_v40 = vld [vmem:[#allocation4 + $0x7a0] sm:$0xff]  ;;  %v6466_v39 = vpack.c.bf16 %v1503_v61, %v1495_v33  ;;  %v1904_v33 = vld [vmem:[#allocation4 + $0x88] sm:$0xff] }
 0x315   :  { %6459 = vmatprep.subr.bf16.mxu0 %v6458_v41  ;;  %6523 = vmatprep.subr.bf16.mxu1 %v6522_v49  ;;  %v1496_v41 = vld [vmem:[#allocation4 + $0x7b0] sm:$0xff]  ;;  %v6468_v51 = vpack.c.bf16 %v1502_v46, %v1494_v40  ;;  %v1912_v61 = vld [vmem:[#allocation4 + $0xc8] sm:$0xff]  ;;  %v6602_v40 = vpack.c.bf16 %v1914_v34, %v1906_v62  ;;  %v1935_v62 = vld [vmem:[#allocation4 + $0x180] sm:$0xff] }
 0x316   :  { %v1504_v49 = vld [vmem:[#allocation4 + $0x7f0] sm:$0xff] }
 0x317   :  { %v6532_v44 = vpack.c.bf16 %v1504_v49, %v1496_v41  ;;  %v1913_v46 = vld [vmem:[#allocation4 + $0xd0] sm:$0xff]  ;;  %v1920_v49 = vld [vmem:[#allocation4 + $0x108] sm:$0xff] }
 0x318   :  { %6461 = vmatpush1.bf16.msra.mxu0 %v6460_v54  ;;  %6525 = vmatpush1.bf16.msra.mxu1 %v6524_v56  ;;  %v1898_v54 = vld [vmem:[#allocation4 + $0x58] sm:$0xff]  ;;  %v1887_v56 = vld [vmem:[#allocation4] sm:$0xff] }
 0x319   :  { %6463 = vmatprep.subr.bf16.mxu0 %v6462_v57  ;;  %6527 = vmatprep.subr.bf16.mxu1 %v6526_v60  ;;  %v6598_v53 = vpack.c.bf16 %v1898_v54, %v1890_v52  ;;  %v6536_v57 = vpack.c.bf16 %v1895_v59, %v1887_v56  ;;  %v1889_v60 = vld [vmem:[#allocation4 + $0x10] sm:$0xff]  ;;  %v1919_v52 = vld [vmem:[#allocation4 + $0x100] sm:$0xff] }
 0x31a   :  { %v6600_v0 = vpack.c.bf16 %v1897_v58, %v1889_v60  ;;  %v1921_v59 = vld [vmem:[#allocation4 + $0x110] sm:$0xff]  ;;  %v1936_v60 = vld [vmem:[#allocation4 + $0x188] sm:$0xff] }
 0x31b   :  { %v1944_v58 = vld [vmem:[#allocation4 + $0x1c8] sm:$0xff] }
 0x31c   :  { %6465 = vmatpush1.bf16.msra.mxu0 %v6464_v36  ;;  %6529 = vmatpush1.bf16.msra.mxu1 %v6528_v35  ;;  %v1903_v36 = vld [vmem:[#allocation4 + $0x80] sm:$0xff] }
 0x31d   :  { %6467 = vmatprep.subr.bf16.mxu0 %v6466_v39  ;;  %6531 = vmatprep.subr.bf16.mxu1 %v6530_v38  ;;  %v1911_v35 = vld [vmem:[#allocation4 + $0xc0] sm:$0xff]  ;;  %v1905_v38 = vld [vmem:[#allocation4 + $0x90] sm:$0xff] }
 0x31e   :  { %v6540_v39 = vpack.c.bf16 %v1911_v35, %v1903_v36  ;;  %v6604_v41 = vpack.c.bf16 %v1913_v46, %v1905_v38  ;;  %v1937_v35 = vld [vmem:[#allocation4 + $0x190] sm:$0xff]  ;;  %v1952_v38 = vld [vmem:[#allocation4 + $0x208] sm:$0xff] }
 0x31f   :  { %v1960_v46 = vld [vmem:[#allocation4 + $0x248] sm:$0xff] }
 0x320   :  { %6469 = vmatpush1.bf16.msra.mxu0 %v6468_v51  ;;  %6533 = vmatpush1.bf16.msra.mxu1 %v6532_v44  ;;  %v1928_v51 = vld [vmem:[#allocation4 + $0x148] sm:$0xff]  ;;  %v1922_v44 = vld [vmem:[#allocation4 + $0x118] sm:$0xff] }
 0x321   :  { %6535 = vmatprep.subr.bf16.mxu0 %v6534_v43  ;;  %6599 = vmatprep.subr.bf16.mxu1 %v6598_v53  ;;  %v6542_v50 = vpack.c.bf16 %v1928_v51, %v1920_v49  ;;  %v1927_v43 = vld [vmem:[#allocation4 + $0x140] sm:$0xff]  ;;  %v6606_v54 = vpack.c.bf16 %v1930_v47, %v1922_v44  ;;  %v1929_v53 = vld [vmem:[#allocation4 + $0x150] sm:$0xff]  ;;  %v6550_v49 = vpack.c.bf16 %v1960_v46, %v1952_v38  ;;  %v1962_v51 = vld [vmem:[#allocation4 + $0x258] sm:$0xff] }
 0x322   :  { %v6544_v56 = vpack.c.bf16 %v1927_v43, %v1919_v52  ;;  %v1951_v44 = vld [vmem:[#allocation4 + $0x200] sm:$0xff]  ;;  %v1953_v43 = vld [vmem:[#allocation4 + $0x210] sm:$0xff]  ;;  %v1994_v46 = vld [vmem:[#allocation4 + $0x358] sm:$0xff] }
 0x323   :  { %1724 = vmatmul.mubr.f32.vlgmr.msra.gmra.mrb[10].mxu0 %v8512_v55  ;;  %1795 = vmatmul.mubr.f32.vlgmr.msra.gmra.mrb[10].mxu1 %v8512_v55  ;;  %v6538_v55 = vpack.c.bf16 %v1912_v61, %v1904_v33  ;;  %v6546_v33 = vpack.c.bf16 %v1944_v58, %v1936_v60  ;;  %v1946_v61 = vld [vmem:[#allocation4 + $0x1d8] sm:$0xff] }
 0x324   :  { %6537 = vmatpush1.bf16.msra.mxu0 %v6536_v57  ;;  %6601 = vmatpush1.bf16.msra.mxu1 %v6600_v0  ;;  %v6608_v57 = vpack.c.bf16 %v1929_v53, %v1921_v59  ;;  %v1938_v0 = vld [vmem:[#allocation4 + $0x198] sm:$0xff]  ;;  %v1968_v59 = vld [vmem:[#allocation4 + $0x288] sm:$0xff] }
 0x325   :  { %6539 = vmatprep.subr.bf16.mxu0 %v6538_v55  ;;  %6603 = vmatprep.subr.bf16.mxu1 %v6602_v40  ;;  %v1943_v55 = vld [vmem:[#allocation4 + $0x1c0] sm:$0xff]  ;;  %v6610_v34 = vpack.c.bf16 %v1946_v61, %v1938_v0  ;;  %v1945_v40 = vld [vmem:[#allocation4 + $0x1d0] sm:$0xff]  ;;  %v1976_v53 = vld [vmem:[#allocation4 + $0x2c8] sm:$0xff] }
 0x326   :  { %v6548_v36 = vpack.c.bf16 %v1943_v55, %v1935_v62  ;;  %v6554_v60 = vpack.c.bf16 %v1976_v53, %v1968_v59  ;;  %v1978_v58 = vld [vmem:[#allocation4 + $0x2d8] sm:$0xff]  ;;  %v1967_v0 = vld [vmem:[#allocation4 + $0x280] sm:$0xff]  ;;  %v1969_v55 = vld [vmem:[#allocation4 + $0x290] sm:$0xff] }
 0x327   :  { %v2010_v53 = vld [vmem:[#allocation4 + $0x3d8] sm:$0xff] }
 0x328   :  { %6541 = vmatpush1.bf16.msra.mxu0 %v6540_v39  ;;  %6605 = vmatpush1.bf16.msra.mxu1 %v6604_v41  ;;  %v6612_v39 = vpack.c.bf16 %v1945_v40, %v1937_v35  ;;  %v1954_v41 = vld [vmem:[#allocation4 + $0x218] sm:$0xff]  ;;  %v1984_v35 = vld [vmem:[#allocation4 + $0x308] sm:$0xff] }
 0x329   :  { %6543 = vmatprep.subr.bf16.mxu0 %v6542_v50  ;;  %6607 = vmatprep.subr.bf16.mxu1 %v6606_v54  ;;  %v1959_v50 = vld [vmem:[#allocation4 + $0x240] sm:$0xff]  ;;  %v6614_v47 = vpack.c.bf16 %v1962_v51, %v1954_v41  ;;  %v1961_v54 = vld [vmem:[#allocation4 + $0x250] sm:$0xff]  ;;  %v1992_v40 = vld [vmem:[#allocation4 + $0x348] sm:$0xff] }
 0x32a   :  { %v6552_v52 = vpack.c.bf16 %v1959_v50, %v1951_v44  ;;  %v6558_v38 = vpack.c.bf16 %v1992_v40, %v1984_v35  ;;  %v1983_v41 = vld [vmem:[#allocation4 + $0x300] sm:$0xff]  ;;  %v1985_v50 = vld [vmem:[#allocation4 + $0x310] sm:$0xff]  ;;  %v2026_v40 = vld [vmem:[#allocation4 + $0x458] sm:$0xff] }
 0x32c   :  { %6545 = vmatpush1.bf16.msra.mxu0 %v6544_v56  ;;  %6609 = vmatpush1.bf16.msra.mxu1 %v6608_v57  ;;  %v6616_v56 = vpack.c.bf16 %v1961_v54, %v1953_v43  ;;  %v1970_v57 = vld [vmem:[#allocation4 + $0x298] sm:$0xff]  ;;  %v2000_v43 = vld [vmem:[#allocation4 + $0x388] sm:$0xff] }
 0x32d   :  { %6547 = vmatprep.subr.bf16.mxu0 %v6546_v33  ;;  %6611 = vmatprep.subr.bf16.mxu1 %v6610_v34  ;;  %v1975_v33 = vld [vmem:[#allocation4 + $0x2c0] sm:$0xff]  ;;  %v6618_v61 = vpack.c.bf16 %v1978_v58, %v1970_v57  ;;  %v1977_v34 = vld [vmem:[#allocation4 + $0x2d0] sm:$0xff]  ;;  %v2008_v54 = vld [vmem:[#allocation4 + $0x3c8] sm:$0xff] }
 0x32e   :  { %v6556_v62 = vpack.c.bf16 %v1975_v33, %v1967_v0  ;;  %v6562_v59 = vpack.c.bf16 %v2008_v54, %v2000_v43  ;;  %v1999_v57 = vld [vmem:[#allocation4 + $0x380] sm:$0xff]  ;;  %v2001_v33 = vld [vmem:[#allocation4 + $0x390] sm:$0xff]  ;;  %v2042_v54 = vld [vmem:[#allocation4 + $0x4d8] sm:$0xff] }
 0x330   :  { %6549 = vmatpush1.bf16.msra.mxu0 %v6548_v36  ;;  %6613 = vmatpush1.bf16.msra.mxu1 %v6612_v39  ;;  %v6620_v36 = vpack.c.bf16 %v1977_v34, %v1969_v55  ;;  %v1986_v39 = vld [vmem:[#allocation4 + $0x318] sm:$0xff]  ;;  %v2016_v55 = vld [vmem:[#allocation4 + $0x408] sm:$0xff] }
 0x331   :  { %6551 = vmatprep.subr.bf16.mxu0 %v6550_v49  ;;  %6615 = vmatprep.subr.bf16.mxu1 %v6614_v47  ;;  %v1991_v49 = vld [vmem:[#allocation4 + $0x340] sm:$0xff]  ;;  %v6622_v51 = vpack.c.bf16 %v1994_v46, %v1986_v39  ;;  %v1993_v47 = vld [vmem:[#allocation4 + $0x350] sm:$0xff]  ;;  %v2024_v34 = vld [vmem:[#allocation4 + $0x448] sm:$0xff] }
 0x332   :  { %v6560_v44 = vpack.c.bf16 %v1991_v49, %v1983_v41  ;;  %v6566_v35 = vpack.c.bf16 %v2024_v34, %v2016_v55  ;;  %v2015_v39 = vld [vmem:[#allocation4 + $0x400] sm:$0xff]  ;;  %v2017_v49 = vld [vmem:[#allocation4 + $0x410] sm:$0xff]  ;;  %v2058_v34 = vld [vmem:[#allocation4 + $0x558] sm:$0xff] }
 0x334   :  { %6553 = vmatpush1.bf16.msra.mxu0 %v6552_v52  ;;  %6617 = vmatpush1.bf16.msra.mxu1 %v6616_v56  ;;  %v6624_v52 = vpack.c.bf16 %v1993_v47, %v1985_v50  ;;  %v2002_v56 = vld [vmem:[#allocation4 + $0x398] sm:$0xff]  ;;  %v2032_v50 = vld [vmem:[#allocation4 + $0x488] sm:$0xff] }
 0x335   :  { %6555 = vmatprep.subr.bf16.mxu0 %v6554_v60  ;;  %6619 = vmatprep.subr.bf16.mxu1 %v6618_v61  ;;  %v2007_v60 = vld [vmem:[#allocation4 + $0x3c0] sm:$0xff]  ;;  %v6626_v58 = vpack.c.bf16 %v2010_v53, %v2002_v56  ;;  %v2009_v61 = vld [vmem:[#allocation4 + $0x3d0] sm:$0xff]  ;;  %v2040_v47 = vld [vmem:[#allocation4 + $0x4c8] sm:$0xff] }
 0x336   :  { %v6564_v0 = vpack.c.bf16 %v2007_v60, %v1999_v57  ;;  %v6570_v43 = vpack.c.bf16 %v2040_v47, %v2032_v50  ;;  %v2031_v56 = vld [vmem:[#allocation4 + $0x480] sm:$0xff]  ;;  %v2033_v60 = vld [vmem:[#allocation4 + $0x490] sm:$0xff]  ;;  %v2074_v47 = vld [vmem:[#allocation4 + $0x5d8] sm:$0xff] }
 0x338   :  { %6557 = vmatpush1.bf16.msra.mxu0 %v6556_v62  ;;  %6621 = vmatpush1.bf16.msra.mxu1 %v6620_v36  ;;  %v6628_v62 = vpack.c.bf16 %v2009_v61, %v2001_v33  ;;  %v2018_v36 = vld [vmem:[#allocation4 + $0x418] sm:$0xff]  ;;  %v2048_v33 = vld [vmem:[#allocation4 + $0x508] sm:$0xff] }
 0x339   :  { %6559 = vmatprep.subr.bf16.mxu0 %v6558_v38  ;;  %6623 = vmatprep.subr.bf16.mxu1 %v6622_v51  ;;  %v2023_v38 = vld [vmem:[#allocation4 + $0x440] sm:$0xff]  ;;  %v6630_v46 = vpack.c.bf16 %v2026_v40, %v2018_v36  ;;  %v2025_v51 = vld [vmem:[#allocation4 + $0x450] sm:$0xff]  ;;  %v2056_v61 = vld [vmem:[#allocation4 + $0x548] sm:$0xff] }
 0x33a   :  { %v6568_v41 = vpack.c.bf16 %v2023_v38, %v2015_v39  ;;  %v6574_v55 = vpack.c.bf16 %v2056_v61, %v2048_v33  ;;  %v2047_v36 = vld [vmem:[#allocation4 + $0x500] sm:$0xff]  ;;  %v2049_v38 = vld [vmem:[#allocation4 + $0x510] sm:$0xff]  ;;  %v2090_v33 = vld [vmem:[#allocation4 + $0x658] sm:$0xff] }
 0x33c   :  { %6561 = vmatpush1.bf16.msra.mxu0 %v6560_v44  ;;  %6625 = vmatpush1.bf16.msra.mxu1 %v6624_v52  ;;  %v6632_v44 = vpack.c.bf16 %v2025_v51, %v2017_v49  ;;  %v2034_v52 = vld [vmem:[#allocation4 + $0x498] sm:$0xff]  ;;  %v2064_v49 = vld [vmem:[#allocation4 + $0x588] sm:$0xff] }
 0x33d   :  { %6563 = vmatprep.subr.bf16.mxu0 %v6562_v59  ;;  %6627 = vmatprep.subr.bf16.mxu1 %v6626_v58  ;;  %v2039_v59 = vld [vmem:[#allocation4 + $0x4c0] sm:$0xff]  ;;  %v6634_v53 = vpack.c.bf16 %v2042_v54, %v2034_v52  ;;  %v2041_v58 = vld [vmem:[#allocation4 + $0x4d0] sm:$0xff]  ;;  %v2072_v51 = vld [vmem:[#allocation4 + $0x5c8] sm:$0xff] }
 0x33e   :  { %v6572_v57 = vpack.c.bf16 %v2039_v59, %v2031_v56  ;;  %v6578_v50 = vpack.c.bf16 %v2072_v51, %v2064_v49  ;;  %v2063_v52 = vld [vmem:[#allocation4 + $0x580] sm:$0xff]  ;;  %v2065_v59 = vld [vmem:[#allocation4 + $0x590] sm:$0xff]  ;;  %v2098_v49 = vld [vmem:[#allocation4 + $0x698] sm:$0xff] }
 0x33f   :  { %v2106_v51 = vld [vmem:[#allocation4 + $0x6d8] sm:$0xff] }
 0x340   :  { %6565 = vmatpush1.bf16.msra.mxu0 %v6564_v0  ;;  %6629 = vmatpush1.bf16.msra.mxu1 %v6628_v62  ;;  %v6636_v0 = vpack.c.bf16 %v2041_v58, %v2033_v60  ;;  %v2050_v62 = vld [vmem:[#allocation4 + $0x518] sm:$0xff]  ;;  %v2088_v58 = vld [vmem:[#allocation4 + $0x648] sm:$0xff] }
 0x341   :  { %6567 = vmatprep.subr.bf16.mxu0 %v6566_v35  ;;  %6631 = vmatprep.subr.bf16.mxu1 %v6630_v46  ;;  %v2055_v35 = vld [vmem:[#allocation4 + $0x540] sm:$0xff]  ;;  %v6638_v40 = vpack.c.bf16 %v2058_v34, %v2050_v62  ;;  %v2057_v46 = vld [vmem:[#allocation4 + $0x550] sm:$0xff] }
 0x342   :  { %v6576_v39 = vpack.c.bf16 %v2055_v35, %v2047_v36  ;;  %v2087_v34 = vld [vmem:[#allocation4 + $0x640] sm:$0xff]  ;;  %v2081_v36 = vld [vmem:[#allocation4 + $0x610] sm:$0xff] }
 0x344   :  { %6569 = vmatpush1.bf16.msra.mxu0 %v6568_v41  ;;  %6633 = vmatpush1.bf16.msra.mxu1 %v6632_v44  ;;  %v6640_v41 = vpack.c.bf16 %v2057_v46, %v2049_v38  ;;  %v2066_v44 = vld [vmem:[#allocation4 + $0x598] sm:$0xff]  ;;  %v2104_v38 = vld [vmem:[#allocation4 + $0x6c8] sm:$0xff] }
 0x345   :  { %6571 = vmatprep.subr.bf16.mxu0 %v6570_v43  ;;  %6635 = vmatprep.subr.bf16.mxu1 %v6634_v53  ;;  %v2071_v43 = vld [vmem:[#allocation4 + $0x5c0] sm:$0xff]  ;;  %v6642_v54 = vpack.c.bf16 %v2074_v47, %v2066_v44  ;;  %v2073_v53 = vld [vmem:[#allocation4 + $0x5d0] sm:$0xff] }
 0x346   :  { %v6580_v56 = vpack.c.bf16 %v2071_v43, %v2063_v52  ;;  %v6644_v60 = vpack.c.bf16 %v2073_v53, %v2065_v59  ;;  %v2095_v44 = vld [vmem:[#allocation4 + $0x680] sm:$0xff]  ;;  %v2097_v52 = vld [vmem:[#allocation4 + $0x690] sm:$0xff]  ;;  %v2120_v59 = vld [vmem:[#allocation4 + $0x748] sm:$0xff] }
 0x347   :  { %v2103_v47 = vld [vmem:[#allocation4 + $0x6c0] sm:$0xff]  ;;  %v2105_v43 = vld [vmem:[#allocation4 + $0x6d0] sm:$0xff]  ;;  %v2114_v53 = vld [vmem:[#allocation4 + $0x718] sm:$0xff] }
 0x348   :  { %6573 = vmatpush1.bf16.msra.mxu0 %v6572_v57  ;;  %6637 = vmatpush1.bf16.msra.mxu1 %v6636_v0  ;;  %v2080_v57 = vld [vmem:[#allocation4 + $0x608] sm:$0xff]  ;;  %v2082_v0 = vld [vmem:[#allocation4 + $0x618] sm:$0xff] }
 0x349   :  { %6575 = vmatprep.subr.bf16.mxu0 %v6574_v55  ;;  %6639 = vmatprep.subr.bf16.mxu1 %v6638_v40  ;;  %v6582_v61 = vpack.c.bf16 %v2088_v58, %v2080_v57  ;;  %v6646_v62 = vpack.c.bf16 %v2090_v33, %v2082_v0  ;;  %v2079_v55 = vld [vmem:[#allocation4 + $0x600] sm:$0xff]  ;;  %v2089_v40 = vld [vmem:[#allocation4 + $0x650] sm:$0xff]  ;;  %v2122_v57 = vld [vmem:[#allocation4 + $0x758] sm:$0xff] }
 0x34a   :  { %v6584_v35 = vpack.c.bf16 %v2087_v34, %v2079_v55  ;;  %v6648_v46 = vpack.c.bf16 %v2089_v40, %v2081_v36  ;;  %v2111_v0 = vld [vmem:[#allocation4 + $0x700] sm:$0xff]  ;;  %v6654_v55 = vpack.c.bf16 %v2122_v57, %v2114_v53  ;;  %v2128_v34 = vld [vmem:[#allocation4 + $0x788] sm:$0xff]  ;;  %v2130_v40 = vld [vmem:[#allocation4 + $0x798] sm:$0xff] }
 0x34b   :  { %v2119_v33 = vld [vmem:[#allocation4 + $0x740] sm:$0xff]  ;;  %v2136_v36 = vld [vmem:[#allocation4 + $0x7c8] sm:$0xff] }
 0x34c   :  { %6577 = vmatpush1.bf16.msra.mxu0 %v6576_v39  ;;  %6641 = vmatpush1.bf16.msra.mxu1 %v6640_v41  ;;  %v2096_v39 = vld [vmem:[#allocation4 + $0x688] sm:$0xff] }
 0x34d   :  { %6579 = vmatprep.subr.bf16.mxu0 %v6578_v50  ;;  %6643 = vmatprep.subr.bf16.mxu1 %v6642_v54  ;;  %v6586_v41 = vpack.c.bf16 %v2104_v38, %v2096_v39  ;;  %v6650_v50 = vpack.c.bf16 %v2106_v51, %v2098_v49  ;;  %v2112_v54 = vld [vmem:[#allocation4 + $0x708] sm:$0xff]  ;;  %v2138_v39 = vld [vmem:[#allocation4 + $0x7d8] sm:$0xff]  ;;  %v6592_v38 = vpack.c.bf16 %v2119_v33, %v2111_v0 }
 0x34e   :  { %v6590_v58 = vpack.c.bf16 %v2120_v59, %v2112_v54  ;;  %v6594_v49 = vpack.c.bf16 %v2136_v36, %v2128_v34  ;;  %v6658_v51 = vpack.c.bf16 %v2138_v39, %v2130_v40  ;;  %v1900_v54 = vld [vmem:[#allocation4 + $0x68] sm:$0xff]  ;;  %v1894_v59 = vld [vmem:[#allocation4 + $0x38] sm:$0xff] }
 0x350   :  { %6581 = vmatpush1.bf16.msra.mxu0 %v6580_v56  ;;  %6645 = vmatpush1.bf16.msra.mxu1 %v6644_v60  ;;  %v6588_v56 = vpack.c.bf16 %v2103_v47, %v2095_v44  ;;  %v6652_v60 = vpack.c.bf16 %v2105_v43, %v2097_v52  ;;  %v2129_v44 = vld [vmem:[#allocation4 + $0x790] sm:$0xff]  ;;  %v1892_v43 = vld [vmem:[#allocation4 + $0x28] sm:$0xff] }
 0x351   :  { %6583 = vmatprep.subr.bf16.mxu0 %v6582_v61  ;;  %6647 = vmatprep.subr.bf16.mxu1 %v6646_v62  ;;  %v2113_v61 = vld [vmem:[#allocation4 + $0x710] sm:$0xff]  ;;  %v6662_v53 = vpack.c.bf16 %v1900_v54, %v1892_v43 }
 0x352   :  { %v2121_v62 = vld [vmem:[#allocation4 + $0x750] sm:$0xff] }
 0x353   :  { %v2137_v47 = vld [vmem:[#allocation4 + $0x7d0] sm:$0xff] }
 0x354   :  { %6585 = vmatpush1.bf16.msra.mxu0 %v6584_v35  ;;  %6649 = vmatpush1.bf16.msra.mxu1 %v6648_v46  ;;  %v6656_v35 = vpack.c.bf16 %v2121_v62, %v2113_v61  ;;  %v2127_v46 = vld [vmem:[#allocation4 + $0x780] sm:$0xff]  ;;  %v6660_v52 = vpack.c.bf16 %v2137_v47, %v2129_v44 }
 0x355   :  { %6587 = vmatprep.subr.bf16.mxu0 %v6586_v41  ;;  %6651 = vmatprep.subr.bf16.mxu1 %v6650_v50  ;;  %v2135_v41 = vld [vmem:[#allocation4 + $0x7c0] sm:$0xff] }
 0x356   :  { %v6596_v50 = vpack.c.bf16 %v2135_v41, %v2127_v46  ;;  %v1247_v44 = vld [vmem:[#allocation2 + $0x1] ss:$8 sm:$0xf] }
 0x357   :  { %v1248_v47 = vld [vmem:[#allocation2 + $0x1] ss:$8 sm:$0xf0] }
 0x358   :  { %6589 = vmatpush1.bf16.msra.mxu0 %v6588_v56  ;;  %6653 = vmatpush1.bf16.msra.mxu1 %v6652_v60  ;;  %v1902_v56 = vld [vmem:[#allocation4 + $0x78] sm:$0xff]  ;;  %v1249_v43 = vor.u32 %v1248_v47, %v1247_v44 }
 0x359   :  { %6591 = vmatprep.subr.bf16.mxu0 %v6590_v58  ;;  %6655 = vmatprep.subr.bf16.mxu1 %v6654_v55  ;;  %v6726_v57 = vpack.c.bf16 %v1902_v56, %v1894_v59  ;;  %v1910_v44 = vld [vmem:[#allocation4 + $0xb8] sm:$0xff] }
 0x35a   :  { %v1918_v47 = vld [vmem:[#allocation4 + $0xf8] sm:$0xff] }
 0x35c   :  { %6593 = vmatpush1.bf16.msra.mxu0 %v6592_v38  ;;  %6657 = vmatpush1.bf16.msra.mxu1 %v6656_v35 }
 0x35d   :  { %6595 = vmatprep.subr.bf16.mxu0 %v6594_v49  ;;  %6659 = vmatprep.subr.bf16.mxu1 %v6658_v51 }
 0x360   :  { %6597 = vmatpush1.bf16.msra.mxu0 %v6596_v50  ;;  %6661 = vmatpush1.bf16.msra.mxu1 %v6660_v52 }
 0x361   :  { %6663 = vmatprep.subr.bf16.mxu0 %v6662_v53  ;;  %6727 = vmatprep.subr.bf16.mxu1 %v6726_v57 }
 0x3b6   :  { %v1583_v60 = vpop.f32.mrb[8].mxu0  ;;  %v1654_v58 = vpop.f32.mrb[8].mxu1 }
 0x3b7   :  { %v1585_v0 = vpop.f32.mrb[9].mxu0  ;;  %v1656_v33 = vpop.f32.mrb[9].mxu1 }
 0x3b8   :  { %v1809_v61 = vcombine.low %v1583_v60, %v1585_v0  ;;  %v1810_v55 = vcombine.low %v1654_v58, %v1656_v33 }
 0x3ba   :  { %v1819_v62 = vrot.slane %v1809_v61, %v8492_v63  ;;  %v1826_v34 = vrot.slane %v1810_v55, %v8492_v63 }
 0x3bc   :  { %v1841_v36 = vcombine.low %v1819_v62, %v1826_v34 }
 0x3be   :  { %v1849_v52 = vrot.slane %v1841_v36, %v8492_v63 }
 0x3f6   :  { %v1725_v40 = vpop.f32.mrb[10].mxu0  ;;  %v1796_v39 = vpop.f32.mrb[10].mxu1 }
 0x3f7   :  { %v1727_v38 = vpop.f32.mrb[11].mxu0  ;;  %v1798_v35 = vpop.f32.mrb[11].mxu1 }
 0x3f8   :  { %v1811_v49 = vcombine.low %v1725_v40, %v1727_v38  ;;  %v1812_v46 = vcombine.low %v1796_v39, %v1798_v35  ;;  %v1891_v40 = vld [vmem:[#allocation4 + $0x20] sm:$0xff]  ;;  %v1893_v35 = vld [vmem:[#allocation4 + $0x30] sm:$0xff] }
 0x3f9   :  { %v1899_v38 = vld [vmem:[#allocation4 + $0x60] sm:$0xff] }
 0x3fa   :  { %v1833_v41 = vrot.slane %v1811_v49, %v8492_v63  ;;  %v1840_v51 = vrot.slane %v1812_v46, %v8492_v63  ;;  %v1901_v49 = vld [vmem:[#allocation4 + $0x70] sm:$0xff] }
 0x3fc   :  { %v1842_v50 = vcombine.low %v1833_v41, %v1840_v51  ;;  %v1908_v41 = vld [vmem:[#allocation4 + $0xa8] sm:$0xff] }
 0x3fd   :  { %v1916_v51 = vld [vmem:[#allocation4 + $0xe8] sm:$0xff] }
 0x3fe   :  { %v1856_v54 = vrot.slane %v1842_v50, %v8492_v63 }
 0x400   :  { %v1857_v59 = vcombine.low %v1849_v52, %v1856_v54  ;;  %v6664_v52 = vpack.c.bf16 %v1899_v38, %v1891_v40  ;;  %v1907_v54 = vld [vmem:[#allocation4 + $0xa0] sm:$0xff] }
 0x401   :  { %v1931_v40 = vld [vmem:[#allocation4 + $0x160] sm:$0xff] }
 0x402   :  { %v1859_v53 = vadd.f32 %v1857_v59, %v1249_v43  ;;  %v6728_v43 = vpack.c.bf16 %v1901_v49, %v1893_v35  ;;  %v1915_v59 = vld [vmem:[#allocation4 + $0xe0] sm:$0xff]  ;;  %v1925_v35 = vld [vmem:[#allocation4 + $0x130] sm:$0xff] }
 0x403   :  { %v1933_v49 = vld [vmem:[#allocation4 + $0x170] sm:$0xff] }
 0x404   :  { %v5849_v56 = vmul.f32 -1.442695, %v1859_v53  ;;  %v1867_v58 = vrot.slane %v1859_v53, 6  ;;  %v1909_v53 = vld [vmem:[#allocation4 + $0xb0] sm:$0xff] }
 0x406   :  { %8116 = vpow2.f32 %v5849_v56  ;;  %v1917_v56 = vld [vmem:[#allocation4 + $0xf0] sm:$0xff] }
 0x410   :  { %v8117_v57 = vpop.eup %8116 }
 0x411   :  { %v1863_v60 = vadd.f32 1.0, %v8117_v57  ;;  %v1924_v57 = vld [vmem:[#allocation4 + $0x128] sm:$0xff] }
 0x413   :  { %8118 = vrcp.f32 %v1863_v60  ;;  %v6666_v60 = vpack.c.bf16 %v1916_v51, %v1908_v41  ;;  %v1948_v41 = vld [vmem:[#allocation4 + $0x1e8] sm:$0xff]  ;;  %v1942_v51 = vld [vmem:[#allocation4 + $0x1b8] sm:$0xff] }
 0x414   :  { %8120 = vtanh.f32 %v1867_v58  ;;  %v6730_v58 = vpack.c.bf16 %v1918_v47, %v1910_v44  ;;  %v1950_v44 = vld [vmem:[#allocation4 + $0x1f8] sm:$0xff] }
 0x41d   :  { %v8119_v0 = vpop.eup %8118 }
 0x41e   :  { %v1871_v33 = vrot.slane %v8119_v0, 2  ;;  %v8121_v61 = vpop.eup %8120  ;;  %v1877_v36 = vrot.slane %v8119_v0, 4 }
 0x41f   :  { %v1874_v55 = vmul.f32 %v8121_v61, %v8119_v0  ;;  %v1932_v0 = vld [vmem:[#allocation4 + $0x168] sm:$0xff]  ;;  %v1934_v61 = vld [vmem:[#allocation4 + $0x178] sm:$0xff] }
 0x420   :  { %v1873_v62 = vmul.f32 %v1871_v33, %v8500_v37  ;;  %v1926_v33 = vld [vmem:[#allocation4 + $0x138] sm:$0xff] }
 0x421   :  { %v6734_v38 = vpack.c.bf16 %v1934_v61, %v1926_v33  ;;  %v1958_v33 = vld [vmem:[#allocation4 + $0x238] sm:$0xff] }
 0x422   :  { %v8525_v34 = vadd.f32 %v1874_v55, %v1873_v62  ;;  %v6668_v55 = vpack.c.bf16 %v1915_v59, %v1907_v54  ;;  %v6732_v62 = vpack.c.bf16 %v1917_v56, %v1909_v53  ;;  %v1947_v54 = vld [vmem:[#allocation4 + $0x1e0] sm:$0xff]  ;;  %v1941_v53 = vld [vmem:[#allocation4 + $0x1b0] sm:$0xff] }
 0x423   :  { %v1949_v56 = vld [vmem:[#allocation4 + $0x1f0] sm:$0xff] }
 0x424   :  { %8122 = vtanh.f32 %v8525_v34  ;;  %v6740_v61 = vpack.c.bf16 %v1949_v56, %v1941_v53  ;;  %v1988_v53 = vld [vmem:[#allocation4 + $0x328] sm:$0xff] }
 0x425   :  { %v1996_v56 = vld [vmem:[#allocation4 + $0x368] sm:$0xff] }
 0x42e   :  { %v8123_v39 = vpop.eup %8122 }
 0x42f   :  { %v1879_v46 = vmul.f32 %v8123_v39, %v1877_v36  ;;  %v1923_v36 = vld [vmem:[#allocation4 + $0x120] sm:$0xff]  ;;  %v6670_v39 = vpack.c.bf16 %v1932_v0, %v1924_v57  ;;  %v1956_v57 = vld [vmem:[#allocation4 + $0x228] sm:$0xff] }
 0x430   :  { %v6672_v47 = vpack.c.bf16 %v1931_v40, %v1923_v36  ;;  %v1964_v0 = vld [vmem:[#allocation4 + $0x268] sm:$0xff] }
 0x431   :  { %1881 = vst.msk [vmem:[#allocation3 + $0x1] ss:$8 sm:$0x3] %vm8504_vm0, %v1879_v46  ;;  %v2151_v37 = vrot.slane %v1879_v46, %v8474_v48  ;;  %v8532_v50 = vrot.slane %v1879_v46, %v8467_v45  ;;  %v1940_v46 = vld [vmem:[#allocation4 + $0x1a8] sm:$0xff]  ;;  %v6678_v36 = vpack.c.bf16 %v1964_v0, %v1956_v57  ;;  %v1990_v57 = vld [vmem:[#allocation4 + $0x338] sm:$0xff] }
 0x432   :  { %v6674_v59 = vpack.c.bf16 %v1948_v41, %v1940_v46  ;;  %v1974_v46 = vld [vmem:[#allocation4 + $0x2b8] sm:$0xff] }
 0x433   :  { %2218 = vmatprep.mubr.f32.mxu0 %v2151_v37  ;;  %2289 = vmatprep.mubr.f32.mxu1 %v2151_v37  ;;  %v1982_v41 = vld [vmem:[#allocation4 + $0x2f8] sm:$0xff] }
 0x434   :  { %2219 = vmatmul.mubr.f32.vlgmr.msra.gmra.mrb[12].mxu0 %v8532_v50  ;;  %2290 = vmatmul.mubr.f32.vlgmr.msra.gmra.mrb[12].mxu1 %v8532_v50  ;;  %v1998_v0 = vld [vmem:[#allocation4 + $0x378] sm:$0xff] }
 0x435   :  { %6665 = vmatpush1.bf16.msra.mxu0 %v6664_v52  ;;  %6729 = vmatpush1.bf16.msra.mxu1 %v6728_v43  ;;  %v6736_v52 = vpack.c.bf16 %v1933_v49, %v1925_v35  ;;  %v1939_v43 = vld [vmem:[#allocation4 + $0x1a0] sm:$0xff]  ;;  %v1972_v35 = vld [vmem:[#allocation4 + $0x2a8] sm:$0xff] }
 0x436   :  { %2360 = vmatprep.mubr.f32.mxu0 %v2151_v37  ;;  %2431 = vmatprep.mubr.f32.mxu1 %v2151_v37  ;;  %v6738_v37 = vpack.c.bf16 %v1950_v44, %v1942_v51  ;;  %v1980_v49 = vld [vmem:[#allocation4 + $0x2e8] sm:$0xff] }
 0x437   :  { %6667 = vmatprep.subr.bf16.mxu0 %v6666_v60  ;;  %6731 = vmatprep.subr.bf16.mxu1 %v6730_v58  ;;  %v1966_v60 = vld [vmem:[#allocation4 + $0x278] sm:$0xff]  ;;  %v6676_v58 = vpack.c.bf16 %v1947_v54, %v1939_v43  ;;  %v6682_v43 = vpack.c.bf16 %v1980_v49, %v1972_v35  ;;  %v6746_v54 = vpack.c.bf16 %v1982_v41, %v1974_v46 }
 0x438   :  { %v6742_v40 = vpack.c.bf16 %v1966_v60, %v1958_v33  ;;  %v2006_v35 = vld [vmem:[#allocation4 + $0x3b8] sm:$0xff] }
 0x439   :  { %6669 = vmatpush1.bf16.msra.mxu0 %v6668_v55  ;;  %6733 = vmatpush1.bf16.msra.mxu1 %v6732_v62  ;;  %v1955_v55 = vld [vmem:[#allocation4 + $0x220] sm:$0xff]  ;;  %v2014_v49 = vld [vmem:[#allocation4 + $0x3f8] sm:$0xff] }
 0x43a   :  { %6671 = vmatprep.subr.bf16.mxu0 %v6670_v39  ;;  %6735 = vmatprep.subr.bf16.mxu1 %v6734_v38  ;;  %v1963_v62 = vld [vmem:[#allocation4 + $0x260] sm:$0xff]  ;;  %v1957_v39 = vld [vmem:[#allocation4 + $0x230] sm:$0xff] }
 0x43b   :  { %v1965_v38 = vld [vmem:[#allocation4 + $0x270] sm:$0xff]  ;;  %v6680_v51 = vpack.c.bf16 %v1963_v62, %v1955_v55  ;;  %v6686_v55 = vpack.c.bf16 %v1996_v56, %v1988_v53  ;;  %v6750_v62 = vpack.c.bf16 %v1998_v0, %v1990_v57  ;;  %v2022_v53 = vld [vmem:[#allocation4 + $0x438] sm:$0xff] }
 0x43c   :  { %v6744_v44 = vpack.c.bf16 %v1965_v38, %v1957_v39  ;;  %v2004_v39 = vld [vmem:[#allocation4 + $0x3a8] sm:$0xff]  ;;  %v2030_v56 = vld [vmem:[#allocation4 + $0x478] sm:$0xff] }
 0x43d   :  { %6673 = vmatpush1.bf16.msra.mxu0 %v6672_v47  ;;  %6737 = vmatpush1.bf16.msra.mxu1 %v6736_v52  ;;  %v1971_v47 = vld [vmem:[#allocation4 + $0x2a0] sm:$0xff]  ;;  %v2012_v38 = vld [vmem:[#allocation4 + $0x3e8] sm:$0xff] }
 0x43e   :  { %6675 = vmatprep.subr.bf16.mxu0 %v6674_v59  ;;  %6739 = vmatprep.subr.bf16.mxu1 %v6738_v37  ;;  %v1979_v52 = vld [vmem:[#allocation4 + $0x2e0] sm:$0xff]  ;;  %v1973_v59 = vld [vmem:[#allocation4 + $0x2b0] sm:$0xff] }
 0x43f   :  { %v1981_v37 = vld [vmem:[#allocation4 + $0x2f0] sm:$0xff]  ;;  %v6684_v33 = vpack.c.bf16 %v1979_v52, %v1971_v47  ;;  %v6690_v47 = vpack.c.bf16 %v2012_v38, %v2004_v39  ;;  %v6754_v52 = vpack.c.bf16 %v2014_v49, %v2006_v35  ;;  %v2038_v39 = vld [vmem:[#allocation4 + $0x4b8] sm:$0xff] }
 0x440   :  { %v6748_v60 = vpack.c.bf16 %v1981_v37, %v1973_v59  ;;  %v2020_v59 = vld [vmem:[#allocation4 + $0x428] sm:$0xff]  ;;  %v2046_v38 = vld [vmem:[#allocation4 + $0x4f8] sm:$0xff] }
 0x441   :  { %6677 = vmatpush1.bf16.msra.mxu0 %v6676_v58  ;;  %6741 = vmatpush1.bf16.msra.mxu1 %v6740_v61  ;;  %v1987_v58 = vld [vmem:[#allocation4 + $0x320] sm:$0xff]  ;;  %v2028_v37 = vld [vmem:[#allocation4 + $0x468] sm:$0xff] }
 0x442   :  { %6679 = vmatprep.subr.bf16.mxu0 %v6678_v36  ;;  %6743 = vmatprep.subr.bf16.mxu1 %v6742_v40  ;;  %v1995_v61 = vld [vmem:[#allocation4 + $0x360] sm:$0xff]  ;;  %v1989_v36 = vld [vmem:[#allocation4 + $0x330] sm:$0xff] }
 0x443   :  { %v1997_v40 = vld [vmem:[#allocation4 + $0x370] sm:$0xff]  ;;  %v6688_v46 = vpack.c.bf16 %v1995_v61, %v1987_v58  ;;  %v6694_v58 = vpack.c.bf16 %v2028_v37, %v2020_v59  ;;  %v6758_v61 = vpack.c.bf16 %v2030_v56, %v2022_v53  ;;  %v2054_v59 = vld [vmem:[#allocation4 + $0x538] sm:$0xff] }
 0x444   :  { %v6752_v41 = vpack.c.bf16 %v1997_v40, %v1989_v36  ;;  %v2036_v36 = vld [vmem:[#allocation4 + $0x4a8] sm:$0xff]  ;;  %v2062_v37 = vld [vmem:[#allocation4 + $0x578] sm:$0xff] }
 0x445   :  { %6681 = vmatpush1.bf16.msra.mxu0 %v6680_v51  ;;  %6745 = vmatpush1.bf16.msra.mxu1 %v6744_v44  ;;  %v2003_v51 = vld [vmem:[#allocation4 + $0x3a0] sm:$0xff]  ;;  %v2044_v40 = vld [vmem:[#allocation4 + $0x4e8] sm:$0xff] }
 0x446   :  { %6683 = vmatprep.subr.bf16.mxu0 %v6682_v43  ;;  %6747 = vmatprep.subr.bf16.mxu1 %v6746_v54  ;;  %v2011_v44 = vld [vmem:[#allocation4 + $0x3e0] sm:$0xff]  ;;  %v2005_v43 = vld [vmem:[#allocation4 + $0x3b0] sm:$0xff] }
 0x447   :  { %v2013_v54 = vld [vmem:[#allocation4 + $0x3f0] sm:$0xff]  ;;  %v6692_v57 = vpack.c.bf16 %v2011_v44, %v2003_v51  ;;  %v6698_v51 = vpack.c.bf16 %v2044_v40, %v2036_v36  ;;  %v6762_v44 = vpack.c.bf16 %v2046_v38, %v2038_v39  ;;  %v2070_v36 = vld [vmem:[#allocation4 + $0x5b8] sm:$0xff] }
 0x448   :  { %v6756_v0 = vpack.c.bf16 %v2013_v54, %v2005_v43  ;;  %v2052_v43 = vld [vmem:[#allocation4 + $0x528] sm:$0xff]  ;;  %v2078_v40 = vld [vmem:[#allocation4 + $0x5f8] sm:$0xff] }
 0x449   :  { %6685 = vmatpush1.bf16.msra.mxu0 %v6684_v33  ;;  %6749 = vmatpush1.bf16.msra.mxu1 %v6748_v60  ;;  %v2019_v33 = vld [vmem:[#allocation4 + $0x420] sm:$0xff]  ;;  %v2060_v54 = vld [vmem:[#allocation4 + $0x568] sm:$0xff] }
 0x44a   :  { %6687 = vmatprep.subr.bf16.mxu0 %v6686_v55  ;;  %6751 = vmatprep.subr.bf16.mxu1 %v6750_v62  ;;  %v2027_v60 = vld [vmem:[#allocation4 + $0x460] sm:$0xff]  ;;  %v2021_v55 = vld [vmem:[#allocation4 + $0x430] sm:$0xff] }
 0x44b   :  { %v2029_v62 = vld [vmem:[#allocation4 + $0x470] sm:$0xff]  ;;  %v6696_v35 = vpack.c.bf16 %v2027_v60, %v2019_v33  ;;  %v6702_v33 = vpack.c.bf16 %v2060_v54, %v2052_v43  ;;  %v6766_v60 = vpack.c.bf16 %v2062_v37, %v2054_v59  ;;  %v2086_v43 = vld [vmem:[#allocation4 + $0x638] sm:$0xff] }
 0x44c   :  { %v6760_v49 = vpack.c.bf16 %v2029_v62, %v2021_v55  ;;  %v2068_v55 = vld [vmem:[#allocation4 + $0x5a8] sm:$0xff]  ;;  %v2094_v54 = vld [vmem:[#allocation4 + $0x678] sm:$0xff] }
 0x44d   :  { %6689 = vmatpush1.bf16.msra.mxu0 %v6688_v46  ;;  %6753 = vmatpush1.bf16.msra.mxu1 %v6752_v41  ;;  %v2035_v46 = vld [vmem:[#allocation4 + $0x4a0] sm:$0xff]  ;;  %v2076_v62 = vld [vmem:[#allocation4 + $0x5e8] sm:$0xff] }
 0x44e   :  { %6691 = vmatprep.subr.bf16.mxu0 %v6690_v47  ;;  %6755 = vmatprep.subr.bf16.mxu1 %v6754_v52  ;;  %v2043_v41 = vld [vmem:[#allocation4 + $0x4e0] sm:$0xff]  ;;  %v2037_v47 = vld [vmem:[#allocation4 + $0x4b0] sm:$0xff] }
 0x44f   :  { %v2045_v52 = vld [vmem:[#allocation4 + $0x4f0] sm:$0xff]  ;;  %v6700_v53 = vpack.c.bf16 %v2043_v41, %v2035_v46  ;;  %v6706_v46 = vpack.c.bf16 %v2076_v62, %v2068_v55  ;;  %v6770_v41 = vpack.c.bf16 %v2078_v40, %v2070_v36  ;;  %v2102_v55 = vld [vmem:[#allocation4 + $0x6b8] sm:$0xff] }
 0x450   :  { %v6764_v56 = vpack.c.bf16 %v2045_v52, %v2037_v47  ;;  %v2084_v47 = vld [vmem:[#allocation4 + $0x628] sm:$0xff]  ;;  %v2110_v62 = vld [vmem:[#allocation4 + $0x6f8] sm:$0xff] }
 0x451   :  { %6693 = vmatpush1.bf16.msra.mxu0 %v6692_v57  ;;  %6757 = vmatpush1.bf16.msra.mxu1 %v6756_v0  ;;  %v2051_v57 = vld [vmem:[#allocation4 + $0x520] sm:$0xff]  ;;  %v2092_v52 = vld [vmem:[#allocation4 + $0x668] sm:$0xff] }
 0x452   :  { %6695 = vmatprep.subr.bf16.mxu0 %v6694_v58  ;;  %6759 = vmatprep.subr.bf16.mxu1 %v6758_v61  ;;  %v2059_v0 = vld [vmem:[#allocation4 + $0x560] sm:$0xff]  ;;  %v2053_v58 = vld [vmem:[#allocation4 + $0x530] sm:$0xff] }
 0x453   :  { %v2061_v61 = vld [vmem:[#allocation4 + $0x570] sm:$0xff]  ;;  %v6704_v39 = vpack.c.bf16 %v2059_v0, %v2051_v57  ;;  %v6710_v57 = vpack.c.bf16 %v2092_v52, %v2084_v47  ;;  %v6774_v0 = vpack.c.bf16 %v2094_v54, %v2086_v43  ;;  %v2118_v47 = vld [vmem:[#allocation4 + $0x738] sm:$0xff] }
 0x454   :  { %v6768_v38 = vpack.c.bf16 %v2061_v61, %v2053_v58  ;;  %v2100_v58 = vld [vmem:[#allocation4 + $0x6a8] sm:$0xff]  ;;  %v2126_v52 = vld [vmem:[#allocation4 + $0x778] sm:$0xff] }
 0x455   :  { %6697 = vmatpush1.bf16.msra.mxu0 %v6696_v35  ;;  %6761 = vmatpush1.bf16.msra.mxu1 %v6760_v49  ;;  %v2067_v35 = vld [vmem:[#allocation4 + $0x5a0] sm:$0xff]  ;;  %v2108_v61 = vld [vmem:[#allocation4 + $0x6e8] sm:$0xff] }
 0x456   :  { %6699 = vmatprep.subr.bf16.mxu0 %v6698_v51  ;;  %6763 = vmatprep.subr.bf16.mxu1 %v6762_v44  ;;  %v2075_v49 = vld [vmem:[#allocation4 + $0x5e0] sm:$0xff]  ;;  %v2069_v51 = vld [vmem:[#allocation4 + $0x5b0] sm:$0xff] }
 0x457   :  { %v2077_v44 = vld [vmem:[#allocation4 + $0x5f0] sm:$0xff]  ;;  %v6708_v59 = vpack.c.bf16 %v2075_v49, %v2067_v35  ;;  %v6714_v35 = vpack.c.bf16 %v2108_v61, %v2100_v58  ;;  %v6778_v49 = vpack.c.bf16 %v2110_v62, %v2102_v55  ;;  %v2134_v58 = vld [vmem:[#allocation4 + $0x7b8] sm:$0xff] }
 0x458   :  { %v6772_v37 = vpack.c.bf16 %v2077_v44, %v2069_v51  ;;  %v2116_v51 = vld [vmem:[#allocation4 + $0x728] sm:$0xff]  ;;  %v2142_v61 = vld [vmem:[#allocation4 + $0x7f8] sm:$0xff] }
 0x459   :  { %6701 = vmatpush1.bf16.msra.mxu0 %v6700_v53  ;;  %6765 = vmatpush1.bf16.msra.mxu1 %v6764_v56  ;;  %v2083_v53 = vld [vmem:[#allocation4 + $0x620] sm:$0xff]  ;;  %v2124_v44 = vld [vmem:[#allocation4 + $0x768] sm:$0xff] }
 0x45a   :  { %6703 = vmatprep.subr.bf16.mxu0 %v6702_v33  ;;  %6767 = vmatprep.subr.bf16.mxu1 %v6766_v60  ;;  %v2091_v56 = vld [vmem:[#allocation4 + $0x660] sm:$0xff]  ;;  %v2085_v33 = vld [vmem:[#allocation4 + $0x630] sm:$0xff] }
 0x45b   :  { %v2093_v60 = vld [vmem:[#allocation4 + $0x670] sm:$0xff]  ;;  %v6712_v36 = vpack.c.bf16 %v2091_v56, %v2083_v53  ;;  %v6718_v53 = vpack.c.bf16 %v2124_v44, %v2116_v51  ;;  %v6782_v56 = vpack.c.bf16 %v2126_v52, %v2118_v47  ;;  %v2525_v51 = vld [vmem:[#allocation4 + $0x8] sm:$0xff]  ;;  %v2527_v47 = vld [vmem:[#allocation4 + $0x18] sm:$0xff] }
 0x45c   :  { %v6776_v40 = vpack.c.bf16 %v2093_v60, %v2085_v33  ;;  %v2132_v33 = vld [vmem:[#allocation4 + $0x7a8] sm:$0xff] }
 0x45d   :  { %6705 = vmatpush1.bf16.msra.mxu0 %v6704_v39  ;;  %6769 = vmatpush1.bf16.msra.mxu1 %v6768_v38  ;;  %v2099_v39 = vld [vmem:[#allocation4 + $0x6a0] sm:$0xff]  ;;  %v2140_v60 = vld [vmem:[#allocation4 + $0x7e8] sm:$0xff] }
 0x45e   :  { %6707 = vmatprep.subr.bf16.mxu0 %v6706_v46  ;;  %6771 = vmatprep.subr.bf16.mxu1 %v6770_v41  ;;  %v2107_v38 = vld [vmem:[#allocation4 + $0x6e0] sm:$0xff]  ;;  %v2101_v46 = vld [vmem:[#allocation4 + $0x6b0] sm:$0xff]  ;;  %v2533_v44 = vld [vmem:[#allocation4 + $0x48] sm:$0xff] }
 0x45f   :  { %v2109_v41 = vld [vmem:[#allocation4 + $0x6f0] sm:$0xff]  ;;  %v6716_v43 = vpack.c.bf16 %v2107_v38, %v2099_v39  ;;  %v6786_v39 = vpack.c.bf16 %v2142_v61, %v2134_v58  ;;  %v2139_v38 = vld [vmem:[#allocation4 + $0x7e0] sm:$0xff]  ;;  %v6790_v52 = vpack.c.bf16 %v2533_v44, %v2525_v51  ;;  %v2543_v58 = vld [vmem:[#allocation4 + $0x98] sm:$0xff] }
 0x460   :  { %v6780_v54 = vpack.c.bf16 %v2109_v41, %v2101_v46  ;;  %v2551_v61 = vld [vmem:[#allocation4 + $0xd8] sm:$0xff] }
 0x461   :  { %6709 = vmatpush1.bf16.msra.mxu0 %v6708_v59  ;;  %6773 = vmatpush1.bf16.msra.mxu1 %v6772_v37  ;;  %v2115_v59 = vld [vmem:[#allocation4 + $0x720] sm:$0xff]  ;;  %v2567_v44 = vld [vmem:[#allocation4 + $0x158] sm:$0xff] }
 0x462   :  { %6711 = vmatprep.subr.bf16.mxu0 %v6710_v57  ;;  %6775 = vmatprep.subr.bf16.mxu1 %v6774_v0  ;;  %v2123_v37 = vld [vmem:[#allocation4 + $0x760] sm:$0xff]  ;;  %v2117_v57 = vld [vmem:[#allocation4 + $0x730] sm:$0xff] }
 0x463   :  { %v2125_v0 = vld [vmem:[#allocation4 + $0x770] sm:$0xff]  ;;  %v6720_v55 = vpack.c.bf16 %v2123_v37, %v2115_v59  ;;  %v2532_v59 = vld [vmem:[#allocation4 + $0x40] sm:$0xff] }
 0x464   :  { %v6784_v62 = vpack.c.bf16 %v2125_v0, %v2117_v57  ;;  %v2534_v57 = vld [vmem:[#allocation4 + $0x50] sm:$0xff] }
 0x465   :  { %6713 = vmatpush1.bf16.msra.mxu0 %v6712_v36  ;;  %6777 = vmatpush1.bf16.msra.mxu1 %v6776_v40  ;;  %v2131_v36 = vld [vmem:[#allocation4 + $0x7a0] sm:$0xff]  ;;  %v6722_v40 = vpack.c.bf16 %v2140_v60, %v2132_v33  ;;  %v2541_v33 = vld [vmem:[#allocation4 + $0x88] sm:$0xff] }
 0x466   :  { %6715 = vmatprep.subr.bf16.mxu0 %v6714_v35  ;;  %6779 = vmatprep.subr.bf16.mxu1 %v6778_v49  ;;  %v2133_v35 = vld [vmem:[#allocation4 + $0x7b0] sm:$0xff]  ;;  %v6724_v46 = vpack.c.bf16 %v2139_v38, %v2131_v36  ;;  %v2549_v60 = vld [vmem:[#allocation4 + $0xc8] sm:$0xff]  ;;  %v6858_v36 = vpack.c.bf16 %v2551_v61, %v2543_v58  ;;  %v2572_v58 = vld [vmem:[#allocation4 + $0x180] sm:$0xff] }
 0x467   :  { %v2141_v49 = vld [vmem:[#allocation4 + $0x7f0] sm:$0xff] }
 0x468   :  { %v6788_v41 = vpack.c.bf16 %v2141_v49, %v2133_v35  ;;  %v2550_v38 = vld [vmem:[#allocation4 + $0xd0] sm:$0xff]  ;;  %v2557_v49 = vld [vmem:[#allocation4 + $0x108] sm:$0xff] }
 0x469   :  { %6717 = vmatpush1.bf16.msra.mxu0 %v6716_v43  ;;  %6781 = vmatpush1.bf16.msra.mxu1 %v6780_v54  ;;  %v2535_v43 = vld [vmem:[#allocation4 + $0x58] sm:$0xff]  ;;  %v2524_v54 = vld [vmem:[#allocation4] sm:$0xff] }
 0x46a   :  { %6719 = vmatprep.subr.bf16.mxu0 %v6718_v53  ;;  %6783 = vmatprep.subr.bf16.mxu1 %v6782_v56  ;;  %v6854_v37 = vpack.c.bf16 %v2535_v43, %v2527_v47  ;;  %v6792_v53 = vpack.c.bf16 %v2532_v59, %v2524_v54  ;;  %v2526_v56 = vld [vmem:[#allocation4 + $0x10] sm:$0xff]  ;;  %v2556_v47 = vld [vmem:[#allocation4 + $0x100] sm:$0xff] }
 0x46b   :  { %v6856_v0 = vpack.c.bf16 %v2534_v57, %v2526_v56  ;;  %v2558_v59 = vld [vmem:[#allocation4 + $0x110] sm:$0xff]  ;;  %v2573_v56 = vld [vmem:[#allocation4 + $0x188] sm:$0xff] }
 0x46c   :  { %v2581_v57 = vld [vmem:[#allocation4 + $0x1c8] sm:$0xff] }
 0x46d   :  { %6721 = vmatpush1.bf16.msra.mxu0 %v6720_v55  ;;  %6785 = vmatpush1.bf16.msra.mxu1 %v6784_v62  ;;  %v2540_v55 = vld [vmem:[#allocation4 + $0x80] sm:$0xff] }
 0x46e   :  { %6723 = vmatprep.subr.bf16.mxu0 %v6722_v40  ;;  %6787 = vmatprep.subr.bf16.mxu1 %v6786_v39  ;;  %v2548_v62 = vld [vmem:[#allocation4 + $0xc0] sm:$0xff]  ;;  %v2542_v39 = vld [vmem:[#allocation4 + $0x90] sm:$0xff] }
 0x46f   :  { %v6796_v40 = vpack.c.bf16 %v2548_v62, %v2540_v55  ;;  %v6860_v35 = vpack.c.bf16 %v2550_v38, %v2542_v39  ;;  %v2574_v62 = vld [vmem:[#allocation4 + $0x190] sm:$0xff]  ;;  %v2589_v39 = vld [vmem:[#allocation4 + $0x208] sm:$0xff] }
 0x470   :  { %v2597_v38 = vld [vmem:[#allocation4 + $0x248] sm:$0xff] }
 0x471   :  { %6725 = vmatpush1.bf16.msra.mxu0 %v6724_v46  ;;  %6789 = vmatpush1.bf16.msra.mxu1 %v6788_v41  ;;  %v2565_v46 = vld [vmem:[#allocation4 + $0x148] sm:$0xff]  ;;  %v2559_v41 = vld [vmem:[#allocation4 + $0x118] sm:$0xff] }
 0x472   :  { %6791 = vmatprep.subr.bf16.mxu0 %v6790_v52  ;;  %6855 = vmatprep.subr.bf16.mxu1 %v6854_v37  ;;  %v6798_v51 = vpack.c.bf16 %v2565_v46, %v2557_v49  ;;  %v2564_v52 = vld [vmem:[#allocation4 + $0x140] sm:$0xff]  ;;  %v6862_v43 = vpack.c.bf16 %v2567_v44, %v2559_v41  ;;  %v2566_v37 = vld [vmem:[#allocation4 + $0x150] sm:$0xff]  ;;  %v6806_v49 = vpack.c.bf16 %v2597_v38, %v2589_v39  ;;  %v2599_v46 = vld [vmem:[#allocation4 + $0x258] sm:$0xff] }
 0x473   :  { %v6800_v54 = vpack.c.bf16 %v2564_v52, %v2556_v47  ;;  %v2588_v41 = vld [vmem:[#allocation4 + $0x200] sm:$0xff]  ;;  %v2590_v52 = vld [vmem:[#allocation4 + $0x210] sm:$0xff]  ;;  %v2631_v38 = vld [vmem:[#allocation4 + $0x358] sm:$0xff] }
 0x474   :  { %2361 = vmatmul.mubr.f32.vlgmr.msra.gmra.mrb[14].mxu0 %v8532_v50  ;;  %2432 = vmatmul.mubr.f32.vlgmr.msra.gmra.mrb[14].mxu1 %v8532_v50  ;;  %v6794_v50 = vpack.c.bf16 %v2549_v60, %v2541_v33  ;;  %v6802_v33 = vpack.c.bf16 %v2581_v57, %v2573_v56  ;;  %v2583_v60 = vld [vmem:[#allocation4 + $0x1d8] sm:$0xff] }
 0x475   :  { %6793 = vmatpush1.bf16.msra.mxu0 %v6792_v53  ;;  %6857 = vmatpush1.bf16.msra.mxu1 %v6856_v0  ;;  %v6864_v53 = vpack.c.bf16 %v2566_v37, %v2558_v59  ;;  %v2575_v0 = vld [vmem:[#allocation4 + $0x198] sm:$0xff]  ;;  %v2605_v59 = vld [vmem:[#allocation4 + $0x288] sm:$0xff] }
 0x476   :  { %6795 = vmatprep.subr.bf16.mxu0 %v6794_v50  ;;  %6859 = vmatprep.subr.bf16.mxu1 %v6858_v36  ;;  %v2580_v50 = vld [vmem:[#allocation4 + $0x1c0] sm:$0xff]  ;;  %v6866_v61 = vpack.c.bf16 %v2583_v60, %v2575_v0  ;;  %v2582_v36 = vld [vmem:[#allocation4 + $0x1d0] sm:$0xff]  ;;  %v2613_v37 = vld [vmem:[#allocation4 + $0x2c8] sm:$0xff] }
 0x477   :  { %v6804_v55 = vpack.c.bf16 %v2580_v50, %v2572_v58  ;;  %v6810_v56 = vpack.c.bf16 %v2613_v37, %v2605_v59  ;;  %v2615_v57 = vld [vmem:[#allocation4 + $0x2d8] sm:$0xff]  ;;  %v2604_v0 = vld [vmem:[#allocation4 + $0x280] sm:$0xff]  ;;  %v2606_v50 = vld [vmem:[#allocation4 + $0x290] sm:$0xff] }
 0x478   :  { %v2647_v37 = vld [vmem:[#allocation4 + $0x3d8] sm:$0xff] }
 0x479   :  { %6797 = vmatpush1.bf16.msra.mxu0 %v6796_v40  ;;  %6861 = vmatpush1.bf16.msra.mxu1 %v6860_v35  ;;  %v6868_v40 = vpack.c.bf16 %v2582_v36, %v2574_v62  ;;  %v2591_v35 = vld [vmem:[#allocation4 + $0x218] sm:$0xff]  ;;  %v2621_v62 = vld [vmem:[#allocation4 + $0x308] sm:$0xff] }
 0x47a   :  { %6799 = vmatprep.subr.bf16.mxu0 %v6798_v51  ;;  %6863 = vmatprep.subr.bf16.mxu1 %v6862_v43  ;;  %v2596_v51 = vld [vmem:[#allocation4 + $0x240] sm:$0xff]  ;;  %v6870_v44 = vpack.c.bf16 %v2599_v46, %v2591_v35  ;;  %v2598_v43 = vld [vmem:[#allocation4 + $0x250] sm:$0xff]  ;;  %v2629_v36 = vld [vmem:[#allocation4 + $0x348] sm:$0xff] }
 0x47b   :  { %v6808_v47 = vpack.c.bf16 %v2596_v51, %v2588_v41  ;;  %v6814_v39 = vpack.c.bf16 %v2629_v36, %v2621_v62  ;;  %v2620_v35 = vld [vmem:[#allocation4 + $0x300] sm:$0xff]  ;;  %v2622_v51 = vld [vmem:[#allocation4 + $0x310] sm:$0xff]  ;;  %v2663_v36 = vld [vmem:[#allocation4 + $0x458] sm:$0xff] }
 0x47d   :  { %6801 = vmatpush1.bf16.msra.mxu0 %v6800_v54  ;;  %6865 = vmatpush1.bf16.msra.mxu1 %v6864_v53  ;;  %v6872_v54 = vpack.c.bf16 %v2598_v43, %v2590_v52  ;;  %v2607_v53 = vld [vmem:[#allocation4 + $0x298] sm:$0xff]  ;;  %v2637_v52 = vld [vmem:[#allocation4 + $0x388] sm:$0xff] }
 0x47e   :  { %6803 = vmatprep.subr.bf16.mxu0 %v6802_v33  ;;  %6867 = vmatprep.subr.bf16.mxu1 %v6866_v61  ;;  %v2612_v33 = vld [vmem:[#allocation4 + $0x2c0] sm:$0xff]  ;;  %v6874_v60 = vpack.c.bf16 %v2615_v57, %v2607_v53  ;;  %v2614_v61 = vld [vmem:[#allocation4 + $0x2d0] sm:$0xff]  ;;  %v2645_v43 = vld [vmem:[#allocation4 + $0x3c8] sm:$0xff] }
 0x47f   :  { %v6812_v58 = vpack.c.bf16 %v2612_v33, %v2604_v0  ;;  %v6818_v59 = vpack.c.bf16 %v2645_v43, %v2637_v52  ;;  %v2636_v53 = vld [vmem:[#allocation4 + $0x380] sm:$0xff]  ;;  %v2638_v33 = vld [vmem:[#allocation4 + $0x390] sm:$0xff]  ;;  %v2679_v43 = vld [vmem:[#allocation4 + $0x4d8] sm:$0xff] }
 0x481   :  { %6805 = vmatpush1.bf16.msra.mxu0 %v6804_v55  ;;  %6869 = vmatpush1.bf16.msra.mxu1 %v6868_v40  ;;  %v6876_v55 = vpack.c.bf16 %v2614_v61, %v2606_v50  ;;  %v2623_v40 = vld [vmem:[#allocation4 + $0x318] sm:$0xff]  ;;  %v2653_v50 = vld [vmem:[#allocation4 + $0x408] sm:$0xff] }
 0x482   :  { %6807 = vmatprep.subr.bf16.mxu0 %v6806_v49  ;;  %6871 = vmatprep.subr.bf16.mxu1 %v6870_v44  ;;  %v2628_v49 = vld [vmem:[#allocation4 + $0x340] sm:$0xff]  ;;  %v6878_v46 = vpack.c.bf16 %v2631_v38, %v2623_v40  ;;  %v2630_v44 = vld [vmem:[#allocation4 + $0x350] sm:$0xff]  ;;  %v2661_v61 = vld [vmem:[#allocation4 + $0x448] sm:$0xff] }
 0x483   :  { %v6816_v41 = vpack.c.bf16 %v2628_v49, %v2620_v35  ;;  %v6822_v62 = vpack.c.bf16 %v2661_v61, %v2653_v50  ;;  %v2652_v40 = vld [vmem:[#allocation4 + $0x400] sm:$0xff]  ;;  %v2654_v49 = vld [vmem:[#allocation4 + $0x410] sm:$0xff]  ;;  %v2695_v61 = vld [vmem:[#allocation4 + $0x558] sm:$0xff] }
 0x485   :  { %6809 = vmatpush1.bf16.msra.mxu0 %v6808_v47  ;;  %6873 = vmatpush1.bf16.msra.mxu1 %v6872_v54  ;;  %v6880_v47 = vpack.c.bf16 %v2630_v44, %v2622_v51  ;;  %v2639_v54 = vld [vmem:[#allocation4 + $0x398] sm:$0xff]  ;;  %v2669_v51 = vld [vmem:[#allocation4 + $0x488] sm:$0xff] }
 0x486   :  { %6811 = vmatprep.subr.bf16.mxu0 %v6810_v56  ;;  %6875 = vmatprep.subr.bf16.mxu1 %v6874_v60  ;;  %v2644_v56 = vld [vmem:[#allocation4 + $0x3c0] sm:$0xff]  ;;  %v6882_v57 = vpack.c.bf16 %v2647_v37, %v2639_v54  ;;  %v2646_v60 = vld [vmem:[#allocation4 + $0x3d0] sm:$0xff]  ;;  %v2677_v44 = vld [vmem:[#allocation4 + $0x4c8] sm:$0xff] }
 0x487   :  { %v6820_v0 = vpack.c.bf16 %v2644_v56, %v2636_v53  ;;  %v6826_v52 = vpack.c.bf16 %v2677_v44, %v2669_v51  ;;  %v2668_v54 = vld [vmem:[#allocation4 + $0x480] sm:$0xff]  ;;  %v2670_v56 = vld [vmem:[#allocation4 + $0x490] sm:$0xff]  ;;  %v2711_v44 = vld [vmem:[#allocation4 + $0x5d8] sm:$0xff] }
 0x489   :  { %6813 = vmatpush1.bf16.msra.mxu0 %v6812_v58  ;;  %6877 = vmatpush1.bf16.msra.mxu1 %v6876_v55  ;;  %v6884_v58 = vpack.c.bf16 %v2646_v60, %v2638_v33  ;;  %v2655_v55 = vld [vmem:[#allocation4 + $0x418] sm:$0xff]  ;;  %v2685_v33 = vld [vmem:[#allocation4 + $0x508] sm:$0xff] }
 0x48a   :  { %6815 = vmatprep.subr.bf16.mxu0 %v6814_v39  ;;  %6879 = vmatprep.subr.bf16.mxu1 %v6878_v46  ;;  %v2660_v39 = vld [vmem:[#allocation4 + $0x440] sm:$0xff]  ;;  %v6886_v38 = vpack.c.bf16 %v2663_v36, %v2655_v55  ;;  %v2662_v46 = vld [vmem:[#allocation4 + $0x450] sm:$0xff]  ;;  %v2693_v60 = vld [vmem:[#allocation4 + $0x548] sm:$0xff] }
 0x48b   :  { %v6824_v35 = vpack.c.bf16 %v2660_v39, %v2652_v40  ;;  %v6830_v50 = vpack.c.bf16 %v2693_v60, %v2685_v33  ;;  %v2684_v55 = vld [vmem:[#allocation4 + $0x500] sm:$0xff]  ;;  %v2686_v39 = vld [vmem:[#allocation4 + $0x510] sm:$0xff]  ;;  %v2727_v33 = vld [vmem:[#allocation4 + $0x658] sm:$0xff] }
 0x48d   :  { %6817 = vmatpush1.bf16.msra.mxu0 %v6816_v41  ;;  %6881 = vmatpush1.bf16.msra.mxu1 %v6880_v47  ;;  %v6888_v41 = vpack.c.bf16 %v2662_v46, %v2654_v49  ;;  %v2671_v47 = vld [vmem:[#allocation4 + $0x498] sm:$0xff]  ;;  %v2701_v49 = vld [vmem:[#allocation4 + $0x588] sm:$0xff] }
 0x48e   :  { %6819 = vmatprep.subr.bf16.mxu0 %v6818_v59  ;;  %6883 = vmatprep.subr.bf16.mxu1 %v6882_v57  ;;  %v2676_v59 = vld [vmem:[#allocation4 + $0x4c0] sm:$0xff]  ;;  %v6890_v37 = vpack.c.bf16 %v2679_v43, %v2671_v47  ;;  %v2678_v57 = vld [vmem:[#allocation4 + $0x4d0] sm:$0xff]  ;;  %v2709_v46 = vld [vmem:[#allocation4 + $0x5c8] sm:$0xff] }
 0x48f   :  { %v6828_v53 = vpack.c.bf16 %v2676_v59, %v2668_v54  ;;  %v6834_v51 = vpack.c.bf16 %v2709_v46, %v2701_v49  ;;  %v2700_v47 = vld [vmem:[#allocation4 + $0x580] sm:$0xff]  ;;  %v2702_v59 = vld [vmem:[#allocation4 + $0x590] sm:$0xff]  ;;  %v2735_v49 = vld [vmem:[#allocation4 + $0x698] sm:$0xff] }
 0x490   :  { %v2743_v46 = vld [vmem:[#allocation4 + $0x6d8] sm:$0xff] }
 0x491   :  { %6821 = vmatpush1.bf16.msra.mxu0 %v6820_v0  ;;  %6885 = vmatpush1.bf16.msra.mxu1 %v6884_v58  ;;  %v6892_v0 = vpack.c.bf16 %v2678_v57, %v2670_v56  ;;  %v2687_v58 = vld [vmem:[#allocation4 + $0x518] sm:$0xff]  ;;  %v2725_v57 = vld [vmem:[#allocation4 + $0x648] sm:$0xff] }
 0x492   :  { %6823 = vmatprep.subr.bf16.mxu0 %v6822_v62  ;;  %6887 = vmatprep.subr.bf16.mxu1 %v6886_v38  ;;  %v2692_v62 = vld [vmem:[#allocation4 + $0x540] sm:$0xff]  ;;  %v6894_v36 = vpack.c.bf16 %v2695_v61, %v2687_v58  ;;  %v2694_v38 = vld [vmem:[#allocation4 + $0x550] sm:$0xff] }
 0x493   :  { %v6832_v40 = vpack.c.bf16 %v2692_v62, %v2684_v55  ;;  %v2724_v61 = vld [vmem:[#allocation4 + $0x640] sm:$0xff]  ;;  %v2718_v55 = vld [vmem:[#allocation4 + $0x610] sm:$0xff] }
 0x495   :  { %6825 = vmatpush1.bf16.msra.mxu0 %v6824_v35  ;;  %6889 = vmatpush1.bf16.msra.mxu1 %v6888_v41  ;;  %v6896_v35 = vpack.c.bf16 %v2694_v38, %v2686_v39  ;;  %v2703_v41 = vld [vmem:[#allocation4 + $0x598] sm:$0xff]  ;;  %v2741_v39 = vld [vmem:[#allocation4 + $0x6c8] sm:$0xff] }
 0x496   :  { %6827 = vmatprep.subr.bf16.mxu0 %v6826_v52  ;;  %6891 = vmatprep.subr.bf16.mxu1 %v6890_v37  ;;  %v2708_v52 = vld [vmem:[#allocation4 + $0x5c0] sm:$0xff]  ;;  %v6898_v43 = vpack.c.bf16 %v2711_v44, %v2703_v41  ;;  %v2710_v37 = vld [vmem:[#allocation4 + $0x5d0] sm:$0xff] }
 0x497   :  { %v6836_v54 = vpack.c.bf16 %v2708_v52, %v2700_v47  ;;  %v6900_v56 = vpack.c.bf16 %v2710_v37, %v2702_v59  ;;  %v2732_v41 = vld [vmem:[#allocation4 + $0x680] sm:$0xff]  ;;  %v2734_v47 = vld [vmem:[#allocation4 + $0x690] sm:$0xff]  ;;  %v2757_v59 = vld [vmem:[#allocation4 + $0x748] sm:$0xff] }
 0x498   :  { %v2740_v44 = vld [vmem:[#allocation4 + $0x6c0] sm:$0xff]  ;;  %v2742_v52 = vld [vmem:[#allocation4 + $0x6d0] sm:$0xff]  ;;  %v2751_v37 = vld [vmem:[#allocation4 + $0x718] sm:$0xff] }
 0x499   :  { %6829 = vmatpush1.bf16.msra.mxu0 %v6828_v53  ;;  %6893 = vmatpush1.bf16.msra.mxu1 %v6892_v0  ;;  %v2717_v53 = vld [vmem:[#allocation4 + $0x608] sm:$0xff]  ;;  %v2719_v0 = vld [vmem:[#allocation4 + $0x618] sm:$0xff] }
 0x49a   :  { %6831 = vmatprep.subr.bf16.mxu0 %v6830_v50  ;;  %6895 = vmatprep.subr.bf16.mxu1 %v6894_v36  ;;  %v6838_v60 = vpack.c.bf16 %v2725_v57, %v2717_v53  ;;  %v6902_v58 = vpack.c.bf16 %v2727_v33, %v2719_v0  ;;  %v2716_v50 = vld [vmem:[#allocation4 + $0x600] sm:$0xff]  ;;  %v2726_v36 = vld [vmem:[#allocation4 + $0x650] sm:$0xff]  ;;  %v2759_v53 = vld [vmem:[#allocation4 + $0x758] sm:$0xff] }
 0x49b   :  { %v6840_v62 = vpack.c.bf16 %v2724_v61, %v2716_v50  ;;  %v6904_v38 = vpack.c.bf16 %v2726_v36, %v2718_v55  ;;  %v2748_v0 = vld [vmem:[#allocation4 + $0x700] sm:$0xff]  ;;  %v6910_v50 = vpack.c.bf16 %v2759_v53, %v2751_v37  ;;  %v2765_v61 = vld [vmem:[#allocation4 + $0x788] sm:$0xff]  ;;  %v2767_v36 = vld [vmem:[#allocation4 + $0x798] sm:$0xff] }
 0x49c   :  { %v2756_v33 = vld [vmem:[#allocation4 + $0x740] sm:$0xff]  ;;  %v2773_v55 = vld [vmem:[#allocation4 + $0x7c8] sm:$0xff] }
 0x49d   :  { %6833 = vmatpush1.bf16.msra.mxu0 %v6832_v40  ;;  %6897 = vmatpush1.bf16.msra.mxu1 %v6896_v35  ;;  %v2733_v40 = vld [vmem:[#allocation4 + $0x688] sm:$0xff] }
 0x49e   :  { %6835 = vmatprep.subr.bf16.mxu0 %v6834_v51  ;;  %6899 = vmatprep.subr.bf16.mxu1 %v6898_v43  ;;  %v6842_v35 = vpack.c.bf16 %v2741_v39, %v2733_v40  ;;  %v6906_v51 = vpack.c.bf16 %v2743_v46, %v2735_v49  ;;  %v2749_v43 = vld [vmem:[#allocation4 + $0x708] sm:$0xff]  ;;  %v2775_v40 = vld [vmem:[#allocation4 + $0x7d8] sm:$0xff]  ;;  %v6848_v39 = vpack.c.bf16 %v2756_v33, %v2748_v0 }
 0x49f   :  { %v6846_v57 = vpack.c.bf16 %v2757_v59, %v2749_v43  ;;  %v6850_v49 = vpack.c.bf16 %v2773_v55, %v2765_v61  ;;  %v6914_v46 = vpack.c.bf16 %v2775_v40, %v2767_v36  ;;  %v2537_v43 = vld [vmem:[#allocation4 + $0x68] sm:$0xff]  ;;  %v2531_v59 = vld [vmem:[#allocation4 + $0x38] sm:$0xff] }
 0x4a1   :  { %6837 = vmatpush1.bf16.msra.mxu0 %v6836_v54  ;;  %6901 = vmatpush1.bf16.msra.mxu1 %v6900_v56  ;;  %v6844_v54 = vpack.c.bf16 %v2740_v44, %v2732_v41  ;;  %v6908_v56 = vpack.c.bf16 %v2742_v52, %v2734_v47  ;;  %v2766_v41 = vld [vmem:[#allocation4 + $0x790] sm:$0xff]  ;;  %v2529_v52 = vld [vmem:[#allocation4 + $0x28] sm:$0xff] }
 0x4a2   :  { %6839 = vmatprep.subr.bf16.mxu0 %v6838_v60  ;;  %6903 = vmatprep.subr.bf16.mxu1 %v6902_v58  ;;  %v2750_v60 = vld [vmem:[#allocation4 + $0x710] sm:$0xff]  ;;  %v6918_v37 = vpack.c.bf16 %v2537_v43, %v2529_v52 }
 0x4a3   :  { %v2758_v58 = vld [vmem:[#allocation4 + $0x750] sm:$0xff] }
 0x4a4   :  { %v2774_v44 = vld [vmem:[#allocation4 + $0x7d0] sm:$0xff] }
 0x4a5   :  { %6841 = vmatpush1.bf16.msra.mxu0 %v6840_v62  ;;  %6905 = vmatpush1.bf16.msra.mxu1 %v6904_v38  ;;  %v6912_v62 = vpack.c.bf16 %v2758_v58, %v2750_v60  ;;  %v2764_v38 = vld [vmem:[#allocation4 + $0x780] sm:$0xff]  ;;  %v6916_v47 = vpack.c.bf16 %v2774_v44, %v2766_v41 }
 0x4a6   :  { %6843 = vmatprep.subr.bf16.mxu0 %v6842_v35  ;;  %6907 = vmatprep.subr.bf16.mxu1 %v6906_v51  ;;  %v2772_v35 = vld [vmem:[#allocation4 + $0x7c0] sm:$0xff] }
 0x4a7   :  { %v6852_v51 = vpack.c.bf16 %v2772_v35, %v2764_v38  ;;  %v1884_v41 = vld [vmem:[#allocation2 + $0x2] ss:$8 sm:$0xf] }
 0x4a8   :  { %v1885_v44 = vld [vmem:[#allocation2 + $0x2] ss:$8 sm:$0xf0] }
 0x4a9   :  { %6845 = vmatpush1.bf16.msra.mxu0 %v6844_v54  ;;  %6909 = vmatpush1.bf16.msra.mxu1 %v6908_v56  ;;  %v2539_v54 = vld [vmem:[#allocation4 + $0x78] sm:$0xff]  ;;  %v1886_v52 = vor.u32 %v1885_v44, %v1884_v41 }
 0x4aa   :  { %6847 = vmatprep.subr.bf16.mxu0 %v6846_v57  ;;  %6911 = vmatprep.subr.bf16.mxu1 %v6910_v50  ;;  %v6982_v53 = vpack.c.bf16 %v2539_v54, %v2531_v59  ;;  %v2547_v41 = vld [vmem:[#allocation4 + $0xb8] sm:$0xff] }
 0x4ab   :  { %v2555_v44 = vld [vmem:[#allocation4 + $0xf8] sm:$0xff] }
 0x4ad   :  { %6849 = vmatpush1.bf16.msra.mxu0 %v6848_v39  ;;  %6913 = vmatpush1.bf16.msra.mxu1 %v6912_v62 }
 0x4ae   :  { %6851 = vmatprep.subr.bf16.mxu0 %v6850_v49  ;;  %6915 = vmatprep.subr.bf16.mxu1 %v6914_v46 }
 0x4b1   :  { %6853 = vmatpush1.bf16.msra.mxu0 %v6852_v51  ;;  %6917 = vmatpush1.bf16.msra.mxu1 %v6916_v47 }
 0x4b2   :  { %6919 = vmatprep.subr.bf16.mxu0 %v6918_v37  ;;  %6983 = vmatprep.subr.bf16.mxu1 %v6982_v53 }
 0x507   :  { %v2220_v56 = vpop.f32.mrb[12].mxu0  ;;  %v2291_v57 = vpop.f32.mrb[12].mxu1 }
 0x508   :  { %v2222_v0 = vpop.f32.mrb[13].mxu0  ;;  %v2293_v33 = vpop.f32.mrb[13].mxu1 }
 0x509   :  { %v2446_v60 = vcombine.low %v2220_v56, %v2222_v0  ;;  %v2447_v50 = vcombine.low %v2291_v57, %v2293_v33 }
 0x50b   :  { %v2456_v58 = vrot.slane %v2446_v60, %v8492_v63  ;;  %v2463_v61 = vrot.slane %v2447_v50, %v8492_v63 }
 0x50d   :  { %v2478_v55 = vcombine.low %v2456_v58, %v2463_v61 }
 0x50f   :  { %v2486_v47 = vrot.slane %v2478_v55, %v8492_v63 }
 0x547   :  { %v2362_v36 = vpop.f32.mrb[14].mxu0  ;;  %v2433_v40 = vpop.f32.mrb[14].mxu1 }
 0x548   :  { %v2364_v39 = vpop.f32.mrb[15].mxu0  ;;  %v2435_v62 = vpop.f32.mrb[15].mxu1 }
 0x549   :  { %v2448_v49 = vcombine.low %v2362_v36, %v2364_v39  ;;  %v2449_v38 = vcombine.low %v2433_v40, %v2435_v62  ;;  %v2528_v36 = vld [vmem:[#allocation4 + $0x20] sm:$0xff]  ;;  %v2530_v62 = vld [vmem:[#allocation4 + $0x30] sm:$0xff] }
 0x54a   :  { %v2536_v39 = vld [vmem:[#allocation4 + $0x60] sm:$0xff] }
 0x54b   :  { %v2470_v35 = vrot.slane %v2448_v49, %v8492_v63  ;;  %v2477_v46 = vrot.slane %v2449_v38, %v8492_v63  ;;  %v2538_v49 = vld [vmem:[#allocation4 + $0x70] sm:$0xff] }
 0x54d   :  { %v2479_v51 = vcombine.low %v2470_v35, %v2477_v46  ;;  %v2545_v35 = vld [vmem:[#allocation4 + $0xa8] sm:$0xff] }
 0x54e   :  { %v2553_v46 = vld [vmem:[#allocation4 + $0xe8] sm:$0xff] }
 0x54f   :  { %v2493_v43 = vrot.slane %v2479_v51, %v8492_v63 }
 0x551   :  { %v2494_v59 = vcombine.low %v2486_v47, %v2493_v43  ;;  %v6920_v47 = vpack.c.bf16 %v2536_v39, %v2528_v36  ;;  %v2544_v43 = vld [vmem:[#allocation4 + $0xa0] sm:$0xff] }
 0x552   :  { %v2568_v36 = vld [vmem:[#allocation4 + $0x160] sm:$0xff] }
 0x553   :  { %v2496_v37 = vadd.f32 %v2494_v59, %v1886_v52  ;;  %v6984_v52 = vpack.c.bf16 %v2538_v49, %v2530_v62  ;;  %v2552_v59 = vld [vmem:[#allocation4 + $0xe0] sm:$0xff]  ;;  %v2562_v62 = vld [vmem:[#allocation4 + $0x130] sm:$0xff] }
 0x554   :  { %v2570_v49 = vld [vmem:[#allocation4 + $0x170] sm:$0xff] }
 0x555   :  { %v5850_v54 = vmul.f32 -1.442695, %v2496_v37  ;;  %v2504_v57 = vrot.slane %v2496_v37, 6  ;;  %v2546_v37 = vld [vmem:[#allocation4 + $0xb0] sm:$0xff] }
 0x557   :  { %8124 = vpow2.f32 %v5850_v54  ;;  %v2554_v54 = vld [vmem:[#allocation4 + $0xf0] sm:$0xff] }
 0x561   :  { %v8125_v53 = vpop.eup %8124 }
 0x562   :  { %v2500_v56 = vadd.f32 1.0, %v8125_v53  ;;  %v2561_v53 = vld [vmem:[#allocation4 + $0x128] sm:$0xff] }
 0x564   :  { %8126 = vrcp.f32 %v2500_v56  ;;  %v6922_v56 = vpack.c.bf16 %v2553_v46, %v2545_v35  ;;  %v2585_v35 = vld [vmem:[#allocation4 + $0x1e8] sm:$0xff]  ;;  %v2579_v46 = vld [vmem:[#allocation4 + $0x1b8] sm:$0xff] }
 0x565   :  { %8128 = vtanh.f32 %v2504_v57  ;;  %v6986_v57 = vpack.c.bf16 %v2555_v44, %v2547_v41  ;;  %v2587_v41 = vld [vmem:[#allocation4 + $0x1f8] sm:$0xff] }
 0x56e   :  { %v8127_v0 = vpop.eup %8126 }
 0x56f   :  { %v2508_v33 = vrot.slane %v8127_v0, 2  ;;  %v8129_v60 = vpop.eup %8128  ;;  %v2514_v55 = vrot.slane %v8127_v0, 4 }
 0x570   :  { %v2511_v50 = vmul.f32 %v8129_v60, %v8127_v0  ;;  %v2569_v0 = vld [vmem:[#allocation4 + $0x168] sm:$0xff]  ;;  %v2571_v60 = vld [vmem:[#allocation4 + $0x178] sm:$0xff] }
 0x571   :  { %v2510_v58 = vmul.f32 %v2508_v33, %v8525_v34  ;;  %v2563_v33 = vld [vmem:[#allocation4 + $0x138] sm:$0xff] }
 0x572   :  { %v6990_v39 = vpack.c.bf16 %v2571_v60, %v2563_v33  ;;  %v2595_v33 = vld [vmem:[#allocation4 + $0x238] sm:$0xff] }
 0x573   :  { %v8545_v61 = vadd.f32 %v2511_v50, %v2510_v58  ;;  %v6924_v50 = vpack.c.bf16 %v2552_v59, %v2544_v43  ;;  %v6988_v58 = vpack.c.bf16 %v2554_v54, %v2546_v37  ;;  %v2584_v43 = vld [vmem:[#allocation4 + $0x1e0] sm:$0xff]  ;;  %v2578_v37 = vld [vmem:[#allocation4 + $0x1b0] sm:$0xff] }
 0x574   :  { %v2586_v54 = vld [vmem:[#allocation4 + $0x1f0] sm:$0xff] }
 0x575   :  { %8130 = vtanh.f32 %v8545_v61  ;;  %v6996_v60 = vpack.c.bf16 %v2586_v54, %v2578_v37  ;;  %v2625_v37 = vld [vmem:[#allocation4 + $0x328] sm:$0xff] }
 0x576   :  { %v2633_v54 = vld [vmem:[#allocation4 + $0x368] sm:$0xff] }
 0x57f   :  { %v8131_v40 = vpop.eup %8130 }
 0x580   :  { %v2516_v38 = vmul.f32 %v8131_v40, %v2514_v55  ;;  %v2560_v55 = vld [vmem:[#allocation4 + $0x120] sm:$0xff]  ;;  %v6926_v40 = vpack.c.bf16 %v2569_v0, %v2561_v53  ;;  %v2593_v53 = vld [vmem:[#allocation4 + $0x228] sm:$0xff] }
 0x581   :  { %v6928_v44 = vpack.c.bf16 %v2568_v36, %v2560_v55  ;;  %v2601_v0 = vld [vmem:[#allocation4 + $0x268] sm:$0xff] }
 0x582   :  { %2518 = vst.msk [vmem:[#allocation3 + $0x2] ss:$8 sm:$0x3] %vm8504_vm0, %v2516_v38  ;;  %v2788_v34 = vrot.slane %v2516_v38, %v8474_v48  ;;  %v8552_v51 = vrot.slane %v2516_v38, %v8467_v45  ;;  %v2577_v38 = vld [vmem:[#allocation4 + $0x1a8] sm:$0xff]  ;;  %v6934_v55 = vpack.c.bf16 %v2601_v0, %v2593_v53  ;;  %v2627_v53 = vld [vmem:[#allocation4 + $0x338] sm:$0xff] }
 0x583   :  { %v6930_v59 = vpack.c.bf16 %v2585_v35, %v2577_v38  ;;  %v2611_v38 = vld [vmem:[#allocation4 + $0x2b8] sm:$0xff] }
 0x584   :  { %2855 = vmatprep.mubr.f32.mxu0 %v2788_v34  ;;  %2926 = vmatprep.mubr.f32.mxu1 %v2788_v34  ;;  %v2619_v35 = vld [vmem:[#allocation4 + $0x2f8] sm:$0xff] }
 0x585   :  { %2856 = vmatmul.mubr.f32.vlgmr.msra.gmra.mrb[16].mxu0 %v8552_v51  ;;  %2927 = vmatmul.mubr.f32.vlgmr.msra.gmra.mrb[16].mxu1 %v8552_v51  ;;  %v2635_v0 = vld [vmem:[#allocation4 + $0x378] sm:$0xff] }
 0x586   :  { %6921 = vmatpush1.bf16.msra.mxu0 %v6920_v47  ;;  %6985 = vmatpush1.bf16.msra.mxu1 %v6984_v52  ;;  %v6992_v47 = vpack.c.bf16 %v2570_v49, %v2562_v62  ;;  %v2576_v52 = vld [vmem:[#allocation4 + $0x1a0] sm:$0xff]  ;;  %v2609_v62 = vld [vmem:[#allocation4 + $0x2a8] sm:$0xff] }
 0x587   :  { %2997 = vmatprep.mubr.f32.mxu0 %v2788_v34  ;;  %3068 = vmatprep.mubr.f32.mxu1 %v2788_v34  ;;  %v6994_v34 = vpack.c.bf16 %v2587_v41, %v2579_v46  ;;  %v2617_v49 = vld [vmem:[#allocation4 + $0x2e8] sm:$0xff] }
 0x588   :  { %6923 = vmatprep.subr.bf16.mxu0 %v6922_v56  ;;  %6987 = vmatprep.subr.bf16.mxu1 %v6986_v57  ;;  %v2603_v56 = vld [vmem:[#allocation4 + $0x278] sm:$0xff]  ;;  %v6932_v57 = vpack.c.bf16 %v2584_v43, %v2576_v52  ;;  %v6938_v52 = vpack.c.bf16 %v2617_v49, %v2609_v62  ;;  %v7002_v43 = vpack.c.bf16 %v2619_v35, %v2611_v38 }
 0x589   :  { %v6998_v36 = vpack.c.bf16 %v2603_v56, %v2595_v33  ;;  %v2643_v62 = vld [vmem:[#allocation4 + $0x3b8] sm:$0xff] }
 0x58a   :  { %6925 = vmatpush1.bf16.msra.mxu0 %v6924_v50  ;;  %6989 = vmatpush1.bf16.msra.mxu1 %v6988_v58  ;;  %v2592_v50 = vld [vmem:[#allocation4 + $0x220] sm:$0xff]  ;;  %v2651_v49 = vld [vmem:[#allocation4 + $0x3f8] sm:$0xff] }
 0x58b   :  { %6927 = vmatprep.subr.bf16.mxu0 %v6926_v40  ;;  %6991 = vmatprep.subr.bf16.mxu1 %v6990_v39  ;;  %v2600_v58 = vld [vmem:[#allocation4 + $0x260] sm:$0xff]  ;;  %v2594_v40 = vld [vmem:[#allocation4 + $0x230] sm:$0xff] }
 0x58c   :  { %v2602_v39 = vld [vmem:[#allocation4 + $0x270] sm:$0xff]  ;;  %v6936_v46 = vpack.c.bf16 %v2600_v58, %v2592_v50  ;;  %v6942_v50 = vpack.c.bf16 %v2633_v54, %v2625_v37  ;;  %v7006_v58 = vpack.c.bf16 %v2635_v0, %v2627_v53  ;;  %v2659_v37 = vld [vmem:[#allocation4 + $0x438] sm:$0xff] }
 0x58d   :  { %v7000_v41 = vpack.c.bf16 %v2602_v39, %v2594_v40  ;;  %v2641_v40 = vld [vmem:[#allocation4 + $0x3a8] sm:$0xff]  ;;  %v2667_v54 = vld [vmem:[#allocation4 + $0x478] sm:$0xff] }
 0x58e   :  { %6929 = vmatpush1.bf16.msra.mxu0 %v6928_v44  ;;  %6993 = vmatpush1.bf16.msra.mxu1 %v6992_v47  ;;  %v2608_v44 = vld [vmem:[#allocation4 + $0x2a0] sm:$0xff]  ;;  %v2649_v39 = vld [vmem:[#allocation4 + $0x3e8] sm:$0xff] }
 0x58f   :  { %6931 = vmatprep.subr.bf16.mxu0 %v6930_v59  ;;  %6995 = vmatprep.subr.bf16.mxu1 %v6994_v34  ;;  %v2616_v47 = vld [vmem:[#allocation4 + $0x2e0] sm:$0xff]  ;;  %v2610_v59 = vld [vmem:[#allocation4 + $0x2b0] sm:$0xff] }
 0x590   :  { %v2618_v34 = vld [vmem:[#allocation4 + $0x2f0] sm:$0xff]  ;;  %v6940_v33 = vpack.c.bf16 %v2616_v47, %v2608_v44  ;;  %v6946_v44 = vpack.c.bf16 %v2649_v39, %v2641_v40  ;;  %v7010_v47 = vpack.c.bf16 %v2651_v49, %v2643_v62  ;;  %v2675_v40 = vld [vmem:[#allocation4 + $0x4b8] sm:$0xff] }
 0x591   :  { %v7004_v56 = vpack.c.bf16 %v2618_v34, %v2610_v59  ;;  %v2657_v59 = vld [vmem:[#allocation4 + $0x428] sm:$0xff]  ;;  %v2683_v39 = vld [vmem:[#allocation4 + $0x4f8] sm:$0xff] }
 0x592   :  { %6933 = vmatpush1.bf16.msra.mxu0 %v6932_v57  ;;  %6997 = vmatpush1.bf16.msra.mxu1 %v6996_v60  ;;  %v2624_v57 = vld [vmem:[#allocation4 + $0x320] sm:$0xff]  ;;  %v2665_v34 = vld [vmem:[#allocation4 + $0x468] sm:$0xff] }
 0x593   :  { %6935 = vmatprep.subr.bf16.mxu0 %v6934_v55  ;;  %6999 = vmatprep.subr.bf16.mxu1 %v6998_v36  ;;  %v2632_v60 = vld [vmem:[#allocation4 + $0x360] sm:$0xff]  ;;  %v2626_v55 = vld [vmem:[#allocation4 + $0x330] sm:$0xff] }
 0x594   :  { %v2634_v36 = vld [vmem:[#allocation4 + $0x370] sm:$0xff]  ;;  %v6944_v38 = vpack.c.bf16 %v2632_v60, %v2624_v57  ;;  %v6950_v57 = vpack.c.bf16 %v2665_v34, %v2657_v59  ;;  %v7014_v60 = vpack.c.bf16 %v2667_v54, %v2659_v37  ;;  %v2691_v59 = vld [vmem:[#allocation4 + $0x538] sm:$0xff] }
 0x595   :  { %v7008_v35 = vpack.c.bf16 %v2634_v36, %v2626_v55  ;;  %v2673_v55 = vld [vmem:[#allocation4 + $0x4a8] sm:$0xff]  ;;  %v2699_v34 = vld [vmem:[#allocation4 + $0x578] sm:$0xff] }
 0x596   :  { %6937 = vmatpush1.bf16.msra.mxu0 %v6936_v46  ;;  %7001 = vmatpush1.bf16.msra.mxu1 %v7000_v41  ;;  %v2640_v46 = vld [vmem:[#allocation4 + $0x3a0] sm:$0xff]  ;;  %v2681_v36 = vld [vmem:[#allocation4 + $0x4e8] sm:$0xff] }
 0x597   :  { %6939 = vmatprep.subr.bf16.mxu0 %v6938_v52  ;;  %7003 = vmatprep.subr.bf16.mxu1 %v7002_v43  ;;  %v2648_v41 = vld [vmem:[#allocation4 + $0x3e0] sm:$0xff]  ;;  %v2642_v52 = vld [vmem:[#allocation4 + $0x3b0] sm:$0xff] }
 0x598   :  { %v2650_v43 = vld [vmem:[#allocation4 + $0x3f0] sm:$0xff]  ;;  %v6948_v53 = vpack.c.bf16 %v2648_v41, %v2640_v46  ;;  %v6954_v46 = vpack.c.bf16 %v2681_v36, %v2673_v55  ;;  %v7018_v41 = vpack.c.bf16 %v2683_v39, %v2675_v40  ;;  %v2707_v55 = vld [vmem:[#allocation4 + $0x5b8] sm:$0xff] }
 0x599   :  { %v7012_v0 = vpack.c.bf16 %v2650_v43, %v2642_v52  ;;  %v2689_v52 = vld [vmem:[#allocation4 + $0x528] sm:$0xff]  ;;  %v2715_v36 = vld [vmem:[#allocation4 + $0x5f8] sm:$0xff] }
 0x59a   :  { %6941 = vmatpush1.bf16.msra.mxu0 %v6940_v33  ;;  %7005 = vmatpush1.bf16.msra.mxu1 %v7004_v56  ;;  %v2656_v33 = vld [vmem:[#allocation4 + $0x420] sm:$0xff]  ;;  %v2697_v43 = vld [vmem:[#allocation4 + $0x568] sm:$0xff] }
 0x59b   :  { %6943 = vmatprep.subr.bf16.mxu0 %v6942_v50  ;;  %7007 = vmatprep.subr.bf16.mxu1 %v7006_v58  ;;  %v2664_v56 = vld [vmem:[#allocation4 + $0x460] sm:$0xff]  ;;  %v2658_v50 = vld [vmem:[#allocation4 + $0x430] sm:$0xff] }
 0x59c   :  { %v2666_v58 = vld [vmem:[#allocation4 + $0x470] sm:$0xff]  ;;  %v6952_v62 = vpack.c.bf16 %v2664_v56, %v2656_v33  ;;  %v6958_v33 = vpack.c.bf16 %v2697_v43, %v2689_v52  ;;  %v7022_v56 = vpack.c.bf16 %v2699_v34, %v2691_v59  ;;  %v2723_v52 = vld [vmem:[#allocation4 + $0x638] sm:$0xff] }
 0x59d   :  { %v7016_v49 = vpack.c.bf16 %v2666_v58, %v2658_v50  ;;  %v2705_v50 = vld [vmem:[#allocation4 + $0x5a8] sm:$0xff]  ;;  %v2731_v43 = vld [vmem:[#allocation4 + $0x678] sm:$0xff] }
 0x59e   :  { %6945 = vmatpush1.bf16.msra.mxu0 %v6944_v38  ;;  %7009 = vmatpush1.bf16.msra.mxu1 %v7008_v35  ;;  %v2672_v38 = vld [vmem:[#allocation4 + $0x4a0] sm:$0xff]  ;;  %v2713_v58 = vld [vmem:[#allocation4 + $0x5e8] sm:$0xff] }
 0x59f   :  { %6947 = vmatprep.subr.bf16.mxu0 %v6946_v44  ;;  %7011 = vmatprep.subr.bf16.mxu1 %v7010_v47  ;;  %v2680_v35 = vld [vmem:[#allocation4 + $0x4e0] sm:$0xff]  ;;  %v2674_v44 = vld [vmem:[#allocation4 + $0x4b0] sm:$0xff] }
 0x5a0   :  { %v2682_v47 = vld [vmem:[#allocation4 + $0x4f0] sm:$0xff]  ;;  %v6956_v37 = vpack.c.bf16 %v2680_v35, %v2672_v38  ;;  %v6962_v38 = vpack.c.bf16 %v2713_v58, %v2705_v50  ;;  %v7026_v35 = vpack.c.bf16 %v2715_v36, %v2707_v55  ;;  %v2739_v50 = vld [vmem:[#allocation4 + $0x6b8] sm:$0xff] }
 0x5a1   :  { %v7020_v54 = vpack.c.bf16 %v2682_v47, %v2674_v44  ;;  %v2721_v44 = vld [vmem:[#allocation4 + $0x628] sm:$0xff]  ;;  %v2747_v58 = vld [vmem:[#allocation4 + $0x6f8] sm:$0xff] }
 0x5a2   :  { %6949 = vmatpush1.bf16.msra.mxu0 %v6948_v53  ;;  %7013 = vmatpush1.bf16.msra.mxu1 %v7012_v0  ;;  %v2688_v53 = vld [vmem:[#allocation4 + $0x520] sm:$0xff]  ;;  %v2729_v47 = vld [vmem:[#allocation4 + $0x668] sm:$0xff] }
 0x5a3   :  { %6951 = vmatprep.subr.bf16.mxu0 %v6950_v57  ;;  %7015 = vmatprep.subr.bf16.mxu1 %v7014_v60  ;;  %v2696_v0 = vld [vmem:[#allocation4 + $0x560] sm:$0xff]  ;;  %v2690_v57 = vld [vmem:[#allocation4 + $0x530] sm:$0xff] }
 0x5a4   :  { %v2698_v60 = vld [vmem:[#allocation4 + $0x570] sm:$0xff]  ;;  %v6960_v40 = vpack.c.bf16 %v2696_v0, %v2688_v53  ;;  %v6966_v53 = vpack.c.bf16 %v2729_v47, %v2721_v44  ;;  %v7030_v0 = vpack.c.bf16 %v2731_v43, %v2723_v52  ;;  %v2755_v44 = vld [vmem:[#allocation4 + $0x738] sm:$0xff] }
 0x5a5   :  { %v7024_v39 = vpack.c.bf16 %v2698_v60, %v2690_v57  ;;  %v2737_v57 = vld [vmem:[#allocation4 + $0x6a8] sm:$0xff]  ;;  %v2763_v47 = vld [vmem:[#allocation4 + $0x778] sm:$0xff] }
 0x5a6   :  { %6953 = vmatpush1.bf16.msra.mxu0 %v6952_v62  ;;  %7017 = vmatpush1.bf16.msra.mxu1 %v7016_v49  ;;  %v2704_v62 = vld [vmem:[#allocation4 + $0x5a0] sm:$0xff]  ;;  %v2745_v60 = vld [vmem:[#allocation4 + $0x6e8] sm:$0xff] }
 0x5a7   :  { %6955 = vmatprep.subr.bf16.mxu0 %v6954_v46  ;;  %7019 = vmatprep.subr.bf16.mxu1 %v7018_v41  ;;  %v2712_v49 = vld [vmem:[#allocation4 + $0x5e0] sm:$0xff]  ;;  %v2706_v46 = vld [vmem:[#allocation4 + $0x5b0] sm:$0xff] }
 0x5a8   :  { %v2714_v41 = vld [vmem:[#allocation4 + $0x5f0] sm:$0xff]  ;;  %v6964_v59 = vpack.c.bf16 %v2712_v49, %v2704_v62  ;;  %v6970_v62 = vpack.c.bf16 %v2745_v60, %v2737_v57  ;;  %v7034_v49 = vpack.c.bf16 %v2747_v58, %v2739_v50  ;;  %v2771_v57 = vld [vmem:[#allocation4 + $0x7b8] sm:$0xff] }
 0x5a9   :  { %v7028_v34 = vpack.c.bf16 %v2714_v41, %v2706_v46  ;;  %v2753_v46 = vld [vmem:[#allocation4 + $0x728] sm:$0xff]  ;;  %v2779_v60 = vld [vmem:[#allocation4 + $0x7f8] sm:$0xff] }
 0x5aa   :  { %6957 = vmatpush1.bf16.msra.mxu0 %v6956_v37  ;;  %7021 = vmatpush1.bf16.msra.mxu1 %v7020_v54  ;;  %v2720_v37 = vld [vmem:[#allocation4 + $0x620] sm:$0xff]  ;;  %v2761_v41 = vld [vmem:[#allocation4 + $0x768] sm:$0xff] }
 0x5ab   :  { %6959 = vmatprep.subr.bf16.mxu0 %v6958_v33  ;;  %7023 = vmatprep.subr.bf16.mxu1 %v7022_v56  ;;  %v2728_v54 = vld [vmem:[#allocation4 + $0x660] sm:$0xff]  ;;  %v2722_v33 = vld [vmem:[#allocation4 + $0x630] sm:$0xff] }
 0x5ac   :  { %v2730_v56 = vld [vmem:[#allocation4 + $0x670] sm:$0xff]  ;;  %v6968_v55 = vpack.c.bf16 %v2728_v54, %v2720_v37  ;;  %v6974_v37 = vpack.c.bf16 %v2761_v41, %v2753_v46  ;;  %v7038_v54 = vpack.c.bf16 %v2763_v47, %v2755_v44  ;;  %v3162_v46 = vld [vmem:[#allocation4 + $0x8] sm:$0xff]  ;;  %v3164_v44 = vld [vmem:[#allocation4 + $0x18] sm:$0xff] }
 0x5ad   :  { %v7032_v36 = vpack.c.bf16 %v2730_v56, %v2722_v33  ;;  %v2769_v33 = vld [vmem:[#allocation4 + $0x7a8] sm:$0xff] }
 0x5ae   :  { %6961 = vmatpush1.bf16.msra.mxu0 %v6960_v40  ;;  %7025 = vmatpush1.bf16.msra.mxu1 %v7024_v39  ;;  %v2736_v40 = vld [vmem:[#allocation4 + $0x6a0] sm:$0xff]  ;;  %v2777_v56 = vld [vmem:[#allocation4 + $0x7e8] sm:$0xff] }
 0x5af   :  { %6963 = vmatprep.subr.bf16.mxu0 %v6962_v38  ;;  %7027 = vmatprep.subr.bf16.mxu1 %v7026_v35  ;;  %v2744_v39 = vld [vmem:[#allocation4 + $0x6e0] sm:$0xff]  ;;  %v2738_v38 = vld [vmem:[#allocation4 + $0x6b0] sm:$0xff]  ;;  %v3170_v41 = vld [vmem:[#allocation4 + $0x48] sm:$0xff] }
 0x5b0   :  { %v2746_v35 = vld [vmem:[#allocation4 + $0x6f0] sm:$0xff]  ;;  %v6972_v52 = vpack.c.bf16 %v2744_v39, %v2736_v40  ;;  %v7042_v40 = vpack.c.bf16 %v2779_v60, %v2771_v57  ;;  %v2776_v39 = vld [vmem:[#allocation4 + $0x7e0] sm:$0xff]  ;;  %v7046_v47 = vpack.c.bf16 %v3170_v41, %v3162_v46  ;;  %v3180_v57 = vld [vmem:[#allocation4 + $0x98] sm:$0xff] }
 0x5b1   :  { %v7036_v43 = vpack.c.bf16 %v2746_v35, %v2738_v38  ;;  %v3188_v60 = vld [vmem:[#allocation4 + $0xd8] sm:$0xff] }
 0x5b2   :  { %6965 = vmatpush1.bf16.msra.mxu0 %v6964_v59  ;;  %7029 = vmatpush1.bf16.msra.mxu1 %v7028_v34  ;;  %v2752_v59 = vld [vmem:[#allocation4 + $0x720] sm:$0xff]  ;;  %v3204_v41 = vld [vmem:[#allocation4 + $0x158] sm:$0xff] }
 0x5b3   :  { %6967 = vmatprep.subr.bf16.mxu0 %v6966_v53  ;;  %7031 = vmatprep.subr.bf16.mxu1 %v7030_v0  ;;  %v2760_v34 = vld [vmem:[#allocation4 + $0x760] sm:$0xff]  ;;  %v2754_v53 = vld [vmem:[#allocation4 + $0x730] sm:$0xff] }
 0x5b4   :  { %v2762_v0 = vld [vmem:[#allocation4 + $0x770] sm:$0xff]  ;;  %v6976_v50 = vpack.c.bf16 %v2760_v34, %v2752_v59  ;;  %v3169_v59 = vld [vmem:[#allocation4 + $0x40] sm:$0xff] }
 0x5b5   :  { %v7040_v58 = vpack.c.bf16 %v2762_v0, %v2754_v53  ;;  %v3171_v53 = vld [vmem:[#allocation4 + $0x50] sm:$0xff] }
 0x5b6   :  { %6969 = vmatpush1.bf16.msra.mxu0 %v6968_v55  ;;  %7033 = vmatpush1.bf16.msra.mxu1 %v7032_v36  ;;  %v2768_v55 = vld [vmem:[#allocation4 + $0x7a0] sm:$0xff]  ;;  %v6978_v36 = vpack.c.bf16 %v2777_v56, %v2769_v33  ;;  %v3178_v33 = vld [vmem:[#allocation4 + $0x88] sm:$0xff] }
 0x5b7   :  { %6971 = vmatprep.subr.bf16.mxu0 %v6970_v62  ;;  %7035 = vmatprep.subr.bf16.mxu1 %v7034_v49  ;;  %v2770_v62 = vld [vmem:[#allocation4 + $0x7b0] sm:$0xff]  ;;  %v6980_v38 = vpack.c.bf16 %v2776_v39, %v2768_v55  ;;  %v3186_v56 = vld [vmem:[#allocation4 + $0xc8] sm:$0xff]  ;;  %v7114_v55 = vpack.c.bf16 %v3188_v60, %v3180_v57  ;;  %v3209_v57 = vld [vmem:[#allocation4 + $0x180] sm:$0xff] }
 0x5b8   :  { %v2778_v49 = vld [vmem:[#allocation4 + $0x7f0] sm:$0xff] }
 0x5b9   :  { %v7044_v35 = vpack.c.bf16 %v2778_v49, %v2770_v62  ;;  %v3187_v39 = vld [vmem:[#allocation4 + $0xd0] sm:$0xff]  ;;  %v3194_v49 = vld [vmem:[#allocation4 + $0x108] sm:$0xff] }
 0x5ba   :  { %6973 = vmatpush1.bf16.msra.mxu0 %v6972_v52  ;;  %7037 = vmatpush1.bf16.msra.mxu1 %v7036_v43  ;;  %v3172_v52 = vld [vmem:[#allocation4 + $0x58] sm:$0xff]  ;;  %v3161_v43 = vld [vmem:[#allocation4] sm:$0xff] }
 0x5bb   :  { %6975 = vmatprep.subr.bf16.mxu0 %v6974_v37  ;;  %7039 = vmatprep.subr.bf16.mxu1 %v7038_v54  ;;  %v7110_v34 = vpack.c.bf16 %v3172_v52, %v3164_v44  ;;  %v7048_v37 = vpack.c.bf16 %v3169_v59, %v3161_v43  ;;  %v3163_v54 = vld [vmem:[#allocation4 + $0x10] sm:$0xff]  ;;  %v3193_v44 = vld [vmem:[#allocation4 + $0x100] sm:$0xff] }
 0x5bc   :  { %v7112_v0 = vpack.c.bf16 %v3171_v53, %v3163_v54  ;;  %v3195_v59 = vld [vmem:[#allocation4 + $0x110] sm:$0xff]  ;;  %v3210_v54 = vld [vmem:[#allocation4 + $0x188] sm:$0xff] }
 0x5bd   :  { %v3218_v53 = vld [vmem:[#allocation4 + $0x1c8] sm:$0xff] }
 0x5be   :  { %6977 = vmatpush1.bf16.msra.mxu0 %v6976_v50  ;;  %7041 = vmatpush1.bf16.msra.mxu1 %v7040_v58  ;;  %v3177_v50 = vld [vmem:[#allocation4 + $0x80] sm:$0xff] }
 0x5bf   :  { %6979 = vmatprep.subr.bf16.mxu0 %v6978_v36  ;;  %7043 = vmatprep.subr.bf16.mxu1 %v7042_v40  ;;  %v3185_v58 = vld [vmem:[#allocation4 + $0xc0] sm:$0xff]  ;;  %v3179_v40 = vld [vmem:[#allocation4 + $0x90] sm:$0xff] }
 0x5c0   :  { %v7052_v36 = vpack.c.bf16 %v3185_v58, %v3177_v50  ;;  %v7116_v62 = vpack.c.bf16 %v3187_v39, %v3179_v40  ;;  %v3211_v58 = vld [vmem:[#allocation4 + $0x190] sm:$0xff]  ;;  %v3226_v40 = vld [vmem:[#allocation4 + $0x208] sm:$0xff] }
 0x5c1   :  { %v3234_v39 = vld [vmem:[#allocation4 + $0x248] sm:$0xff] }
 0x5c2   :  { %6981 = vmatpush1.bf16.msra.mxu0 %v6980_v38  ;;  %7045 = vmatpush1.bf16.msra.mxu1 %v7044_v35  ;;  %v3202_v38 = vld [vmem:[#allocation4 + $0x148] sm:$0xff]  ;;  %v3196_v35 = vld [vmem:[#allocation4 + $0x118] sm:$0xff] }
 0x5c3   :  { %7047 = vmatprep.subr.bf16.mxu0 %v7046_v47  ;;  %7111 = vmatprep.subr.bf16.mxu1 %v7110_v34  ;;  %v7054_v46 = vpack.c.bf16 %v3202_v38, %v3194_v49  ;;  %v3201_v47 = vld [vmem:[#allocation4 + $0x140] sm:$0xff]  ;;  %v7118_v52 = vpack.c.bf16 %v3204_v41, %v3196_v35  ;;  %v3203_v34 = vld [vmem:[#allocation4 + $0x150] sm:$0xff]  ;;  %v7062_v49 = vpack.c.bf16 %v3234_v39, %v3226_v40  ;;  %v3236_v38 = vld [vmem:[#allocation4 + $0x258] sm:$0xff] }
 0x5c4   :  { %v7056_v43 = vpack.c.bf16 %v3201_v47, %v3193_v44  ;;  %v3225_v35 = vld [vmem:[#allocation4 + $0x200] sm:$0xff]  ;;  %v3227_v47 = vld [vmem:[#allocation4 + $0x210] sm:$0xff]  ;;  %v3268_v39 = vld [vmem:[#allocation4 + $0x358] sm:$0xff] }
 0x5c5   :  { %2998 = vmatmul.mubr.f32.vlgmr.msra.gmra.mrb[18].mxu0 %v8552_v51  ;;  %3069 = vmatmul.mubr.f32.vlgmr.msra.gmra.mrb[18].mxu1 %v8552_v51  ;;  %v7050_v51 = vpack.c.bf16 %v3186_v56, %v3178_v33  ;;  %v7058_v33 = vpack.c.bf16 %v3218_v53, %v3210_v54  ;;  %v3220_v56 = vld [vmem:[#allocation4 + $0x1d8] sm:$0xff] }
 0x5c6   :  { %7049 = vmatpush1.bf16.msra.mxu0 %v7048_v37  ;;  %7113 = vmatpush1.bf16.msra.mxu1 %v7112_v0  ;;  %v7120_v37 = vpack.c.bf16 %v3203_v34, %v3195_v59  ;;  %v3212_v0 = vld [vmem:[#allocation4 + $0x198] sm:$0xff]  ;;  %v3242_v59 = vld [vmem:[#allocation4 + $0x288] sm:$0xff] }
 0x5c7   :  { %7051 = vmatprep.subr.bf16.mxu0 %v7050_v51  ;;  %7115 = vmatprep.subr.bf16.mxu1 %v7114_v55  ;;  %v3217_v51 = vld [vmem:[#allocation4 + $0x1c0] sm:$0xff]  ;;  %v7122_v60 = vpack.c.bf16 %v3220_v56, %v3212_v0  ;;  %v3219_v55 = vld [vmem:[#allocation4 + $0x1d0] sm:$0xff]  ;;  %v3250_v34 = vld [vmem:[#allocation4 + $0x2c8] sm:$0xff] }
 0x5c8   :  { %v7060_v50 = vpack.c.bf16 %v3217_v51, %v3209_v57  ;;  %v7066_v54 = vpack.c.bf16 %v3250_v34, %v3242_v59  ;;  %v3252_v53 = vld [vmem:[#allocation4 + $0x2d8] sm:$0xff]  ;;  %v3241_v0 = vld [vmem:[#allocation4 + $0x280] sm:$0xff]  ;;  %v3243_v51 = vld [vmem:[#allocation4 + $0x290] sm:$0xff] }
 0x5c9   :  { %v3284_v34 = vld [vmem:[#allocation4 + $0x3d8] sm:$0xff] }
 0x5ca   :  { %7053 = vmatpush1.bf16.msra.mxu0 %v7052_v36  ;;  %7117 = vmatpush1.bf16.msra.mxu1 %v7116_v62  ;;  %v7124_v36 = vpack.c.bf16 %v3219_v55, %v3211_v58  ;;  %v3228_v62 = vld [vmem:[#allocation4 + $0x218] sm:$0xff]  ;;  %v3258_v58 = vld [vmem:[#allocation4 + $0x308] sm:$0xff] }
 0x5cb   :  { %7055 = vmatprep.subr.bf16.mxu0 %v7054_v46  ;;  %7119 = vmatprep.subr.bf16.mxu1 %v7118_v52  ;;  %v3233_v46 = vld [vmem:[#allocation4 + $0x240] sm:$0xff]  ;;  %v7126_v41 = vpack.c.bf16 %v3236_v38, %v3228_v62  ;;  %v3235_v52 = vld [vmem:[#allocation4 + $0x250] sm:$0xff]  ;;  %v3266_v55 = vld [vmem:[#allocation4 + $0x348] sm:$0xff] }
 0x5cc   :  { %v7064_v44 = vpack.c.bf16 %v3233_v46, %v3225_v35  ;;  %v7070_v40 = vpack.c.bf16 %v3266_v55, %v3258_v58  ;;  %v3257_v62 = vld [vmem:[#allocation4 + $0x300] sm:$0xff]  ;;  %v3259_v46 = vld [vmem:[#allocation4 + $0x310] sm:$0xff]  ;;  %v3300_v55 = vld [vmem:[#allocation4 + $0x458] sm:$0xff] }
 0x5ce   :  { %7057 = vmatpush1.bf16.msra.mxu0 %v7056_v43  ;;  %7121 = vmatpush1.bf16.msra.mxu1 %v7120_v37  ;;  %v7128_v43 = vpack.c.bf16 %v3235_v52, %v3227_v47  ;;  %v3244_v37 = vld [vmem:[#allocation4 + $0x298] sm:$0xff]  ;;  %v3274_v47 = vld [vmem:[#allocation4 + $0x388] sm:$0xff] }
 0x5cf   :  { %7059 = vmatprep.subr.bf16.mxu0 %v7058_v33  ;;  %7123 = vmatprep.subr.bf16.mxu1 %v7122_v60  ;;  %v3249_v33 = vld [vmem:[#allocation4 + $0x2c0] sm:$0xff]  ;;  %v7130_v56 = vpack.c.bf16 %v3252_v53, %v3244_v37  ;;  %v3251_v60 = vld [vmem:[#allocation4 + $0x2d0] sm:$0xff]  ;;  %v3282_v52 = vld [vmem:[#allocation4 + $0x3c8] sm:$0xff] }
 0x5d0   :  { %v7068_v57 = vpack.c.bf16 %v3249_v33, %v3241_v0  ;;  %v7074_v59 = vpack.c.bf16 %v3282_v52, %v3274_v47  ;;  %v3273_v37 = vld [vmem:[#allocation4 + $0x380] sm:$0xff]  ;;  %v3275_v33 = vld [vmem:[#allocation4 + $0x390] sm:$0xff]  ;;  %v3316_v52 = vld [vmem:[#allocation4 + $0x4d8] sm:$0xff] }
 0x5d2   :  { %7061 = vmatpush1.bf16.msra.mxu0 %v7060_v50  ;;  %7125 = vmatpush1.bf16.msra.mxu1 %v7124_v36  ;;  %v7132_v50 = vpack.c.bf16 %v3251_v60, %v3243_v51  ;;  %v3260_v36 = vld [vmem:[#allocation4 + $0x318] sm:$0xff]  ;;  %v3290_v51 = vld [vmem:[#allocation4 + $0x408] sm:$0xff] }
 0x5d3   :  { %7063 = vmatprep.subr.bf16.mxu0 %v7062_v49  ;;  %7127 = vmatprep.subr.bf16.mxu1 %v7126_v41  ;;  %v3265_v49 = vld [vmem:[#allocation4 + $0x340] sm:$0xff]  ;;  %v7134_v38 = vpack.c.bf16 %v3268_v39, %v3260_v36  ;;  %v3267_v41 = vld [vmem:[#allocation4 + $0x350] sm:$0xff]  ;;  %v3298_v60 = vld [vmem:[#allocation4 + $0x448] sm:$0xff] }
 0x5d4   :  { %v7072_v35 = vpack.c.bf16 %v3265_v49, %v3257_v62  ;;  %v7078_v58 = vpack.c.bf16 %v3298_v60, %v3290_v51  ;;  %v3289_v36 = vld [vmem:[#allocation4 + $0x400] sm:$0xff]  ;;  %v3291_v49 = vld [vmem:[#allocation4 + $0x410] sm:$0xff]  ;;  %v3332_v60 = vld [vmem:[#allocation4 + $0x558] sm:$0xff] }
 0x5d6   :  { %7065 = vmatpush1.bf16.msra.mxu0 %v7064_v44  ;;  %7129 = vmatpush1.bf16.msra.mxu1 %v7128_v43  ;;  %v7136_v44 = vpack.c.bf16 %v3267_v41, %v3259_v46  ;;  %v3276_v43 = vld [vmem:[#allocation4 + $0x398] sm:$0xff]  ;;  %v3306_v46 = vld [vmem:[#allocation4 + $0x488] sm:$0xff] }
 0x5d7   :  { %7067 = vmatprep.subr.bf16.mxu0 %v7066_v54  ;;  %7131 = vmatprep.subr.bf16.mxu1 %v7130_v56  ;;  %v3281_v54 = vld [vmem:[#allocation4 + $0x3c0] sm:$0xff]  ;;  %v7138_v53 = vpack.c.bf16 %v3284_v34, %v3276_v43  ;;  %v3283_v56 = vld [vmem:[#allocation4 + $0x3d0] sm:$0xff]  ;;  %v3314_v41 = vld [vmem:[#allocation4 + $0x4c8] sm:$0xff] }
 0x5d8   :  { %v7076_v0 = vpack.c.bf16 %v3281_v54, %v3273_v37  ;;  %v7082_v47 = vpack.c.bf16 %v3314_v41, %v3306_v46  ;;  %v3305_v43 = vld [vmem:[#allocation4 + $0x480] sm:$0xff]  ;;  %v3307_v54 = vld [vmem:[#allocation4 + $0x490] sm:$0xff]  ;;  %v3348_v41 = vld [vmem:[#allocation4 + $0x5d8] sm:$0xff] }
 0x5da   :  { %7069 = vmatpush1.bf16.msra.mxu0 %v7068_v57  ;;  %7133 = vmatpush1.bf16.msra.mxu1 %v7132_v50  ;;  %v7140_v57 = vpack.c.bf16 %v3283_v56, %v3275_v33  ;;  %v3292_v50 = vld [vmem:[#allocation4 + $0x418] sm:$0xff]  ;;  %v3322_v33 = vld [vmem:[#allocation4 + $0x508] sm:$0xff] }
 0x5db   :  { %7071 = vmatprep.subr.bf16.mxu0 %v7070_v40  ;;  %7135 = vmatprep.subr.bf16.mxu1 %v7134_v38  ;;  %v3297_v40 = vld [vmem:[#allocation4 + $0x440] sm:$0xff]  ;;  %v7142_v39 = vpack.c.bf16 %v3300_v55, %v3292_v50  ;;  %v3299_v38 = vld [vmem:[#allocation4 + $0x450] sm:$0xff]  ;;  %v3330_v56 = vld [vmem:[#allocation4 + $0x548] sm:$0xff] }
 0x5dc   :  { %v7080_v62 = vpack.c.bf16 %v3297_v40, %v3289_v36  ;;  %v7086_v51 = vpack.c.bf16 %v3330_v56, %v3322_v33  ;;  %v3321_v50 = vld [vmem:[#allocation4 + $0x500] sm:$0xff]  ;;  %v3323_v40 = vld [vmem:[#allocation4 + $0x510] sm:$0xff]  ;;  %v3364_v33 = vld [vmem:[#allocation4 + $0x658] sm:$0xff] }
 0x5de   :  { %7073 = vmatpush1.bf16.msra.mxu0 %v7072_v35  ;;  %7137 = vmatpush1.bf16.msra.mxu1 %v7136_v44  ;;  %v7144_v35 = vpack.c.bf16 %v3299_v38, %v3291_v49  ;;  %v3308_v44 = vld [vmem:[#allocation4 + $0x498] sm:$0xff]  ;;  %v3338_v49 = vld [vmem:[#allocation4 + $0x588] sm:$0xff] }
 0x5df   :  { %7075 = vmatprep.subr.bf16.mxu0 %v7074_v59  ;;  %7139 = vmatprep.subr.bf16.mxu1 %v7138_v53  ;;  %v3313_v59 = vld [vmem:[#allocation4 + $0x4c0] sm:$0xff]  ;;  %v7146_v34 = vpack.c.bf16 %v3316_v52, %v3308_v44  ;;  %v3315_v53 = vld [vmem:[#allocation4 + $0x4d0] sm:$0xff]  ;;  %v3346_v38 = vld [vmem:[#allocation4 + $0x5c8] sm:$0xff] }
 0x5e0   :  { %v7084_v37 = vpack.c.bf16 %v3313_v59, %v3305_v43  ;;  %v7090_v46 = vpack.c.bf16 %v3346_v38, %v3338_v49  ;;  %v3337_v44 = vld [vmem:[#allocation4 + $0x580] sm:$0xff]  ;;  %v3339_v59 = vld [vmem:[#allocation4 + $0x590] sm:$0xff]  ;;  %v3372_v49 = vld [vmem:[#allocation4 + $0x698] sm:$0xff] }
 0x5e1   :  { %v3380_v38 = vld [vmem:[#allocation4 + $0x6d8] sm:$0xff] }
 0x5e2   :  { %7077 = vmatpush1.bf16.msra.mxu0 %v7076_v0  ;;  %7141 = vmatpush1.bf16.msra.mxu1 %v7140_v57  ;;  %v7148_v0 = vpack.c.bf16 %v3315_v53, %v3307_v54  ;;  %v3324_v57 = vld [vmem:[#allocation4 + $0x518] sm:$0xff]  ;;  %v3362_v53 = vld [vmem:[#allocation4 + $0x648] sm:$0xff] }
 0x5e3   :  { %7079 = vmatprep.subr.bf16.mxu0 %v7078_v58  ;;  %7143 = vmatprep.subr.bf16.mxu1 %v7142_v39  ;;  %v3329_v58 = vld [vmem:[#allocation4 + $0x540] sm:$0xff]  ;;  %v7150_v55 = vpack.c.bf16 %v3332_v60, %v3324_v57  ;;  %v3331_v39 = vld [vmem:[#allocation4 + $0x550] sm:$0xff] }
 0x5e4   :  { %v7088_v36 = vpack.c.bf16 %v3329_v58, %v3321_v50  ;;  %v3361_v60 = vld [vmem:[#allocation4 + $0x640] sm:$0xff]  ;;  %v3355_v50 = vld [vmem:[#allocation4 + $0x610] sm:$0xff] }
 0x5e6   :  { %7081 = vmatpush1.bf16.msra.mxu0 %v7080_v62  ;;  %7145 = vmatpush1.bf16.msra.mxu1 %v7144_v35  ;;  %v7152_v62 = vpack.c.bf16 %v3331_v39, %v3323_v40  ;;  %v3340_v35 = vld [vmem:[#allocation4 + $0x598] sm:$0xff]  ;;  %v3378_v40 = vld [vmem:[#allocation4 + $0x6c8] sm:$0xff] }
 0x5e7   :  { %7083 = vmatprep.subr.bf16.mxu0 %v7082_v47  ;;  %7147 = vmatprep.subr.bf16.mxu1 %v7146_v34  ;;  %v3345_v47 = vld [vmem:[#allocation4 + $0x5c0] sm:$0xff]  ;;  %v7154_v52 = vpack.c.bf16 %v3348_v41, %v3340_v35  ;;  %v3347_v34 = vld [vmem:[#allocation4 + $0x5d0] sm:$0xff] }
 0x5e8   :  { %v7092_v43 = vpack.c.bf16 %v3345_v47, %v3337_v44  ;;  %v7156_v54 = vpack.c.bf16 %v3347_v34, %v3339_v59  ;;  %v3369_v35 = vld [vmem:[#allocation4 + $0x680] sm:$0xff]  ;;  %v3371_v44 = vld [vmem:[#allocation4 + $0x690] sm:$0xff]  ;;  %v3394_v59 = vld [vmem:[#allocation4 + $0x748] sm:$0xff] }
 0x5e9   :  { %v3377_v41 = vld [vmem:[#allocation4 + $0x6c0] sm:$0xff]  ;;  %v3379_v47 = vld [vmem:[#allocation4 + $0x6d0] sm:$0xff]  ;;  %v3388_v34 = vld [vmem:[#allocation4 + $0x718] sm:$0xff] }
 0x5ea   :  { %7085 = vmatpush1.bf16.msra.mxu0 %v7084_v37  ;;  %7149 = vmatpush1.bf16.msra.mxu1 %v7148_v0  ;;  %v3354_v37 = vld [vmem:[#allocation4 + $0x608] sm:$0xff]  ;;  %v3356_v0 = vld [vmem:[#allocation4 + $0x618] sm:$0xff] }
 0x5eb   :  { %7087 = vmatprep.subr.bf16.mxu0 %v7086_v51  ;;  %7151 = vmatprep.subr.bf16.mxu1 %v7150_v55  ;;  %v7094_v56 = vpack.c.bf16 %v3362_v53, %v3354_v37  ;;  %v7158_v57 = vpack.c.bf16 %v3364_v33, %v3356_v0  ;;  %v3353_v51 = vld [vmem:[#allocation4 + $0x600] sm:$0xff]  ;;  %v3363_v55 = vld [vmem:[#allocation4 + $0x650] sm:$0xff]  ;;  %v3396_v37 = vld [vmem:[#allocation4 + $0x758] sm:$0xff] }
 0x5ec   :  { %v7096_v58 = vpack.c.bf16 %v3361_v60, %v3353_v51  ;;  %v7160_v39 = vpack.c.bf16 %v3363_v55, %v3355_v50  ;;  %v3385_v0 = vld [vmem:[#allocation4 + $0x700] sm:$0xff]  ;;  %v7166_v51 = vpack.c.bf16 %v3396_v37, %v3388_v34  ;;  %v3402_v60 = vld [vmem:[#allocation4 + $0x788] sm:$0xff]  ;;  %v3404_v55 = vld [vmem:[#allocation4 + $0x798] sm:$0xff] }
 0x5ed   :  { %v3393_v33 = vld [vmem:[#allocation4 + $0x740] sm:$0xff]  ;;  %v3410_v50 = vld [vmem:[#allocation4 + $0x7c8] sm:$0xff] }
 0x5ee   :  { %7089 = vmatpush1.bf16.msra.mxu0 %v7088_v36  ;;  %7153 = vmatpush1.bf16.msra.mxu1 %v7152_v62  ;;  %v3370_v36 = vld [vmem:[#allocation4 + $0x688] sm:$0xff] }
 0x5ef   :  { %7091 = vmatprep.subr.bf16.mxu0 %v7090_v46  ;;  %7155 = vmatprep.subr.bf16.mxu1 %v7154_v52  ;;  %v7098_v62 = vpack.c.bf16 %v3378_v40, %v3370_v36  ;;  %v7162_v46 = vpack.c.bf16 %v3380_v38, %v3372_v49  ;;  %v3386_v52 = vld [vmem:[#allocation4 + $0x708] sm:$0xff]  ;;  %v3412_v36 = vld [vmem:[#allocation4 + $0x7d8] sm:$0xff]  ;;  %v7104_v40 = vpack.c.bf16 %v3393_v33, %v3385_v0 }
 0x5f0   :  { %v7102_v53 = vpack.c.bf16 %v3394_v59, %v3386_v52  ;;  %v7106_v49 = vpack.c.bf16 %v3410_v50, %v3402_v60  ;;  %v7170_v38 = vpack.c.bf16 %v3412_v36, %v3404_v55  ;;  %v3174_v52 = vld [vmem:[#allocation4 + $0x68] sm:$0xff]  ;;  %v3168_v59 = vld [vmem:[#allocation4 + $0x38] sm:$0xff] }
 0x5f2   :  { %7093 = vmatpush1.bf16.msra.mxu0 %v7092_v43  ;;  %7157 = vmatpush1.bf16.msra.mxu1 %v7156_v54  ;;  %v7100_v43 = vpack.c.bf16 %v3377_v41, %v3369_v35  ;;  %v7164_v54 = vpack.c.bf16 %v3379_v47, %v3371_v44  ;;  %v3403_v35 = vld [vmem:[#allocation4 + $0x790] sm:$0xff]  ;;  %v3166_v47 = vld [vmem:[#allocation4 + $0x28] sm:$0xff] }
 0x5f3   :  { %7095 = vmatprep.subr.bf16.mxu0 %v7094_v56  ;;  %7159 = vmatprep.subr.bf16.mxu1 %v7158_v57  ;;  %v3387_v56 = vld [vmem:[#allocation4 + $0x710] sm:$0xff]  ;;  %v7174_v34 = vpack.c.bf16 %v3174_v52, %v3166_v47 }
 0x5f4   :  { %v3395_v57 = vld [vmem:[#allocation4 + $0x750] sm:$0xff] }
 0x5f5   :  { %v3411_v41 = vld [vmem:[#allocation4 + $0x7d0] sm:$0xff] }
 0x5f6   :  { %7097 = vmatpush1.bf16.msra.mxu0 %v7096_v58  ;;  %7161 = vmatpush1.bf16.msra.mxu1 %v7160_v39  ;;  %v7168_v58 = vpack.c.bf16 %v3395_v57, %v3387_v56  ;;  %v3401_v39 = vld [vmem:[#allocation4 + $0x780] sm:$0xff]  ;;  %v7172_v44 = vpack.c.bf16 %v3411_v41, %v3403_v35 }
 0x5f7   :  { %7099 = vmatprep.subr.bf16.mxu0 %v7098_v62  ;;  %7163 = vmatprep.subr.bf16.mxu1 %v7162_v46  ;;  %v3409_v62 = vld [vmem:[#allocation4 + $0x7c0] sm:$0xff] }
 0x5f8   :  { %v7108_v46 = vpack.c.bf16 %v3409_v62, %v3401_v39  ;;  %v2521_v35 = vld [vmem:[#allocation2 + $0x3] ss:$8 sm:$0xf] }
 0x5f9   :  { %v2522_v41 = vld [vmem:[#allocation2 + $0x3] ss:$8 sm:$0xf0] }
 0x5fa   :  { %7101 = vmatpush1.bf16.msra.mxu0 %v7100_v43  ;;  %7165 = vmatpush1.bf16.msra.mxu1 %v7164_v54  ;;  %v3176_v43 = vld [vmem:[#allocation4 + $0x78] sm:$0xff]  ;;  %v2523_v47 = vor.u32 %v2522_v41, %v2521_v35 }
 0x5fb   :  { %7103 = vmatprep.subr.bf16.mxu0 %v7102_v53  ;;  %7167 = vmatprep.subr.bf16.mxu1 %v7166_v51  ;;  %v7238_v37 = vpack.c.bf16 %v3176_v43, %v3168_v59  ;;  %v3184_v35 = vld [vmem:[#allocation4 + $0xb8] sm:$0xff] }
 0x5fc   :  { %v3192_v41 = vld [vmem:[#allocation4 + $0xf8] sm:$0xff] }
 0x5fe   :  { %7105 = vmatpush1.bf16.msra.mxu0 %v7104_v40  ;;  %7169 = vmatpush1.bf16.msra.mxu1 %v7168_v58 }
 0x5ff   :  { %7107 = vmatprep.subr.bf16.mxu0 %v7106_v49  ;;  %7171 = vmatprep.subr.bf16.mxu1 %v7170_v38 }
 0x602   :  { %7109 = vmatpush1.bf16.msra.mxu0 %v7108_v46  ;;  %7173 = vmatpush1.bf16.msra.mxu1 %v7172_v44 }
 0x603   :  { %7175 = vmatprep.subr.bf16.mxu0 %v7174_v34  ;;  %7239 = vmatprep.subr.bf16.mxu1 %v7238_v37 }
 0x658   :  { %v2857_v54 = vpop.f32.mrb[16].mxu0  ;;  %v2928_v53 = vpop.f32.mrb[16].mxu1 }
 0x659   :  { %v2859_v0 = vpop.f32.mrb[17].mxu0  ;;  %v2930_v33 = vpop.f32.mrb[17].mxu1 }
 0x65a   :  { %v3083_v56 = vcombine.low %v2857_v54, %v2859_v0  ;;  %v3084_v51 = vcombine.low %v2928_v53, %v2930_v33 }
 0x65c   :  { %v3093_v57 = vrot.slane %v3083_v56, %v8492_v63  ;;  %v3100_v60 = vrot.slane %v3084_v51, %v8492_v63 }
 0x65e   :  { %v3115_v50 = vcombine.low %v3093_v57, %v3100_v60 }
 0x660   :  { %v3123_v44 = vrot.slane %v3115_v50, %v8492_v63 }
 0x698   :  { %v2999_v55 = vpop.f32.mrb[18].mxu0  ;;  %v3070_v36 = vpop.f32.mrb[18].mxu1 }
 0x699   :  { %v3001_v40 = vpop.f32.mrb[19].mxu0  ;;  %v3072_v58 = vpop.f32.mrb[19].mxu1 }
 0x69a   :  { %v3085_v49 = vcombine.low %v2999_v55, %v3001_v40  ;;  %v3086_v39 = vcombine.low %v3070_v36, %v3072_v58  ;;  %v3165_v55 = vld [vmem:[#allocation4 + $0x20] sm:$0xff]  ;;  %v3167_v58 = vld [vmem:[#allocation4 + $0x30] sm:$0xff] }
 0x69b   :  { %v3173_v40 = vld [vmem:[#allocation4 + $0x60] sm:$0xff] }
 0x69c   :  { %v3107_v62 = vrot.slane %v3085_v49, %v8492_v63  ;;  %v3114_v38 = vrot.slane %v3086_v39, %v8492_v63  ;;  %v3175_v49 = vld [vmem:[#allocation4 + $0x70] sm:$0xff] }
 0x69e   :  { %v3116_v46 = vcombine.low %v3107_v62, %v3114_v38  ;;  %v3182_v62 = vld [vmem:[#allocation4 + $0xa8] sm:$0xff] }
 0x69f   :  { %v3190_v38 = vld [vmem:[#allocation4 + $0xe8] sm:$0xff] }
 0x6a0   :  { %v3130_v52 = vrot.slane %v3116_v46, %v8492_v63 }
 0x6a2   :  { %v3131_v59 = vcombine.low %v3123_v44, %v3130_v52  ;;  %v7176_v44 = vpack.c.bf16 %v3173_v40, %v3165_v55  ;;  %v3181_v52 = vld [vmem:[#allocation4 + $0xa0] sm:$0xff] }
 0x6a3   :  { %v3205_v55 = vld [vmem:[#allocation4 + $0x160] sm:$0xff] }
 0x6a4   :  { %v3133_v34 = vadd.f32 %v3131_v59, %v2523_v47  ;;  %v7240_v47 = vpack.c.bf16 %v3175_v49, %v3167_v58  ;;  %v3189_v59 = vld [vmem:[#allocation4 + $0xe0] sm:$0xff]  ;;  %v3199_v58 = vld [vmem:[#allocation4 + $0x130] sm:$0xff] }
 0x6a5   :  { %v3207_v49 = vld [vmem:[#allocation4 + $0x170] sm:$0xff] }
 0x6a6   :  { %v5851_v43 = vmul.f32 -1.442695, %v3133_v34  ;;  %v3141_v53 = vrot.slane %v3133_v34, 6  ;;  %v3183_v34 = vld [vmem:[#allocation4 + $0xb0] sm:$0xff] }
 0x6a8   :  { %8132 = vpow2.f32 %v5851_v43  ;;  %v3191_v43 = vld [vmem:[#allocation4 + $0xf0] sm:$0xff] }
 0x6b2   :  { %v8133_v37 = vpop.eup %8132 }
 0x6b3   :  { %v3137_v54 = vadd.f32 1.0, %v8133_v37  ;;  %v3198_v37 = vld [vmem:[#allocation4 + $0x128] sm:$0xff] }
 0x6b5   :  { %8134 = vrcp.f32 %v3137_v54  ;;  %v7178_v54 = vpack.c.bf16 %v3190_v38, %v3182_v62  ;;  %v3222_v62 = vld [vmem:[#allocation4 + $0x1e8] sm:$0xff]  ;;  %v3216_v38 = vld [vmem:[#allocation4 + $0x1b8] sm:$0xff] }
 0x6b6   :  { %8136 = vtanh.f32 %v3141_v53  ;;  %v7242_v53 = vpack.c.bf16 %v3192_v41, %v3184_v35  ;;  %v3224_v35 = vld [vmem:[#allocation4 + $0x1f8] sm:$0xff] }
 0x6bf   :  { %v8135_v0 = vpop.eup %8134 }
 0x6c0   :  { %v3145_v33 = vrot.slane %v8135_v0, 2  ;;  %v8137_v56 = vpop.eup %8136  ;;  %v3151_v50 = vrot.slane %v8135_v0, 4 }
 0x6c1   :  { %v3148_v51 = vmul.f32 %v8137_v56, %v8135_v0  ;;  %v3206_v0 = vld [vmem:[#allocation4 + $0x168] sm:$0xff]  ;;  %v3208_v56 = vld [vmem:[#allocation4 + $0x178] sm:$0xff] }
 0x6c2   :  { %v3147_v57 = vmul.f32 %v3145_v33, %v8545_v61  ;;  %v3200_v33 = vld [vmem:[#allocation4 + $0x138] sm:$0xff] }
 0x6c3   :  { %v7246_v40 = vpack.c.bf16 %v3208_v56, %v3200_v33  ;;  %v3232_v33 = vld [vmem:[#allocation4 + $0x238] sm:$0xff] }
 0x6c4   :  { %v8565_v60 = vadd.f32 %v3148_v51, %v3147_v57  ;;  %v7180_v51 = vpack.c.bf16 %v3189_v59, %v3181_v52  ;;  %v7244_v57 = vpack.c.bf16 %v3191_v43, %v3183_v34  ;;  %v3221_v52 = vld [vmem:[#allocation4 + $0x1e0] sm:$0xff]  ;;  %v3215_v34 = vld [vmem:[#allocation4 + $0x1b0] sm:$0xff] }
 0x6c5   :  { %v3223_v43 = vld [vmem:[#allocation4 + $0x1f0] sm:$0xff] }
 0x6c6   :  { %8138 = vtanh.f32 %v8565_v60  ;;  %v7252_v56 = vpack.c.bf16 %v3223_v43, %v3215_v34  ;;  %v3262_v34 = vld [vmem:[#allocation4 + $0x328] sm:$0xff] }
 0x6c7   :  { %v3270_v43 = vld [vmem:[#allocation4 + $0x368] sm:$0xff] }
 0x6d0   :  { %v8139_v36 = vpop.eup %8138 }
 0x6d1   :  { %v3153_v39 = vmul.f32 %v8139_v36, %v3151_v50  ;;  %v3197_v50 = vld [vmem:[#allocation4 + $0x120] sm:$0xff]  ;;  %v7182_v36 = vpack.c.bf16 %v3206_v0, %v3198_v37  ;;  %v3230_v37 = vld [vmem:[#allocation4 + $0x228] sm:$0xff] }
 0x6d2   :  { %v7184_v41 = vpack.c.bf16 %v3205_v55, %v3197_v50  ;;  %v3238_v0 = vld [vmem:[#allocation4 + $0x268] sm:$0xff] }
 0x6d3   :  { %3155 = vst.msk [vmem:[#allocation3 + $0x3] ss:$8 sm:$0x3] %vm8504_vm0, %v3153_v39  ;;  %v3425_v61 = vrot.slane %v3153_v39, %v8474_v48  ;;  %v8572_v46 = vrot.slane %v3153_v39, %v8467_v45  ;;  %v3214_v39 = vld [vmem:[#allocation4 + $0x1a8] sm:$0xff]  ;;  %v7190_v50 = vpack.c.bf16 %v3238_v0, %v3230_v37  ;;  %v3264_v37 = vld [vmem:[#allocation4 + $0x338] sm:$0xff] }
 0x6d4   :  { %v7186_v59 = vpack.c.bf16 %v3222_v62, %v3214_v39  ;;  %v3248_v39 = vld [vmem:[#allocation4 + $0x2b8] sm:$0xff] }
 0x6d5   :  { %3492 = vmatprep.mubr.f32.mxu0 %v3425_v61  ;;  %3563 = vmatprep.mubr.f32.mxu1 %v3425_v61  ;;  %v3256_v62 = vld [vmem:[#allocation4 + $0x2f8] sm:$0xff] }
 0x6d6   :  { %3493 = vmatmul.mubr.f32.vlgmr.msra.gmra.mrb[20].mxu0 %v8572_v46  ;;  %3564 = vmatmul.mubr.f32.vlgmr.msra.gmra.mrb[20].mxu1 %v8572_v46  ;;  %v3272_v0 = vld [vmem:[#allocation4 + $0x378] sm:$0xff] }
 0x6d7   :  { %7177 = vmatpush1.bf16.msra.mxu0 %v7176_v44  ;;  %7241 = vmatpush1.bf16.msra.mxu1 %v7240_v47  ;;  %v7248_v44 = vpack.c.bf16 %v3207_v49, %v3199_v58  ;;  %v3213_v47 = vld [vmem:[#allocation4 + $0x1a0] sm:$0xff]  ;;  %v3246_v58 = vld [vmem:[#allocation4 + $0x2a8] sm:$0xff] }
 0x6d8   :  { %3634 = vmatprep.mubr.f32.mxu0 %v3425_v61  ;;  %3705 = vmatprep.mubr.f32.mxu1 %v3425_v61  ;;  %v7250_v61 = vpack.c.bf16 %v3224_v35, %v3216_v38  ;;  %v3254_v49 = vld [vmem:[#allocation4 + $0x2e8] sm:$0xff] }
 0x6d9   :  { %7179 = vmatprep.subr.bf16.mxu0 %v7178_v54  ;;  %7243 = vmatprep.subr.bf16.mxu1 %v7242_v53  ;;  %v3240_v54 = vld [vmem:[#allocation4 + $0x278] sm:$0xff]  ;;  %v7188_v53 = vpack.c.bf16 %v3221_v52, %v3213_v47  ;;  %v7194_v47 = vpack.c.bf16 %v3254_v49, %v3246_v58  ;;  %v7258_v52 = vpack.c.bf16 %v3256_v62, %v3248_v39 }
 0x6da   :  { %v7254_v55 = vpack.c.bf16 %v3240_v54, %v3232_v33  ;;  %v3280_v58 = vld [vmem:[#allocation4 + $0x3b8] sm:$0xff] }
 0x6db   :  { %7181 = vmatpush1.bf16.msra.mxu0 %v7180_v51  ;;  %7245 = vmatpush1.bf16.msra.mxu1 %v7244_v57  ;;  %v3229_v51 = vld [vmem:[#allocation4 + $0x220] sm:$0xff]  ;;  %v3288_v49 = vld [vmem:[#allocation4 + $0x3f8] sm:$0xff] }
 0x6dc   :  { %7183 = vmatprep.subr.bf16.mxu0 %v7182_v36  ;;  %7247 = vmatprep.subr.bf16.mxu1 %v7246_v40  ;;  %v3237_v57 = vld [vmem:[#allocation4 + $0x260] sm:$0xff]  ;;  %v3231_v36 = vld [vmem:[#allocation4 + $0x230] sm:$0xff] }
 0x6dd   :  { %v3239_v40 = vld [vmem:[#allocation4 + $0x270] sm:$0xff]  ;;  %v7192_v38 = vpack.c.bf16 %v3237_v57, %v3229_v51  ;;  %v7198_v51 = vpack.c.bf16 %v3270_v43, %v3262_v34  ;;  %v7262_v57 = vpack.c.bf16 %v3272_v0, %v3264_v37  ;;  %v3296_v34 = vld [vmem:[#allocation4 + $0x438] sm:$0xff] }
 0x6de   :  { %v7256_v35 = vpack.c.bf16 %v3239_v40, %v3231_v36  ;;  %v3278_v36 = vld [vmem:[#allocation4 + $0x3a8] sm:$0xff]  ;;  %v3304_v43 = vld [vmem:[#allocation4 + $0x478] sm:$0xff] }
 0x6df   :  { %7185 = vmatpush1.bf16.msra.mxu0 %v7184_v41  ;;  %7249 = vmatpush1.bf16.msra.mxu1 %v7248_v44  ;;  %v3245_v41 = vld [vmem:[#allocation4 + $0x2a0] sm:$0xff]  ;;  %v3286_v40 = vld [vmem:[#allocation4 + $0x3e8] sm:$0xff] }
 0x6e0   :  { %7187 = vmatprep.subr.bf16.mxu0 %v7186_v59  ;;  %7251 = vmatprep.subr.bf16.mxu1 %v7250_v61  ;;  %v3253_v44 = vld [vmem:[#allocation4 + $0x2e0] sm:$0xff]  ;;  %v3247_v59 = vld [vmem:[#allocation4 + $0x2b0] sm:$0xff] }
 0x6e1   :  { %v3255_v61 = vld [vmem:[#allocation4 + $0x2f0] sm:$0xff]  ;;  %v7196_v33 = vpack.c.bf16 %v3253_v44, %v3245_v41  ;;  %v7202_v41 = vpack.c.bf16 %v3286_v40, %v3278_v36  ;;  %v7266_v44 = vpack.c.bf16 %v3288_v49, %v3280_v58  ;;  %v3312_v36 = vld [vmem:[#allocation4 + $0x4b8] sm:$0xff] }
 0x6e2   :  { %v7260_v54 = vpack.c.bf16 %v3255_v61, %v3247_v59  ;;  %v3294_v59 = vld [vmem:[#allocation4 + $0x428] sm:$0xff]  ;;  %v3320_v40 = vld [vmem:[#allocation4 + $0x4f8] sm:$0xff] }
 0x6e3   :  { %7189 = vmatpush1.bf16.msra.mxu0 %v7188_v53  ;;  %7253 = vmatpush1.bf16.msra.mxu1 %v7252_v56  ;;  %v3261_v53 = vld [vmem:[#allocation4 + $0x320] sm:$0xff]  ;;  %v3302_v61 = vld [vmem:[#allocation4 + $0x468] sm:$0xff] }
 0x6e4   :  { %7191 = vmatprep.subr.bf16.mxu0 %v7190_v50  ;;  %7255 = vmatprep.subr.bf16.mxu1 %v7254_v55  ;;  %v3269_v56 = vld [vmem:[#allocation4 + $0x360] sm:$0xff]  ;;  %v3263_v50 = vld [vmem:[#allocation4 + $0x330] sm:$0xff] }
 0x6e5   :  { %v3271_v55 = vld [vmem:[#allocation4 + $0x370] sm:$0xff]  ;;  %v7200_v39 = vpack.c.bf16 %v3269_v56, %v3261_v53  ;;  %v7206_v53 = vpack.c.bf16 %v3302_v61, %v3294_v59  ;;  %v7270_v56 = vpack.c.bf16 %v3304_v43, %v3296_v34  ;;  %v3328_v59 = vld [vmem:[#allocation4 + $0x538] sm:$0xff] }
 0x6e6   :  { %v7264_v62 = vpack.c.bf16 %v3271_v55, %v3263_v50  ;;  %v3310_v50 = vld [vmem:[#allocation4 + $0x4a8] sm:$0xff]  ;;  %v3336_v61 = vld [vmem:[#allocation4 + $0x578] sm:$0xff] }
 0x6e7   :  { %7193 = vmatpush1.bf16.msra.mxu0 %v7192_v38  ;;  %7257 = vmatpush1.bf16.msra.mxu1 %v7256_v35  ;;  %v3277_v38 = vld [vmem:[#allocation4 + $0x3a0] sm:$0xff]  ;;  %v3318_v55 = vld [vmem:[#allocation4 + $0x4e8] sm:$0xff] }
 0x6e8   :  { %7195 = vmatprep.subr.bf16.mxu0 %v7194_v47  ;;  %7259 = vmatprep.subr.bf16.mxu1 %v7258_v52  ;;  %v3285_v35 = vld [vmem:[#allocation4 + $0x3e0] sm:$0xff]  ;;  %v3279_v47 = vld [vmem:[#allocation4 + $0x3b0] sm:$0xff] }
 0x6e9   :  { %v3287_v52 = vld [vmem:[#allocation4 + $0x3f0] sm:$0xff]  ;;  %v7204_v37 = vpack.c.bf16 %v3285_v35, %v3277_v38  ;;  %v7210_v38 = vpack.c.bf16 %v3318_v55, %v3310_v50  ;;  %v7274_v35 = vpack.c.bf16 %v3320_v40, %v3312_v36  ;;  %v3344_v50 = vld [vmem:[#allocation4 + $0x5b8] sm:$0xff] }
 0x6ea   :  { %v7268_v0 = vpack.c.bf16 %v3287_v52, %v3279_v47  ;;  %v3326_v47 = vld [vmem:[#allocation4 + $0x528] sm:$0xff]  ;;  %v3352_v55 = vld [vmem:[#allocation4 + $0x5f8] sm:$0xff] }
 0x6eb   :  { %7197 = vmatpush1.bf16.msra.mxu0 %v7196_v33  ;;  %7261 = vmatpush1.bf16.msra.mxu1 %v7260_v54  ;;  %v3293_v33 = vld [vmem:[#allocation4 + $0x420] sm:$0xff]  ;;  %v3334_v52 = vld [vmem:[#allocation4 + $0x568] sm:$0xff] }
 0x6ec   :  { %7199 = vmatprep.subr.bf16.mxu0 %v7198_v51  ;;  %7263 = vmatprep.subr.bf16.mxu1 %v7262_v57  ;;  %v3301_v54 = vld [vmem:[#allocation4 + $0x460] sm:$0xff]  ;;  %v3295_v51 = vld [vmem:[#allocation4 + $0x430] sm:$0xff] }
 0x6ed   :  { %v3303_v57 = vld [vmem:[#allocation4 + $0x470] sm:$0xff]  ;;  %v7208_v58 = vpack.c.bf16 %v3301_v54, %v3293_v33  ;;  %v7214_v33 = vpack.c.bf16 %v3334_v52, %v3326_v47  ;;  %v7278_v54 = vpack.c.bf16 %v3336_v61, %v3328_v59  ;;  %v3360_v47 = vld [vmem:[#allocation4 + $0x638] sm:$0xff] }
 0x6ee   :  { %v7272_v49 = vpack.c.bf16 %v3303_v57, %v3295_v51  ;;  %v3342_v51 = vld [vmem:[#allocation4 + $0x5a8] sm:$0xff]  ;;  %v3368_v52 = vld [vmem:[#allocation4 + $0x678] sm:$0xff] }
 0x6ef   :  { %7201 = vmatpush1.bf16.msra.mxu0 %v7200_v39  ;;  %7265 = vmatpush1.bf16.msra.mxu1 %v7264_v62  ;;  %v3309_v39 = vld [vmem:[#allocation4 + $0x4a0] sm:$0xff]  ;;  %v3350_v57 = vld [vmem:[#allocation4 + $0x5e8] sm:$0xff] }
 0x6f0   :  { %7203 = vmatprep.subr.bf16.mxu0 %v7202_v41  ;;  %7267 = vmatprep.subr.bf16.mxu1 %v7266_v44  ;;  %v3317_v62 = vld [vmem:[#allocation4 + $0x4e0] sm:$0xff]  ;;  %v3311_v41 = vld [vmem:[#allocation4 + $0x4b0] sm:$0xff] }
 0x6f1   :  { %v3319_v44 = vld [vmem:[#allocation4 + $0x4f0] sm:$0xff]  ;;  %v7212_v34 = vpack.c.bf16 %v3317_v62, %v3309_v39  ;;  %v7218_v39 = vpack.c.bf16 %v3350_v57, %v3342_v51  ;;  %v7282_v62 = vpack.c.bf16 %v3352_v55, %v3344_v50  ;;  %v3376_v51 = vld [vmem:[#allocation4 + $0x6b8] sm:$0xff] }
 0x6f2   :  { %v7276_v43 = vpack.c.bf16 %v3319_v44, %v3311_v41  ;;  %v3358_v41 = vld [vmem:[#allocation4 + $0x628] sm:$0xff]  ;;  %v3384_v57 = vld [vmem:[#allocation4 + $0x6f8] sm:$0xff] }
 0x6f3   :  { %7205 = vmatpush1.bf16.msra.mxu0 %v7204_v37  ;;  %7269 = vmatpush1.bf16.msra.mxu1 %v7268_v0  ;;  %v3325_v37 = vld [vmem:[#allocation4 + $0x520] sm:$0xff]  ;;  %v3366_v44 = vld [vmem:[#allocation4 + $0x668] sm:$0xff] }
 0x6f4   :  { %7207 = vmatprep.subr.bf16.mxu0 %v7206_v53  ;;  %7271 = vmatprep.subr.bf16.mxu1 %v7270_v56  ;;  %v3333_v0 = vld [vmem:[#allocation4 + $0x560] sm:$0xff]  ;;  %v3327_v53 = vld [vmem:[#allocation4 + $0x530] sm:$0xff] }
 0x6f5   :  { %v3335_v56 = vld [vmem:[#allocation4 + $0x570] sm:$0xff]  ;;  %v7216_v36 = vpack.c.bf16 %v3333_v0, %v3325_v37  ;;  %v7222_v37 = vpack.c.bf16 %v3366_v44, %v3358_v41  ;;  %v7286_v0 = vpack.c.bf16 %v3368_v52, %v3360_v47  ;;  %v3392_v41 = vld [vmem:[#allocation4 + $0x738] sm:$0xff] }
 0x6f6   :  { %v7280_v40 = vpack.c.bf16 %v3335_v56, %v3327_v53  ;;  %v3374_v53 = vld [vmem:[#allocation4 + $0x6a8] sm:$0xff]  ;;  %v3400_v44 = vld [vmem:[#allocation4 + $0x778] sm:$0xff] }
 0x6f7   :  { %7209 = vmatpush1.bf16.msra.mxu0 %v7208_v58  ;;  %7273 = vmatpush1.bf16.msra.mxu1 %v7272_v49  ;;  %v3341_v58 = vld [vmem:[#allocation4 + $0x5a0] sm:$0xff]  ;;  %v3382_v56 = vld [vmem:[#allocation4 + $0x6e8] sm:$0xff] }
 0x6f8   :  { %7211 = vmatprep.subr.bf16.mxu0 %v7210_v38  ;;  %7275 = vmatprep.subr.bf16.mxu1 %v7274_v35  ;;  %v3349_v49 = vld [vmem:[#allocation4 + $0x5e0] sm:$0xff]  ;;  %v3343_v38 = vld [vmem:[#allocation4 + $0x5b0] sm:$0xff] }
 0x6f9   :  { %v3351_v35 = vld [vmem:[#allocation4 + $0x5f0] sm:$0xff]  ;;  %v7220_v59 = vpack.c.bf16 %v3349_v49, %v3341_v58  ;;  %v7226_v58 = vpack.c.bf16 %v3382_v56, %v3374_v53  ;;  %v7290_v49 = vpack.c.bf16 %v3384_v57, %v3376_v51  ;;  %v3408_v53 = vld [vmem:[#allocation4 + $0x7b8] sm:$0xff] }
 0x6fa   :  { %v7284_v61 = vpack.c.bf16 %v3351_v35, %v3343_v38  ;;  %v3390_v38 = vld [vmem:[#allocation4 + $0x728] sm:$0xff]  ;;  %v3416_v56 = vld [vmem:[#allocation4 + $0x7f8] sm:$0xff] }
 0x6fb   :  { %7213 = vmatpush1.bf16.msra.mxu0 %v7212_v34  ;;  %7277 = vmatpush1.bf16.msra.mxu1 %v7276_v43  ;;  %v3357_v34 = vld [vmem:[#allocation4 + $0x620] sm:$0xff]  ;;  %v3398_v35 = vld [vmem:[#allocation4 + $0x768] sm:$0xff] }
 0x6fc   :  { %7215 = vmatprep.subr.bf16.mxu0 %v7214_v33  ;;  %7279 = vmatprep.subr.bf16.mxu1 %v7278_v54  ;;  %v3365_v43 = vld [vmem:[#allocation4 + $0x660] sm:$0xff]  ;;  %v3359_v33 = vld [vmem:[#allocation4 + $0x630] sm:$0xff] }
 0x6fd   :  { %v3367_v54 = vld [vmem:[#allocation4 + $0x670] sm:$0xff]  ;;  %v7224_v50 = vpack.c.bf16 %v3365_v43, %v3357_v34  ;;  %v7230_v34 = vpack.c.bf16 %v3398_v35, %v3390_v38  ;;  %v7294_v43 = vpack.c.bf16 %v3400_v44, %v3392_v41  ;;  %v3799_v38 = vld [vmem:[#allocation4 + $0x8] sm:$0xff]  ;;  %v3801_v41 = vld [vmem:[#allocation4 + $0x18] sm:$0xff] }
 0x6fe   :  { %v7288_v55 = vpack.c.bf16 %v3367_v54, %v3359_v33  ;;  %v3406_v33 = vld [vmem:[#allocation4 + $0x7a8] sm:$0xff] }
 0x6ff   :  { %7217 = vmatpush1.bf16.msra.mxu0 %v7216_v36  ;;  %7281 = vmatpush1.bf16.msra.mxu1 %v7280_v40  ;;  %v3373_v36 = vld [vmem:[#allocation4 + $0x6a0] sm:$0xff]  ;;  %v3414_v54 = vld [vmem:[#allocation4 + $0x7e8] sm:$0xff] }
 0x700   :  { %7219 = vmatprep.subr.bf16.mxu0 %v7218_v39  ;;  %7283 = vmatprep.subr.bf16.mxu1 %v7282_v62  ;;  %v3381_v40 = vld [vmem:[#allocation4 + $0x6e0] sm:$0xff]  ;;  %v3375_v39 = vld [vmem:[#allocation4 + $0x6b0] sm:$0xff]  ;;  %v3807_v35 = vld [vmem:[#allocation4 + $0x48] sm:$0xff] }
 0x701   :  { %v3383_v62 = vld [vmem:[#allocation4 + $0x6f0] sm:$0xff]  ;;  %v7228_v47 = vpack.c.bf16 %v3381_v40, %v3373_v36  ;;  %v7298_v36 = vpack.c.bf16 %v3416_v56, %v3408_v53  ;;  %v3413_v40 = vld [vmem:[#allocation4 + $0x7e0] sm:$0xff]  ;;  %v7302_v44 = vpack.c.bf16 %v3807_v35, %v3799_v38  ;;  %v3817_v53 = vld [vmem:[#allocation4 + $0x98] sm:$0xff] }
 0x702   :  { %v7292_v52 = vpack.c.bf16 %v3383_v62, %v3375_v39  ;;  %v3825_v56 = vld [vmem:[#allocation4 + $0xd8] sm:$0xff] }
 0x703   :  { %7221 = vmatpush1.bf16.msra.mxu0 %v7220_v59  ;;  %7285 = vmatpush1.bf16.msra.mxu1 %v7284_v61  ;;  %v3389_v59 = vld [vmem:[#allocation4 + $0x720] sm:$0xff]  ;;  %v3841_v35 = vld [vmem:[#allocation4 + $0x158] sm:$0xff] }
 0x704   :  { %7223 = vmatprep.subr.bf16.mxu0 %v7222_v37  ;;  %7287 = vmatprep.subr.bf16.mxu1 %v7286_v0  ;;  %v3397_v61 = vld [vmem:[#allocation4 + $0x760] sm:$0xff]  ;;  %v3391_v37 = vld [vmem:[#allocation4 + $0x730] sm:$0xff] }
 0x705   :  { %v3399_v0 = vld [vmem:[#allocation4 + $0x770] sm:$0xff]  ;;  %v7232_v51 = vpack.c.bf16 %v3397_v61, %v3389_v59  ;;  %v3806_v59 = vld [vmem:[#allocation4 + $0x40] sm:$0xff] }
 0x706   :  { %v7296_v57 = vpack.c.bf16 %v3399_v0, %v3391_v37  ;;  %v3808_v37 = vld [vmem:[#allocation4 + $0x50] sm:$0xff] }
 0x707   :  { %7225 = vmatpush1.bf16.msra.mxu0 %v7224_v50  ;;  %7289 = vmatpush1.bf16.msra.mxu1 %v7288_v55  ;;  %v3405_v50 = vld [vmem:[#allocation4 + $0x7a0] sm:$0xff]  ;;  %v7234_v55 = vpack.c.bf16 %v3414_v54, %v3406_v33  ;;  %v3815_v33 = vld [vmem:[#allocation4 + $0x88] sm:$0xff] }
 0x708   :  { %7227 = vmatprep.subr.bf16.mxu0 %v7226_v58  ;;  %7291 = vmatprep.subr.bf16.mxu1 %v7290_v49  ;;  %v3407_v58 = vld [vmem:[#allocation4 + $0x7b0] sm:$0xff]  ;;  %v7236_v39 = vpack.c.bf16 %v3413_v40, %v3405_v50  ;;  %v3823_v54 = vld [vmem:[#allocation4 + $0xc8] sm:$0xff]  ;;  %v7370_v50 = vpack.c.bf16 %v3825_v56, %v3817_v53  ;;  %v3846_v53 = vld [vmem:[#allocation4 + $0x180] sm:$0xff] }
 0x709   :  { %v3415_v49 = vld [vmem:[#allocation4 + $0x7f0] sm:$0xff] }
 0x70a   :  { %v7300_v62 = vpack.c.bf16 %v3415_v49, %v3407_v58  ;;  %v3824_v40 = vld [vmem:[#allocation4 + $0xd0] sm:$0xff]  ;;  %v3831_v49 = vld [vmem:[#allocation4 + $0x108] sm:$0xff] }
 0x70b   :  { %7229 = vmatpush1.bf16.msra.mxu0 %v7228_v47  ;;  %7293 = vmatpush1.bf16.msra.mxu1 %v7292_v52  ;;  %v3809_v47 = vld [vmem:[#allocation4 + $0x58] sm:$0xff]  ;;  %v3798_v52 = vld [vmem:[#allocation4] sm:$0xff] }
 0x70c   :  { %7231 = vmatprep.subr.bf16.mxu0 %v7230_v34  ;;  %7295 = vmatprep.subr.bf16.mxu1 %v7294_v43  ;;  %v7366_v61 = vpack.c.bf16 %v3809_v47, %v3801_v41  ;;  %v7304_v34 = vpack.c.bf16 %v3806_v59, %v3798_v52  ;;  %v3800_v43 = vld [vmem:[#allocation4 + $0x10] sm:$0xff]  ;;  %v3830_v41 = vld [vmem:[#allocation4 + $0x100] sm:$0xff] }
 0x70d   :  { %v7368_v0 = vpack.c.bf16 %v3808_v37, %v3800_v43  ;;  %v3832_v59 = vld [vmem:[#allocation4 + $0x110] sm:$0xff]  ;;  %v3847_v43 = vld [vmem:[#allocation4 + $0x188] sm:$0xff] }
 0x70e   :  { %v3855_v37 = vld [vmem:[#allocation4 + $0x1c8] sm:$0xff] }
 0x70f   :  { %7233 = vmatpush1.bf16.msra.mxu0 %v7232_v51  ;;  %7297 = vmatpush1.bf16.msra.mxu1 %v7296_v57  ;;  %v3814_v51 = vld [vmem:[#allocation4 + $0x80] sm:$0xff] }
 0x710   :  { %7235 = vmatprep.subr.bf16.mxu0 %v7234_v55  ;;  %7299 = vmatprep.subr.bf16.mxu1 %v7298_v36  ;;  %v3822_v57 = vld [vmem:[#allocation4 + $0xc0] sm:$0xff]  ;;  %v3816_v36 = vld [vmem:[#allocation4 + $0x90] sm:$0xff] }
 0x711   :  { %v7308_v55 = vpack.c.bf16 %v3822_v57, %v3814_v51  ;;  %v7372_v58 = vpack.c.bf16 %v3824_v40, %v3816_v36  ;;  %v3848_v57 = vld [vmem:[#allocation4 + $0x190] sm:$0xff]  ;;  %v3863_v36 = vld [vmem:[#allocation4 + $0x208] sm:$0xff] }
 0x712   :  { %v3871_v40 = vld [vmem:[#allocation4 + $0x248] sm:$0xff] }
 0x713   :  { %7237 = vmatpush1.bf16.msra.mxu0 %v7236_v39  ;;  %7301 = vmatpush1.bf16.msra.mxu1 %v7300_v62  ;;  %v3839_v39 = vld [vmem:[#allocation4 + $0x148] sm:$0xff]  ;;  %v3833_v62 = vld [vmem:[#allocation4 + $0x118] sm:$0xff] }
 0x714   :  { %7303 = vmatprep.subr.bf16.mxu0 %v7302_v44  ;;  %7367 = vmatprep.subr.bf16.mxu1 %v7366_v61  ;;  %v7310_v38 = vpack.c.bf16 %v3839_v39, %v3831_v49  ;;  %v3838_v44 = vld [vmem:[#allocation4 + $0x140] sm:$0xff]  ;;  %v7374_v47 = vpack.c.bf16 %v3841_v35, %v3833_v62  ;;  %v3840_v61 = vld [vmem:[#allocation4 + $0x150] sm:$0xff]  ;;  %v7318_v49 = vpack.c.bf16 %v3871_v40, %v3863_v36  ;;  %v3873_v39 = vld [vmem:[#allocation4 + $0x258] sm:$0xff] }
 0x715   :  { %v7312_v52 = vpack.c.bf16 %v3838_v44, %v3830_v41  ;;  %v3862_v62 = vld [vmem:[#allocation4 + $0x200] sm:$0xff]  ;;  %v3864_v44 = vld [vmem:[#allocation4 + $0x210] sm:$0xff]  ;;  %v3905_v40 = vld [vmem:[#allocation4 + $0x358] sm:$0xff] }
 0x716   :  { %3635 = vmatmul.mubr.f32.vlgmr.msra.gmra.mrb[22].mxu0 %v8572_v46  ;;  %3706 = vmatmul.mubr.f32.vlgmr.msra.gmra.mrb[22].mxu1 %v8572_v46  ;;  %v7306_v46 = vpack.c.bf16 %v3823_v54, %v3815_v33  ;;  %v7314_v33 = vpack.c.bf16 %v3855_v37, %v3847_v43  ;;  %v3857_v54 = vld [vmem:[#allocation4 + $0x1d8] sm:$0xff] }
 0x717   :  { %7305 = vmatpush1.bf16.msra.mxu0 %v7304_v34  ;;  %7369 = vmatpush1.bf16.msra.mxu1 %v7368_v0  ;;  %v7376_v34 = vpack.c.bf16 %v3840_v61, %v3832_v59  ;;  %v3849_v0 = vld [vmem:[#allocation4 + $0x198] sm:$0xff]  ;;  %v3879_v59 = vld [vmem:[#allocation4 + $0x288] sm:$0xff] }
 0x718   :  { %7307 = vmatprep.subr.bf16.mxu0 %v7306_v46  ;;  %7371 = vmatprep.subr.bf16.mxu1 %v7370_v50  ;;  %v3854_v46 = vld [vmem:[#allocation4 + $0x1c0] sm:$0xff]  ;;  %v7378_v56 = vpack.c.bf16 %v3857_v54, %v3849_v0  ;;  %v3856_v50 = vld [vmem:[#allocation4 + $0x1d0] sm:$0xff]  ;;  %v3887_v61 = vld [vmem:[#allocation4 + $0x2c8] sm:$0xff] }
 0x719   :  { %v7316_v51 = vpack.c.bf16 %v3854_v46, %v3846_v53  ;;  %v7322_v43 = vpack.c.bf16 %v3887_v61, %v3879_v59  ;;  %v3889_v37 = vld [vmem:[#allocation4 + $0x2d8] sm:$0xff]  ;;  %v3878_v0 = vld [vmem:[#allocation4 + $0x280] sm:$0xff]  ;;  %v3880_v46 = vld [vmem:[#allocation4 + $0x290] sm:$0xff] }
 0x71a   :  { %v3921_v61 = vld [vmem:[#allocation4 + $0x3d8] sm:$0xff] }
 0x71b   :  { %7309 = vmatpush1.bf16.msra.mxu0 %v7308_v55  ;;  %7373 = vmatpush1.bf16.msra.mxu1 %v7372_v58  ;;  %v7380_v55 = vpack.c.bf16 %v3856_v50, %v3848_v57  ;;  %v3865_v58 = vld [vmem:[#allocation4 + $0x218] sm:$0xff]  ;;  %v3895_v57 = vld [vmem:[#allocation4 + $0x308] sm:$0xff] }
 0x71c   :  { %7311 = vmatprep.subr.bf16.mxu0 %v7310_v38  ;;  %7375 = vmatprep.subr.bf16.mxu1 %v7374_v47  ;;  %v3870_v38 = vld [vmem:[#allocation4 + $0x240] sm:$0xff]  ;;  %v7382_v35 = vpack.c.bf16 %v3873_v39, %v3865_v58  ;;  %v3872_v47 = vld [vmem:[#allocation4 + $0x250] sm:$0xff]  ;;  %v3903_v50 = vld [vmem:[#allocation4 + $0x348] sm:$0xff] }
 0x71d   :  { %v7320_v41 = vpack.c.bf16 %v3870_v38, %v3862_v62  ;;  %v7326_v36 = vpack.c.bf16 %v3903_v50, %v3895_v57  ;;  %v3894_v58 = vld [vmem:[#allocation4 + $0x300] sm:$0xff]  ;;  %v3896_v38 = vld [vmem:[#allocation4 + $0x310] sm:$0xff]  ;;  %v3937_v50 = vld [vmem:[#allocation4 + $0x458] sm:$0xff] }
 0x71f   :  { %7313 = vmatpush1.bf16.msra.mxu0 %v7312_v52  ;;  %7377 = vmatpush1.bf16.msra.mxu1 %v7376_v34  ;;  %v7384_v52 = vpack.c.bf16 %v3872_v47, %v3864_v44  ;;  %v3881_v34 = vld [vmem:[#allocation4 + $0x298] sm:$0xff]  ;;  %v3911_v44 = vld [vmem:[#allocation4 + $0x388] sm:$0xff] }
 0x720   :  { %7315 = vmatprep.subr.bf16.mxu0 %v7314_v33  ;;  %7379 = vmatprep.subr.bf16.mxu1 %v7378_v56  ;;  %v3886_v33 = vld [vmem:[#allocation4 + $0x2c0] sm:$0xff]  ;;  %v7386_v54 = vpack.c.bf16 %v3889_v37, %v3881_v34  ;;  %v3888_v56 = vld [vmem:[#allocation4 + $0x2d0] sm:$0xff]  ;;  %v3919_v47 = vld [vmem:[#allocation4 + $0x3c8] sm:$0xff] }
 0x721   :  { %v7324_v53 = vpack.c.bf16 %v3886_v33, %v3878_v0  ;;  %v7330_v59 = vpack.c.bf16 %v3919_v47, %v3911_v44  ;;  %v3910_v34 = vld [vmem:[#allocation4 + $0x380] sm:$0xff]  ;;  %v3912_v33 = vld [vmem:[#allocation4 + $0x390] sm:$0xff]  ;;  %v3953_v47 = vld [vmem:[#allocation4 + $0x4d8] sm:$0xff] }
 0x723   :  { %7317 = vmatpush1.bf16.msra.mxu0 %v7316_v51  ;;  %7381 = vmatpush1.bf16.msra.mxu1 %v7380_v55  ;;  %v7388_v51 = vpack.c.bf16 %v3888_v56, %v3880_v46  ;;  %v3897_v55 = vld [vmem:[#allocation4 + $0x318] sm:$0xff]  ;;  %v3927_v46 = vld [vmem:[#allocation4 + $0x408] sm:$0xff] }
 0x724   :  { %7319 = vmatprep.subr.bf16.mxu0 %v7318_v49  ;;  %7383 = vmatprep.subr.bf16.mxu1 %v7382_v35  ;;  %v3902_v49 = vld [vmem:[#allocation4 + $0x340] sm:$0xff]  ;;  %v7390_v39 = vpack.c.bf16 %v3905_v40, %v3897_v55  ;;  %v3904_v35 = vld [vmem:[#allocation4 + $0x350] sm:$0xff]  ;;  %v3935_v56 = vld [vmem:[#allocation4 + $0x448] sm:$0xff] }
 0x725   :  { %v7328_v62 = vpack.c.bf16 %v3902_v49, %v3894_v58  ;;  %v7334_v57 = vpack.c.bf16 %v3935_v56, %v3927_v46  ;;  %v3926_v55 = vld [vmem:[#allocation4 + $0x400] sm:$0xff]  ;;  %v3928_v49 = vld [vmem:[#allocation4 + $0x410] sm:$0xff]  ;;  %v3969_v56 = vld [vmem:[#allocation4 + $0x558] sm:$0xff] }
 0x727   :  { %7321 = vmatpush1.bf16.msra.mxu0 %v7320_v41  ;;  %7385 = vmatpush1.bf16.msra.mxu1 %v7384_v52  ;;  %v7392_v41 = vpack.c.bf16 %v3904_v35, %v3896_v38  ;;  %v3913_v52 = vld [vmem:[#allocation4 + $0x398] sm:$0xff]  ;;  %v3943_v38 = vld [vmem:[#allocation4 + $0x488] sm:$0xff] }
 0x728   :  { %7323 = vmatprep.subr.bf16.mxu0 %v7322_v43  ;;  %7387 = vmatprep.subr.bf16.mxu1 %v7386_v54  ;;  %v3918_v43 = vld [vmem:[#allocation4 + $0x3c0] sm:$0xff]  ;;  %v7394_v37 = vpack.c.bf16 %v3921_v61, %v3913_v52  ;;  %v3920_v54 = vld [vmem:[#allocation4 + $0x3d0] sm:$0xff]  ;;  %v3951_v35 = vld [vmem:[#allocation4 + $0x4c8] sm:$0xff] }
 0x729   :  { %v7332_v0 = vpack.c.bf16 %v3918_v43, %v3910_v34  ;;  %v7338_v44 = vpack.c.bf16 %v3951_v35, %v3943_v38  ;;  %v3942_v52 = vld [vmem:[#allocation4 + $0x480] sm:$0xff]  ;;  %v3944_v43 = vld [vmem:[#allocation4 + $0x490] sm:$0xff]  ;;  %v3985_v35 = vld [vmem:[#allocation4 + $0x5d8] sm:$0xff] }
 0x72b   :  { %7325 = vmatpush1.bf16.msra.mxu0 %v7324_v53  ;;  %7389 = vmatpush1.bf16.msra.mxu1 %v7388_v51  ;;  %v7396_v53 = vpack.c.bf16 %v3920_v54, %v3912_v33  ;;  %v3929_v51 = vld [vmem:[#allocation4 + $0x418] sm:$0xff]  ;;  %v3959_v33 = vld [vmem:[#allocation4 + $0x508] sm:$0xff] }
 0x72c   :  { %7327 = vmatprep.subr.bf16.mxu0 %v7326_v36  ;;  %7391 = vmatprep.subr.bf16.mxu1 %v7390_v39  ;;  %v3934_v36 = vld [vmem:[#allocation4 + $0x440] sm:$0xff]  ;;  %v7398_v40 = vpack.c.bf16 %v3937_v50, %v3929_v51  ;;  %v3936_v39 = vld [vmem:[#allocation4 + $0x450] sm:$0xff]  ;;  %v3967_v54 = vld [vmem:[#allocation4 + $0x548] sm:$0xff] }
 0x72d   :  { %v7336_v58 = vpack.c.bf16 %v3934_v36, %v3926_v55  ;;  %v7342_v46 = vpack.c.bf16 %v3967_v54, %v3959_v33  ;;  %v3958_v51 = vld [vmem:[#allocation4 + $0x500] sm:$0xff]  ;;  %v3960_v36 = vld [vmem:[#allocation4 + $0x510] sm:$0xff]  ;;  %v4001_v33 = vld [vmem:[#allocation4 + $0x658] sm:$0xff] }
 0x72f   :  { %7329 = vmatpush1.bf16.msra.mxu0 %v7328_v62  ;;  %7393 = vmatpush1.bf16.msra.mxu1 %v7392_v41  ;;  %v7400_v62 = vpack.c.bf16 %v3936_v39, %v3928_v49  ;;  %v3945_v41 = vld [vmem:[#allocation4 + $0x498] sm:$0xff]  ;;  %v3975_v49 = vld [vmem:[#allocation4 + $0x588] sm:$0xff] }
 0x730   :  { %7331 = vmatprep.subr.bf16.mxu0 %v7330_v59  ;;  %7395 = vmatprep.subr.bf16.mxu1 %v7394_v37  ;;  %v3950_v59 = vld [vmem:[#allocation4 + $0x4c0] sm:$0xff]  ;;  %v7402_v61 = vpack.c.bf16 %v3953_v47, %v3945_v41  ;;  %v3952_v37 = vld [vmem:[#allocation4 + $0x4d0] sm:$0xff]  ;;  %v3983_v39 = vld [vmem:[#allocation4 + $0x5c8] sm:$0xff] }
 0x731   :  { %v7340_v34 = vpack.c.bf16 %v3950_v59, %v3942_v52  ;;  %v7346_v38 = vpack.c.bf16 %v3983_v39, %v3975_v49  ;;  %v3974_v41 = vld [vmem:[#allocation4 + $0x580] sm:$0xff]  ;;  %v3976_v59 = vld [vmem:[#allocation4 + $0x590] sm:$0xff]  ;;  %v4009_v49 = vld [vmem:[#allocation4 + $0x698] sm:$0xff] }
 0x732   :  { %v4017_v39 = vld [vmem:[#allocation4 + $0x6d8] sm:$0xff] }
 0x733   :  { %7333 = vmatpush1.bf16.msra.mxu0 %v7332_v0  ;;  %7397 = vmatpush1.bf16.msra.mxu1 %v7396_v53  ;;  %v7404_v0 = vpack.c.bf16 %v3952_v37, %v3944_v43  ;;  %v3961_v53 = vld [vmem:[#allocation4 + $0x518] sm:$0xff]  ;;  %v3999_v37 = vld [vmem:[#allocation4 + $0x648] sm:$0xff] }
 0x734   :  { %7335 = vmatprep.subr.bf16.mxu0 %v7334_v57  ;;  %7399 = vmatprep.subr.bf16.mxu1 %v7398_v40  ;;  %v3966_v57 = vld [vmem:[#allocation4 + $0x540] sm:$0xff]  ;;  %v7406_v50 = vpack.c.bf16 %v3969_v56, %v3961_v53  ;;  %v3968_v40 = vld [vmem:[#allocation4 + $0x550] sm:$0xff] }
 0x735   :  { %v7344_v55 = vpack.c.bf16 %v3966_v57, %v3958_v51  ;;  %v3998_v56 = vld [vmem:[#allocation4 + $0x640] sm:$0xff]  ;;  %v3992_v51 = vld [vmem:[#allocation4 + $0x610] sm:$0xff] }
 0x737   :  { %7337 = vmatpush1.bf16.msra.mxu0 %v7336_v58  ;;  %7401 = vmatpush1.bf16.msra.mxu1 %v7400_v62  ;;  %v7408_v58 = vpack.c.bf16 %v3968_v40, %v3960_v36  ;;  %v3977_v62 = vld [vmem:[#allocation4 + $0x598] sm:$0xff]  ;;  %v4015_v36 = vld [vmem:[#allocation4 + $0x6c8] sm:$0xff] }
 0x738   :  { %7339 = vmatprep.subr.bf16.mxu0 %v7338_v44  ;;  %7403 = vmatprep.subr.bf16.mxu1 %v7402_v61  ;;  %v3982_v44 = vld [vmem:[#allocation4 + $0x5c0] sm:$0xff]  ;;  %v7410_v47 = vpack.c.bf16 %v3985_v35, %v3977_v62  ;;  %v3984_v61 = vld [vmem:[#allocation4 + $0x5d0] sm:$0xff] }
 0x739   :  { %v7348_v52 = vpack.c.bf16 %v3982_v44, %v3974_v41  ;;  %v7412_v43 = vpack.c.bf16 %v3984_v61, %v3976_v59  ;;  %v4006_v62 = vld [vmem:[#allocation4 + $0x680] sm:$0xff]  ;;  %v4008_v41 = vld [vmem:[#allocation4 + $0x690] sm:$0xff]  ;;  %v4031_v59 = vld [vmem:[#allocation4 + $0x748] sm:$0xff] }
 0x73a   :  { %v4014_v35 = vld [vmem:[#allocation4 + $0x6c0] sm:$0xff]  ;;  %v4016_v44 = vld [vmem:[#allocation4 + $0x6d0] sm:$0xff]  ;;  %v4025_v61 = vld [vmem:[#allocation4 + $0x718] sm:$0xff] }
 0x73b   :  { %7341 = vmatpush1.bf16.msra.mxu0 %v7340_v34  ;;  %7405 = vmatpush1.bf16.msra.mxu1 %v7404_v0  ;;  %v3991_v34 = vld [vmem:[#allocation4 + $0x608] sm:$0xff]  ;;  %v3993_v0 = vld [vmem:[#allocation4 + $0x618] sm:$0xff] }
 0x73c   :  { %7343 = vmatprep.subr.bf16.mxu0 %v7342_v46  ;;  %7407 = vmatprep.subr.bf16.mxu1 %v7406_v50  ;;  %v7350_v54 = vpack.c.bf16 %v3999_v37, %v3991_v34  ;;  %v7414_v53 = vpack.c.bf16 %v4001_v33, %v3993_v0  ;;  %v3990_v46 = vld [vmem:[#allocation4 + $0x600] sm:$0xff]  ;;  %v4000_v50 = vld [vmem:[#allocation4 + $0x650] sm:$0xff]  ;;  %v4033_v34 = vld [vmem:[#allocation4 + $0x758] sm:$0xff] }
 0x73d   :  { %v7352_v57 = vpack.c.bf16 %v3998_v56, %v3990_v46  ;;  %v7416_v40 = vpack.c.bf16 %v4000_v50, %v3992_v51  ;;  %v4022_v0 = vld [vmem:[#allocation4 + $0x700] sm:$0xff]  ;;  %v7422_v46 = vpack.c.bf16 %v4033_v34, %v4025_v61  ;;  %v4039_v56 = vld [vmem:[#allocation4 + $0x788] sm:$0xff]  ;;  %v4041_v50 = vld [vmem:[#allocation4 + $0x798] sm:$0xff] }
 0x73e   :  { %v4030_v33 = vld [vmem:[#allocation4 + $0x740] sm:$0xff]  ;;  %v4047_v51 = vld [vmem:[#allocation4 + $0x7c8] sm:$0xff] }
 0x73f   :  { %7345 = vmatpush1.bf16.msra.mxu0 %v7344_v55  ;;  %7409 = vmatpush1.bf16.msra.mxu1 %v7408_v58  ;;  %v4007_v55 = vld [vmem:[#allocation4 + $0x688] sm:$0xff] }
 0x740   :  { %7347 = vmatprep.subr.bf16.mxu0 %v7346_v38  ;;  %7411 = vmatprep.subr.bf16.mxu1 %v7410_v47  ;;  %v7354_v58 = vpack.c.bf16 %v4015_v36, %v4007_v55  ;;  %v7418_v38 = vpack.c.bf16 %v4017_v39, %v4009_v49  ;;  %v4023_v47 = vld [vmem:[#allocation4 + $0x708] sm:$0xff]  ;;  %v4049_v55 = vld [vmem:[#allocation4 + $0x7d8] sm:$0xff]  ;;  %v7360_v36 = vpack.c.bf16 %v4030_v33, %v4022_v0 }
 0x741   :  { %v7358_v37 = vpack.c.bf16 %v4031_v59, %v4023_v47  ;;  %v7362_v49 = vpack.c.bf16 %v4047_v51, %v4039_v56  ;;  %v7426_v39 = vpack.c.bf16 %v4049_v55, %v4041_v50  ;;  %v3811_v47 = vld [vmem:[#allocation4 + $0x68] sm:$0xff]  ;;  %v3805_v59 = vld [vmem:[#allocation4 + $0x38] sm:$0xff] }
 0x743   :  { %7349 = vmatpush1.bf16.msra.mxu0 %v7348_v52  ;;  %7413 = vmatpush1.bf16.msra.mxu1 %v7412_v43  ;;  %v7356_v52 = vpack.c.bf16 %v4014_v35, %v4006_v62  ;;  %v7420_v43 = vpack.c.bf16 %v4016_v44, %v4008_v41  ;;  %v4040_v62 = vld [vmem:[#allocation4 + $0x790] sm:$0xff]  ;;  %v3803_v44 = vld [vmem:[#allocation4 + $0x28] sm:$0xff] }
 0x744   :  { %7351 = vmatprep.subr.bf16.mxu0 %v7350_v54  ;;  %7415 = vmatprep.subr.bf16.mxu1 %v7414_v53  ;;  %v4024_v54 = vld [vmem:[#allocation4 + $0x710] sm:$0xff]  ;;  %v7430_v61 = vpack.c.bf16 %v3811_v47, %v3803_v44 }
 0x745   :  { %v4032_v53 = vld [vmem:[#allocation4 + $0x750] sm:$0xff] }
 0x746   :  { %v4048_v35 = vld [vmem:[#allocation4 + $0x7d0] sm:$0xff] }
 0x747   :  { %7353 = vmatpush1.bf16.msra.mxu0 %v7352_v57  ;;  %7417 = vmatpush1.bf16.msra.mxu1 %v7416_v40  ;;  %v7424_v57 = vpack.c.bf16 %v4032_v53, %v4024_v54  ;;  %v4038_v40 = vld [vmem:[#allocation4 + $0x780] sm:$0xff]  ;;  %v7428_v41 = vpack.c.bf16 %v4048_v35, %v4040_v62 }
 0x748   :  { %7355 = vmatprep.subr.bf16.mxu0 %v7354_v58  ;;  %7419 = vmatprep.subr.bf16.mxu1 %v7418_v38  ;;  %v4046_v58 = vld [vmem:[#allocation4 + $0x7c0] sm:$0xff] }
 0x749   :  { %v7364_v38 = vpack.c.bf16 %v4046_v58, %v4038_v40  ;;  %v3158_v62 = vld [vmem:[#allocation2 + $0x4] ss:$8 sm:$0xf] }
 0x74a   :  { %v3159_v35 = vld [vmem:[#allocation2 + $0x4] ss:$8 sm:$0xf0] }
 0x74b   :  { %7357 = vmatpush1.bf16.msra.mxu0 %v7356_v52  ;;  %7421 = vmatpush1.bf16.msra.mxu1 %v7420_v43  ;;  %v3813_v52 = vld [vmem:[#allocation4 + $0x78] sm:$0xff]  ;;  %v3160_v44 = vor.u32 %v3159_v35, %v3158_v62 }
 0x74c   :  { %7359 = vmatprep.subr.bf16.mxu0 %v7358_v37  ;;  %7423 = vmatprep.subr.bf16.mxu1 %v7422_v46  ;;  %v7494_v34 = vpack.c.bf16 %v3813_v52, %v3805_v59  ;;  %v3821_v62 = vld [vmem:[#allocation4 + $0xb8] sm:$0xff] }
 0x74d   :  { %v3829_v35 = vld [vmem:[#allocation4 + $0xf8] sm:$0xff] }
 0x74f   :  { %7361 = vmatpush1.bf16.msra.mxu0 %v7360_v36  ;;  %7425 = vmatpush1.bf16.msra.mxu1 %v7424_v57 }
 0x750   :  { %7363 = vmatprep.subr.bf16.mxu0 %v7362_v49  ;;  %7427 = vmatprep.subr.bf16.mxu1 %v7426_v39 }
 0x753   :  { %7365 = vmatpush1.bf16.msra.mxu0 %v7364_v38  ;;  %7429 = vmatpush1.bf16.msra.mxu1 %v7428_v41 }
 0x754   :  { %7431 = vmatprep.subr.bf16.mxu0 %v7430_v61  ;;  %7495 = vmatprep.subr.bf16.mxu1 %v7494_v34 }
 0x7a9   :  { %v3494_v43 = vpop.f32.mrb[20].mxu0  ;;  %v3565_v37 = vpop.f32.mrb[20].mxu1 }
 0x7aa   :  { %v3496_v0 = vpop.f32.mrb[21].mxu0  ;;  %v3567_v33 = vpop.f32.mrb[21].mxu1 }
 0x7ab   :  { %v3720_v54 = vcombine.low %v3494_v43, %v3496_v0  ;;  %v3721_v46 = vcombine.low %v3565_v37, %v3567_v33 }
 0x7ad   :  { %v3730_v53 = vrot.slane %v3720_v54, %v8492_v63  ;;  %v3737_v56 = vrot.slane %v3721_v46, %v8492_v63 }
 0x7af   :  { %v3752_v51 = vcombine.low %v3730_v53, %v3737_v56 }
 0x7b1   :  { %v3760_v41 = vrot.slane %v3752_v51, %v8492_v63 }
 0x7e9   :  { %v3636_v50 = vpop.f32.mrb[22].mxu0  ;;  %v3707_v55 = vpop.f32.mrb[22].mxu1 }
 0x7ea   :  { %v3638_v36 = vpop.f32.mrb[23].mxu0  ;;  %v3709_v57 = vpop.f32.mrb[23].mxu1 }
 0x7eb   :  { %v3722_v49 = vcombine.low %v3636_v50, %v3638_v36  ;;  %v3723_v40 = vcombine.low %v3707_v55, %v3709_v57  ;;  %v3802_v50 = vld [vmem:[#allocation4 + $0x20] sm:$0xff]  ;;  %v3804_v57 = vld [vmem:[#allocation4 + $0x30] sm:$0xff] }
 0x7ec   :  { %v3810_v36 = vld [vmem:[#allocation4 + $0x60] sm:$0xff] }
 0x7ed   :  { %v3744_v58 = vrot.slane %v3722_v49, %v8492_v63  ;;  %v3751_v39 = vrot.slane %v3723_v40, %v8492_v63  ;;  %v3812_v49 = vld [vmem:[#allocation4 + $0x70] sm:$0xff] }
 0x7ef   :  { %v3753_v38 = vcombine.low %v3744_v58, %v3751_v39  ;;  %v3819_v58 = vld [vmem:[#allocation4 + $0xa8] sm:$0xff] }
 0x7f0   :  { %v3827_v39 = vld [vmem:[#allocation4 + $0xe8] sm:$0xff] }
 0x7f1   :  { %v3767_v47 = vrot.slane %v3753_v38, %v8492_v63 }
 0x7f3   :  { %v3768_v59 = vcombine.low %v3760_v41, %v3767_v47  ;;  %v7432_v41 = vpack.c.bf16 %v3810_v36, %v3802_v50  ;;  %v3818_v47 = vld [vmem:[#allocation4 + $0xa0] sm:$0xff] }
 0x7f4   :  { %v3842_v50 = vld [vmem:[#allocation4 + $0x160] sm:$0xff] }
 0x7f5   :  { %v3770_v61 = vadd.f32 %v3768_v59, %v3160_v44  ;;  %v7496_v44 = vpack.c.bf16 %v3812_v49, %v3804_v57  ;;  %v3826_v59 = vld [vmem:[#allocation4 + $0xe0] sm:$0xff]  ;;  %v3836_v57 = vld [vmem:[#allocation4 + $0x130] sm:$0xff] }
 0x7f6   :  { %v3844_v49 = vld [vmem:[#allocation4 + $0x170] sm:$0xff] }
 0x7f7   :  { %v5852_v52 = vmul.f32 -1.442695, %v3770_v61  ;;  %v3778_v37 = vrot.slane %v3770_v61, 6  ;;  %v3820_v61 = vld [vmem:[#allocation4 + $0xb0] sm:$0xff] }
 0x7f9   :  { %8140 = vpow2.f32 %v5852_v52  ;;  %v3828_v52 = vld [vmem:[#allocation4 + $0xf0] sm:$0xff] }
 0x803   :  { %v8141_v34 = vpop.eup %8140 }
 0x804   :  { %v3774_v43 = vadd.f32 1.0, %v8141_v34  ;;  %v3835_v34 = vld [vmem:[#allocation4 + $0x128] sm:$0xff] }
 0x806   :  { %8142 = vrcp.f32 %v3774_v43  ;;  %v7434_v43 = vpack.c.bf16 %v3827_v39, %v3819_v58  ;;  %v3859_v58 = vld [vmem:[#allocation4 + $0x1e8] sm:$0xff]  ;;  %v3853_v39 = vld [vmem:[#allocation4 + $0x1b8] sm:$0xff] }
 0x807   :  { %8144 = vtanh.f32 %v3778_v37  ;;  %v7498_v37 = vpack.c.bf16 %v3829_v35, %v3821_v62  ;;  %v3861_v62 = vld [vmem:[#allocation4 + $0x1f8] sm:$0xff] }
 0x810   :  { %v8143_v0 = vpop.eup %8142 }
 0x811   :  { %v3782_v33 = vrot.slane %v8143_v0, 2  ;;  %v8145_v54 = vpop.eup %8144  ;;  %v3788_v51 = vrot.slane %v8143_v0, 4 }
 0x812   :  { %v3785_v46 = vmul.f32 %v8145_v54, %v8143_v0  ;;  %v3843_v0 = vld [vmem:[#allocation4 + $0x168] sm:$0xff]  ;;  %v3845_v54 = vld [vmem:[#allocation4 + $0x178] sm:$0xff] }
 0x813   :  { %v3784_v53 = vmul.f32 %v3782_v33, %v8565_v60  ;;  %v3837_v33 = vld [vmem:[#allocation4 + $0x138] sm:$0xff] }
 0x814   :  { %v7502_v36 = vpack.c.bf16 %v3845_v54, %v3837_v33  ;;  %v3869_v33 = vld [vmem:[#allocation4 + $0x238] sm:$0xff] }
 0x815   :  { %v8585_v56 = vadd.f32 %v3785_v46, %v3784_v53  ;;  %v7436_v46 = vpack.c.bf16 %v3826_v59, %v3818_v47  ;;  %v7500_v53 = vpack.c.bf16 %v3828_v52, %v3820_v61  ;;  %v3858_v47 = vld [vmem:[#allocation4 + $0x1e0] sm:$0xff]  ;;  %v3852_v61 = vld [vmem:[#allocation4 + $0x1b0] sm:$0xff] }
 0x816   :  { %v3860_v52 = vld [vmem:[#allocation4 + $0x1f0] sm:$0xff] }
 0x817   :  { %8146 = vtanh.f32 %v8585_v56  ;;  %v7508_v54 = vpack.c.bf16 %v3860_v52, %v3852_v61  ;;  %v3899_v61 = vld [vmem:[#allocation4 + $0x328] sm:$0xff] }
 0x818   :  { %v3907_v52 = vld [vmem:[#allocation4 + $0x368] sm:$0xff] }
 0x821   :  { %v8147_v55 = vpop.eup %8146 }
 0x822   :  { %v3790_v40 = vmul.f32 %v8147_v55, %v3788_v51  ;;  %v3834_v51 = vld [vmem:[#allocation4 + $0x120] sm:$0xff]  ;;  %v7438_v55 = vpack.c.bf16 %v3843_v0, %v3835_v34  ;;  %v3867_v34 = vld [vmem:[#allocation4 + $0x228] sm:$0xff] }
 0x823   :  { %v7440_v35 = vpack.c.bf16 %v3842_v50, %v3834_v51  ;;  %v3875_v0 = vld [vmem:[#allocation4 + $0x268] sm:$0xff] }
 0x824   :  { %3792 = vst.msk [vmem:[#allocation3 + $0x4] ss:$8 sm:$0x3] %vm8504_vm0, %v3790_v40  ;;  %v4062_v60 = vrot.slane %v3790_v40, %v8474_v48  ;;  %v8592_v38 = vrot.slane %v3790_v40, %v8467_v45  ;;  %v3851_v40 = vld [vmem:[#allocation4 + $0x1a8] sm:$0xff]  ;;  %v7446_v51 = vpack.c.bf16 %v3875_v0, %v3867_v34  ;;  %v3901_v34 = vld [vmem:[#allocation4 + $0x338] sm:$0xff] }
 0x825   :  { %v7442_v59 = vpack.c.bf16 %v3859_v58, %v3851_v40  ;;  %v3885_v40 = vld [vmem:[#allocation4 + $0x2b8] sm:$0xff] }
 0x826   :  { %4129 = vmatprep.mubr.f32.mxu0 %v4062_v60  ;;  %4200 = vmatprep.mubr.f32.mxu1 %v4062_v60  ;;  %v3893_v58 = vld [vmem:[#allocation4 + $0x2f8] sm:$0xff] }
 0x827   :  { %4130 = vmatmul.mubr.f32.vlgmr.msra.gmra.mrb[24].mxu0 %v8592_v38  ;;  %4201 = vmatmul.mubr.f32.vlgmr.msra.gmra.mrb[24].mxu1 %v8592_v38  ;;  %v3909_v0 = vld [vmem:[#allocation4 + $0x378] sm:$0xff] }
 0x828   :  { %7433 = vmatpush1.bf16.msra.mxu0 %v7432_v41  ;;  %7497 = vmatpush1.bf16.msra.mxu1 %v7496_v44  ;;  %v7504_v41 = vpack.c.bf16 %v3844_v49, %v3836_v57  ;;  %v3850_v44 = vld [vmem:[#allocation4 + $0x1a0] sm:$0xff]  ;;  %v3883_v57 = vld [vmem:[#allocation4 + $0x2a8] sm:$0xff] }
 0x829   :  { %4271 = vmatprep.mubr.f32.mxu0 %v4062_v60  ;;  %4342 = vmatprep.mubr.f32.mxu1 %v4062_v60  ;;  %v7506_v60 = vpack.c.bf16 %v3861_v62, %v3853_v39  ;;  %v3891_v49 = vld [vmem:[#allocation4 + $0x2e8] sm:$0xff] }
 0x82a   :  { %7435 = vmatprep.subr.bf16.mxu0 %v7434_v43  ;;  %7499 = vmatprep.subr.bf16.mxu1 %v7498_v37  ;;  %v3877_v43 = vld [vmem:[#allocation4 + $0x278] sm:$0xff]  ;;  %v7444_v37 = vpack.c.bf16 %v3858_v47, %v3850_v44  ;;  %v7450_v44 = vpack.c.bf16 %v3891_v49, %v3883_v57  ;;  %v7514_v47 = vpack.c.bf16 %v3893_v58, %v3885_v40 }
 0x82b   :  { %v7510_v50 = vpack.c.bf16 %v3877_v43, %v3869_v33  ;;  %v3917_v57 = vld [vmem:[#allocation4 + $0x3b8] sm:$0xff] }
 0x82c   :  { %7437 = vmatpush1.bf16.msra.mxu0 %v7436_v46  ;;  %7501 = vmatpush1.bf16.msra.mxu1 %v7500_v53  ;;  %v3866_v46 = vld [vmem:[#allocation4 + $0x220] sm:$0xff]  ;;  %v3925_v49 = vld [vmem:[#allocation4 + $0x3f8] sm:$0xff] }
 0x82d   :  { %7439 = vmatprep.subr.bf16.mxu0 %v7438_v55  ;;  %7503 = vmatprep.subr.bf16.mxu1 %v7502_v36  ;;  %v3874_v53 = vld [vmem:[#allocation4 + $0x260] sm:$0xff]  ;;  %v3868_v55 = vld [vmem:[#allocation4 + $0x230] sm:$0xff] }
 0x82e   :  { %v3876_v36 = vld [vmem:[#allocation4 + $0x270] sm:$0xff]  ;;  %v7448_v39 = vpack.c.bf16 %v3874_v53, %v3866_v46  ;;  %v7454_v46 = vpack.c.bf16 %v3907_v52, %v3899_v61  ;;  %v7518_v53 = vpack.c.bf16 %v3909_v0, %v3901_v34  ;;  %v3933_v61 = vld [vmem:[#allocation4 + $0x438] sm:$0xff] }
 0x82f   :  { %v7512_v62 = vpack.c.bf16 %v3876_v36, %v3868_v55  ;;  %v3915_v55 = vld [vmem:[#allocation4 + $0x3a8] sm:$0xff]  ;;  %v3941_v52 = vld [vmem:[#allocation4 + $0x478] sm:$0xff] }
 0x830   :  { %7441 = vmatpush1.bf16.msra.mxu0 %v7440_v35  ;;  %7505 = vmatpush1.bf16.msra.mxu1 %v7504_v41  ;;  %v3882_v35 = vld [vmem:[#allocation4 + $0x2a0] sm:$0xff]  ;;  %v3923_v36 = vld [vmem:[#allocation4 + $0x3e8] sm:$0xff] }
 0x831   :  { %7443 = vmatprep.subr.bf16.mxu0 %v7442_v59  ;;  %7507 = vmatprep.subr.bf16.mxu1 %v7506_v60  ;;  %v3890_v41 = vld [vmem:[#allocation4 + $0x2e0] sm:$0xff]  ;;  %v3884_v59 = vld [vmem:[#allocation4 + $0x2b0] sm:$0xff] }
 0x832   :  { %v3892_v60 = vld [vmem:[#allocation4 + $0x2f0] sm:$0xff]  ;;  %v7452_v33 = vpack.c.bf16 %v3890_v41, %v3882_v35  ;;  %v7458_v35 = vpack.c.bf16 %v3923_v36, %v3915_v55  ;;  %v7522_v41 = vpack.c.bf16 %v3925_v49, %v3917_v57  ;;  %v3949_v55 = vld [vmem:[#allocation4 + $0x4b8] sm:$0xff] }
 0x833   :  { %v7516_v43 = vpack.c.bf16 %v3892_v60, %v3884_v59  ;;  %v3931_v59 = vld [vmem:[#allocation4 + $0x428] sm:$0xff]  ;;  %v3957_v36 = vld [vmem:[#allocation4 + $0x4f8] sm:$0xff] }
 0x834   :  { %7445 = vmatpush1.bf16.msra.mxu0 %v7444_v37  ;;  %7509 = vmatpush1.bf16.msra.mxu1 %v7508_v54  ;;  %v3898_v37 = vld [vmem:[#allocation4 + $0x320] sm:$0xff]  ;;  %v3939_v60 = vld [vmem:[#allocation4 + $0x468] sm:$0xff] }
 0x835   :  { %7447 = vmatprep.subr.bf16.mxu0 %v7446_v51  ;;  %7511 = vmatprep.subr.bf16.mxu1 %v7510_v50  ;;  %v3906_v54 = vld [vmem:[#allocation4 + $0x360] sm:$0xff]  ;;  %v3900_v51 = vld [vmem:[#allocation4 + $0x330] sm:$0xff] }
 0x836   :  { %v3908_v50 = vld [vmem:[#allocation4 + $0x370] sm:$0xff]  ;;  %v7456_v40 = vpack.c.bf16 %v3906_v54, %v3898_v37  ;;  %v7462_v37 = vpack.c.bf16 %v3939_v60, %v3931_v59  ;;  %v7526_v54 = vpack.c.bf16 %v3941_v52, %v3933_v61  ;;  %v3965_v59 = vld [vmem:[#allocation4 + $0x538] sm:$0xff] }
 0x837   :  { %v7520_v58 = vpack.c.bf16 %v3908_v50, %v3900_v51  ;;  %v3947_v51 = vld [vmem:[#allocation4 + $0x4a8] sm:$0xff]  ;;  %v3973_v60 = vld [vmem:[#allocation4 + $0x578] sm:$0xff] }
 0x838   :  { %7449 = vmatpush1.bf16.msra.mxu0 %v7448_v39  ;;  %7513 = vmatpush1.bf16.msra.mxu1 %v7512_v62  ;;  %v3914_v39 = vld [vmem:[#allocation4 + $0x3a0] sm:$0xff]  ;;  %v3955_v50 = vld [vmem:[#allocation4 + $0x4e8] sm:$0xff] }
 0x839   :  { %7451 = vmatprep.subr.bf16.mxu0 %v7450_v44  ;;  %7515 = vmatprep.subr.bf16.mxu1 %v7514_v47  ;;  %v3922_v62 = vld [vmem:[#allocation4 + $0x3e0] sm:$0xff]  ;;  %v3916_v44 = vld [vmem:[#allocation4 + $0x3b0] sm:$0xff] }
 0x83a   :  { %v3924_v47 = vld [vmem:[#allocation4 + $0x3f0] sm:$0xff]  ;;  %v7460_v34 = vpack.c.bf16 %v3922_v62, %v3914_v39  ;;  %v7466_v39 = vpack.c.bf16 %v3955_v50, %v3947_v51  ;;  %v7530_v62 = vpack.c.bf16 %v3957_v36, %v3949_v55  ;;  %v3981_v51 = vld [vmem:[#allocation4 + $0x5b8] sm:$0xff] }
 0x83b   :  { %v7524_v0 = vpack.c.bf16 %v3924_v47, %v3916_v44  ;;  %v3963_v44 = vld [vmem:[#allocation4 + $0x528] sm:$0xff]  ;;  %v3989_v50 = vld [vmem:[#allocation4 + $0x5f8] sm:$0xff] }
 0x83c   :  { %7453 = vmatpush1.bf16.msra.mxu0 %v7452_v33  ;;  %7517 = vmatpush1.bf16.msra.mxu1 %v7516_v43  ;;  %v3930_v33 = vld [vmem:[#allocation4 + $0x420] sm:$0xff]  ;;  %v3971_v47 = vld [vmem:[#allocation4 + $0x568] sm:$0xff] }
 0x83d   :  { %7455 = vmatprep.subr.bf16.mxu0 %v7454_v46  ;;  %7519 = vmatprep.subr.bf16.mxu1 %v7518_v53  ;;  %v3938_v43 = vld [vmem:[#allocation4 + $0x460] sm:$0xff]  ;;  %v3932_v46 = vld [vmem:[#allocation4 + $0x430] sm:$0xff] }
 0x83e   :  { %v3940_v53 = vld [vmem:[#allocation4 + $0x470] sm:$0xff]  ;;  %v7464_v57 = vpack.c.bf16 %v3938_v43, %v3930_v33  ;;  %v7470_v33 = vpack.c.bf16 %v3971_v47, %v3963_v44  ;;  %v7534_v43 = vpack.c.bf16 %v3973_v60, %v3965_v59  ;;  %v3997_v44 = vld [vmem:[#allocation4 + $0x638] sm:$0xff] }
 0x83f   :  { %v7528_v49 = vpack.c.bf16 %v3940_v53, %v3932_v46  ;;  %v3979_v46 = vld [vmem:[#allocation4 + $0x5a8] sm:$0xff]  ;;  %v4005_v47 = vld [vmem:[#allocation4 + $0x678] sm:$0xff] }
 0x840   :  { %7457 = vmatpush1.bf16.msra.mxu0 %v7456_v40  ;;  %7521 = vmatpush1.bf16.msra.mxu1 %v7520_v58  ;;  %v3946_v40 = vld [vmem:[#allocation4 + $0x4a0] sm:$0xff]  ;;  %v3987_v53 = vld [vmem:[#allocation4 + $0x5e8] sm:$0xff] }
 0x841   :  { %7459 = vmatprep.subr.bf16.mxu0 %v7458_v35  ;;  %7523 = vmatprep.subr.bf16.mxu1 %v7522_v41  ;;  %v3954_v58 = vld [vmem:[#allocation4 + $0x4e0] sm:$0xff]  ;;  %v3948_v35 = vld [vmem:[#allocation4 + $0x4b0] sm:$0xff] }
 0x842   :  { %v3956_v41 = vld [vmem:[#allocation4 + $0x4f0] sm:$0xff]  ;;  %v7468_v61 = vpack.c.bf16 %v3954_v58, %v3946_v40  ;;  %v7474_v40 = vpack.c.bf16 %v3987_v53, %v3979_v46  ;;  %v7538_v58 = vpack.c.bf16 %v3989_v50, %v3981_v51  ;;  %v4013_v46 = vld [vmem:[#allocation4 + $0x6b8] sm:$0xff] }
 0x843   :  { %v7532_v52 = vpack.c.bf16 %v3956_v41, %v3948_v35  ;;  %v3995_v35 = vld [vmem:[#allocation4 + $0x628] sm:$0xff]  ;;  %v4021_v53 = vld [vmem:[#allocation4 + $0x6f8] sm:$0xff] }
 0x844   :  { %7461 = vmatpush1.bf16.msra.mxu0 %v7460_v34  ;;  %7525 = vmatpush1.bf16.msra.mxu1 %v7524_v0  ;;  %v3962_v34 = vld [vmem:[#allocation4 + $0x520] sm:$0xff]  ;;  %v4003_v41 = vld [vmem:[#allocation4 + $0x668] sm:$0xff] }
 0x845   :  { %7463 = vmatprep.subr.bf16.mxu0 %v7462_v37  ;;  %7527 = vmatprep.subr.bf16.mxu1 %v7526_v54  ;;  %v3970_v0 = vld [vmem:[#allocation4 + $0x560] sm:$0xff]  ;;  %v3964_v37 = vld [vmem:[#allocation4 + $0x530] sm:$0xff] }
 0x846   :  { %v3972_v54 = vld [vmem:[#allocation4 + $0x570] sm:$0xff]  ;;  %v7472_v55 = vpack.c.bf16 %v3970_v0, %v3962_v34  ;;  %v7478_v34 = vpack.c.bf16 %v4003_v41, %v3995_v35  ;;  %v7542_v0 = vpack.c.bf16 %v4005_v47, %v3997_v44  ;;  %v4029_v35 = vld [vmem:[#allocation4 + $0x738] sm:$0xff] }
 0x847   :  { %v7536_v36 = vpack.c.bf16 %v3972_v54, %v3964_v37  ;;  %v4011_v37 = vld [vmem:[#allocation4 + $0x6a8] sm:$0xff]  ;;  %v4037_v41 = vld [vmem:[#allocation4 + $0x778] sm:$0xff] }
 0x848   :  { %7465 = vmatpush1.bf16.msra.mxu0 %v7464_v57  ;;  %7529 = vmatpush1.bf16.msra.mxu1 %v7528_v49  ;;  %v3978_v57 = vld [vmem:[#allocation4 + $0x5a0] sm:$0xff]  ;;  %v4019_v54 = vld [vmem:[#allocation4 + $0x6e8] sm:$0xff] }
 0x849   :  { %7467 = vmatprep.subr.bf16.mxu0 %v7466_v39  ;;  %7531 = vmatprep.subr.bf16.mxu1 %v7530_v62  ;;  %v3986_v49 = vld [vmem:[#allocation4 + $0x5e0] sm:$0xff]  ;;  %v3980_v39 = vld [vmem:[#allocation4 + $0x5b0] sm:$0xff] }
 0x84a   :  { %v3988_v62 = vld [vmem:[#allocation4 + $0x5f0] sm:$0xff]  ;;  %v7476_v59 = vpack.c.bf16 %v3986_v49, %v3978_v57  ;;  %v7482_v57 = vpack.c.bf16 %v4019_v54, %v4011_v37  ;;  %v7546_v49 = vpack.c.bf16 %v4021_v53, %v4013_v46  ;;  %v4045_v37 = vld [vmem:[#allocation4 + $0x7b8] sm:$0xff] }
 0x84b   :  { %v7540_v60 = vpack.c.bf16 %v3988_v62, %v3980_v39  ;;  %v4027_v39 = vld [vmem:[#allocation4 + $0x728] sm:$0xff]  ;;  %v4053_v54 = vld [vmem:[#allocation4 + $0x7f8] sm:$0xff] }
 0x84c   :  { %7469 = vmatpush1.bf16.msra.mxu0 %v7468_v61  ;;  %7533 = vmatpush1.bf16.msra.mxu1 %v7532_v52  ;;  %v3994_v61 = vld [vmem:[#allocation4 + $0x620] sm:$0xff]  ;;  %v4035_v62 = vld [vmem:[#allocation4 + $0x768] sm:$0xff] }
 0x84d   :  { %7471 = vmatprep.subr.bf16.mxu0 %v7470_v33  ;;  %7535 = vmatprep.subr.bf16.mxu1 %v7534_v43  ;;  %v4002_v52 = vld [vmem:[#allocation4 + $0x660] sm:$0xff]  ;;  %v3996_v33 = vld [vmem:[#allocation4 + $0x630] sm:$0xff] }
 0x84e   :  { %v4004_v43 = vld [vmem:[#allocation4 + $0x670] sm:$0xff]  ;;  %v7480_v51 = vpack.c.bf16 %v4002_v52, %v3994_v61  ;;  %v7486_v61 = vpack.c.bf16 %v4035_v62, %v4027_v39  ;;  %v7550_v52 = vpack.c.bf16 %v4037_v41, %v4029_v35  ;;  %v4436_v39 = vld [vmem:[#allocation4 + $0x8] sm:$0xff]  ;;  %v4438_v35 = vld [vmem:[#allocation4 + $0x18] sm:$0xff] }
 0x84f   :  { %v7544_v50 = vpack.c.bf16 %v4004_v43, %v3996_v33  ;;  %v4043_v33 = vld [vmem:[#allocation4 + $0x7a8] sm:$0xff] }
 0x850   :  { %7473 = vmatpush1.bf16.msra.mxu0 %v7472_v55  ;;  %7537 = vmatpush1.bf16.msra.mxu1 %v7536_v36  ;;  %v4010_v55 = vld [vmem:[#allocation4 + $0x6a0] sm:$0xff]  ;;  %v4051_v43 = vld [vmem:[#allocation4 + $0x7e8] sm:$0xff] }
 0x851   :  { %7475 = vmatprep.subr.bf16.mxu0 %v7474_v40  ;;  %7539 = vmatprep.subr.bf16.mxu1 %v7538_v58  ;;  %v4018_v36 = vld [vmem:[#allocation4 + $0x6e0] sm:$0xff]  ;;  %v4012_v40 = vld [vmem:[#allocation4 + $0x6b0] sm:$0xff]  ;;  %v4444_v62 = vld [vmem:[#allocation4 + $0x48] sm:$0xff] }
 0x852   :  { %v4020_v58 = vld [vmem:[#allocation4 + $0x6f0] sm:$0xff]  ;;  %v7484_v44 = vpack.c.bf16 %v4018_v36, %v4010_v55  ;;  %v7554_v55 = vpack.c.bf16 %v4053_v54, %v4045_v37  ;;  %v4050_v36 = vld [vmem:[#allocation4 + $0x7e0] sm:$0xff]  ;;  %v7558_v41 = vpack.c.bf16 %v4444_v62, %v4436_v39  ;;  %v4454_v37 = vld [vmem:[#allocation4 + $0x98] sm:$0xff] }
 0x853   :  { %v7548_v47 = vpack.c.bf16 %v4020_v58, %v4012_v40  ;;  %v4462_v54 = vld [vmem:[#allocation4 + $0xd8] sm:$0xff] }
 0x854   :  { %7477 = vmatpush1.bf16.msra.mxu0 %v7476_v59  ;;  %7541 = vmatpush1.bf16.msra.mxu1 %v7540_v60  ;;  %v4026_v59 = vld [vmem:[#allocation4 + $0x720] sm:$0xff]  ;;  %v4478_v62 = vld [vmem:[#allocation4 + $0x158] sm:$0xff] }
 0x855   :  { %7479 = vmatprep.subr.bf16.mxu0 %v7478_v34  ;;  %7543 = vmatprep.subr.bf16.mxu1 %v7542_v0  ;;  %v4034_v60 = vld [vmem:[#allocation4 + $0x760] sm:$0xff]  ;;  %v4028_v34 = vld [vmem:[#allocation4 + $0x730] sm:$0xff] }
 0x856   :  { %v4036_v0 = vld [vmem:[#allocation4 + $0x770] sm:$0xff]  ;;  %v7488_v46 = vpack.c.bf16 %v4034_v60, %v4026_v59  ;;  %v4443_v59 = vld [vmem:[#allocation4 + $0x40] sm:$0xff] }
 0x857   :  { %v7552_v53 = vpack.c.bf16 %v4036_v0, %v4028_v34  ;;  %v4445_v34 = vld [vmem:[#allocation4 + $0x50] sm:$0xff] }
 0x858   :  { %7481 = vmatpush1.bf16.msra.mxu0 %v7480_v51  ;;  %7545 = vmatpush1.bf16.msra.mxu1 %v7544_v50  ;;  %v4042_v51 = vld [vmem:[#allocation4 + $0x7a0] sm:$0xff]  ;;  %v7490_v50 = vpack.c.bf16 %v4051_v43, %v4043_v33  ;;  %v4452_v33 = vld [vmem:[#allocation4 + $0x88] sm:$0xff] }
 0x859   :  { %7483 = vmatprep.subr.bf16.mxu0 %v7482_v57  ;;  %7547 = vmatprep.subr.bf16.mxu1 %v7546_v49  ;;  %v4044_v57 = vld [vmem:[#allocation4 + $0x7b0] sm:$0xff]  ;;  %v7492_v40 = vpack.c.bf16 %v4050_v36, %v4042_v51  ;;  %v4460_v43 = vld [vmem:[#allocation4 + $0xc8] sm:$0xff]  ;;  %v7626_v51 = vpack.c.bf16 %v4462_v54, %v4454_v37  ;;  %v4483_v37 = vld [vmem:[#allocation4 + $0x180] sm:$0xff] }
 0x85a   :  { %v4052_v49 = vld [vmem:[#allocation4 + $0x7f0] sm:$0xff] }
 0x85b   :  { %v7556_v58 = vpack.c.bf16 %v4052_v49, %v4044_v57  ;;  %v4461_v36 = vld [vmem:[#allocation4 + $0xd0] sm:$0xff]  ;;  %v4468_v49 = vld [vmem:[#allocation4 + $0x108] sm:$0xff] }
 0x85c   :  { %7485 = vmatpush1.bf16.msra.mxu0 %v7484_v44  ;;  %7549 = vmatpush1.bf16.msra.mxu1 %v7548_v47  ;;  %v4446_v44 = vld [vmem:[#allocation4 + $0x58] sm:$0xff]  ;;  %v4435_v47 = vld [vmem:[#allocation4] sm:$0xff] }
 0x85d   :  { %7487 = vmatprep.subr.bf16.mxu0 %v7486_v61  ;;  %7551 = vmatprep.subr.bf16.mxu1 %v7550_v52  ;;  %v7622_v60 = vpack.c.bf16 %v4446_v44, %v4438_v35  ;;  %v7560_v61 = vpack.c.bf16 %v4443_v59, %v4435_v47  ;;  %v4437_v52 = vld [vmem:[#allocation4 + $0x10] sm:$0xff]  ;;  %v4467_v35 = vld [vmem:[#allocation4 + $0x100] sm:$0xff] }
 0x85e   :  { %v7624_v0 = vpack.c.bf16 %v4445_v34, %v4437_v52  ;;  %v4469_v59 = vld [vmem:[#allocation4 + $0x110] sm:$0xff]  ;;  %v4484_v52 = vld [vmem:[#allocation4 + $0x188] sm:$0xff] }
 0x85f   :  { %v4492_v34 = vld [vmem:[#allocation4 + $0x1c8] sm:$0xff] }
 0x860   :  { %7489 = vmatpush1.bf16.msra.mxu0 %v7488_v46  ;;  %7553 = vmatpush1.bf16.msra.mxu1 %v7552_v53  ;;  %v4451_v46 = vld [vmem:[#allocation4 + $0x80] sm:$0xff] }
 0x861   :  { %7491 = vmatprep.subr.bf16.mxu0 %v7490_v50  ;;  %7555 = vmatprep.subr.bf16.mxu1 %v7554_v55  ;;  %v4459_v53 = vld [vmem:[#allocation4 + $0xc0] sm:$0xff]  ;;  %v4453_v55 = vld [vmem:[#allocation4 + $0x90] sm:$0xff] }
 0x862   :  { %v7564_v50 = vpack.c.bf16 %v4459_v53, %v4451_v46  ;;  %v7628_v57 = vpack.c.bf16 %v4461_v36, %v4453_v55  ;;  %v4485_v53 = vld [vmem:[#allocation4 + $0x190] sm:$0xff]  ;;  %v4500_v55 = vld [vmem:[#allocation4 + $0x208] sm:$0xff] }
 0x863   :  { %v4508_v36 = vld [vmem:[#allocation4 + $0x248] sm:$0xff] }
 0x864   :  { %7493 = vmatpush1.bf16.msra.mxu0 %v7492_v40  ;;  %7557 = vmatpush1.bf16.msra.mxu1 %v7556_v58  ;;  %v4476_v40 = vld [vmem:[#allocation4 + $0x148] sm:$0xff]  ;;  %v4470_v58 = vld [vmem:[#allocation4 + $0x118] sm:$0xff] }
 0x865   :  { %7559 = vmatprep.subr.bf16.mxu0 %v7558_v41  ;;  %7623 = vmatprep.subr.bf16.mxu1 %v7622_v60  ;;  %v7566_v39 = vpack.c.bf16 %v4476_v40, %v4468_v49  ;;  %v4475_v41 = vld [vmem:[#allocation4 + $0x140] sm:$0xff]  ;;  %v7630_v44 = vpack.c.bf16 %v4478_v62, %v4470_v58  ;;  %v4477_v60 = vld [vmem:[#allocation4 + $0x150] sm:$0xff]  ;;  %v7574_v49 = vpack.c.bf16 %v4508_v36, %v4500_v55  ;;  %v4510_v40 = vld [vmem:[#allocation4 + $0x258] sm:$0xff] }
 0x866   :  { %v7568_v47 = vpack.c.bf16 %v4475_v41, %v4467_v35  ;;  %v4499_v58 = vld [vmem:[#allocation4 + $0x200] sm:$0xff]  ;;  %v4501_v41 = vld [vmem:[#allocation4 + $0x210] sm:$0xff]  ;;  %v4542_v36 = vld [vmem:[#allocation4 + $0x358] sm:$0xff] }
 0x867   :  { %4272 = vmatmul.mubr.f32.vlgmr.msra.gmra.mrb[26].mxu0 %v8592_v38  ;;  %4343 = vmatmul.mubr.f32.vlgmr.msra.gmra.mrb[26].mxu1 %v8592_v38  ;;  %v7562_v38 = vpack.c.bf16 %v4460_v43, %v4452_v33  ;;  %v7570_v33 = vpack.c.bf16 %v4492_v34, %v4484_v52  ;;  %v4494_v43 = vld [vmem:[#allocation4 + $0x1d8] sm:$0xff] }
 0x868   :  { %7561 = vmatpush1.bf16.msra.mxu0 %v7560_v61  ;;  %7625 = vmatpush1.bf16.msra.mxu1 %v7624_v0  ;;  %v7632_v61 = vpack.c.bf16 %v4477_v60, %v4469_v59  ;;  %v4486_v0 = vld [vmem:[#allocation4 + $0x198] sm:$0xff]  ;;  %v4516_v59 = vld [vmem:[#allocation4 + $0x288] sm:$0xff] }
 0x869   :  { %7563 = vmatprep.subr.bf16.mxu0 %v7562_v38  ;;  %7627 = vmatprep.subr.bf16.mxu1 %v7626_v51  ;;  %v4491_v38 = vld [vmem:[#allocation4 + $0x1c0] sm:$0xff]  ;;  %v7634_v54 = vpack.c.bf16 %v4494_v43, %v4486_v0  ;;  %v4493_v51 = vld [vmem:[#allocation4 + $0x1d0] sm:$0xff]  ;;  %v4524_v60 = vld [vmem:[#allocation4 + $0x2c8] sm:$0xff] }
 0x86a   :  { %v7572_v46 = vpack.c.bf16 %v4491_v38, %v4483_v37  ;;  %v7578_v52 = vpack.c.bf16 %v4524_v60, %v4516_v59  ;;  %v4526_v34 = vld [vmem:[#allocation4 + $0x2d8] sm:$0xff]  ;;  %v4515_v0 = vld [vmem:[#allocation4 + $0x280] sm:$0xff]  ;;  %v4517_v38 = vld [vmem:[#allocation4 + $0x290] sm:$0xff] }
 0x86b   :  { %v4558_v60 = vld [vmem:[#allocation4 + $0x3d8] sm:$0xff] }
 0x86c   :  { %7565 = vmatpush1.bf16.msra.mxu0 %v7564_v50  ;;  %7629 = vmatpush1.bf16.msra.mxu1 %v7628_v57  ;;  %v7636_v50 = vpack.c.bf16 %v4493_v51, %v4485_v53  ;;  %v4502_v57 = vld [vmem:[#allocation4 + $0x218] sm:$0xff]  ;;  %v4532_v53 = vld [vmem:[#allocation4 + $0x308] sm:$0xff] }
 0x86d   :  { %7567 = vmatprep.subr.bf16.mxu0 %v7566_v39  ;;  %7631 = vmatprep.subr.bf16.mxu1 %v7630_v44  ;;  %v4507_v39 = vld [vmem:[#allocation4 + $0x240] sm:$0xff]  ;;  %v7638_v62 = vpack.c.bf16 %v4510_v40, %v4502_v57  ;;  %v4509_v44 = vld [vmem:[#allocation4 + $0x250] sm:$0xff]  ;;  %v4540_v51 = vld [vmem:[#allocation4 + $0x348] sm:$0xff] }
 0x86e   :  { %v7576_v35 = vpack.c.bf16 %v4507_v39, %v4499_v58  ;;  %v7582_v55 = vpack.c.bf16 %v4540_v51, %v4532_v53  ;;  %v4531_v57 = vld [vmem:[#allocation4 + $0x300] sm:$0xff]  ;;  %v4533_v39 = vld [vmem:[#allocation4 + $0x310] sm:$0xff]  ;;  %v4574_v51 = vld [vmem:[#allocation4 + $0x458] sm:$0xff] }
 0x870   :  { %7569 = vmatpush1.bf16.msra.mxu0 %v7568_v47  ;;  %7633 = vmatpush1.bf16.msra.mxu1 %v7632_v61  ;;  %v7640_v47 = vpack.c.bf16 %v4509_v44, %v4501_v41  ;;  %v4518_v61 = vld [vmem:[#allocation4 + $0x298] sm:$0xff]  ;;  %v4548_v41 = vld [vmem:[#allocation4 + $0x388] sm:$0xff] }
 0x871   :  { %7571 = vmatprep.subr.bf16.mxu0 %v7570_v33  ;;  %7635 = vmatprep.subr.bf16.mxu1 %v7634_v54  ;;  %v4523_v33 = vld [vmem:[#allocation4 + $0x2c0] sm:$0xff]  ;;  %v7642_v43 = vpack.c.bf16 %v4526_v34, %v4518_v61  ;;  %v4525_v54 = vld [vmem:[#allocation4 + $0x2d0] sm:$0xff]  ;;  %v4556_v44 = vld [vmem:[#allocation4 + $0x3c8] sm:$0xff] }
 0x872   :  { %v7580_v37 = vpack.c.bf16 %v4523_v33, %v4515_v0  ;;  %v7586_v59 = vpack.c.bf16 %v4556_v44, %v4548_v41  ;;  %v4547_v61 = vld [vmem:[#allocation4 + $0x380] sm:$0xff]  ;;  %v4549_v33 = vld [vmem:[#allocation4 + $0x390] sm:$0xff]  ;;  %v4590_v44 = vld [vmem:[#allocation4 + $0x4d8] sm:$0xff] }
 0x874   :  { %7573 = vmatpush1.bf16.msra.mxu0 %v7572_v46  ;;  %7637 = vmatpush1.bf16.msra.mxu1 %v7636_v50  ;;  %v7644_v46 = vpack.c.bf16 %v4525_v54, %v4517_v38  ;;  %v4534_v50 = vld [vmem:[#allocation4 + $0x318] sm:$0xff]  ;;  %v4564_v38 = vld [vmem:[#allocation4 + $0x408] sm:$0xff] }
 0x875   :  { %7575 = vmatprep.subr.bf16.mxu0 %v7574_v49  ;;  %7639 = vmatprep.subr.bf16.mxu1 %v7638_v62  ;;  %v4539_v49 = vld [vmem:[#allocation4 + $0x340] sm:$0xff]  ;;  %v7646_v40 = vpack.c.bf16 %v4542_v36, %v4534_v50  ;;  %v4541_v62 = vld [vmem:[#allocation4 + $0x350] sm:$0xff]  ;;  %v4572_v54 = vld [vmem:[#allocation4 + $0x448] sm:$0xff] }
 0x876   :  { %v7584_v58 = vpack.c.bf16 %v4539_v49, %v4531_v57  ;;  %v7590_v53 = vpack.c.bf16 %v4572_v54, %v4564_v38  ;;  %v4563_v50 = vld [vmem:[#allocation4 + $0x400] sm:$0xff]  ;;  %v4565_v49 = vld [vmem:[#allocation4 + $0x410] sm:$0xff]  ;;  %v4606_v54 = vld [vmem:[#allocation4 + $0x558] sm:$0xff] }
 0x878   :  { %7577 = vmatpush1.bf16.msra.mxu0 %v7576_v35  ;;  %7641 = vmatpush1.bf16.msra.mxu1 %v7640_v47  ;;  %v7648_v35 = vpack.c.bf16 %v4541_v62, %v4533_v39  ;;  %v4550_v47 = vld [vmem:[#allocation4 + $0x398] sm:$0xff]  ;;  %v4580_v39 = vld [vmem:[#allocation4 + $0x488] sm:$0xff] }
 0x879   :  { %7579 = vmatprep.subr.bf16.mxu0 %v7578_v52  ;;  %7643 = vmatprep.subr.bf16.mxu1 %v7642_v43  ;;  %v4555_v52 = vld [vmem:[#allocation4 + $0x3c0] sm:$0xff]  ;;  %v7650_v34 = vpack.c.bf16 %v4558_v60, %v4550_v47  ;;  %v4557_v43 = vld [vmem:[#allocation4 + $0x3d0] sm:$0xff]  ;;  %v4588_v62 = vld [vmem:[#allocation4 + $0x4c8] sm:$0xff] }
 0x87a   :  { %v7588_v0 = vpack.c.bf16 %v4555_v52, %v4547_v61  ;;  %v7594_v41 = vpack.c.bf16 %v4588_v62, %v4580_v39  ;;  %v4579_v47 = vld [vmem:[#allocation4 + $0x480] sm:$0xff]  ;;  %v4581_v52 = vld [vmem:[#allocation4 + $0x490] sm:$0xff]  ;;  %v4622_v62 = vld [vmem:[#allocation4 + $0x5d8] sm:$0xff] }
 0x87c   :  { %7581 = vmatpush1.bf16.msra.mxu0 %v7580_v37  ;;  %7645 = vmatpush1.bf16.msra.mxu1 %v7644_v46  ;;  %v7652_v37 = vpack.c.bf16 %v4557_v43, %v4549_v33  ;;  %v4566_v46 = vld [vmem:[#allocation4 + $0x418] sm:$0xff]  ;;  %v4596_v33 = vld [vmem:[#allocation4 + $0x508] sm:$0xff] }
 0x87d   :  { %7583 = vmatprep.subr.bf16.mxu0 %v7582_v55  ;;  %7647 = vmatprep.subr.bf16.mxu1 %v7646_v40  ;;  %v4571_v55 = vld [vmem:[#allocation4 + $0x440] sm:$0xff]  ;;  %v7654_v36 = vpack.c.bf16 %v4574_v51, %v4566_v46  ;;  %v4573_v40 = vld [vmem:[#allocation4 + $0x450] sm:$0xff]  ;;  %v4604_v43 = vld [vmem:[#allocation4 + $0x548] sm:$0xff] }
 0x87e   :  { %v7592_v57 = vpack.c.bf16 %v4571_v55, %v4563_v50  ;;  %v7598_v38 = vpack.c.bf16 %v4604_v43, %v4596_v33  ;;  %v4595_v46 = vld [vmem:[#allocation4 + $0x500] sm:$0xff]  ;;  %v4597_v55 = vld [vmem:[#allocation4 + $0x510] sm:$0xff]  ;;  %v4638_v33 = vld [vmem:[#allocation4 + $0x658] sm:$0xff] }
 0x880   :  { %7585 = vmatpush1.bf16.msra.mxu0 %v7584_v58  ;;  %7649 = vmatpush1.bf16.msra.mxu1 %v7648_v35  ;;  %v7656_v58 = vpack.c.bf16 %v4573_v40, %v4565_v49  ;;  %v4582_v35 = vld [vmem:[#allocation4 + $0x498] sm:$0xff]  ;;  %v4612_v49 = vld [vmem:[#allocation4 + $0x588] sm:$0xff] }
 0x881   :  { %7587 = vmatprep.subr.bf16.mxu0 %v7586_v59  ;;  %7651 = vmatprep.subr.bf16.mxu1 %v7650_v34  ;;  %v4587_v59 = vld [vmem:[#allocation4 + $0x4c0] sm:$0xff]  ;;  %v7658_v60 = vpack.c.bf16 %v4590_v44, %v4582_v35  ;;  %v4589_v34 = vld [vmem:[#allocation4 + $0x4d0] sm:$0xff]  ;;  %v4620_v40 = vld [vmem:[#allocation4 + $0x5c8] sm:$0xff] }
 0x882   :  { %v7596_v61 = vpack.c.bf16 %v4587_v59, %v4579_v47  ;;  %v7602_v39 = vpack.c.bf16 %v4620_v40, %v4612_v49  ;;  %v4611_v35 = vld [vmem:[#allocation4 + $0x580] sm:$0xff]  ;;  %v4613_v59 = vld [vmem:[#allocation4 + $0x590] sm:$0xff]  ;;  %v4646_v49 = vld [vmem:[#allocation4 + $0x698] sm:$0xff] }
 0x883   :  { %v4654_v40 = vld [vmem:[#allocation4 + $0x6d8] sm:$0xff] }
 0x884   :  { %7589 = vmatpush1.bf16.msra.mxu0 %v7588_v0  ;;  %7653 = vmatpush1.bf16.msra.mxu1 %v7652_v37  ;;  %v7660_v0 = vpack.c.bf16 %v4589_v34, %v4581_v52  ;;  %v4598_v37 = vld [vmem:[#allocation4 + $0x518] sm:$0xff]  ;;  %v4636_v34 = vld [vmem:[#allocation4 + $0x648] sm:$0xff] }
 0x885   :  { %7591 = vmatprep.subr.bf16.mxu0 %v7590_v53  ;;  %7655 = vmatprep.subr.bf16.mxu1 %v7654_v36  ;;  %v4603_v53 = vld [vmem:[#allocation4 + $0x540] sm:$0xff]  ;;  %v7662_v51 = vpack.c.bf16 %v4606_v54, %v4598_v37  ;;  %v4605_v36 = vld [vmem:[#allocation4 + $0x550] sm:$0xff] }
 0x886   :  { %v7600_v50 = vpack.c.bf16 %v4603_v53, %v4595_v46  ;;  %v4635_v54 = vld [vmem:[#allocation4 + $0x640] sm:$0xff]  ;;  %v4629_v46 = vld [vmem:[#allocation4 + $0x610] sm:$0xff] }
 0x888   :  { %7593 = vmatpush1.bf16.msra.mxu0 %v7592_v57  ;;  %7657 = vmatpush1.bf16.msra.mxu1 %v7656_v58  ;;  %v7664_v57 = vpack.c.bf16 %v4605_v36, %v4597_v55  ;;  %v4614_v58 = vld [vmem:[#allocation4 + $0x598] sm:$0xff]  ;;  %v4652_v55 = vld [vmem:[#allocation4 + $0x6c8] sm:$0xff] }
 0x889   :  { %7595 = vmatprep.subr.bf16.mxu0 %v7594_v41  ;;  %7659 = vmatprep.subr.bf16.mxu1 %v7658_v60  ;;  %v4619_v41 = vld [vmem:[#allocation4 + $0x5c0] sm:$0xff]  ;;  %v7666_v44 = vpack.c.bf16 %v4622_v62, %v4614_v58  ;;  %v4621_v60 = vld [vmem:[#allocation4 + $0x5d0] sm:$0xff] }
 0x88a   :  { %v7604_v47 = vpack.c.bf16 %v4619_v41, %v4611_v35  ;;  %v7668_v52 = vpack.c.bf16 %v4621_v60, %v4613_v59  ;;  %v4643_v58 = vld [vmem:[#allocation4 + $0x680] sm:$0xff]  ;;  %v4645_v35 = vld [vmem:[#allocation4 + $0x690] sm:$0xff]  ;;  %v4668_v59 = vld [vmem:[#allocation4 + $0x748] sm:$0xff] }
 0x88b   :  { %v4651_v62 = vld [vmem:[#allocation4 + $0x6c0] sm:$0xff]  ;;  %v4653_v41 = vld [vmem:[#allocation4 + $0x6d0] sm:$0xff]  ;;  %v4662_v60 = vld [vmem:[#allocation4 + $0x718] sm:$0xff] }
 0x88c   :  { %7597 = vmatpush1.bf16.msra.mxu0 %v7596_v61  ;;  %7661 = vmatpush1.bf16.msra.mxu1 %v7660_v0  ;;  %v4628_v61 = vld [vmem:[#allocation4 + $0x608] sm:$0xff]  ;;  %v4630_v0 = vld [vmem:[#allocation4 + $0x618] sm:$0xff] }
 0x88d   :  { %7599 = vmatprep.subr.bf16.mxu0 %v7598_v38  ;;  %7663 = vmatprep.subr.bf16.mxu1 %v7662_v51  ;;  %v7606_v43 = vpack.c.bf16 %v4636_v34, %v4628_v61  ;;  %v7670_v37 = vpack.c.bf16 %v4638_v33, %v4630_v0  ;;  %v4627_v38 = vld [vmem:[#allocation4 + $0x600] sm:$0xff]  ;;  %v4637_v51 = vld [vmem:[#allocation4 + $0x650] sm:$0xff]  ;;  %v4670_v61 = vld [vmem:[#allocation4 + $0x758] sm:$0xff] }
 0x88e   :  { %v7608_v53 = vpack.c.bf16 %v4635_v54, %v4627_v38  ;;  %v7672_v36 = vpack.c.bf16 %v4637_v51, %v4629_v46  ;;  %v4659_v0 = vld [vmem:[#allocation4 + $0x700] sm:$0xff]  ;;  %v7678_v38 = vpack.c.bf16 %v4670_v61, %v4662_v60  ;;  %v4676_v54 = vld [vmem:[#allocation4 + $0x788] sm:$0xff]  ;;  %v4678_v51 = vld [vmem:[#allocation4 + $0x798] sm:$0xff] }
 0x88f   :  { %v4667_v33 = vld [vmem:[#allocation4 + $0x740] sm:$0xff]  ;;  %v4684_v46 = vld [vmem:[#allocation4 + $0x7c8] sm:$0xff] }
 0x890   :  { %7601 = vmatpush1.bf16.msra.mxu0 %v7600_v50  ;;  %7665 = vmatpush1.bf16.msra.mxu1 %v7664_v57  ;;  %v4644_v50 = vld [vmem:[#allocation4 + $0x688] sm:$0xff] }
 0x891   :  { %7603 = vmatprep.subr.bf16.mxu0 %v7602_v39  ;;  %7667 = vmatprep.subr.bf16.mxu1 %v7666_v44  ;;  %v7610_v57 = vpack.c.bf16 %v4652_v55, %v4644_v50  ;;  %v7674_v39 = vpack.c.bf16 %v4654_v40, %v4646_v49  ;;  %v4660_v44 = vld [vmem:[#allocation4 + $0x708] sm:$0xff]  ;;  %v4686_v50 = vld [vmem:[#allocation4 + $0x7d8] sm:$0xff]  ;;  %v7616_v55 = vpack.c.bf16 %v4667_v33, %v4659_v0 }
 0x892   :  { %v7614_v34 = vpack.c.bf16 %v4668_v59, %v4660_v44  ;;  %v7618_v49 = vpack.c.bf16 %v4684_v46, %v4676_v54  ;;  %v7682_v40 = vpack.c.bf16 %v4686_v50, %v4678_v51  ;;  %v4448_v44 = vld [vmem:[#allocation4 + $0x68] sm:$0xff]  ;;  %v4442_v59 = vld [vmem:[#allocation4 + $0x38] sm:$0xff] }
 0x894   :  { %7605 = vmatpush1.bf16.msra.mxu0 %v7604_v47  ;;  %7669 = vmatpush1.bf16.msra.mxu1 %v7668_v52  ;;  %v7612_v47 = vpack.c.bf16 %v4651_v62, %v4643_v58  ;;  %v7676_v52 = vpack.c.bf16 %v4653_v41, %v4645_v35  ;;  %v4677_v58 = vld [vmem:[#allocation4 + $0x790] sm:$0xff]  ;;  %v4440_v41 = vld [vmem:[#allocation4 + $0x28] sm:$0xff] }
 0x895   :  { %7607 = vmatprep.subr.bf16.mxu0 %v7606_v43  ;;  %7671 = vmatprep.subr.bf16.mxu1 %v7670_v37  ;;  %v4661_v43 = vld [vmem:[#allocation4 + $0x710] sm:$0xff]  ;;  %v7686_v60 = vpack.c.bf16 %v4448_v44, %v4440_v41 }
 0x896   :  { %v4669_v37 = vld [vmem:[#allocation4 + $0x750] sm:$0xff] }
 0x897   :  { %v4685_v62 = vld [vmem:[#allocation4 + $0x7d0] sm:$0xff] }
 0x898   :  { %7609 = vmatpush1.bf16.msra.mxu0 %v7608_v53  ;;  %7673 = vmatpush1.bf16.msra.mxu1 %v7672_v36  ;;  %v7680_v53 = vpack.c.bf16 %v4669_v37, %v4661_v43  ;;  %v4675_v36 = vld [vmem:[#allocation4 + $0x780] sm:$0xff]  ;;  %v7684_v35 = vpack.c.bf16 %v4685_v62, %v4677_v58 }
 0x899   :  { %7611 = vmatprep.subr.bf16.mxu0 %v7610_v57  ;;  %7675 = vmatprep.subr.bf16.mxu1 %v7674_v39  ;;  %v4683_v57 = vld [vmem:[#allocation4 + $0x7c0] sm:$0xff] }
 0x89a   :  { %v7620_v39 = vpack.c.bf16 %v4683_v57, %v4675_v36  ;;  %v3795_v58 = vld [vmem:[#allocation2 + $0x5] ss:$8 sm:$0xf] }
 0x89b   :  { %v3796_v62 = vld [vmem:[#allocation2 + $0x5] ss:$8 sm:$0xf0] }
 0x89c   :  { %7613 = vmatpush1.bf16.msra.mxu0 %v7612_v47  ;;  %7677 = vmatpush1.bf16.msra.mxu1 %v7676_v52  ;;  %v4450_v47 = vld [vmem:[#allocation4 + $0x78] sm:$0xff]  ;;  %v3797_v41 = vor.u32 %v3796_v62, %v3795_v58 }
 0x89d   :  { %7615 = vmatprep.subr.bf16.mxu0 %v7614_v34  ;;  %7679 = vmatprep.subr.bf16.mxu1 %v7678_v38  ;;  %v7750_v61 = vpack.c.bf16 %v4450_v47, %v4442_v59  ;;  %v4458_v58 = vld [vmem:[#allocation4 + $0xb8] sm:$0xff] }
 0x89e   :  { %v4466_v62 = vld [vmem:[#allocation4 + $0xf8] sm:$0xff] }
 0x8a0   :  { %7617 = vmatpush1.bf16.msra.mxu0 %v7616_v55  ;;  %7681 = vmatpush1.bf16.msra.mxu1 %v7680_v53 }
 0x8a1   :  { %7619 = vmatprep.subr.bf16.mxu0 %v7618_v49  ;;  %7683 = vmatprep.subr.bf16.mxu1 %v7682_v40 }
 0x8a4   :  { %7621 = vmatpush1.bf16.msra.mxu0 %v7620_v39  ;;  %7685 = vmatpush1.bf16.msra.mxu1 %v7684_v35 }
 0x8a5   :  { %7687 = vmatprep.subr.bf16.mxu0 %v7686_v60  ;;  %7751 = vmatprep.subr.bf16.mxu1 %v7750_v61 }
 0x8fa   :  { %v4131_v52 = vpop.f32.mrb[24].mxu0  ;;  %v4202_v34 = vpop.f32.mrb[24].mxu1 }
 0x8fb   :  { %v4133_v0 = vpop.f32.mrb[25].mxu0  ;;  %v4204_v33 = vpop.f32.mrb[25].mxu1 }
 0x8fc   :  { %v4357_v43 = vcombine.low %v4131_v52, %v4133_v0  ;;  %v4358_v38 = vcombine.low %v4202_v34, %v4204_v33 }
 0x8fe   :  { %v4367_v37 = vrot.slane %v4357_v43, %v8492_v63  ;;  %v4374_v54 = vrot.slane %v4358_v38, %v8492_v63 }
 0x900   :  { %v4389_v46 = vcombine.low %v4367_v37, %v4374_v54 }
 0x902   :  { %v4397_v35 = vrot.slane %v4389_v46, %v8492_v63 }
 0x93a   :  { %v4273_v51 = vpop.f32.mrb[26].mxu0  ;;  %v4344_v50 = vpop.f32.mrb[26].mxu1 }
 0x93b   :  { %v4275_v55 = vpop.f32.mrb[27].mxu0  ;;  %v4346_v53 = vpop.f32.mrb[27].mxu1 }
 0x93c   :  { %v4359_v49 = vcombine.low %v4273_v51, %v4275_v55  ;;  %v4360_v36 = vcombine.low %v4344_v50, %v4346_v53  ;;  %v4439_v51 = vld [vmem:[#allocation4 + $0x20] sm:$0xff]  ;;  %v4441_v53 = vld [vmem:[#allocation4 + $0x30] sm:$0xff] }
 0x93d   :  { %v4447_v55 = vld [vmem:[#allocation4 + $0x60] sm:$0xff] }
 0x93e   :  { %v4381_v57 = vrot.slane %v4359_v49, %v8492_v63  ;;  %v4388_v40 = vrot.slane %v4360_v36, %v8492_v63  ;;  %v4449_v49 = vld [vmem:[#allocation4 + $0x70] sm:$0xff] }
 0x940   :  { %v4390_v39 = vcombine.low %v4381_v57, %v4388_v40  ;;  %v4456_v57 = vld [vmem:[#allocation4 + $0xa8] sm:$0xff] }
 0x941   :  { %v4464_v40 = vld [vmem:[#allocation4 + $0xe8] sm:$0xff] }
 0x942   :  { %v4404_v44 = vrot.slane %v4390_v39, %v8492_v63 }
 0x944   :  { %v4405_v59 = vcombine.low %v4397_v35, %v4404_v44  ;;  %v7688_v35 = vpack.c.bf16 %v4447_v55, %v4439_v51  ;;  %v4455_v44 = vld [vmem:[#allocation4 + $0xa0] sm:$0xff] }
 0x945   :  { %v4479_v51 = vld [vmem:[#allocation4 + $0x160] sm:$0xff] }
 0x946   :  { %v4407_v60 = vadd.f32 %v4405_v59, %v3797_v41  ;;  %v7752_v41 = vpack.c.bf16 %v4449_v49, %v4441_v53  ;;  %v4463_v59 = vld [vmem:[#allocation4 + $0xe0] sm:$0xff]  ;;  %v4473_v53 = vld [vmem:[#allocation4 + $0x130] sm:$0xff] }
 0x947   :  { %v4481_v49 = vld [vmem:[#allocation4 + $0x170] sm:$0xff] }
 0x948   :  { %v5853_v47 = vmul.f32 -1.442695, %v4407_v60  ;;  %v4415_v34 = vrot.slane %v4407_v60, 6  ;;  %v4457_v60 = vld [vmem:[#allocation4 + $0xb0] sm:$0xff] }
 0x94a   :  { %8148 = vpow2.f32 %v5853_v47  ;;  %v4465_v47 = vld [vmem:[#allocation4 + $0xf0] sm:$0xff] }
 0x954   :  { %v8149_v61 = vpop.eup %8148 }
 0x955   :  { %v4411_v52 = vadd.f32 1.0, %v8149_v61  ;;  %v4472_v61 = vld [vmem:[#allocation4 + $0x128] sm:$0xff] }
 0x957   :  { %8150 = vrcp.f32 %v4411_v52  ;;  %v7690_v52 = vpack.c.bf16 %v4464_v40, %v4456_v57  ;;  %v4496_v57 = vld [vmem:[#allocation4 + $0x1e8] sm:$0xff]  ;;  %v4490_v40 = vld [vmem:[#allocation4 + $0x1b8] sm:$0xff] }
 0x958   :  { %8152 = vtanh.f32 %v4415_v34  ;;  %v7754_v34 = vpack.c.bf16 %v4466_v62, %v4458_v58  ;;  %v4498_v58 = vld [vmem:[#allocation4 + $0x1f8] sm:$0xff] }
 0x961   :  { %v8151_v0 = vpop.eup %8150 }
 0x962   :  { %v4419_v33 = vrot.slane %v8151_v0, 2  ;;  %v8153_v43 = vpop.eup %8152  ;;  %v4425_v46 = vrot.slane %v8151_v0, 4 }
 0x963   :  { %v4422_v38 = vmul.f32 %v8153_v43, %v8151_v0  ;;  %v4480_v0 = vld [vmem:[#allocation4 + $0x168] sm:$0xff]  ;;  %v4482_v43 = vld [vmem:[#allocation4 + $0x178] sm:$0xff] }
 0x964   :  { %v4421_v37 = vmul.f32 %v4419_v33, %v8585_v56  ;;  %v4474_v33 = vld [vmem:[#allocation4 + $0x138] sm:$0xff] }
 0x965   :  { %v7758_v55 = vpack.c.bf16 %v4482_v43, %v4474_v33  ;;  %v4506_v33 = vld [vmem:[#allocation4 + $0x238] sm:$0xff] }
 0x966   :  { %v8605_v54 = vadd.f32 %v4422_v38, %v4421_v37  ;;  %v7692_v38 = vpack.c.bf16 %v4463_v59, %v4455_v44  ;;  %v7756_v37 = vpack.c.bf16 %v4465_v47, %v4457_v60  ;;  %v4495_v44 = vld [vmem:[#allocation4 + $0x1e0] sm:$0xff]  ;;  %v4489_v60 = vld [vmem:[#allocation4 + $0x1b0] sm:$0xff] }
 0x967   :  { %v4497_v47 = vld [vmem:[#allocation4 + $0x1f0] sm:$0xff] }
 0x968   :  { %8154 = vtanh.f32 %v8605_v54  ;;  %v7764_v43 = vpack.c.bf16 %v4497_v47, %v4489_v60  ;;  %v4536_v60 = vld [vmem:[#allocation4 + $0x328] sm:$0xff] }
 0x969   :  { %v4544_v47 = vld [vmem:[#allocation4 + $0x368] sm:$0xff] }
 0x972   :  { %v8155_v50 = vpop.eup %8154 }
 0x973   :  { %v4427_v36 = vmul.f32 %v8155_v50, %v4425_v46  ;;  %v4471_v46 = vld [vmem:[#allocation4 + $0x120] sm:$0xff]  ;;  %v7694_v50 = vpack.c.bf16 %v4480_v0, %v4472_v61  ;;  %v4504_v61 = vld [vmem:[#allocation4 + $0x228] sm:$0xff] }
 0x974   :  { %v7696_v62 = vpack.c.bf16 %v4479_v51, %v4471_v46  ;;  %v4512_v0 = vld [vmem:[#allocation4 + $0x268] sm:$0xff] }
 0x975   :  { %4429 = vst.msk [vmem:[#allocation3 + $0x5] ss:$8 sm:$0x3] %vm8504_vm0, %v4427_v36  ;;  %v4699_v56 = vrot.slane %v4427_v36, %v8474_v48  ;;  %v8612_v39 = vrot.slane %v4427_v36, %v8467_v45  ;;  %v4488_v36 = vld [vmem:[#allocation4 + $0x1a8] sm:$0xff]  ;;  %v7702_v46 = vpack.c.bf16 %v4512_v0, %v4504_v61  ;;  %v4538_v61 = vld [vmem:[#allocation4 + $0x338] sm:$0xff] }
 0x976   :  { %v7698_v59 = vpack.c.bf16 %v4496_v57, %v4488_v36  ;;  %v4522_v36 = vld [vmem:[#allocation4 + $0x2b8] sm:$0xff] }
 0x977   :  { %4766 = vmatprep.mubr.f32.mxu0 %v4699_v56  ;;  %4837 = vmatprep.mubr.f32.mxu1 %v4699_v56  ;;  %v4530_v57 = vld [vmem:[#allocation4 + $0x2f8] sm:$0xff] }
 0x978   :  { %4767 = vmatmul.mubr.f32.vlgmr.msra.gmra.mrb[28].mxu0 %v8612_v39  ;;  %4838 = vmatmul.mubr.f32.vlgmr.msra.gmra.mrb[28].mxu1 %v8612_v39  ;;  %v4546_v0 = vld [vmem:[#allocation4 + $0x378] sm:$0xff] }
 0x979   :  { %7689 = vmatpush1.bf16.msra.mxu0 %v7688_v35  ;;  %7753 = vmatpush1.bf16.msra.mxu1 %v7752_v41  ;;  %v7760_v35 = vpack.c.bf16 %v4481_v49, %v4473_v53  ;;  %v4487_v41 = vld [vmem:[#allocation4 + $0x1a0] sm:$0xff]  ;;  %v4520_v53 = vld [vmem:[#allocation4 + $0x2a8] sm:$0xff] }
 0x97a   :  { %4908 = vmatprep.mubr.f32.mxu0 %v4699_v56  ;;  %4979 = vmatprep.mubr.f32.mxu1 %v4699_v56  ;;  %v7762_v56 = vpack.c.bf16 %v4498_v58, %v4490_v40  ;;  %v4528_v49 = vld [vmem:[#allocation4 + $0x2e8] sm:$0xff] }
 0x97b   :  { %7691 = vmatprep.subr.bf16.mxu0 %v7690_v52  ;;  %7755 = vmatprep.subr.bf16.mxu1 %v7754_v34  ;;  %v4514_v52 = vld [vmem:[#allocation4 + $0x278] sm:$0xff]  ;;  %v7700_v34 = vpack.c.bf16 %v4495_v44, %v4487_v41  ;;  %v7706_v41 = vpack.c.bf16 %v4528_v49, %v4520_v53  ;;  %v7770_v44 = vpack.c.bf16 %v4530_v57, %v4522_v36 }
 0x97c   :  { %v7766_v51 = vpack.c.bf16 %v4514_v52, %v4506_v33  ;;  %v4554_v53 = vld [vmem:[#allocation4 + $0x3b8] sm:$0xff] }
 0x97d   :  { %7693 = vmatpush1.bf16.msra.mxu0 %v7692_v38  ;;  %7757 = vmatpush1.bf16.msra.mxu1 %v7756_v37  ;;  %v4503_v38 = vld [vmem:[#allocation4 + $0x220] sm:$0xff]  ;;  %v4562_v49 = vld [vmem:[#allocation4 + $0x3f8] sm:$0xff] }
 0x97e   :  { %7695 = vmatprep.subr.bf16.mxu0 %v7694_v50  ;;  %7759 = vmatprep.subr.bf16.mxu1 %v7758_v55  ;;  %v4511_v37 = vld [vmem:[#allocation4 + $0x260] sm:$0xff]  ;;  %v4505_v50 = vld [vmem:[#allocation4 + $0x230] sm:$0xff] }
 0x97f   :  { %v4513_v55 = vld [vmem:[#allocation4 + $0x270] sm:$0xff]  ;;  %v7704_v40 = vpack.c.bf16 %v4511_v37, %v4503_v38  ;;  %v7710_v38 = vpack.c.bf16 %v4544_v47, %v4536_v60  ;;  %v7774_v37 = vpack.c.bf16 %v4546_v0, %v4538_v61  ;;  %v4570_v60 = vld [vmem:[#allocation4 + $0x438] sm:$0xff] }
 0x980   :  { %v7768_v58 = vpack.c.bf16 %v4513_v55, %v4505_v50  ;;  %v4552_v50 = vld [vmem:[#allocation4 + $0x3a8] sm:$0xff]  ;;  %v4578_v47 = vld [vmem:[#allocation4 + $0x478] sm:$0xff] }
 0x981   :  { %7697 = vmatpush1.bf16.msra.mxu0 %v7696_v62  ;;  %7761 = vmatpush1.bf16.msra.mxu1 %v7760_v35  ;;  %v4519_v62 = vld [vmem:[#allocation4 + $0x2a0] sm:$0xff]  ;;  %v4560_v55 = vld [vmem:[#allocation4 + $0x3e8] sm:$0xff] }
 0x982   :  { %7699 = vmatprep.subr.bf16.mxu0 %v7698_v59  ;;  %7763 = vmatprep.subr.bf16.mxu1 %v7762_v56  ;;  %v4527_v35 = vld [vmem:[#allocation4 + $0x2e0] sm:$0xff]  ;;  %v4521_v59 = vld [vmem:[#allocation4 + $0x2b0] sm:$0xff] }
 0x983   :  { %v4529_v56 = vld [vmem:[#allocation4 + $0x2f0] sm:$0xff]  ;;  %v7708_v33 = vpack.c.bf16 %v4527_v35, %v4519_v62  ;;  %v7714_v62 = vpack.c.bf16 %v4560_v55, %v4552_v50  ;;  %v7778_v35 = vpack.c.bf16 %v4562_v49, %v4554_v53  ;;  %v4586_v50 = vld [vmem:[#allocation4 + $0x4b8] sm:$0xff] }
 0x984   :  { %v7772_v52 = vpack.c.bf16 %v4529_v56, %v4521_v59  ;;  %v4568_v59 = vld [vmem:[#allocation4 + $0x428] sm:$0xff]  ;;  %v4594_v55 = vld [vmem:[#allocation4 + $0x4f8] sm:$0xff] }
 0x985   :  { %7701 = vmatpush1.bf16.msra.mxu0 %v7700_v34  ;;  %7765 = vmatpush1.bf16.msra.mxu1 %v7764_v43  ;;  %v4535_v34 = vld [vmem:[#allocation4 + $0x320] sm:$0xff]  ;;  %v4576_v56 = vld [vmem:[#allocation4 + $0x468] sm:$0xff] }
 0x986   :  { %7703 = vmatprep.subr.bf16.mxu0 %v7702_v46  ;;  %7767 = vmatprep.subr.bf16.mxu1 %v7766_v51  ;;  %v4543_v43 = vld [vmem:[#allocation4 + $0x360] sm:$0xff]  ;;  %v4537_v46 = vld [vmem:[#allocation4 + $0x330] sm:$0xff] }
 0x987   :  { %v4545_v51 = vld [vmem:[#allocation4 + $0x370] sm:$0xff]  ;;  %v7712_v36 = vpack.c.bf16 %v4543_v43, %v4535_v34  ;;  %v7718_v34 = vpack.c.bf16 %v4576_v56, %v4568_v59  ;;  %v7782_v43 = vpack.c.bf16 %v4578_v47, %v4570_v60  ;;  %v4602_v59 = vld [vmem:[#allocation4 + $0x538] sm:$0xff] }
 0x988   :  { %v7776_v57 = vpack.c.bf16 %v4545_v51, %v4537_v46  ;;  %v4584_v46 = vld [vmem:[#allocation4 + $0x4a8] sm:$0xff]  ;;  %v4610_v56 = vld [vmem:[#allocation4 + $0x578] sm:$0xff] }
 0x989   :  { %7705 = vmatpush1.bf16.msra.mxu0 %v7704_v40  ;;  %7769 = vmatpush1.bf16.msra.mxu1 %v7768_v58  ;;  %v4551_v40 = vld [vmem:[#allocation4 + $0x3a0] sm:$0xff]  ;;  %v4592_v51 = vld [vmem:[#allocation4 + $0x4e8] sm:$0xff] }
 0x98a   :  { %7707 = vmatprep.subr.bf16.mxu0 %v7706_v41  ;;  %7771 = vmatprep.subr.bf16.mxu1 %v7770_v44  ;;  %v4559_v58 = vld [vmem:[#allocation4 + $0x3e0] sm:$0xff]  ;;  %v4553_v41 = vld [vmem:[#allocation4 + $0x3b0] sm:$0xff] }
 0x98b   :  { %v4561_v44 = vld [vmem:[#allocation4 + $0x3f0] sm:$0xff]  ;;  %v7716_v61 = vpack.c.bf16 %v4559_v58, %v4551_v40  ;;  %v7722_v40 = vpack.c.bf16 %v4592_v51, %v4584_v46  ;;  %v7786_v58 = vpack.c.bf16 %v4594_v55, %v4586_v50  ;;  %v4618_v46 = vld [vmem:[#allocation4 + $0x5b8] sm:$0xff] }
 0x98c   :  { %v7780_v0 = vpack.c.bf16 %v4561_v44, %v4553_v41  ;;  %v4600_v41 = vld [vmem:[#allocation4 + $0x528] sm:$0xff]  ;;  %v4626_v51 = vld [vmem:[#allocation4 + $0x5f8] sm:$0xff] }
 0x98d   :  { %7709 = vmatpush1.bf16.msra.mxu0 %v7708_v33  ;;  %7773 = vmatpush1.bf16.msra.mxu1 %v7772_v52  ;;  %v4567_v33 = vld [vmem:[#allocation4 + $0x420] sm:$0xff]  ;;  %v4608_v44 = vld [vmem:[#allocation4 + $0x568] sm:$0xff] }
 0x98e   :  { %7711 = vmatprep.subr.bf16.mxu0 %v7710_v38  ;;  %7775 = vmatprep.subr.bf16.mxu1 %v7774_v37  ;;  %v4575_v52 = vld [vmem:[#allocation4 + $0x460] sm:$0xff]  ;;  %v4569_v38 = vld [vmem:[#allocation4 + $0x430] sm:$0xff] }
 0x98f   :  { %v4577_v37 = vld [vmem:[#allocation4 + $0x470] sm:$0xff]  ;;  %v7720_v53 = vpack.c.bf16 %v4575_v52, %v4567_v33  ;;  %v7726_v33 = vpack.c.bf16 %v4608_v44, %v4600_v41  ;;  %v7790_v52 = vpack.c.bf16 %v4610_v56, %v4602_v59  ;;  %v4634_v41 = vld [vmem:[#allocation4 + $0x638] sm:$0xff] }
 0x990   :  { %v7784_v49 = vpack.c.bf16 %v4577_v37, %v4569_v38  ;;  %v4616_v38 = vld [vmem:[#allocation4 + $0x5a8] sm:$0xff]  ;;  %v4642_v44 = vld [vmem:[#allocation4 + $0x678] sm:$0xff] }
 0x991   :  { %7713 = vmatpush1.bf16.msra.mxu0 %v7712_v36  ;;  %7777 = vmatpush1.bf16.msra.mxu1 %v7776_v57  ;;  %v4583_v36 = vld [vmem:[#allocation4 + $0x4a0] sm:$0xff]  ;;  %v4624_v37 = vld [vmem:[#allocation4 + $0x5e8] sm:$0xff] }
 0x992   :  { %7715 = vmatprep.subr.bf16.mxu0 %v7714_v62  ;;  %7779 = vmatprep.subr.bf16.mxu1 %v7778_v35  ;;  %v4591_v57 = vld [vmem:[#allocation4 + $0x4e0] sm:$0xff]  ;;  %v4585_v62 = vld [vmem:[#allocation4 + $0x4b0] sm:$0xff] }
 0x993   :  { %v4593_v35 = vld [vmem:[#allocation4 + $0x4f0] sm:$0xff]  ;;  %v7724_v60 = vpack.c.bf16 %v4591_v57, %v4583_v36  ;;  %v7730_v36 = vpack.c.bf16 %v4624_v37, %v4616_v38  ;;  %v7794_v57 = vpack.c.bf16 %v4626_v51, %v4618_v46  ;;  %v4650_v38 = vld [vmem:[#allocation4 + $0x6b8] sm:$0xff] }
 0x994   :  { %v7788_v47 = vpack.c.bf16 %v4593_v35, %v4585_v62  ;;  %v4632_v62 = vld [vmem:[#allocation4 + $0x628] sm:$0xff]  ;;  %v4658_v37 = vld [vmem:[#allocation4 + $0x6f8] sm:$0xff] }
 0x995   :  { %7717 = vmatpush1.bf16.msra.mxu0 %v7716_v61  ;;  %7781 = vmatpush1.bf16.msra.mxu1 %v7780_v0  ;;  %v4599_v61 = vld [vmem:[#allocation4 + $0x520] sm:$0xff]  ;;  %v4640_v35 = vld [vmem:[#allocation4 + $0x668] sm:$0xff] }
 0x996   :  { %7719 = vmatprep.subr.bf16.mxu0 %v7718_v34  ;;  %7783 = vmatprep.subr.bf16.mxu1 %v7782_v43  ;;  %v4607_v0 = vld [vmem:[#allocation4 + $0x560] sm:$0xff]  ;;  %v4601_v34 = vld [vmem:[#allocation4 + $0x530] sm:$0xff] }
 0x997   :  { %v4609_v43 = vld [vmem:[#allocation4 + $0x570] sm:$0xff]  ;;  %v7728_v50 = vpack.c.bf16 %v4607_v0, %v4599_v61  ;;  %v7734_v61 = vpack.c.bf16 %v4640_v35, %v4632_v62  ;;  %v7798_v0 = vpack.c.bf16 %v4642_v44, %v4634_v41  ;;  %v4666_v62 = vld [vmem:[#allocation4 + $0x738] sm:$0xff] }
 0x998   :  { %v7792_v55 = vpack.c.bf16 %v4609_v43, %v4601_v34  ;;  %v4648_v34 = vld [vmem:[#allocation4 + $0x6a8] sm:$0xff]  ;;  %v4674_v35 = vld [vmem:[#allocation4 + $0x778] sm:$0xff] }
 0x999   :  { %7721 = vmatpush1.bf16.msra.mxu0 %v7720_v53  ;;  %7785 = vmatpush1.bf16.msra.mxu1 %v7784_v49  ;;  %v4615_v53 = vld [vmem:[#allocation4 + $0x5a0] sm:$0xff]  ;;  %v4656_v43 = vld [vmem:[#allocation4 + $0x6e8] sm:$0xff] }
 0x99a   :  { %7723 = vmatprep.subr.bf16.mxu0 %v7722_v40  ;;  %7787 = vmatprep.subr.bf16.mxu1 %v7786_v58  ;;  %v4623_v49 = vld [vmem:[#allocation4 + $0x5e0] sm:$0xff]  ;;  %v4617_v40 = vld [vmem:[#allocation4 + $0x5b0] sm:$0xff] }
 0x99b   :  { %v4625_v58 = vld [vmem:[#allocation4 + $0x5f0] sm:$0xff]  ;;  %v7732_v59 = vpack.c.bf16 %v4623_v49, %v4615_v53  ;;  %v7738_v53 = vpack.c.bf16 %v4656_v43, %v4648_v34  ;;  %v7802_v49 = vpack.c.bf16 %v4658_v37, %v4650_v38  ;;  %v4682_v34 = vld [vmem:[#allocation4 + $0x7b8] sm:$0xff] }
 0x99c   :  { %v7796_v56 = vpack.c.bf16 %v4625_v58, %v4617_v40  ;;  %v4664_v40 = vld [vmem:[#allocation4 + $0x728] sm:$0xff]  ;;  %v4690_v43 = vld [vmem:[#allocation4 + $0x7f8] sm:$0xff] }
 0x99d   :  { %7725 = vmatpush1.bf16.msra.mxu0 %v7724_v60  ;;  %7789 = vmatpush1.bf16.msra.mxu1 %v7788_v47  ;;  %v4631_v60 = vld [vmem:[#allocation4 + $0x620] sm:$0xff]  ;;  %v4672_v58 = vld [vmem:[#allocation4 + $0x768] sm:$0xff] }
 0x99e   :  { %7727 = vmatprep.subr.bf16.mxu0 %v7726_v33  ;;  %7791 = vmatprep.subr.bf16.mxu1 %v7790_v52  ;;  %v4639_v47 = vld [vmem:[#allocation4 + $0x660] sm:$0xff]  ;;  %v4633_v33 = vld [vmem:[#allocation4 + $0x630] sm:$0xff] }
 0x99f   :  { %v4641_v52 = vld [vmem:[#allocation4 + $0x670] sm:$0xff]  ;;  %v7736_v46 = vpack.c.bf16 %v4639_v47, %v4631_v60  ;;  %v7742_v60 = vpack.c.bf16 %v4672_v58, %v4664_v40  ;;  %v7806_v47 = vpack.c.bf16 %v4674_v35, %v4666_v62  ;;  %v5073_v40 = vld [vmem:[#allocation4 + $0x8] sm:$0xff]  ;;  %v5075_v62 = vld [vmem:[#allocation4 + $0x18] sm:$0xff] }
 0x9a0   :  { %v7800_v51 = vpack.c.bf16 %v4641_v52, %v4633_v33  ;;  %v4680_v33 = vld [vmem:[#allocation4 + $0x7a8] sm:$0xff] }
 0x9a1   :  { %7729 = vmatpush1.bf16.msra.mxu0 %v7728_v50  ;;  %7793 = vmatpush1.bf16.msra.mxu1 %v7792_v55  ;;  %v4647_v50 = vld [vmem:[#allocation4 + $0x6a0] sm:$0xff]  ;;  %v4688_v52 = vld [vmem:[#allocation4 + $0x7e8] sm:$0xff] }
 0x9a2   :  { %7731 = vmatprep.subr.bf16.mxu0 %v7730_v36  ;;  %7795 = vmatprep.subr.bf16.mxu1 %v7794_v57  ;;  %v4655_v55 = vld [vmem:[#allocation4 + $0x6e0] sm:$0xff]  ;;  %v4649_v36 = vld [vmem:[#allocation4 + $0x6b0] sm:$0xff]  ;;  %v5081_v58 = vld [vmem:[#allocation4 + $0x48] sm:$0xff] }
 0x9a3   :  { %v4657_v57 = vld [vmem:[#allocation4 + $0x6f0] sm:$0xff]  ;;  %v7740_v41 = vpack.c.bf16 %v4655_v55, %v4647_v50  ;;  %v7810_v50 = vpack.c.bf16 %v4690_v43, %v4682_v34  ;;  %v4687_v55 = vld [vmem:[#allocation4 + $0x7e0] sm:$0xff]  ;;  %v7814_v35 = vpack.c.bf16 %v5081_v58, %v5073_v40  ;;  %v5091_v34 = vld [vmem:[#allocation4 + $0x98] sm:$0xff] }
 0x9a4   :  { %v7804_v44 = vpack.c.bf16 %v4657_v57, %v4649_v36  ;;  %v5099_v43 = vld [vmem:[#allocation4 + $0xd8] sm:$0xff] }
 0x9a5   :  { %7733 = vmatpush1.bf16.msra.mxu0 %v7732_v59  ;;  %7797 = vmatpush1.bf16.msra.mxu1 %v7796_v56  ;;  %v4663_v59 = vld [vmem:[#allocation4 + $0x720] sm:$0xff]  ;;  %v5115_v58 = vld [vmem:[#allocation4 + $0x158] sm:$0xff] }
 0x9a6   :  { %7735 = vmatprep.subr.bf16.mxu0 %v7734_v61  ;;  %7799 = vmatprep.subr.bf16.mxu1 %v7798_v0  ;;  %v4671_v56 = vld [vmem:[#allocation4 + $0x760] sm:$0xff]  ;;  %v4665_v61 = vld [vmem:[#allocation4 + $0x730] sm:$0xff] }
 0x9a7   :  { %v4673_v0 = vld [vmem:[#allocation4 + $0x770] sm:$0xff]  ;;  %v7744_v38 = vpack.c.bf16 %v4671_v56, %v4663_v59  ;;  %v5080_v59 = vld [vmem:[#allocation4 + $0x40] sm:$0xff] }
 0x9a8   :  { %v7808_v37 = vpack.c.bf16 %v4673_v0, %v4665_v61  ;;  %v5082_v61 = vld [vmem:[#allocation4 + $0x50] sm:$0xff] }
 0x9a9   :  { %7737 = vmatpush1.bf16.msra.mxu0 %v7736_v46  ;;  %7801 = vmatpush1.bf16.msra.mxu1 %v7800_v51  ;;  %v4679_v46 = vld [vmem:[#allocation4 + $0x7a0] sm:$0xff]  ;;  %v7746_v51 = vpack.c.bf16 %v4688_v52, %v4680_v33  ;;  %v5089_v33 = vld [vmem:[#allocation4 + $0x88] sm:$0xff] }
 0x9aa   :  { %7739 = vmatprep.subr.bf16.mxu0 %v7738_v53  ;;  %7803 = vmatprep.subr.bf16.mxu1 %v7802_v49  ;;  %v4681_v53 = vld [vmem:[#allocation4 + $0x7b0] sm:$0xff]  ;;  %v7748_v36 = vpack.c.bf16 %v4687_v55, %v4679_v46  ;;  %v5097_v52 = vld [vmem:[#allocation4 + $0xc8] sm:$0xff]  ;;  %v7882_v46 = vpack.c.bf16 %v5099_v43, %v5091_v34  ;;  %v5120_v34 = vld [vmem:[#allocation4 + $0x180] sm:$0xff] }
 0x9ab   :  { %v4689_v49 = vld [vmem:[#allocation4 + $0x7f0] sm:$0xff] }
 0x9ac   :  { %v7812_v57 = vpack.c.bf16 %v4689_v49, %v4681_v53  ;;  %v5098_v55 = vld [vmem:[#allocation4 + $0xd0] sm:$0xff]  ;;  %v5105_v49 = vld [vmem:[#allocation4 + $0x108] sm:$0xff] }
 0x9ad   :  { %7741 = vmatpush1.bf16.msra.mxu0 %v7740_v41  ;;  %7805 = vmatpush1.bf16.msra.mxu1 %v7804_v44  ;;  %v5083_v41 = vld [vmem:[#allocation4 + $0x58] sm:$0xff]  ;;  %v5072_v44 = vld [vmem:[#allocation4] sm:$0xff] }
 0x9ae   :  { %7743 = vmatprep.subr.bf16.mxu0 %v7742_v60  ;;  %7807 = vmatprep.subr.bf16.mxu1 %v7806_v47  ;;  %v7878_v56 = vpack.c.bf16 %v5083_v41, %v5075_v62  ;;  %v7816_v60 = vpack.c.bf16 %v5080_v59, %v5072_v44  ;;  %v5074_v47 = vld [vmem:[#allocation4 + $0x10] sm:$0xff]  ;;  %v5104_v62 = vld [vmem:[#allocation4 + $0x100] sm:$0xff] }
 0x9af   :  { %v7880_v0 = vpack.c.bf16 %v5082_v61, %v5074_v47  ;;  %v5106_v59 = vld [vmem:[#allocation4 + $0x110] sm:$0xff]  ;;  %v5121_v47 = vld [vmem:[#allocation4 + $0x188] sm:$0xff] }
 0x9b0   :  { %v5129_v61 = vld [vmem:[#allocation4 + $0x1c8] sm:$0xff] }
 0x9b1   :  { %7745 = vmatpush1.bf16.msra.mxu0 %v7744_v38  ;;  %7809 = vmatpush1.bf16.msra.mxu1 %v7808_v37  ;;  %v5088_v38 = vld [vmem:[#allocation4 + $0x80] sm:$0xff] }
 0x9b2   :  { %7747 = vmatprep.subr.bf16.mxu0 %v7746_v51  ;;  %7811 = vmatprep.subr.bf16.mxu1 %v7810_v50  ;;  %v5096_v37 = vld [vmem:[#allocation4 + $0xc0] sm:$0xff]  ;;  %v5090_v50 = vld [vmem:[#allocation4 + $0x90] sm:$0xff] }
 0x9b3   :  { %v7820_v51 = vpack.c.bf16 %v5096_v37, %v5088_v38  ;;  %v7884_v53 = vpack.c.bf16 %v5098_v55, %v5090_v50  ;;  %v5122_v37 = vld [vmem:[#allocation4 + $0x190] sm:$0xff]  ;;  %v5137_v50 = vld [vmem:[#allocation4 + $0x208] sm:$0xff] }
 0x9b4   :  { %v5145_v55 = vld [vmem:[#allocation4 + $0x248] sm:$0xff] }
 0x9b5   :  { %7749 = vmatpush1.bf16.msra.mxu0 %v7748_v36  ;;  %7813 = vmatpush1.bf16.msra.mxu1 %v7812_v57  ;;  %v5113_v36 = vld [vmem:[#allocation4 + $0x148] sm:$0xff]  ;;  %v5107_v57 = vld [vmem:[#allocation4 + $0x118] sm:$0xff] }
 0x9b6   :  { %7815 = vmatprep.subr.bf16.mxu0 %v7814_v35  ;;  %7879 = vmatprep.subr.bf16.mxu1 %v7878_v56  ;;  %v7822_v40 = vpack.c.bf16 %v5113_v36, %v5105_v49  ;;  %v5112_v35 = vld [vmem:[#allocation4 + $0x140] sm:$0xff]  ;;  %v7886_v41 = vpack.c.bf16 %v5115_v58, %v5107_v57  ;;  %v5114_v56 = vld [vmem:[#allocation4 + $0x150] sm:$0xff]  ;;  %v7830_v49 = vpack.c.bf16 %v5145_v55, %v5137_v50  ;;  %v5147_v36 = vld [vmem:[#allocation4 + $0x258] sm:$0xff] }
 0x9b7   :  { %v7824_v44 = vpack.c.bf16 %v5112_v35, %v5104_v62  ;;  %v5136_v57 = vld [vmem:[#allocation4 + $0x200] sm:$0xff]  ;;  %v5138_v35 = vld [vmem:[#allocation4 + $0x210] sm:$0xff]  ;;  %v5179_v55 = vld [vmem:[#allocation4 + $0x358] sm:$0xff] }
 0x9b8   :  { %4909 = vmatmul.mubr.f32.vlgmr.msra.gmra.mrb[30].mxu0 %v8612_v39  ;;  %4980 = vmatmul.mubr.f32.vlgmr.msra.gmra.mrb[30].mxu1 %v8612_v39  ;;  %v7818_v39 = vpack.c.bf16 %v5097_v52, %v5089_v33  ;;  %v7826_v33 = vpack.c.bf16 %v5129_v61, %v5121_v47  ;;  %v5131_v52 = vld [vmem:[#allocation4 + $0x1d8] sm:$0xff] }
 0x9b9   :  { %7817 = vmatpush1.bf16.msra.mxu0 %v7816_v60  ;;  %7881 = vmatpush1.bf16.msra.mxu1 %v7880_v0  ;;  %v7888_v60 = vpack.c.bf16 %v5114_v56, %v5106_v59  ;;  %v5123_v0 = vld [vmem:[#allocation4 + $0x198] sm:$0xff]  ;;  %v5153_v59 = vld [vmem:[#allocation4 + $0x288] sm:$0xff] }
 0x9ba   :  { %7819 = vmatprep.subr.bf16.mxu0 %v7818_v39  ;;  %7883 = vmatprep.subr.bf16.mxu1 %v7882_v46  ;;  %v5128_v39 = vld [vmem:[#allocation4 + $0x1c0] sm:$0xff]  ;;  %v7890_v43 = vpack.c.bf16 %v5131_v52, %v5123_v0  ;;  %v5130_v46 = vld [vmem:[#allocation4 + $0x1d0] sm:$0xff]  ;;  %v5161_v56 = vld [vmem:[#allocation4 + $0x2c8] sm:$0xff] }
 0x9bb   :  { %v7828_v38 = vpack.c.bf16 %v5128_v39, %v5120_v34  ;;  %v7834_v47 = vpack.c.bf16 %v5161_v56, %v5153_v59  ;;  %v5163_v61 = vld [vmem:[#allocation4 + $0x2d8] sm:$0xff]  ;;  %v5152_v0 = vld [vmem:[#allocation4 + $0x280] sm:$0xff]  ;;  %v5154_v39 = vld [vmem:[#allocation4 + $0x290] sm:$0xff] }
 0x9bc   :  { %v5195_v56 = vld [vmem:[#allocation4 + $0x3d8] sm:$0xff] }
 0x9bd   :  { %7821 = vmatpush1.bf16.msra.mxu0 %v7820_v51  ;;  %7885 = vmatpush1.bf16.msra.mxu1 %v7884_v53  ;;  %v7892_v51 = vpack.c.bf16 %v5130_v46, %v5122_v37  ;;  %v5139_v53 = vld [vmem:[#allocation4 + $0x218] sm:$0xff]  ;;  %v5169_v37 = vld [vmem:[#allocation4 + $0x308] sm:$0xff] }
 0x9be   :  { %7823 = vmatprep.subr.bf16.mxu0 %v7822_v40  ;;  %7887 = vmatprep.subr.bf16.mxu1 %v7886_v41  ;;  %v5144_v40 = vld [vmem:[#allocation4 + $0x240] sm:$0xff]  ;;  %v7894_v58 = vpack.c.bf16 %v5147_v36, %v5139_v53  ;;  %v5146_v41 = vld [vmem:[#allocation4 + $0x250] sm:$0xff]  ;;  %v5177_v46 = vld [vmem:[#allocation4 + $0x348] sm:$0xff] }
 0x9bf   :  { %v7832_v62 = vpack.c.bf16 %v5144_v40, %v5136_v57  ;;  %v7838_v50 = vpack.c.bf16 %v5177_v46, %v5169_v37  ;;  %v5168_v53 = vld [vmem:[#allocation4 + $0x300] sm:$0xff]  ;;  %v5170_v40 = vld [vmem:[#allocation4 + $0x310] sm:$0xff]  ;;  %v5211_v46 = vld [vmem:[#allocation4 + $0x458] sm:$0xff] }
 0x9c1   :  { %7825 = vmatpush1.bf16.msra.mxu0 %v7824_v44  ;;  %7889 = vmatpush1.bf16.msra.mxu1 %v7888_v60  ;;  %v7896_v44 = vpack.c.bf16 %v5146_v41, %v5138_v35  ;;  %v5155_v60 = vld [vmem:[#allocation4 + $0x298] sm:$0xff]  ;;  %v5185_v35 = vld [vmem:[#allocation4 + $0x388] sm:$0xff] }
 0x9c2   :  { %7827 = vmatprep.subr.bf16.mxu0 %v7826_v33  ;;  %7891 = vmatprep.subr.bf16.mxu1 %v7890_v43  ;;  %v5160_v33 = vld [vmem:[#allocation4 + $0x2c0] sm:$0xff]  ;;  %v7898_v52 = vpack.c.bf16 %v5163_v61, %v5155_v60  ;;  %v5162_v43 = vld [vmem:[#allocation4 + $0x2d0] sm:$0xff]  ;;  %v5193_v41 = vld [vmem:[#allocation4 + $0x3c8] sm:$0xff] }
 0x9c3   :  { %v7836_v34 = vpack.c.bf16 %v5160_v33, %v5152_v0  ;;  %v7842_v59 = vpack.c.bf16 %v5193_v41, %v5185_v35  ;;  %v5184_v60 = vld [vmem:[#allocation4 + $0x380] sm:$0xff]  ;;  %v5186_v33 = vld [vmem:[#allocation4 + $0x390] sm:$0xff]  ;;  %v5227_v41 = vld [vmem:[#allocation4 + $0x4d8] sm:$0xff] }
 0x9c5   :  { %7829 = vmatpush1.bf16.msra.mxu0 %v7828_v38  ;;  %7893 = vmatpush1.bf16.msra.mxu1 %v7892_v51  ;;  %v7900_v38 = vpack.c.bf16 %v5162_v43, %v5154_v39  ;;  %v5171_v51 = vld [vmem:[#allocation4 + $0x318] sm:$0xff]  ;;  %v5201_v39 = vld [vmem:[#allocation4 + $0x408] sm:$0xff] }
 0x9c6   :  { %7831 = vmatprep.subr.bf16.mxu0 %v7830_v49  ;;  %7895 = vmatprep.subr.bf16.mxu1 %v7894_v58  ;;  %v5176_v49 = vld [vmem:[#allocation4 + $0x340] sm:$0xff]  ;;  %v7902_v36 = vpack.c.bf16 %v5179_v55, %v5171_v51  ;;  %v5178_v58 = vld [vmem:[#allocation4 + $0x350] sm:$0xff]  ;;  %v5209_v43 = vld [vmem:[#allocation4 + $0x448] sm:$0xff] }
 0x9c7   :  { %v7840_v57 = vpack.c.bf16 %v5176_v49, %v5168_v53  ;;  %v7846_v37 = vpack.c.bf16 %v5209_v43, %v5201_v39  ;;  %v5200_v51 = vld [vmem:[#allocation4 + $0x400] sm:$0xff]  ;;  %v5202_v49 = vld [vmem:[#allocation4 + $0x410] sm:$0xff]  ;;  %v5243_v43 = vld [vmem:[#allocation4 + $0x558] sm:$0xff] }
 0x9c9   :  { %7833 = vmatpush1.bf16.msra.mxu0 %v7832_v62  ;;  %7897 = vmatpush1.bf16.msra.mxu1 %v7896_v44  ;;  %v7904_v62 = vpack.c.bf16 %v5178_v58, %v5170_v40  ;;  %v5187_v44 = vld [vmem:[#allocation4 + $0x398] sm:$0xff]  ;;  %v5217_v40 = vld [vmem:[#allocation4 + $0x488] sm:$0xff] }
 0x9ca   :  { %7835 = vmatprep.subr.bf16.mxu0 %v7834_v47  ;;  %7899 = vmatprep.subr.bf16.mxu1 %v7898_v52  ;;  %v5192_v47 = vld [vmem:[#allocation4 + $0x3c0] sm:$0xff]  ;;  %v7906_v61 = vpack.c.bf16 %v5195_v56, %v5187_v44  ;;  %v5194_v52 = vld [vmem:[#allocation4 + $0x3d0] sm:$0xff]  ;;  %v5225_v58 = vld [vmem:[#allocation4 + $0x4c8] sm:$0xff] }
 0x9cb   :  { %v7844_v0 = vpack.c.bf16 %v5192_v47, %v5184_v60  ;;  %v7850_v35 = vpack.c.bf16 %v5225_v58, %v5217_v40  ;;  %v5216_v44 = vld [vmem:[#allocation4 + $0x480] sm:$0xff]  ;;  %v5218_v47 = vld [vmem:[#allocation4 + $0x490] sm:$0xff]  ;;  %v5259_v58 = vld [vmem:[#allocation4 + $0x5d8] sm:$0xff] }
 0x9cd   :  { %7837 = vmatpush1.bf16.msra.mxu0 %v7836_v34  ;;  %7901 = vmatpush1.bf16.msra.mxu1 %v7900_v38  ;;  %v7908_v34 = vpack.c.bf16 %v5194_v52, %v5186_v33  ;;  %v5203_v38 = vld [vmem:[#allocation4 + $0x418] sm:$0xff]  ;;  %v5233_v33 = vld [vmem:[#allocation4 + $0x508] sm:$0xff] }
 0x9ce   :  { %7839 = vmatprep.subr.bf16.mxu0 %v7838_v50  ;;  %7903 = vmatprep.subr.bf16.mxu1 %v7902_v36  ;;  %v5208_v50 = vld [vmem:[#allocation4 + $0x440] sm:$0xff]  ;;  %v7910_v55 = vpack.c.bf16 %v5211_v46, %v5203_v38  ;;  %v5210_v36 = vld [vmem:[#allocation4 + $0x450] sm:$0xff]  ;;  %v5241_v52 = vld [vmem:[#allocation4 + $0x548] sm:$0xff] }
 0x9cf   :  { %v7848_v53 = vpack.c.bf16 %v5208_v50, %v5200_v51  ;;  %v7854_v39 = vpack.c.bf16 %v5241_v52, %v5233_v33  ;;  %v5232_v38 = vld [vmem:[#allocation4 + $0x500] sm:$0xff]  ;;  %v5234_v50 = vld [vmem:[#allocation4 + $0x510] sm:$0xff]  ;;  %v5275_v33 = vld [vmem:[#allocation4 + $0x658] sm:$0xff] }
 0x9d1   :  { %7841 = vmatpush1.bf16.msra.mxu0 %v7840_v57  ;;  %7905 = vmatpush1.bf16.msra.mxu1 %v7904_v62  ;;  %v7912_v57 = vpack.c.bf16 %v5210_v36, %v5202_v49  ;;  %v5219_v62 = vld [vmem:[#allocation4 + $0x498] sm:$0xff]  ;;  %v5249_v49 = vld [vmem:[#allocation4 + $0x588] sm:$0xff] }
 0x9d2   :  { %7843 = vmatprep.subr.bf16.mxu0 %v7842_v59  ;;  %7907 = vmatprep.subr.bf16.mxu1 %v7906_v61  ;;  %v5224_v59 = vld [vmem:[#allocation4 + $0x4c0] sm:$0xff]  ;;  %v7914_v56 = vpack.c.bf16 %v5227_v41, %v5219_v62  ;;  %v5226_v61 = vld [vmem:[#allocation4 + $0x4d0] sm:$0xff]  ;;  %v5257_v36 = vld [vmem:[#allocation4 + $0x5c8] sm:$0xff] }
 0x9d3   :  { %v7852_v60 = vpack.c.bf16 %v5224_v59, %v5216_v44  ;;  %v7858_v40 = vpack.c.bf16 %v5257_v36, %v5249_v49  ;;  %v5248_v62 = vld [vmem:[#allocation4 + $0x580] sm:$0xff]  ;;  %v5250_v59 = vld [vmem:[#allocation4 + $0x590] sm:$0xff]  ;;  %v5283_v49 = vld [vmem:[#allocation4 + $0x698] sm:$0xff] }
 0x9d4   :  { %v5291_v36 = vld [vmem:[#allocation4 + $0x6d8] sm:$0xff] }
 0x9d5   :  { %7845 = vmatpush1.bf16.msra.mxu0 %v7844_v0  ;;  %7909 = vmatpush1.bf16.msra.mxu1 %v7908_v34  ;;  %v7916_v0 = vpack.c.bf16 %v5226_v61, %v5218_v47  ;;  %v5235_v34 = vld [vmem:[#allocation4 + $0x518] sm:$0xff]  ;;  %v5273_v61 = vld [vmem:[#allocation4 + $0x648] sm:$0xff] }
 0x9d6   :  { %7847 = vmatprep.subr.bf16.mxu0 %v7846_v37  ;;  %7911 = vmatprep.subr.bf16.mxu1 %v7910_v55  ;;  %v5240_v37 = vld [vmem:[#allocation4 + $0x540] sm:$0xff]  ;;  %v7918_v46 = vpack.c.bf16 %v5243_v43, %v5235_v34  ;;  %v5242_v55 = vld [vmem:[#allocation4 + $0x550] sm:$0xff] }
 0x9d7   :  { %v7856_v51 = vpack.c.bf16 %v5240_v37, %v5232_v38  ;;  %v5272_v43 = vld [vmem:[#allocation4 + $0x640] sm:$0xff]  ;;  %v5266_v38 = vld [vmem:[#allocation4 + $0x610] sm:$0xff] }
 0x9d9   :  { %7849 = vmatpush1.bf16.msra.mxu0 %v7848_v53  ;;  %7913 = vmatpush1.bf16.msra.mxu1 %v7912_v57  ;;  %v7920_v53 = vpack.c.bf16 %v5242_v55, %v5234_v50  ;;  %v5251_v57 = vld [vmem:[#allocation4 + $0x598] sm:$0xff]  ;;  %v5289_v50 = vld [vmem:[#allocation4 + $0x6c8] sm:$0xff] }
 0x9da   :  { %7851 = vmatprep.subr.bf16.mxu0 %v7850_v35  ;;  %7915 = vmatprep.subr.bf16.mxu1 %v7914_v56  ;;  %v5256_v35 = vld [vmem:[#allocation4 + $0x5c0] sm:$0xff]  ;;  %v7922_v41 = vpack.c.bf16 %v5259_v58, %v5251_v57  ;;  %v5258_v56 = vld [vmem:[#allocation4 + $0x5d0] sm:$0xff] }
 0x9db   :  { %v7860_v44 = vpack.c.bf16 %v5256_v35, %v5248_v62  ;;  %v7924_v47 = vpack.c.bf16 %v5258_v56, %v5250_v59  ;;  %v5280_v57 = vld [vmem:[#allocation4 + $0x680] sm:$0xff]  ;;  %v5282_v62 = vld [vmem:[#allocation4 + $0x690] sm:$0xff]  ;;  %v5305_v59 = vld [vmem:[#allocation4 + $0x748] sm:$0xff] }
 0x9dc   :  { %v5288_v58 = vld [vmem:[#allocation4 + $0x6c0] sm:$0xff]  ;;  %v5290_v35 = vld [vmem:[#allocation4 + $0x6d0] sm:$0xff]  ;;  %v5299_v56 = vld [vmem:[#allocation4 + $0x718] sm:$0xff] }
 0x9dd   :  { %7853 = vmatpush1.bf16.msra.mxu0 %v7852_v60  ;;  %7917 = vmatpush1.bf16.msra.mxu1 %v7916_v0  ;;  %v5265_v60 = vld [vmem:[#allocation4 + $0x608] sm:$0xff]  ;;  %v5267_v0 = vld [vmem:[#allocation4 + $0x618] sm:$0xff] }
 0x9de   :  { %7855 = vmatprep.subr.bf16.mxu0 %v7854_v39  ;;  %7919 = vmatprep.subr.bf16.mxu1 %v7918_v46  ;;  %v7862_v52 = vpack.c.bf16 %v5273_v61, %v5265_v60  ;;  %v7926_v34 = vpack.c.bf16 %v5275_v33, %v5267_v0  ;;  %v5264_v39 = vld [vmem:[#allocation4 + $0x600] sm:$0xff]  ;;  %v5274_v46 = vld [vmem:[#allocation4 + $0x650] sm:$0xff]  ;;  %v5307_v60 = vld [vmem:[#allocation4 + $0x758] sm:$0xff] }
 0x9df   :  { %v7864_v37 = vpack.c.bf16 %v5272_v43, %v5264_v39  ;;  %v7928_v55 = vpack.c.bf16 %v5274_v46, %v5266_v38  ;;  %v5296_v0 = vld [vmem:[#allocation4 + $0x700] sm:$0xff]  ;;  %v7934_v39 = vpack.c.bf16 %v5307_v60, %v5299_v56  ;;  %v5313_v43 = vld [vmem:[#allocation4 + $0x788] sm:$0xff]  ;;  %v5315_v46 = vld [vmem:[#allocation4 + $0x798] sm:$0xff] }
 0x9e0   :  { %v5304_v33 = vld [vmem:[#allocation4 + $0x740] sm:$0xff]  ;;  %v5321_v38 = vld [vmem:[#allocation4 + $0x7c8] sm:$0xff] }
 0x9e1   :  { %7857 = vmatpush1.bf16.msra.mxu0 %v7856_v51  ;;  %7921 = vmatpush1.bf16.msra.mxu1 %v7920_v53  ;;  %v5281_v51 = vld [vmem:[#allocation4 + $0x688] sm:$0xff] }
 0x9e2   :  { %7859 = vmatprep.subr.bf16.mxu0 %v7858_v40  ;;  %7923 = vmatprep.subr.bf16.mxu1 %v7922_v41  ;;  %v7866_v53 = vpack.c.bf16 %v5289_v50, %v5281_v51  ;;  %v7930_v40 = vpack.c.bf16 %v5291_v36, %v5283_v49  ;;  %v5297_v41 = vld [vmem:[#allocation4 + $0x708] sm:$0xff]  ;;  %v5323_v51 = vld [vmem:[#allocation4 + $0x7d8] sm:$0xff]  ;;  %v7872_v50 = vpack.c.bf16 %v5304_v33, %v5296_v0 }
 0x9e3   :  { %v7870_v61 = vpack.c.bf16 %v5305_v59, %v5297_v41  ;;  %v7874_v49 = vpack.c.bf16 %v5321_v38, %v5313_v43  ;;  %v7938_v36 = vpack.c.bf16 %v5323_v51, %v5315_v46  ;;  %v5085_v41 = vld [vmem:[#allocation4 + $0x68] sm:$0xff]  ;;  %v5079_v59 = vld [vmem:[#allocation4 + $0x38] sm:$0xff] }
 0x9e5   :  { %7861 = vmatpush1.bf16.msra.mxu0 %v7860_v44  ;;  %7925 = vmatpush1.bf16.msra.mxu1 %v7924_v47  ;;  %v7868_v44 = vpack.c.bf16 %v5288_v58, %v5280_v57  ;;  %v7932_v47 = vpack.c.bf16 %v5290_v35, %v5282_v62  ;;  %v5314_v57 = vld [vmem:[#allocation4 + $0x790] sm:$0xff]  ;;  %v5077_v35 = vld [vmem:[#allocation4 + $0x28] sm:$0xff] }
 0x9e6   :  { %7863 = vmatprep.subr.bf16.mxu0 %v7862_v52  ;;  %7927 = vmatprep.subr.bf16.mxu1 %v7926_v34  ;;  %v5298_v52 = vld [vmem:[#allocation4 + $0x710] sm:$0xff]  ;;  %v7942_v56 = vpack.c.bf16 %v5085_v41, %v5077_v35 }
 0x9e7   :  { %v5306_v34 = vld [vmem:[#allocation4 + $0x750] sm:$0xff] }
 0x9e8   :  { %v5322_v58 = vld [vmem:[#allocation4 + $0x7d0] sm:$0xff] }
 0x9e9   :  { %7865 = vmatpush1.bf16.msra.mxu0 %v7864_v37  ;;  %7929 = vmatpush1.bf16.msra.mxu1 %v7928_v55  ;;  %v7936_v37 = vpack.c.bf16 %v5306_v34, %v5298_v52  ;;  %v5312_v55 = vld [vmem:[#allocation4 + $0x780] sm:$0xff]  ;;  %v7940_v62 = vpack.c.bf16 %v5322_v58, %v5314_v57 }
 0x9ea   :  { %7867 = vmatprep.subr.bf16.mxu0 %v7866_v53  ;;  %7931 = vmatprep.subr.bf16.mxu1 %v7930_v40  ;;  %v5320_v53 = vld [vmem:[#allocation4 + $0x7c0] sm:$0xff] }
 0x9eb   :  { %v7876_v40 = vpack.c.bf16 %v5320_v53, %v5312_v55  ;;  %v4432_v57 = vld [vmem:[#allocation2 + $0x6] ss:$8 sm:$0xf] }
 0x9ec   :  { %v4433_v58 = vld [vmem:[#allocation2 + $0x6] ss:$8 sm:$0xf0] }
 0x9ed   :  { %7869 = vmatpush1.bf16.msra.mxu0 %v7868_v44  ;;  %7933 = vmatpush1.bf16.msra.mxu1 %v7932_v47  ;;  %v5087_v44 = vld [vmem:[#allocation4 + $0x78] sm:$0xff]  ;;  %v4434_v35 = vor.u32 %v4433_v58, %v4432_v57 }
 0x9ee   :  { %7871 = vmatprep.subr.bf16.mxu0 %v7870_v61  ;;  %7935 = vmatprep.subr.bf16.mxu1 %v7934_v39  ;;  %v8006_v60 = vpack.c.bf16 %v5087_v44, %v5079_v59  ;;  %v5095_v57 = vld [vmem:[#allocation4 + $0xb8] sm:$0xff] }
 0x9ef   :  { %v5103_v58 = vld [vmem:[#allocation4 + $0xf8] sm:$0xff] }
 0x9f1   :  { %7873 = vmatpush1.bf16.msra.mxu0 %v7872_v50  ;;  %7937 = vmatpush1.bf16.msra.mxu1 %v7936_v37 }
 0x9f2   :  { %7875 = vmatprep.subr.bf16.mxu0 %v7874_v49  ;;  %7939 = vmatprep.subr.bf16.mxu1 %v7938_v36 }
 0x9f5   :  { %7877 = vmatpush1.bf16.msra.mxu0 %v7876_v40  ;;  %7941 = vmatpush1.bf16.msra.mxu1 %v7940_v62 }
 0x9f6   :  { %7943 = vmatprep.subr.bf16.mxu0 %v7942_v56  ;;  %8007 = vmatprep.subr.bf16.mxu1 %v8006_v60 }
 0xa4b   :  { %v4768_v47 = vpop.f32.mrb[28].mxu0  ;;  %v4839_v61 = vpop.f32.mrb[28].mxu1 }
 0xa4c   :  { %v4770_v0 = vpop.f32.mrb[29].mxu0  ;;  %v4841_v33 = vpop.f32.mrb[29].mxu1 }
 0xa4d   :  { %v4994_v52 = vcombine.low %v4768_v47, %v4770_v0  ;;  %v4995_v39 = vcombine.low %v4839_v61, %v4841_v33 }
 0xa4f   :  { %v5004_v34 = vrot.slane %v4994_v52, %v8492_v63  ;;  %v5011_v43 = vrot.slane %v4995_v39, %v8492_v63 }
 0xa51   :  { %v5026_v38 = vcombine.low %v5004_v34, %v5011_v43 }
 0xa53   :  { %v5034_v62 = vrot.slane %v5026_v38, %v8492_v63 }
 0xa8b   :  { %v4910_v46 = vpop.f32.mrb[30].mxu0  ;;  %v4981_v51 = vpop.f32.mrb[30].mxu1 }
 0xa8c   :  { %v4912_v50 = vpop.f32.mrb[31].mxu0  ;;  %v4983_v37 = vpop.f32.mrb[31].mxu1 }
 0xa8d   :  { %v4996_v49 = vcombine.low %v4910_v46, %v4912_v50  ;;  %v4997_v55 = vcombine.low %v4981_v51, %v4983_v37  ;;  %v5076_v46 = vld [vmem:[#allocation4 + $0x20] sm:$0xff]  ;;  %v5078_v37 = vld [vmem:[#allocation4 + $0x30] sm:$0xff] }
 0xa8e   :  { %v5084_v50 = vld [vmem:[#allocation4 + $0x60] sm:$0xff] }
 0xa8f   :  { %v5018_v53 = vrot.slane %v4996_v49, %v8492_v63  ;;  %v5025_v36 = vrot.slane %v4997_v55, %v8492_v63  ;;  %v5086_v49 = vld [vmem:[#allocation4 + $0x70] sm:$0xff] }
 0xa91   :  { %v5027_v40 = vcombine.low %v5018_v53, %v5025_v36  ;;  %v5093_v53 = vld [vmem:[#allocation4 + $0xa8] sm:$0xff] }
 0xa92   :  { %v5101_v36 = vld [vmem:[#allocation4 + $0xe8] sm:$0xff] }
 0xa93   :  { %v5041_v41 = vrot.slane %v5027_v40, %v8492_v63 }
 0xa95   :  { %v5042_v59 = vcombine.low %v5034_v62, %v5041_v41  ;;  %v7944_v62 = vpack.c.bf16 %v5084_v50, %v5076_v46  ;;  %v5092_v41 = vld [vmem:[#allocation4 + $0xa0] sm:$0xff]  ;;  %v5118_v50 = vld [vmem:[#allocation4 + $0x170] sm:$0xff] }
 0xa97   :  { %v5044_v56 = vadd.f32 %v5042_v59, %v4434_v35  ;;  %v8008_v35 = vpack.c.bf16 %v5086_v49, %v5078_v37  ;;  %v5100_v59 = vld [vmem:[#allocation4 + $0xe0] sm:$0xff]  ;;  %v5125_v37 = vld [vmem:[#allocation4 + $0x1a8] sm:$0xff] }
 0xa98   :  { %v5133_v49 = vld [vmem:[#allocation4 + $0x1e8] sm:$0xff] }
 0xa99   :  { %v5854_v44 = vmul.f32 -1.442695, %v5044_v56  ;;  %v5052_v61 = vrot.slane %v5044_v56, 6  ;;  %v5094_v56 = vld [vmem:[#allocation4 + $0xb0] sm:$0xff] }
 0xa9b   :  { %8156 = vpow2.f32 %v5854_v44  ;;  %v5102_v44 = vld [vmem:[#allocation4 + $0xf0] sm:$0xff] }
 0xaa5   :  { %v8157_v60 = vpop.eup %8156 }
 0xaa6   :  { %v5048_v47 = vadd.f32 1.0, %v8157_v60  ;;  %v5109_v60 = vld [vmem:[#allocation4 + $0x128] sm:$0xff] }
 0xaa8   :  { %8158 = vrcp.f32 %v5048_v47  ;;  %v7946_v47 = vpack.c.bf16 %v5101_v36, %v5093_v53  ;;  %v5135_v53 = vld [vmem:[#allocation4 + $0x1f8] sm:$0xff] }
 0xaa9   :  { %8160 = vtanh.f32 %v5052_v61  ;;  %v8010_v61 = vpack.c.bf16 %v5103_v58, %v5095_v57  ;;  %v5124_v58 = vld [vmem:[#allocation4 + $0x1a0] sm:$0xff] }
 0xab2   :  { %v8159_v0 = vpop.eup %8158 }
 0xab3   :  { %v5056_v33 = vrot.slane %v8159_v0, 2  ;;  %v8161_v52 = vpop.eup %8160  ;;  %v5062_v38 = vrot.slane %v8159_v0, 4 }
 0xab4   :  { %v5059_v39 = vmul.f32 %v8161_v52, %v8159_v0  ;;  %v5117_v0 = vld [vmem:[#allocation4 + $0x168] sm:$0xff]  ;;  %v5119_v52 = vld [vmem:[#allocation4 + $0x178] sm:$0xff] }
 0xab5   :  { %v5058_v34 = vmul.f32 %v5056_v33, %v8605_v54  ;;  %v5111_v33 = vld [vmem:[#allocation4 + $0x138] sm:$0xff] }
 0xab6   :  { %v8014_v46 = vpack.c.bf16 %v5119_v52, %v5111_v33  ;;  %v5140_v33 = vld [vmem:[#allocation4 + $0x220] sm:$0xff] }
 0xab7   :  { %v8625_v43 = vadd.f32 %v5059_v39, %v5058_v34  ;;  %v5108_v39 = vld [vmem:[#allocation4 + $0x120] sm:$0xff] }
 0xab8   :  { %v5116_v34 = vld [vmem:[#allocation4 + $0x160] sm:$0xff] }
 0xab9   :  { %8162 = vtanh.f32 %v8625_v43  ;;  %v7952_v36 = vpack.c.bf16 %v5116_v34, %v5108_v39  ;;  %v5148_v52 = vld [vmem:[#allocation4 + $0x260] sm:$0xff]  ;;  %v5142_v39 = vld [vmem:[#allocation4 + $0x230] sm:$0xff] }
 0xaba   :  { %v5150_v34 = vld [vmem:[#allocation4 + $0x270] sm:$0xff] }
 0xac3   :  { %v8163_v51 = vpop.eup %8162 }
 0xac4   :  { %v5064_v55 = vmul.f32 %v8163_v51, %v5062_v38  ;;  %v7950_v38 = vpack.c.bf16 %v5117_v0, %v5109_v60  ;;  %v5110_v51 = vld [vmem:[#allocation4 + $0x130] sm:$0xff]  ;;  %v5143_v60 = vld [vmem:[#allocation4 + $0x238] sm:$0xff] }
 0xac5   :  { %v8016_v57 = vpack.c.bf16 %v5118_v50, %v5110_v51  ;;  %v5159_v51 = vld [vmem:[#allocation4 + $0x2b8] sm:$0xff] }
 0xac6   :  { %5066 = vst.msk [vmem:[#allocation3 + $0x6] ss:$8 sm:$0x3] %vm8504_vm0, %v5064_v55  ;;  %v5336_v54 = vrot.slane %v5064_v55, %v8474_v48  ;;  %v8632_v40 = vrot.slane %v5064_v55, %v8467_v45  ;;  %v7948_v45 = vpack.c.bf16 %v5100_v59, %v5092_v41  ;;  %v8012_v48 = vpack.c.bf16 %v5102_v44, %v5094_v56  ;;  %v5127_v55 = vld [vmem:[#allocation4 + $0x1b8] sm:$0xff]  ;;  %v5126_v41 = vld [vmem:[#allocation4 + $0x1b0] sm:$0xff]  ;;  %v5141_v56 = vld [vmem:[#allocation4 + $0x228] sm:$0xff] }
 0xac7   :  { %v5134_v59 = vld [vmem:[#allocation4 + $0x1f0] sm:$0xff]  ;;  %v5149_v44 = vld [vmem:[#allocation4 + $0x268] sm:$0xff]  ;;  %v5167_v50 = vld [vmem:[#allocation4 + $0x2f8] sm:$0xff] }
 0xac8   :  { %5403 = vmatprep.mubr.f32.mxu0 %v5336_v54  ;;  %5474 = vmatprep.mubr.f32.mxu1 %v5336_v54  ;;  %v8020_v0 = vpack.c.bf16 %v5134_v59, %v5126_v41  ;;  %v5175_v41 = vld [vmem:[#allocation4 + $0x338] sm:$0xff] }
 0xac9   :  { %5404 = vmatmul.mubr.f32.vlgmr.msra.gmra.mrb[32].mxu0 %v8632_v40  ;;  %5475 = vmatmul.mubr.f32.vlgmr.msra.gmra.mrb[32].mxu1 %v8632_v40  ;;  %v5183_v59 = vld [vmem:[#allocation4 + $0x378] sm:$0xff] }
 0xaca   :  { %7945 = vmatpush1.bf16.msra.mxu0 %v7944_v62  ;;  %8009 = vmatpush1.bf16.msra.mxu1 %v8008_v35  ;;  %v5132_v62 = vld [vmem:[#allocation4 + $0x1e0] sm:$0xff]  ;;  %v7954_v35 = vpack.c.bf16 %v5133_v49, %v5125_v37  ;;  %v7960_v37 = vpack.c.bf16 %v5148_v52, %v5140_v33  ;;  %v8024_v49 = vpack.c.bf16 %v5150_v34, %v5142_v39  ;;  %v5174_v33 = vld [vmem:[#allocation4 + $0x330] sm:$0xff]  ;;  %v5191_v39 = vld [vmem:[#allocation4 + $0x3b8] sm:$0xff] }
 0xacb   :  { %5545 = vmatprep.mubr.f32.mxu0 %v5336_v54  ;;  %5616 = vmatprep.mubr.f32.mxu1 %v5336_v54  ;;  %v8018_v54 = vpack.c.bf16 %v5135_v53, %v5127_v55  ;;  %v5156_v55 = vld [vmem:[#allocation4 + $0x2a0] sm:$0xff]  ;;  %v5182_v52 = vld [vmem:[#allocation4 + $0x370] sm:$0xff]  ;;  %v5199_v34 = vld [vmem:[#allocation4 + $0x3f8] sm:$0xff] }
 0xacc   :  { %7947 = vmatprep.subr.bf16.mxu0 %v7946_v47  ;;  %8011 = vmatprep.subr.bf16.mxu1 %v8010_v61  ;;  %v5151_v47 = vld [vmem:[#allocation4 + $0x278] sm:$0xff]  ;;  %v7956_v61 = vpack.c.bf16 %v5132_v62, %v5124_v58  ;;  %v5164_v53 = vld [vmem:[#allocation4 + $0x2e0] sm:$0xff]  ;;  %v5158_v58 = vld [vmem:[#allocation4 + $0x2b0] sm:$0xff] }
 0xacd   :  { %v5166_v62 = vld [vmem:[#allocation4 + $0x2f0] sm:$0xff] }
 0xace   :  { %7949 = vmatpush1.bf16.msra.mxu0 %v7948_v45  ;;  %8013 = vmatpush1.bf16.msra.mxu1 %v8012_v48  ;;  %v7958_v45 = vpack.c.bf16 %v5149_v44, %v5141_v56  ;;  %v8022_v48 = vpack.c.bf16 %v5151_v47, %v5143_v60  ;;  %v7964_v56 = vpack.c.bf16 %v5164_v53, %v5156_v55  ;;  %v5172_v60 = vld [vmem:[#allocation4 + $0x320] sm:$0xff]  ;;  %v5190_v55 = vld [vmem:[#allocation4 + $0x3b0] sm:$0xff] }
 0xacf   :  { %7951 = vmatprep.subr.bf16.mxu0 %v7950_v38  ;;  %8015 = vmatprep.subr.bf16.mxu1 %v8014_v46  ;;  %v5157_v38 = vld [vmem:[#allocation4 + $0x2a8] sm:$0xff]  ;;  %v8028_v44 = vpack.c.bf16 %v5166_v62, %v5158_v58  ;;  %v5180_v47 = vld [vmem:[#allocation4 + $0x360] sm:$0xff]  ;;  %v5198_v53 = vld [vmem:[#allocation4 + $0x3f0] sm:$0xff] }
 0xad0   :  { %v5165_v46 = vld [vmem:[#allocation4 + $0x2e8] sm:$0xff]  ;;  %v5207_v58 = vld [vmem:[#allocation4 + $0x438] sm:$0xff] }
 0xad1   :  { %v5215_v62 = vld [vmem:[#allocation4 + $0x478] sm:$0xff] }
 0xad2   :  { %7953 = vmatpush1.bf16.msra.mxu0 %v7952_v36  ;;  %8017 = vmatpush1.bf16.msra.mxu1 %v8016_v57  ;;  %v7962_v36 = vpack.c.bf16 %v5165_v46, %v5157_v38  ;;  %v8026_v57 = vpack.c.bf16 %v5167_v50, %v5159_v51  ;;  %v7968_v38 = vpack.c.bf16 %v5180_v47, %v5172_v60  ;;  %v5188_v51 = vld [vmem:[#allocation4 + $0x3a0] sm:$0xff]  ;;  %v5206_v60 = vld [vmem:[#allocation4 + $0x430] sm:$0xff] }
 0xad3   :  { %7955 = vmatprep.subr.bf16.mxu0 %v7954_v35  ;;  %8019 = vmatprep.subr.bf16.mxu1 %v8018_v54  ;;  %v5173_v35 = vld [vmem:[#allocation4 + $0x328] sm:$0xff]  ;;  %v8032_v46 = vpack.c.bf16 %v5182_v52, %v5174_v33  ;;  %v5196_v50 = vld [vmem:[#allocation4 + $0x3e0] sm:$0xff]  ;;  %v5214_v47 = vld [vmem:[#allocation4 + $0x470] sm:$0xff] }
 0xad4   :  { %v5181_v54 = vld [vmem:[#allocation4 + $0x368] sm:$0xff]  ;;  %v5223_v33 = vld [vmem:[#allocation4 + $0x4b8] sm:$0xff] }
 0xad5   :  { %v5231_v52 = vld [vmem:[#allocation4 + $0x4f8] sm:$0xff] }
 0xad6   :  { %7957 = vmatpush1.bf16.msra.mxu0 %v7956_v61  ;;  %8021 = vmatpush1.bf16.msra.mxu1 %v8020_v0  ;;  %v7966_v61 = vpack.c.bf16 %v5181_v54, %v5173_v35  ;;  %v8030_v0 = vpack.c.bf16 %v5183_v59, %v5175_v41  ;;  %v7972_v35 = vpack.c.bf16 %v5196_v50, %v5188_v51  ;;  %v5204_v41 = vld [vmem:[#allocation4 + $0x420] sm:$0xff]  ;;  %v5222_v51 = vld [vmem:[#allocation4 + $0x4b0] sm:$0xff] }
 0xad7   :  { %7959 = vmatprep.subr.bf16.mxu0 %v7958_v45  ;;  %8023 = vmatprep.subr.bf16.mxu1 %v8022_v48  ;;  %v5189_v45 = vld [vmem:[#allocation4 + $0x3a8] sm:$0xff]  ;;  %v8036_v54 = vpack.c.bf16 %v5198_v53, %v5190_v55  ;;  %v5212_v59 = vld [vmem:[#allocation4 + $0x460] sm:$0xff]  ;;  %v5230_v50 = vld [vmem:[#allocation4 + $0x4f0] sm:$0xff] }
 0xad8   :  { %v5197_v48 = vld [vmem:[#allocation4 + $0x3e8] sm:$0xff]  ;;  %v5239_v55 = vld [vmem:[#allocation4 + $0x538] sm:$0xff] }
 0xad9   :  { %v5247_v53 = vld [vmem:[#allocation4 + $0x578] sm:$0xff] }
 0xada   :  { %7961 = vmatpush1.bf16.msra.mxu0 %v7960_v37  ;;  %8025 = vmatpush1.bf16.msra.mxu1 %v8024_v49  ;;  %v7970_v37 = vpack.c.bf16 %v5197_v48, %v5189_v45  ;;  %v8034_v49 = vpack.c.bf16 %v5199_v34, %v5191_v39  ;;  %v7976_v45 = vpack.c.bf16 %v5212_v59, %v5204_v41  ;;  %v5220_v39 = vld [vmem:[#allocation4 + $0x4a0] sm:$0xff]  ;;  %v5238_v41 = vld [vmem:[#allocation4 + $0x530] sm:$0xff] }
 0xadb   :  { %7963 = vmatprep.subr.bf16.mxu0 %v7962_v36  ;;  %8027 = vmatprep.subr.bf16.mxu1 %v8026_v57  ;;  %v5205_v36 = vld [vmem:[#allocation4 + $0x428] sm:$0xff]  ;;  %v8040_v48 = vpack.c.bf16 %v5214_v47, %v5206_v60  ;;  %v5228_v34 = vld [vmem:[#allocation4 + $0x4e0] sm:$0xff]  ;;  %v5246_v59 = vld [vmem:[#allocation4 + $0x570] sm:$0xff] }
 0xadc   :  { %v5213_v57 = vld [vmem:[#allocation4 + $0x468] sm:$0xff]  ;;  %v5255_v60 = vld [vmem:[#allocation4 + $0x5b8] sm:$0xff] }
 0xadd   :  { %v5263_v47 = vld [vmem:[#allocation4 + $0x5f8] sm:$0xff] }
 0xade   :  { %7965 = vmatpush1.bf16.msra.mxu0 %v7964_v56  ;;  %8029 = vmatpush1.bf16.msra.mxu1 %v8028_v44  ;;  %v7974_v56 = vpack.c.bf16 %v5213_v57, %v5205_v36  ;;  %v8038_v44 = vpack.c.bf16 %v5215_v62, %v5207_v58  ;;  %v7980_v36 = vpack.c.bf16 %v5228_v34, %v5220_v39  ;;  %v5236_v58 = vld [vmem:[#allocation4 + $0x520] sm:$0xff]  ;;  %v5254_v39 = vld [vmem:[#allocation4 + $0x5b0] sm:$0xff] }
 0xadf   :  { %7967 = vmatprep.subr.bf16.mxu0 %v7966_v61  ;;  %8031 = vmatprep.subr.bf16.mxu1 %v8030_v0  ;;  %v5221_v61 = vld [vmem:[#allocation4 + $0x4a8] sm:$0xff]  ;;  %v8044_v57 = vpack.c.bf16 %v5230_v50, %v5222_v51  ;;  %v5244_v62 = vld [vmem:[#allocation4 + $0x560] sm:$0xff]  ;;  %v5262_v34 = vld [vmem:[#allocation4 + $0x5f0] sm:$0xff] }
 0xae0   :  { %v5229_v0 = vld [vmem:[#allocation4 + $0x4e8] sm:$0xff]  ;;  %v5271_v51 = vld [vmem:[#allocation4 + $0x638] sm:$0xff] }
 0xae1   :  { %v5279_v50 = vld [vmem:[#allocation4 + $0x678] sm:$0xff] }
 0xae2   :  { %7969 = vmatpush1.bf16.msra.mxu0 %v7968_v38  ;;  %8033 = vmatpush1.bf16.msra.mxu1 %v8032_v46  ;;  %v7978_v38 = vpack.c.bf16 %v5229_v0, %v5221_v61  ;;  %v8042_v46 = vpack.c.bf16 %v5231_v52, %v5223_v33  ;;  %v7984_v61 = vpack.c.bf16 %v5244_v62, %v5236_v58  ;;  %v5252_v33 = vld [vmem:[#allocation4 + $0x5a0] sm:$0xff]  ;;  %v5270_v58 = vld [vmem:[#allocation4 + $0x630] sm:$0xff] }
 0xae3   :  { %7971 = vmatprep.subr.bf16.mxu0 %v7970_v37  ;;  %8035 = vmatprep.subr.bf16.mxu1 %v8034_v49  ;;  %v5237_v37 = vld [vmem:[#allocation4 + $0x528] sm:$0xff]  ;;  %v8048_v0 = vpack.c.bf16 %v5246_v59, %v5238_v41  ;;  %v5260_v52 = vld [vmem:[#allocation4 + $0x5e0] sm:$0xff]  ;;  %v5278_v62 = vld [vmem:[#allocation4 + $0x670] sm:$0xff] }
 0xae4   :  { %v5245_v49 = vld [vmem:[#allocation4 + $0x568] sm:$0xff]  ;;  %v5287_v41 = vld [vmem:[#allocation4 + $0x6b8] sm:$0xff] }
 0xae5   :  { %v5295_v59 = vld [vmem:[#allocation4 + $0x6f8] sm:$0xff] }
 0xae6   :  { %7973 = vmatpush1.bf16.msra.mxu0 %v7972_v35  ;;  %8037 = vmatpush1.bf16.msra.mxu1 %v8036_v54  ;;  %v7982_v35 = vpack.c.bf16 %v5245_v49, %v5237_v37  ;;  %v8046_v54 = vpack.c.bf16 %v5247_v53, %v5239_v55  ;;  %v7988_v37 = vpack.c.bf16 %v5260_v52, %v5252_v33  ;;  %v5268_v55 = vld [vmem:[#allocation4 + $0x620] sm:$0xff]  ;;  %v5286_v33 = vld [vmem:[#allocation4 + $0x6b0] sm:$0xff] }
 0xae7   :  { %7975 = vmatprep.subr.bf16.mxu0 %v7974_v56  ;;  %8039 = vmatprep.subr.bf16.mxu1 %v8038_v44  ;;  %v5253_v56 = vld [vmem:[#allocation4 + $0x5a8] sm:$0xff]  ;;  %v8052_v49 = vpack.c.bf16 %v5262_v34, %v5254_v39  ;;  %v5276_v53 = vld [vmem:[#allocation4 + $0x660] sm:$0xff]  ;;  %v5294_v52 = vld [vmem:[#allocation4 + $0x6f0] sm:$0xff] }
 0xae8   :  { %v5261_v44 = vld [vmem:[#allocation4 + $0x5e8] sm:$0xff]  ;;  %v5303_v39 = vld [vmem:[#allocation4 + $0x738] sm:$0xff] }
 0xae9   :  { %v5311_v34 = vld [vmem:[#allocation4 + $0x778] sm:$0xff] }
 0xaea   :  { %7977 = vmatpush1.bf16.msra.mxu0 %v7976_v45  ;;  %8041 = vmatpush1.bf16.msra.mxu1 %v8040_v48  ;;  %v7986_v45 = vpack.c.bf16 %v5261_v44, %v5253_v56  ;;  %v8050_v48 = vpack.c.bf16 %v5263_v47, %v5255_v60  ;;  %v7992_v56 = vpack.c.bf16 %v5276_v53, %v5268_v55  ;;  %v5284_v60 = vld [vmem:[#allocation4 + $0x6a0] sm:$0xff]  ;;  %v5302_v55 = vld [vmem:[#allocation4 + $0x730] sm:$0xff] }
 0xaeb   :  { %7979 = vmatprep.subr.bf16.mxu0 %v7978_v38  ;;  %8043 = vmatprep.subr.bf16.mxu1 %v8042_v46  ;;  %v5269_v38 = vld [vmem:[#allocation4 + $0x628] sm:$0xff]  ;;  %v8056_v44 = vpack.c.bf16 %v5278_v62, %v5270_v58  ;;  %v5292_v47 = vld [vmem:[#allocation4 + $0x6e0] sm:$0xff]  ;;  %v5310_v53 = vld [vmem:[#allocation4 + $0x770] sm:$0xff] }
 0xaec   :  { %v5277_v46 = vld [vmem:[#allocation4 + $0x668] sm:$0xff]  ;;  %v5319_v58 = vld [vmem:[#allocation4 + $0x7b8] sm:$0xff] }
 0xaed   :  { %v5327_v62 = vld [vmem:[#allocation4 + $0x7f8] sm:$0xff] }
 0xaee   :  { %7981 = vmatpush1.bf16.msra.mxu0 %v7980_v36  ;;  %8045 = vmatpush1.bf16.msra.mxu1 %v8044_v57  ;;  %v7990_v36 = vpack.c.bf16 %v5277_v46, %v5269_v38  ;;  %v8054_v57 = vpack.c.bf16 %v5279_v50, %v5271_v51  ;;  %v7996_v38 = vpack.c.bf16 %v5292_v47, %v5284_v60  ;;  %v5300_v51 = vld [vmem:[#allocation4 + $0x720] sm:$0xff]  ;;  %v5318_v60 = vld [vmem:[#allocation4 + $0x7b0] sm:$0xff] }
 0xaef   :  { %7983 = vmatprep.subr.bf16.mxu0 %v7982_v35  ;;  %8047 = vmatprep.subr.bf16.mxu1 %v8046_v54  ;;  %v5285_v35 = vld [vmem:[#allocation4 + $0x6a8] sm:$0xff]  ;;  %v8060_v46 = vpack.c.bf16 %v5294_v52, %v5286_v33  ;;  %v5308_v50 = vld [vmem:[#allocation4 + $0x760] sm:$0xff]  ;;  %v5326_v47 = vld [vmem:[#allocation4 + $0x7f0] sm:$0xff] }
 0xaf0   :  { %v5293_v54 = vld [vmem:[#allocation4 + $0x6e8] sm:$0xff] }
 0xaf2   :  { %7985 = vmatpush1.bf16.msra.mxu0 %v7984_v61  ;;  %8049 = vmatpush1.bf16.msra.mxu1 %v8048_v0  ;;  %v7994_v61 = vpack.c.bf16 %v5293_v54, %v5285_v35  ;;  %v8058_v0 = vpack.c.bf16 %v5295_v59, %v5287_v41  ;;  %v8000_v35 = vpack.c.bf16 %v5308_v50, %v5300_v51  ;;  %v5316_v41 = vld [vmem:[#allocation4 + $0x7a0] sm:$0xff] }
 0xaf3   :  { %7987 = vmatprep.subr.bf16.mxu0 %v7986_v45  ;;  %8051 = vmatprep.subr.bf16.mxu1 %v8050_v48  ;;  %v5301_v45 = vld [vmem:[#allocation4 + $0x728] sm:$0xff]  ;;  %v8064_v54 = vpack.c.bf16 %v5310_v53, %v5302_v55 }
 0xaf4   :  { %v5309_v48 = vld [vmem:[#allocation4 + $0x768] sm:$0xff] }
 0xaf6   :  { %7989 = vmatpush1.bf16.msra.mxu0 %v7988_v37  ;;  %8053 = vmatpush1.bf16.msra.mxu1 %v8052_v49  ;;  %v7998_v37 = vpack.c.bf16 %v5309_v48, %v5301_v45  ;;  %v8062_v49 = vpack.c.bf16 %v5311_v34, %v5303_v39 }
 0xaf7   :  { %7991 = vmatprep.subr.bf16.mxu0 %v7990_v36  ;;  %8055 = vmatprep.subr.bf16.mxu1 %v8054_v57  ;;  %v5317_v36 = vld [vmem:[#allocation4 + $0x7a8] sm:$0xff] }
 0xaf8   :  { %v5325_v57 = vld [vmem:[#allocation4 + $0x7e8] sm:$0xff] }
 0xaf9   :  { %v8002_v59 = vpack.c.bf16 %v5325_v57, %v5317_v36 }
 0xafa   :  { %7993 = vmatpush1.bf16.msra.mxu0 %v7992_v56  ;;  %8057 = vmatpush1.bf16.msra.mxu1 %v8056_v44  ;;  %v8066_v56 = vpack.c.bf16 %v5327_v62, %v5319_v58  ;;  %v5324_v44 = vld [vmem:[#allocation4 + $0x7e0] sm:$0xff] }
 0xafb   :  { %7995 = vmatprep.subr.bf16.mxu0 %v7994_v61  ;;  %8059 = vmatprep.subr.bf16.mxu1 %v8058_v0  ;;  %v8004_v61 = vpack.c.bf16 %v5324_v44, %v5316_v41  ;;  %v8068_v0 = vpack.c.bf16 %v5326_v47, %v5318_v60  ;;  %v5069_v58 = vld [vmem:[#allocation2 + $0x7] ss:$8 sm:$0xf] }
 0xafc   :  { %v5070_v62 = vld [vmem:[#allocation2 + $0x7] ss:$8 sm:$0xf0] }
 0xafd   :  { %v5071_v41 = vor.u32 %v5070_v62, %v5069_v58 }
 0xafe   :  { %7997 = vmatpush1.bf16.msra.mxu0 %v7996_v38  ;;  %8061 = vmatpush1.bf16.msra.mxu1 %v8060_v46 }
 0xaff   :  { %7999 = vmatprep.subr.bf16.mxu0 %v7998_v37  ;;  %8063 = vmatprep.subr.bf16.mxu1 %v8062_v49 }
 0xb02   :  { %8001 = vmatpush1.bf16.msra.mxu0 %v8000_v35  ;;  %8065 = vmatpush1.bf16.msra.mxu1 %v8064_v54 }
 0xb03   :  { %8003 = vmatprep.subr.bf16.mxu0 %v8002_v59  ;;  %8067 = vmatprep.subr.bf16.mxu1 %v8066_v56 }
 0xb06   :  { %8005 = vmatpush1.bf16.msra.mxu0 %v8004_v61  ;;  %8069 = vmatpush1.bf16.msra.mxu1 %v8068_v0 }
 0xb09   :  { %5546 = vmatmul.mubr.f32.vlgmr.msra.gmra.mrb[34].mxu0 %v8632_v40  ;;  %5617 = vmatmul.mubr.f32.vlgmr.msra.gmra.mrb[34].mxu1 %v8632_v40 }
 0xb9c   :  { %v5405_v33 = vpop.f32.mrb[32].mxu0  ;;  %v5476_v52 = vpop.f32.mrb[32].mxu1 }
 0xb9d   :  { %v5407_v45 = vpop.f32.mrb[33].mxu0  ;;  %v5478_v48 = vpop.f32.mrb[33].mxu1 }
 0xb9e   :  { %v5631_v39 = vcombine.low %v5405_v33, %v5407_v45  ;;  %v5632_v34 = vcombine.low %v5476_v52, %v5478_v48 }
 0xba0   :  { %v5641_v38 = vrot.slane %v5631_v39, %v8492_v63  ;;  %v5648_v46 = vrot.slane %v5632_v34, %v8492_v63 }
 0xba2   :  { %v5663_v51 = vcombine.low %v5641_v38, %v5648_v46 }
 0xba4   :  { %v5671_v54 = vrot.slane %v5663_v51, %v8492_v63  ;;  %v8070_v51 = vpack.c.bf16 %v8378_v18, %v8373_v17 }
 0xbdc   :  { %v5547_v50 = vpop.f32.mrb[34].mxu0  ;;  %v5618_v37 = vpop.f32.mrb[34].mxu1 }
 0xbdd   :  { %v5549_v49 = vpop.f32.mrb[35].mxu0  ;;  %v5620_v55 = vpop.f32.mrb[35].mxu1 }
 0xbde   :  { %v5633_v53 = vcombine.low %v5547_v50, %v5549_v49  ;;  %v5634_v36 = vcombine.low %v5618_v37, %v5620_v55  ;;  %v8072_v50 = vpack.c.bf16 %v8298_v2, %v8293_v1  ;;  %v8074_v37 = vpack.c.bf16 %v8388_v20, %v8383_v19 }
 0xbe0   :  { %v5655_v57 = vrot.slane %v5633_v53, %v8492_v63  ;;  %v5662_v40 = vrot.slane %v5634_v36, %v8492_v63 }
 0xbe2   :  { %v5664_v35 = vcombine.low %v5655_v57, %v5662_v40 }
 0xbe4   :  { %v5678_v59 = vrot.slane %v5664_v35, %v8492_v63 }
 0xbe6   :  { %v5679_v56 = vcombine.low %v5671_v54, %v5678_v59 }
 0xbe8   :  { %v5681_v44 = vadd.f32 %v5679_v56, %v5071_v41 }
 0xbea   :  { %v5855_v60 = vmul.f32 -1.442695, %v5681_v44  ;;  %v5689_v0 = vrot.slane %v5681_v44, 6 }
 0xbec   :  { %8164 = vpow2.f32 %v5855_v60 }
 0xbf6   :  { %v8165_v47 = vpop.eup %8164 }
 0xbf7   :  { %v5685_v61 = vadd.f32 1.0, %v8165_v47 }
 0xbf9   :  { %8166 = vrcp.f32 %v5685_v61 }
 0xbfa   :  { %8168 = vtanh.f32 %v5689_v0 }
 0xc03   :  { %v8167_v33 = vpop.eup %8166 }
 0xc04   :  { %v5693_v52 = vrot.slane %v8167_v33, 2  ;;  %v8169_v45 = vpop.eup %8168  ;;  %v5699_v38 = vrot.slane %v8167_v33, 4 }
 0xc05   :  { %v5696_v39 = vmul.f32 %v8169_v45, %v8167_v33 }
 0xc06   :  { %v5695_v48 = vmul.f32 %v5693_v52, %v8625_v43 }
 0xc08   :  { %v5697_v34 = vadd.f32 %v5696_v39, %v5695_v48 }
 0xc0a   :  { %8170 = vtanh.f32 %v5697_v34 }
 0xc14   :  { %v8171_v46 = vpop.eup %8170 }
 0xc15   :  { %v5701_v63 = vmul.f32 %v8171_v46, %v5699_v38 }
 0xc17   :  { %5703 = vst.msk [vmem:[#allocation3 + $0x7] ss:$8 sm:$0x3] %vm8504_vm0, %v5701_v63 }
 0xc18   :  { %8220 = dma.done.wait [#allocation6 + $0x1], 4096 }
 0xc19   :  { %8221 = vsyncadd [#allocation6 + $0x1], 4294963200  ;;  %8071 = vmatprep.subr.bf16.mxu0 %v8070_v51  ;;  %v8076_v43 = vpack.c.bf16 %v8308_v4, %v8303_v3  ;;  %v8078_v42 = vpack.c.bf16 %v8398_v22, %v8393_v21  ;;  %v8080_v17 = vpack.c.bf16 %v8318_v6, %v8313_v5  ;;  %v8082_v1 = vpack.c.bf16 %v8408_v24, %v8403_v23 }
 0xc1a   :  { %8073 = vmatpush3.bf16.msra.mxu0 %v8072_v50  ;;  %v8084_v2 = vpack.c.bf16 %v8328_v8, %v8323_v7  ;;  %v8086_v3 = vpack.c.bf16 %v8418_v26, %v8413_v25  ;;  %v8088_v4 = vpack.c.bf16 %v8338_v10, %v8333_v9  ;;  %v8090_v5 = vpack.c.bf16 %v8428_v28, %v8423_v27 }
 0xc1b   :  { %8075 = vmatprep.subr.bf16.mxu0 %v8074_v37  ;;  %v8092_v6 = vpack.c.bf16 %v8348_v12, %v8343_v11  ;;  %v8094_v7 = vpack.c.bf16 %v8438_v30, %v8433_v29  ;;  %v8096_v8 = vpack.c.bf16 %v8358_v14, %v8353_v13  ;;  %v8098_v9 = vpack.c.bf16 %v8448_v32, %v8443_v31  ;;  %v5856_v12 = vld [vmem:[#allocation7] ss:$0 sm:$0xff] }
 0xc1c   :  { %v8100_v10 = vpack.c.bf16 %v8368_v16, %v8363_v15  ;;  %vm5820_vm1 = vcmask 7168  }
 0xc1e   :  { %8077 = vmatpush3.bf16.msra.mxu0 %v8076_v43  ;;  %v5709_v18 = vld [vmem:[#allocation3 + $0x8] sm:$0xff]  ;;  %v5708_v19 = vld [vmem:[#allocation3] sm:$0xff] }
 0xc1f   :  { %8079 = vmatprep.subr.bf16.mxu0 %v8078_v42  ;;  %5813 = vmatprep.mubr.f32.mxu0 %v5709_v18 }
 0xc22   :  { %8081 = vmatpush3.bf16.msra.mxu0 %v8080_v17 }
 0xc23   :  { %8083 = vmatprep.subr.bf16.mxu0 %v8082_v1 }
 0xc26   :  { %8085 = vmatpush3.bf16.msra.mxu0 %v8084_v2 }
 0xc27   :  { %8087 = vmatprep.subr.bf16.mxu0 %v8086_v3 }
 0xc2a   :  { %8089 = vmatpush3.bf16.msra.mxu0 %v8088_v4 }
 0xc2b   :  { %8091 = vmatprep.subr.bf16.mxu0 %v8090_v5 }
 0xc2e   :  { %8093 = vmatpush3.bf16.msra.mxu0 %v8092_v6 }
 0xc2f   :  { %8095 = vmatprep.subr.bf16.mxu0 %v8094_v7 }
 0xc32   :  { %8097 = vmatpush3.bf16.msra.mxu0 %v8096_v8 }
 0xc33   :  { %8099 = vmatprep.subr.bf16.mxu0 %v8098_v9 }
 0xc36   :  { %8101 = vmatpush3.bf16.msra.mxu0 %v8100_v10 }
 0xc39   :  { %5814 = vmatmul.mubr.f32.vlgmr.msra.gmra.mrb[36].mxu0 %v5708_v19 }
 0xd0c   :  { %v5891_v11 = vpop.f32.mrb[36].mxu0 }
 0xd0d   :  { %v5892_v20 = vpop.f32.mrb[37].mxu0 }
 0xd0e   :  { %v5893_v21 = vadd.f32 %v5892_v20, %v5891_v11 }
 0xd10   :  { %v5816_v22 = vadd.f32 %v5893_v21, %v5856_v12 }
 0xd12   :  { %v5819_v23 = vmax.f32 %v5816_v22, 0.0 }
 0xd14   :  { %5821 = vst.msk [vmem:[%s8688_s6] sm:$0xff] %vm5820_vm1, %v5819_v23 }
 0xd15   :  { %5826 = vsyncpa [#allocation9], 1 }
 0xd16   :  { %5827 = vsyncmov [#allocation6] }
 0xd19   :  { %s5828_s10 = vpop.sfrf %5827 }
 0xd1a   :  { %p5857_p2 = scmp.ne.s32.totalorder %s5828_s10, 0 }
 0xd1c   :  { %5832 = shalt.err (%p5857_p2)  }
 0xd1d   :  { %5834 = vsyncmov [#allocation6 + $0x1] }
 0xd20   :  { %s5835_s11 = vpop.sfrf %5834 }
 0xd21   :  { %p5858_p3 = scmp.ne.s32.totalorder %s5835_s11, 0 }
 0xd23   :  { %5839 = shalt.err (%p5858_p3)  }

</bundles_post_ra>
